<compile_context>
chip_gen: v7x
topology: tpu7x:2x2x1
jax: 0.10.0
libtpu: 0.0.40
codegen_flags: <defaults>
</compile_context>

<pallas_src>
import functools

import numpy as np
import jax
import jax.numpy as jnp
from jax.experimental import pallas as pl
from jax.experimental.pallas import tpu as pltpu


# ----------------------------------------------------------------------------------
# Scaled-down ShuffleNetV2 configuration (same block structure as torchvision).
# ----------------------------------------------------------------------------------
STAGES_REPEATS = [2, 2, 2]           # torchvision uses [4, 8, 4]
STAGES_OUT = [16, 32, 64, 128, 256]  # torchvision x0_5 uses [24, 48, 96, 192, 1024]
INCLUDE_LABEL = 8
NUM_CLASSES = 10
HIDDEN = STAGES_OUT[4]               # shufflenetv2.fc.in_features (fc replaced by Identity)


def _round_up(a, b):
    return (a + b - 1) // b * b


# ----------------------------------------------------------------------------------
# Pallas kernels
# ----------------------------------------------------------------------------------
def _mm_bias_act_kernel(x_ref, w_ref, b_ref, o_ref, *, relu):
    """out = act(x @ w + bias) -- matmul with folded-BN bias and optional ReLU."""
    acc = jnp.dot(x_ref[...], w_ref[...], preferred_element_type=jnp.float32) + b_ref[...]
    if relu:
        acc = jnp.maximum(acc, 0.0)
    o_ref[...] = acc.astype(o_ref.dtype)


def _block_s1_kernel(x_ref, mask_ref, wp1_ref, bp1_ref, wd_ref, bd_ref,
                     w2_ref, b2_ref, se_ref, o_ref, *, H, W):
    """Fused stride-1 InvertedResidual for one image.

    x_ref: (1, (H+2)*(W+2), C) zero-padded, flattened pixels x channels.
    Output: (1, H, W, C) already channel-shuffled (x1 -> even, branch2 -> odd channels).
    """
    Wp = W + 2
    L = H * Wp - 2            # contiguous flattened window covering every valid output pixel
    q0 = Wp + 1               # flattened padded index of output pixel (0, 0)
    x = x_ref[0]              # (P, C)

    # branch2 pw1 (+folded BN) + ReLU; the channel split (x2) is folded into zero rows of wp1.
    h = jnp.dot(x, wp1_ref[...], preferred_element_type=jnp.float32) + bp1_ref[...]
    h = jnp.maximum(h, 0.0) * mask_ref[...]        # zero the spatial-padding pixels

    # depthwise 3x3 / stride 1 (+folded BN): 9 statically shifted row-slices of h.
    wd = wd_ref[...]
    acc = jnp.zeros((L, h.shape[1]), jnp.float32)
    for dy in range(3):
        for dx in range(3):
            k = (dy - 1) * Wp + (dx - 1)
            t = dy * 3 + dx
            acc = acc + h[q0 + k:q0 + k + L, :] * wd[t:t + 1, :]
    acc = acc + bd_ref[...]

    # x1 pass-through scattered to even channels (spreading matmul) + branch2 pw2(+BN)+ReLU
    # scattered to odd channels via expanded weights: concat + channel_shuffle are free here.
    out = jnp.dot(x[q0:q0 + L, :], se_ref[...], preferred_element_type=jnp.float32)
    out = out + jnp.maximum(
        jnp.dot(acc, w2_ref[...], preferred_element_type=jnp.float32) + b2_ref[...], 0.0)

    for r in range(H):        # drop the 2 padding columns carried per output row
        o_ref[0, r] = out[r * Wp:r * Wp + W, :].astype(o_ref.dtype)


def _block_s2_kernel(ph_ref, mask_ref, wd1_ref, bd1_ref, w1_ref, b1_ref,
                     wp1_ref, bp1_ref, wd2_ref, bd2_ref, w2_ref, b2_ref,
                     o_ref, *, Ho, Wo):
    """Fused stride-2 InvertedResidual for one image.

    ph_ref: (1, 4, (Ho+1)*(Wo+1), Cin) -- 4 even/odd parity slabs of the zero-padded input,
    so every 3x3/stride-2 tap is a contiguous static slice of one slab.
    Output: (1, Ho, Wo, Cout) already channel-shuffled (branch1 -> even, branch2 -> odd).
    """
    Wp = Wo + 1
    Lo = Ho * Wp - 1
    ph = [ph_ref[0, s] for s in range(4)]          # (Ps, Cin) each

    def dw_s2(slabs, wd_val):
        acc = jnp.zeros((Lo, slabs[0].shape[1]), jnp.float32)
        for dy in range(3):
            for dx in range(3):
                s = (dy % 2) * 2 + (dx % 2)
                off = (dy // 2) * Wp + (dx // 2)
                t = dy * 3 + dx
                acc = acc + slabs[s][off:off + Lo, :] * wd_val[t:t + 1, :]
        return acc

    # branch1: dw3x3/s2 (+BN) on the raw zero-padded input, then 1x1(+BN)+ReLU -> even channels
    acc1 = dw_s2(ph, wd1_ref[...]) + bd1_ref[...]
    out = jnp.maximum(
        jnp.dot(acc1, w1_ref[...], preferred_element_type=jnp.float32) + b1_ref[...], 0.0)

    # branch2: 1x1(+BN)+ReLU, dw3x3/s2 (+BN), 1x1(+BN)+ReLU -> odd channels
    hs = []
    for s in range(4):
        h = jnp.dot(ph[s], wp1_ref[...], preferred_element_type=jnp.float32) + bp1_ref[...]
        hs.append(jnp.maximum(h, 0.0) * mask_ref[s])   # zero spatial-padding pixels
    acc2 = dw_s2(hs, wd2_ref[...]) + bd2_ref[...]
    out = out + jnp.maximum(
        jnp.dot(acc2, w2_ref[...], preferred_element_type=jnp.float32) + b2_ref[...], 0.0)

    for i in range(Ho):       # drop the 1 garbage column carried per output row
        o_ref[0, i] = out[i * Wp:i * Wp + Wo, :].astype(o_ref.dtype)


def _maxpool_s2_kernel(ph_ref, o_ref, *, Ho, Wo):
    """MaxPool 3x3 / stride 2 / pad 1 on parity slabs of a -inf-padded input (one image)."""
    Wp = Wo + 1
    Lo = Ho * Wp - 1
    ph = [ph_ref[0, s] for s in range(4)]
    m = jnp.full((Lo, ph[0].shape[1]), -jnp.inf, jnp.float32)
    for dy in range(3):
        for dx in range(3):
            s = (dy % 2) * 2 + (dx % 2)
            off = (dy // 2) * Wp + (dx // 2)
            m = jnp.maximum(m, ph[s][off:off + Lo, :])
    for i in range(Ho):
        o_ref[0, i] = m[i * Wp:i * Wp + Wo, :].astype(o_ref.dtype)


def _conv5_gap_kernel(x_ref, w_ref, b_ref, o_ref):
    """conv5 (1x1 + folded BN) + ReLU fused with global average pooling (one image)."""
    y = jnp.dot(x_ref[0], w_ref[...], preferred_element_type=jnp.float32) + b_ref[...]
    y = jnp.maximum(y, 0.0)
    o_ref[0] = jnp.mean(y, axis=0, keepdims=True).astype(o_ref.dtype)


# ----------------------------------------------------------------------------------
# Wrappers (layout glue kept minimal: pad / parity split / reshape of small tensors)
# ----------------------------------------------------------------------------------
def matmul_bias_act(x, w, b, relu):
    """x:(M,K) w:(K,N) b:(1,N) -> (M,N), tiled over M with large row tiles."""
    M, K = x.shape
    N = w.shape[1]
    tm = min(512, _round_up(M, 8))
    Mp = _round_up(M, tm)
    xp = jnp.pad(x, ((0, Mp - M), (0, 0))) if Mp != M else x
    out = pl.pallas_call(
        functools.partial(_mm_bias_act_kernel, relu=relu),
        out_shape=jax.ShapeDtypeStruct((Mp, N), jnp.float32),
        grid=(Mp // tm,),
        in_specs=[
            pl.BlockSpec((tm, K), lambda i: (i, 0)),
            pl.BlockSpec((K, N), lambda i: (0, 0)),
            pl.BlockSpec((1, N), lambda i: (0, 0)),
        ],
        out_specs=pl.BlockSpec((tm, N), lambda i: (i, 0)),
        compiler_params=pltpu.CompilerParams(dimension_semantics=("parallel",)),
    )(xp, w, b)
    return out[:M] if Mp != M else out


def _pad_hw(x, value=0.0):
    return jnp.pad(x, ((0, 0), (1, 1), (1, 1), (0, 0)), constant_values=value)


def _phase_slabs(xp):
    """(N, H+2, W+2, C) -> (N, 4, (H/2+1)*(W/2+1), C); slab s = 2*row_parity + col_parity."""
    N, _, _, C = xp.shape
    slabs = [xp[:, py::2, px::2, :].reshape(N, -1, C) for py in (0, 1) for px in (0, 1)]
    return jnp.stack(slabs, axis=1)


def _interior_mask_np(H, W):
    m = np.zeros((H + 2, W + 2, 1), np.float32)
    m[1:H + 1, 1:W + 1, :] = 1.0
    return m


def _flat_interior_mask(H, W):
    return jnp.asarray(_interior_mask_np(H, W).reshape((H + 2) * (W + 2), 1))


def _phase_masks(H, W):
    m = _interior_mask_np(H, W)
    slabs = [m[py::2, px::2, :].reshape(-1, 1) for py in (0, 1) for px in (0, 1)]
    return jnp.asarray(np.stack(slabs, axis=0))


def stem_conv_bn_relu(x, w, b):
    """Conv2d(3, C0, 3, stride=2, padding=1, bias=False) + folded BN + ReLU via im2col."""
    N, H, W, C = x.shape
    Ho, Wo = H // 2, W // 2
    xp = _pad_hw(x)
    cols = [xp[:, dy:dy + 2 * Ho - 1:2, dx:dx + 2 * Wo - 1:2, :]
            for dy in range(3) for dx in range(3)]
    patches = jnp.concatenate(cols, axis=-1).reshape(N * Ho * Wo, 9 * C)
    y = matmul_bias_act(patches, w, b, relu=True)
    return y.reshape(N, Ho, Wo, w.shape[1])


def maxpool3x3_s2(x):
    """MaxPool2d(kernel_size=3, stride=2, padding=1); stride-2 output computed directly."""
    N, H, W, C = x.shape
    Ho, Wo = H // 2, W // 2
    ph = _phase_slabs(_pad_hw(x, value=-jnp.inf))
    Ps = (Ho + 1) * (Wo + 1)
    return pl.pallas_call(
        functools.partial(_maxpool_s2_kernel, Ho=Ho, Wo=Wo),
        out_shape=jax.ShapeDtypeStruct((N, Ho, Wo, C), jnp.float32),
        grid=(N,),
        in_specs=[pl.BlockSpec((1, 4, Ps, C), lambda n: (n, 0, 0, 0))],
        out_specs=pl.BlockSpec((1, Ho, Wo, C), lambda n: (n, 0, 0, 0)),
        compiler_params=pltpu.CompilerParams(dimension_semantics=("parallel",)),
    )(ph)


def block_stride1(x, p):
    """Fused ShuffleNetV2 stride-1 InvertedResidual (split + branch2 + concat + shuffle)."""
    N, H, W, C = x.shape
    bf = C // 2
    P = (H + 2) * (W + 2)
    xpf = _pad_hw(x).reshape(N, P, C)
    mask = _flat_interior_mask(H, W)
    return pl.pallas_call(
        functools.partial(_block_s1_kernel, H=H, W=W),
        out_shape=jax.ShapeDtypeStruct((N, H, W, C), jnp.float32),
        grid=(N,),
        in_specs=[
            pl.BlockSpec((1, P, C), lambda n: (n, 0, 0)),
            pl.BlockSpec((P, 1), lambda n: (0, 0)),
            pl.BlockSpec((C, bf), lambda n: (0, 0)),
            pl.BlockSpec((1, bf), lambda n: (0, 0)),
            pl.BlockSpec((9, bf), lambda n: (0, 0)),
            pl.BlockSpec((1, bf), lambda n: (0, 0)),
            pl.BlockSpec((bf, C), lambda n: (0, 0)),
            pl.BlockSpec((1, C), lambda n: (0, 0)),
            pl.BlockSpec((C, C), lambda n: (0, 0)),
        ],
        out_specs=pl.BlockSpec((1, H, W, C), lambda n: (n, 0, 0, 0)),
        compiler_params=pltpu.CompilerParams(dimension_semantics=("parallel",)),
    )(xpf, mask, p["wp1f"], p["bp1"], p["wd2"], p["bd2"], p["w2e"], p["b2e"], p["sef"])


def block_stride2(x, p):
    """Fused ShuffleNetV2 stride-2 InvertedResidual (branch1 + branch2 + concat + shuffle)."""
    N, H, W, Cin = x.shape
    Ho, Wo = H // 2, W // 2
    Cout = p["w2e"].shape[1]
    bf = Cout // 2
    Ps = (Ho + 1) * (Wo + 1)
    ph = _phase_slabs(_pad_hw(x))
    masks = _phase_masks(H, W)
    return pl.pallas_call(
        functools.partial(_block_s2_kernel, Ho=Ho, Wo=Wo),
        out_shape=jax.ShapeDtypeStruct((N, Ho, Wo, Cout), jnp.float32),
        grid=(N,),
        in_specs=[
            pl.BlockSpec((1, 4, Ps, Cin), lambda n: (n, 0, 0, 0)),
            pl.BlockSpec((4, Ps, 1), lambda n: (0, 0, 0)),
            pl.BlockSpec((9, Cin), lambda n: (0, 0)),
            pl.BlockSpec((1, Cin), lambda n: (0, 0)),
            pl.BlockSpec((Cin, Cout), lambda n: (0, 0)),
            pl.BlockSpec((1, Cout), lambda n: (0, 0)),
            pl.BlockSpec((Cin, bf), lambda n: (0, 0)),
            pl.BlockSpec((1, bf), lambda n: (0, 0)),
            pl.BlockSpec((9, bf), lambda n: (0, 0)),
            pl.BlockSpec((1, bf), lambda n: (0, 0)),
            pl.BlockSpec((bf, Cout), lambda n: (0, 0)),
            pl.BlockSpec((1, Cout), lambda n: (0, 0)),
        ],
        out_specs=pl.BlockSpec((1, Ho, Wo, Cout), lambda n: (n, 0, 0, 0)),
        compiler_params=pltpu.CompilerParams(dimension_semantics=("parallel",)),
    )(ph, masks, p["wd1"], p["bd1"], p["w1e"], p["b1e"],
      p["wp1"], p["bp1"], p["wd2"], p["bd2"], p["w2e"], p["b2e"])


def conv5_gap(x, w, b):
    """conv5 (1x1 + folded BN + ReLU) fused with global average pooling: (N,HW,C) -> (N,Cout)."""
    N, HW, C = x.shape
    Cout = w.shape[1]
    out = pl.pallas_call(
        _conv5_gap_kernel,
        out_shape=jax.ShapeDtypeStruct((N, 1, Cout), jnp.float32),
        grid=(N,),
        in_specs=[
            pl.BlockSpec((1, HW, C), lambda n: (n, 0, 0)),
            pl.BlockSpec((C, Cout), lambda n: (0, 0)),
            pl.BlockSpec((1, Cout), lambda n: (0, 0)),
        ],
        out_specs=pl.BlockSpec((1, 1, Cout), lambda n: (n, 0, 0)),
        compiler_params=pltpu.CompilerParams(dimension_semantics=("parallel",)),
    )(x, w, b)
    return out.reshape(N, Cout)


# ----------------------------------------------------------------------------------
# Deterministic synthetic parameters (BN scale folded into weights; channel_shuffle and
# the branch concat folded into expanded / spreading weight layouts).
# ----------------------------------------------------------------------------------
_rng = np.random.default_rng(12345)


def _w_np(shape, fan_in):
    return _rng.normal(0.0, 1.0 / np.sqrt(fan_in), size=shape).astype(np.float32)


def _bn_np(c):
    scale = _rng.uniform(0.5, 1.5, size=(c,)).astype(np.float32)
    bias = _rng.uniform(-0.1, 0.1, size=(c,)).astype(np.float32)
    return scale, bias


def _expand_cols(w, b, parity):
    """Scatter (K, bf) weight columns / bias into the even (0) or odd (1) columns of (K, 2*bf)."""
    K, bf = w.shape
    we = np.zeros((K, 2 * bf), np.float32)
    be = np.zeros((1, 2 * bf), np.float32)
    we[:, parity::2] = w
    be[0, parity::2] = b
    return jnp.asarray(we), jnp.asarray(be)


def _make_s2_params(inp, oup):
    bf = oup // 2
    p = {}
    wd1 = _w_np((9, inp), 9); s, b = _bn_np(inp)
    p["wd1"] = jnp.asarray(wd1 * s); p["bd1"] = jnp.asarray(b.reshape(1, inp))
    w1 = _w_np((inp, bf), inp); s, b = _bn_np(bf)
    p["w1e"], p["b1e"] = _expand_cols(w1 * s, b, parity=0)          # branch1 -> even channels
    wp1 = _w_np((inp, bf), inp); s, b = _bn_np(bf)
    p["wp1"] = jnp.asarray(wp1 * s); p["bp1"] = jnp.asarray(b.reshape(1, bf))
    wd2 = _w_np((9, bf), 9); s, b = _bn_np(bf)
    p["wd2"] = jnp.asarray(wd2 * s); p["bd2"] = jnp.asarray(b.reshape(1, bf))
    w2 = _w_np((bf, bf), bf); s, b = _bn_np(bf)
    p["w2e"], p["b2e"] = _expand_cols(w2 * s, b, parity=1)          # branch2 -> odd channels
    return p


def _make_s1_params(oup):
    bf = oup // 2
    p = {}
    wp1 = _w_np((bf, bf), bf); s, b = _bn_np(bf)
    wf = np.zeros((oup, bf), np.float32)
    wf[bf:, :] = wp1 * s                                            # x2 channel-split folded in
    p["wp1f"] = jnp.asarray(wf); p["bp1"] = jnp.asarray(b.reshape(1, bf))
    wd2 = _w_np((9, bf), 9); s, b = _bn_np(bf)
    p["wd2"] = jnp.asarray(wd2 * s); p["bd2"] = jnp.asarray(b.reshape(1, bf))
    w2 = _w_np((bf, bf), bf); s, b = _bn_np(bf)
    p["w2e"], p["b2e"] = _expand_cols(w2 * s, b, parity=1)          # branch2 -> odd channels
    sef = np.zeros((oup, oup), np.float32)
    sef[np.arange(bf), np.arange(bf) * 2] = 1.0                     # x1 pass-through -> even
    p["sef"] = jnp.asarray(sef)
    return p


def make_params():
    P = {}
    c0 = STAGES_OUT[0]
    w = _w_np((27, c0), 27); s, b = _bn_np(c0)
    P["conv1_w"] = jnp.asarray(w * s); P["conv1_b"] = jnp.asarray(b.reshape(1, c0))
    inp = c0
    for sidx, (reps, oup) in enumerate(zip(STAGES_REPEATS, STAGES_OUT[1:4])):
        blocks = [_make_s2_params(inp, oup)]
        for _ in range(reps - 1):
            blocks.append(_make_s1_params(oup))
        P[f"stage{sidx + 2}"] = blocks
        inp = oup
    w = _w_np((inp, STAGES_OUT[4]), inp); s, b = _bn_np(STAGES_OUT[4])
    P["conv5_w"] = jnp.asarray(w * s); P["conv5_b"] = jnp.asarray(b.reshape(1, -1))
    P["fc_w"] = jnp.asarray(_w_np((HIDDEN + INCLUDE_LABEL, NUM_CLASSES), HIDDEN + INCLUDE_LABEL))
    P["fc_b"] = jnp.asarray(_rng.uniform(-0.1, 0.1, size=(1, NUM_CLASSES)).astype(np.float32))
    return P


# ----------------------------------------------------------------------------------
# Forward pass (equivalent of _shufflenetv2_base.forward)
# ----------------------------------------------------------------------------------
def forward(params, x_nchw, y):
    # layout: NCHW input (PyTorch) -> NHWC so channels sit on the 128-lane axis.
    x = jnp.transpose(x_nchw, (0, 2, 3, 1))
    x = stem_conv_bn_relu(x, params["conv1_w"], params["conv1_b"])
    x = maxpool3x3_s2(x)
    for sidx in (2, 3, 4):
        blocks = params[f"stage{sidx}"]
        x = block_stride2(x, blocks[0])
        for bp in blocks[1:]:
            x = block_stride1(x, bp)
    N, H, W, C = x.shape
    feat = conv5_gap(x.reshape(N, H * W, C), params["conv5_w"], params["conv5_b"])
    if INCLUDE_LABEL > 0:
        oh = jax.nn.one_hot(y, INCLUDE_LABEL, dtype=jnp.float32)
        feat = jnp.concatenate([feat, oh], axis=1)   # torch.cat([x, one_hot(y)], dim=1)
    # Final fc (2x264 @ 264x10): kept in plain XLA -- a Pallas call here is pure overhead.
    return feat @ params["fc_w"] + params["fc_b"]


if __name__ == "__main__":
    params = make_params()
    key = jax.random.PRNGKey(0)
    kx, ky = jax.random.split(key)
    x = jax.random.normal(kx, (2, 3, 64, 64), dtype=jnp.float32)   # NCHW, like PyTorch
    y = jax.random.randint(ky, (2,), 0, INCLUDE_LABEL)

    fwd = jax.jit(forward)
    out = fwd(params, x, y)
    jax.block_until_ready(out)
    assert out.shape == (2, NUM_CLASSES), out.shape
    assert bool(jnp.all(jnp.isfinite(out)))
    print("KERNEL_OK")
</pallas_src>

<mosaic_0001>
module attributes {stable_mosaic.version = 11 : i64} {
  func.func @_mm_bias_act_kernel(%arg0: i32, %arg1: memref<512x27xf32, #tpu.memory_space<vmem>>, %arg2: memref<27x16xf32, #tpu.memory_space<vmem>>, %arg3: memref<1x16xf32, #tpu.memory_space<vmem>>, %arg4: memref<512x16xf32, #tpu.memory_space<vmem>>) attributes {dimension_semantics = [#tpu.dimension_semantics<parallel>], iteration_bounds = array<i64: 4>, scalar_prefetch = 0 : i64, scratch_operands = 0 : i64, tpu.core_type = #tpu.core_type<tc>, window_params = [{transform_indices = @transform_0, window_bounds = array<i64: 512, 27>}, {pipeline_mode = #tpu.pipeline_mode<synchronous>, transform_indices = @transform_1, window_bounds = array<i64: 27, 16>}, {pipeline_mode = #tpu.pipeline_mode<synchronous>, transform_indices = @transform_2, window_bounds = array<i64: 1, 16>}, {transform_indices = @transform_3, window_bounds = array<i64: 512, 16>}]} {
    %c0 = arith.constant 0 : index
    %c0_0 = arith.constant 0 : index
    %0 = vector.load %arg1[%c0, %c0_0] : memref<512x27xf32, #tpu.memory_space<vmem>>, vector<512x27xf32>
    %c0_1 = arith.constant 0 : index
    %c0_2 = arith.constant 0 : index
    %1 = vector.load %arg2[%c0_1, %c0_2] : memref<27x16xf32, #tpu.memory_space<vmem>>, vector<27x16xf32>
    %cst = arith.constant dense<0.000000e+00> : vector<512x16xf32>
    %2 = tpu.matmul %0, %1, %cst {dimension_numbers = #tpu.dot_dimension_numbers<[1], [0], [0], [1], [0, 0, 1, 1], [], []>} : vector<512x27xf32>, vector<27x16xf32>, vector<512x16xf32> -> vector<512x16xf32>
    %c0_3 = arith.constant 0 : index
    %c0_4 = arith.constant 0 : index
    %3 = vector.load %arg3[%c0_3, %c0_4] : memref<1x16xf32, #tpu.memory_space<vmem>>, vector<1x16xf32>
    %4 = vector.broadcast %3 : vector<1x16xf32> to vector<512x16xf32>
    %5 = arith.addf %2, %4 : vector<512x16xf32>
    %cst_5 = arith.constant 0.000000e+00 : f32
    %6 = vector.broadcast %cst_5 : f32 to vector<512x16xf32>
    %7 = arith.maximumf %5, %6 : vector<512x16xf32>
    %c0_6 = arith.constant 0 : index
    %c0_7 = arith.constant 0 : index
    %8 = vector.load %arg4[%c0_6, %c0_7] : memref<512x16xf32, #tpu.memory_space<vmem>>, vector<512x16xf32>
    tpu.vector_store %arg4[%c0_6, %c0_7], %7 {strides = array<i32>} : memref<512x16xf32, #tpu.memory_space<vmem>>, vector<512x16xf32>,
    return
  }
  func.func @transform_0(%arg0: i32) -> (i32, i32) {
    %c0_i32 = arith.constant 0 : i32
    %c0_i32_0 = arith.constant 0 : i32
    return %arg0, %c0_i32 : i32, i32
  }
  func.func @transform_1(%arg0: i32) -> (i32, i32) {
    %c0_i32 = arith.constant 0 : i32
    %c0_i32_0 = arith.constant 0 : i32
    %c0_i32_1 = arith.constant 0 : i32
    return %c0_i32, %c0_i32_0 : i32, i32
  }
  func.func @transform_2(%arg0: i32) -> (i32, i32) {
    %c0_i32 = arith.constant 0 : i32
    %c0_i32_0 = arith.constant 0 : i32
    %c0_i32_1 = arith.constant 0 : i32
    return %c0_i32, %c0_i32_0 : i32, i32
  }
  func.func @transform_3(%arg0: i32) -> (i32, i32) {
    %c0_i32 = arith.constant 0 : i32
    %c0_i32_0 = arith.constant 0 : i32
    return %arg0, %c0_i32 : i32, i32
  }
}

module attributes {stable_mosaic.version = 11 : i64} {
  func.func @_maxpool_s2_kernel(%arg0: i32, %arg1: memref<1x4x289x16xf32, #tpu.memory_space<vmem>>, %arg2: memref<1x16x16x16xf32, #tpu.memory_space<vmem>>) attributes {dimension_semantics = [#tpu.dimension_semantics<parallel>], iteration_bounds = array<i64: 2>, scalar_prefetch = 0 : i64, scratch_operands = 0 : i64, tpu.core_type = #tpu.core_type<tc>, window_params = [{transform_indices = @transform_0, window_bounds = array<i64: 1, 4, 289, 16>}, {transform_indices = @transform_1, window_bounds = array<i64: 1, 16, 16, 16>}]} {
    %c0 = arith.constant 0 : index
    %c0_0 = arith.constant 0 : index
    %c0_1 = arith.constant 0 : index
    %c0_2 = arith.constant 0 : index
    %0 = vector.load %arg1[%c0, %c0_0, %c0_1, %c0_2] : memref<1x4x289x16xf32, #tpu.memory_space<vmem>>, vector<1x1x289x16xf32>
    %1 = vector.shape_cast %0 : vector<1x1x289x16xf32> to vector<289x16xf32>
    %c0_3 = arith.constant 0 : index
    %c1 = arith.constant 1 : index
    %c0_4 = arith.constant 0 : index
    %c0_5 = arith.constant 0 : index
    %2 = vector.load %arg1[%c0_3, %c1, %c0_4, %c0_5] : memref<1x4x289x16xf32, #tpu.memory_space<vmem>>, vector<1x1x289x16xf32>
    %3 = vector.shape_cast %2 : vector<1x1x289x16xf32> to vector<289x16xf32>
    %c0_6 = arith.constant 0 : index
    %c2 = arith.constant 2 : index
    %c0_7 = arith.constant 0 : index
    %c0_8 = arith.constant 0 : index
    %4 = vector.load %arg1[%c0_6, %c2, %c0_7, %c0_8] : memref<1x4x289x16xf32, #tpu.memory_space<vmem>>, vector<1x1x289x16xf32>
    %5 = vector.shape_cast %4 : vector<1x1x289x16xf32> to vector<289x16xf32>
    %c0_9 = arith.constant 0 : index
    %c3 = arith.constant 3 : index
    %c0_10 = arith.constant 0 : index
    %c0_11 = arith.constant 0 : index
    %6 = vector.load %arg1[%c0_9, %c3, %c0_10, %c0_11] : memref<1x4x289x16xf32, #tpu.memory_space<vmem>>, vector<1x1x289x16xf32>
    %7 = vector.shape_cast %6 : vector<1x1x289x16xf32> to vector<289x16xf32>
    %cst = arith.constant 0xFF800000 : f32
    %8 = vector.broadcast %cst : f32 to vector<271x16xf32>
    %9 = vector.extract_strided_slice %1 {offsets = [0, 0], sizes = [271, 16], strides = [1, 1]} : vector<289x16xf32> to vector<271x16xf32>
    %10 = arith.maximumf %8, %9 : vector<271x16xf32>
    %11 = vector.extract_strided_slice %3 {offsets = [0, 0], sizes = [271, 16], strides = [1, 1]} : vector<289x16xf32> to vector<271x16xf32>
    %12 = arith.maximumf %10, %11 : vector<271x16xf32>
    %13 = vector.extract_strided_slice %1 {offsets = [1, 0], sizes = [271, 16], strides = [1, 1]} : vector<289x16xf32> to vector<271x16xf32>
    %14 = arith.maximumf %12, %13 : vector<271x16xf32>
    %15 = vector.extract_strided_slice %5 {offsets = [0, 0], sizes = [271, 16], strides = [1, 1]} : vector<289x16xf32> to vector<271x16xf32>
    %16 = arith.maximumf %14, %15 : vector<271x16xf32>
    %17 = vector.extract_strided_slice %7 {offsets = [0, 0], sizes = [271, 16], strides = [1, 1]} : vector<289x16xf32> to vector<271x16xf32>
    %18 = arith.maximumf %16, %17 : vector<271x16xf32>
    %19 = vector.extract_strided_slice %5 {offsets = [1, 0], sizes = [271, 16], strides = [1, 1]} : vector<289x16xf32> to vector<271x16xf32>
    %20 = arith.maximumf %18, %19 : vector<271x16xf32>
    %21 = vector.extract_strided_slice %1 {offsets = [17, 0], sizes = [271, 16], strides = [1, 1]} : vector<289x16xf32> to vector<271x16xf32>
    %22 = arith.maximumf %20, %21 : vector<271x16xf32>
    %23 = vector.extract_strided_slice %3 {offsets = [17, 0], sizes = [271, 16], strides = [1, 1]} : vector<289x16xf32> to vector<271x16xf32>
    %24 = arith.maximumf %22, %23 : vector<271x16xf32>
    %25 = vector.extract_strided_slice %1 {offsets = [18, 0], sizes = [271, 16], strides = [1, 1]} : vector<289x16xf32> to vector<271x16xf32>
    %26 = arith.maximumf %24, %25 : vector<271x16xf32>
    %27 = vector.extract_strided_slice %26 {offsets = [0, 0], sizes = [16, 16], strides = [1, 1]} : vector<271x16xf32> to vector<16x16xf32>
    %c0_12 = arith.constant 0 : index
    %c0_13 = arith.constant 0 : index
    %c0_14 = arith.constant 0 : index
    %c0_15 = arith.constant 0 : index
    %28 = vector.load %arg2[%c0_12, %c0_13, %c0_14, %c0_15] : memref<1x16x16x16xf32, #tpu.memory_space<vmem>>, vector<1x1x16x16xf32>
    %29 = vector.shape_cast %28 : vector<1x1x16x16xf32> to vector<16x16xf32>
    %30 = vector.shape_cast %27 : vector<16x16xf32> to vector<1x1x16x16xf32>
    tpu.vector_store %arg2[%c0_12, %c0_13, %c0_14, %c0_15], %30 {strides = array<i32>} : memref<1x16x16x16xf32, #tpu.memory_space<vmem>>, vector<1x1x16x16xf32>,
    %31 = vector.extract_strided_slice %26 {offsets = [17, 0], sizes = [16, 16], strides = [1, 1]} : vector<271x16xf32> to vector<16x16xf32>
    %c0_16 = arith.constant 0 : index
    %c1_17 = arith.constant 1 : index
    %c0_18 = arith.constant 0 : index
    %c0_19 = arith.constant 0 : index
    %32 = vector.load %arg2[%c0_16, %c1_17, %c0_18, %c0_19] : memref<1x16x16x16xf32, #tpu.memory_space<vmem>>, vector<1x1x16x16xf32>
    %33 = vector.shape_cast %32 : vector<1x1x16x16xf32> to vector<16x16xf32>
    %34 = vector.shape_cast %31 : vector<16x16xf32> to vector<1x1x16x16xf32>
    tpu.vector_store %arg2[%c0_16, %c1_17, %c0_18, %c0_19], %34 {strides = array<i32>} : memref<1x16x16x16xf32, #tpu.memory_space<vmem>>, vector<1x1x16x16xf32>,
    %35 = vector.extract_strided_slice %26 {offsets = [34, 0], sizes = [16, 16], strides = [1, 1]} : vector<271x16xf32> to vector<16x16xf32>
    %c0_20 = arith.constant 0 : index
    %c2_21 = arith.constant 2 : index
    %c0_22 = arith.constant 0 : index
    %c0_23 = arith.constant 0 : index
    %36 = vector.load %arg2[%c0_20, %c2_21, %c0_22, %c0_23] : memref<1x16x16x16xf32, #tpu.memory_space<vmem>>, vector<1x1x16x16xf32>
    %37 = vector.shape_cast %36 : vector<1x1x16x16xf32> to vector<16x16xf32>
    %38 = vector.shape_cast %35 : vector<16x16xf32> to vector<1x1x16x16xf32>
    tpu.vector_store %arg2[%c0_20, %c2_21, %c0_22, %c0_23], %38 {strides = array<i32>} : memref<1x16x16x16xf32, #tpu.memory_space<vmem>>, vector<1x1x16x16xf32>,
    %39 = vector.extract_strided_slice %26 {offsets = [51, 0], sizes = [16, 16], strides = [1, 1]} : vector<271x16xf32> to vector<16x16xf32>
    %c0_24 = arith.constant 0 : index
    %c3_25 = arith.constant 3 : index
    %c0_26 = arith.constant 0 : index
    %c0_27 = arith.constant 0 : index
    %40 = vector.load %arg2[%c0_24, %c3_25, %c0_26, %c0_27] : memref<1x16x16x16xf32, #tpu.memory_space<vmem>>, vector<1x1x16x16xf32>
    %41 = vector.shape_cast %40 : vector<1x1x16x16xf32> to vector<16x16xf32>
    %42 = vector.shape_cast %39 : vector<16x16xf32> to vector<1x1x16x16xf32>
    tpu.vector_store %arg2[%c0_24, %c3_25, %c0_26, %c0_27], %42 {strides = array<i32>} : memref<1x16x16x16xf32, #tpu.memory_space<vmem>>, vector<1x1x16x16xf32>,
    %43 = vector.extract_strided_slice %26 {offsets = [68, 0], sizes = [16, 16], strides = [1, 1]} : vector<271x16xf32> to vector<16x16xf32>
    %c0_28 = arith.constant 0 : index
    %c4 = arith.constant 4 : index
    %c0_29 = arith.constant 0 : index
    %c0_30 = arith.constant 0 : index
    %44 = vector.load %arg2[%c0_28, %c4, %c0_29, %c0_30] : memref<1x16x16x16xf32, #tpu.memory_space<vmem>>, vector<1x1x16x16xf32>
    %45 = vector.shape_cast %44 : vector<1x1x16x16xf32> to vector<16x16xf32>
    %46 = vector.shape_cast %43 : vector<16x16xf32> to vector<1x1x16x16xf32>
    tpu.vector_store %arg2[%c0_28, %c4, %c0_29, %c0_30], %46 {strides = array<i32>} : memref<1x16x16x16xf32, #tpu.memory_space<vmem>>, vector<1x1x16x16xf32>,
    %47 = vector.extract_strided_slice %26 {offsets = [85, 0], sizes = [16, 16], strides = [1, 1]} : vector<271x16xf32> to vector<16x16xf32>
    %c0_31 = arith.constant 0 : index
    %c5 = arith.constant 5 : index
    %c0_32 = arith.constant 0 : index
    %c0_33 = arith.constant 0 : index
    %48 = vector.load %arg2[%c0_31, %c5, %c0_32, %c0_33] : memref<1x16x16x16xf32, #tpu.memory_space<vmem>>, vector<1x1x16x16xf32>
    %49 = vector.shape_cast %48 : vector<1x1x16x16xf32> to vector<16x16xf32>
    %50 = vector.shape_cast %47 : vector<16x16xf32> to vector<1x1x16x16xf32>
    tpu.vector_store %arg2[%c0_31, %c5, %c0_32, %c0_33], %50 {strides = array<i32>} : memref<1x16x16x16xf32, #tpu.memory_space<vmem>>, vector<1x1x16x16xf32>,
    %51 = vector.extract_strided_slice %26 {offsets = [102, 0], sizes = [16, 16], strides = [1, 1]} : vector<271x16xf32> to vector<16x16xf32>
    %c0_34 = arith.constant 0 : index
    %c6 = arith.constant 6 : index
    %c0_35 = arith.constant 0 : index
    %c0_36 = arith.constant 0 : index
    %52 = vector.load %arg2[%c0_34, %c6, %c0_35, %c0_36] : memref<1x16x16x16xf32, #tpu.memory_space<vmem>>, vector<1x1x16x16xf32>
    %53 = vector.shape_cast %52 : vector<1x1x16x16xf32> to vector<16x16xf32>
    %54 = vector.shape_cast %51 : vector<16x16xf32> to vector<1x1x16x16xf32>
    tpu.vector_store %arg2[%c0_34, %c6, %c0_35, %c0_36], %54 {strides = array<i32>} : memref<1x16x16x16xf32, #tpu.memory_space<vmem>>, vector<1x1x16x16xf32>,
    %55 = vector.extract_strided_slice %26 {offsets = [119, 0], sizes = [16, 16], strides = [1, 1]} : vector<271x16xf32> to vector<16x16xf32>
    %c0_37 = arith.constant 0 : index
    %c7 = arith.constant 7 : index
    %c0_38 = arith.constant 0 : index
    %c0_39 = arith.constant 0 : index
    %56 = vector.load %arg2[%c0_37, %c7, %c0_38, %c0_39] : memref<1x16x16x16xf32, #tpu.memory_space<vmem>>, vector<1x1x16x16xf32>
    %57 = vector.shape_cast %56 : vector<1x1x16x16xf32> to vector<16x16xf32>
    %58 = vector.shape_cast %55 : vector<16x16xf32> to vector<1x1x16x16xf32>
    tpu.vector_store %arg2[%c0_37, %c7, %c0_38, %c0_39], %58 {strides = array<i32>} : memref<1x16x16x16xf32, #tpu.memory_space<vmem>>, vector<1x1x16x16xf32>,
    %59 = vector.extract_strided_slice %26 {offsets = [136, 0], sizes = [16, 16], strides = [1, 1]} : vector<271x16xf32> to vector<16x16xf32>
    %c0_40 = arith.constant 0 : index
    %c8 = arith.constant 8 : index
    %c0_41 = arith.constant 0 : index
    %c0_42 = arith.constant 0 : index
    %60 = vector.load %arg2[%c0_40, %c8, %c0_41, %c0_42] : memref<1x16x16x16xf32, #tpu.memory_space<vmem>>, vector<1x1x16x16xf32>
    %61 = vector.shape_cast %60 : vector<1x1x16x16xf32> to vector<16x16xf32>
    %62 = vector.shape_cast %59 : vector<16x16xf32> to vector<1x1x16x16xf32>
    tpu.vector_store %arg2[%c0_40, %c8, %c0_41, %c0_42], %62 {strides = array<i32>} : memref<1x16x16x16xf32, #tpu.memory_space<vmem>>, vector<1x1x16x16xf32>,
    %63 = vector.extract_strided_slice %26 {offsets = [153, 0], sizes = [16, 16], strides = [1, 1]} : vector<271x16xf32> to vector<16x16xf32>
    %c0_43 = arith.constant 0 : index
    %c9 = arith.constant 9 : index
    %c0_44 = arith.constant 0 : index
    %c0_45 = arith.constant 0 : index
    %64 = vector.load %arg2[%c0_43, %c9, %c0_44, %c0_45] : memref<1x16x16x16xf32, #tpu.memory_space<vmem>>, vector<1x1x16x16xf32>
    %65 = vector.shape_cast %64 : vector<1x1x16x16xf32> to vector<16x16xf32>
    %66 = vector.shape_cast %63 : vector<16x16xf32> to vector<1x1x16x16xf32>
    tpu.vector_store %arg2[%c0_43, %c9, %c0_44, %c0_45], %66 {strides = array<i32>} : memref<1x16x16x16xf32, #tpu.memory_space<vmem>>, vector<1x1x16x16xf32>,
    %67 = vector.extract_strided_slice %26 {offsets = [170, 0], sizes = [16, 16], strides = [1, 1]} : vector<271x16xf32> to vector<16x16xf32>
    %c0_46 = arith.constant 0 : index
    %c10 = arith.constant 10 : index
    %c0_47 = arith.constant 0 : index
    %c0_48 = arith.constant 0 : index
    %68 = vector.load %arg2[%c0_46, %c10, %c0_47, %c0_48] : memref<1x16x16x16xf32, #tpu.memory_space<vmem>>, vector<1x1x16x16xf32>
    %69 = vector.shape_cast %68 : vector<1x1x16x16xf32> to vector<16x16xf32>
    %70 = vector.shape_cast %67 : vector<16x16xf32> to vector<1x1x16x16xf32>
    tpu.vector_store %arg2[%c0_46, %c10, %c0_47, %c0_48], %70 {strides = array<i32>} : memref<1x16x16x16xf32, #tpu.memory_space<vmem>>, vector<1x1x16x16xf32>,
    %71 = vector.extract_strided_slice %26 {offsets = [187, 0], sizes = [16, 16], strides = [1, 1]} : vector<271x16xf32> to vector<16x16xf32>
    %c0_49 = arith.constant 0 : index
    %c11 = arith.constant 11 : index
    %c0_50 = arith.constant 0 : index
    %c0_51 = arith.constant 0 : index
    %72 = vector.load %arg2[%c0_49, %c11, %c0_50, %c0_51] : memref<1x16x16x16xf32, #tpu.memory_space<vmem>>, vector<1x1x16x16xf32>
    %73 = vector.shape_cast %72 : vector<1x1x16x16xf32> to vector<16x16xf32>
    %74 = vector.shape_cast %71 : vector<16x16xf32> to vector<1x1x16x16xf32>
    tpu.vector_store %arg2[%c0_49, %c11, %c0_50, %c0_51], %74 {strides = array<i32>} : memref<1x16x16x16xf32, #tpu.memory_space<vmem>>, vector<1x1x16x16xf32>,
    %75 = vector.extract_strided_slice %26 {offsets = [204, 0], sizes = [16, 16], strides = [1, 1]} : vector<271x16xf32> to vector<16x16xf32>
    %c0_52 = arith.constant 0 : index
    %c12 = arith.constant 12 : index
    %c0_53 = arith.constant 0 : index
    %c0_54 = arith.constant 0 : index
    %76 = vector.load %arg2[%c0_52, %c12, %c0_53, %c0_54] : memref<1x16x16x16xf32, #tpu.memory_space<vmem>>, vector<1x1x16x16xf32>
    %77 = vector.shape_cast %76 : vector<1x1x16x16xf32> to vector<16x16xf32>
    %78 = vector.shape_cast %75 : vector<16x16xf32> to vector<1x1x16x16xf32>
    tpu.vector_store %arg2[%c0_52, %c12, %c0_53, %c0_54], %78 {strides = array<i32>} : memref<1x16x16x16xf32, #tpu.memory_space<vmem>>, vector<1x1x16x16xf32>,
    %79 = vector.extract_strided_slice %26 {offsets = [221, 0], sizes = [16, 16], strides = [1, 1]} : vector<271x16xf32> to vector<16x16xf32>
    %c0_55 = arith.constant 0 : index
    %c13 = arith.constant 13 : index
    %c0_56 = arith.constant 0 : index
    %c0_57 = arith.constant 0 : index
    %80 = vector.load %arg2[%c0_55, %c13, %c0_56, %c0_57] : memref<1x16x16x16xf32, #tpu.memory_space<vmem>>, vector<1x1x16x16xf32>
    %81 = vector.shape_cast %80 : vector<1x1x16x16xf32> to vector<16x16xf32>
    %82 = vector.shape_cast %79 : vector<16x16xf32> to vector<1x1x16x16xf32>
    tpu.vector_store %arg2[%c0_55, %c13, %c0_56, %c0_57], %82 {strides = array<i32>} : memref<1x16x16x16xf32, #tpu.memory_space<vmem>>, vector<1x1x16x16xf32>,
    %83 = vector.extract_strided_slice %26 {offsets = [238, 0], sizes = [16, 16], strides = [1, 1]} : vector<271x16xf32> to vector<16x16xf32>
    %c0_58 = arith.constant 0 : index
    %c14 = arith.constant 14 : index
    %c0_59 = arith.constant 0 : index
    %c0_60 = arith.constant 0 : index
    %84 = vector.load %arg2[%c0_58, %c14, %c0_59, %c0_60] : memref<1x16x16x16xf32, #tpu.memory_space<vmem>>, vector<1x1x16x16xf32>
    %85 = vector.shape_cast %84 : vector<1x1x16x16xf32> to vector<16x16xf32>
    %86 = vector.shape_cast %83 : vector<16x16xf32> to vector<1x1x16x16xf32>
    tpu.vector_store %arg2[%c0_58, %c14, %c0_59, %c0_60], %86 {strides = array<i32>} : memref<1x16x16x16xf32, #tpu.memory_space<vmem>>, vector<1x1x16x16xf32>,
    %87 = vector.extract_strided_slice %26 {offsets = [255, 0], sizes = [16, 16], strides = [1, 1]} : vector<271x16xf32> to vector<16x16xf32>
    %c0_61 = arith.constant 0 : index
    %c15 = arith.constant 15 : index
    %c0_62 = arith.constant 0 : index
    %c0_63 = arith.constant 0 : index
    %88 = vector.load %arg2[%c0_61, %c15, %c0_62, %c0_63] : memref<1x16x16x16xf32, #tpu.memory_space<vmem>>, vector<1x1x16x16xf32>
    %89 = vector.shape_cast %88 : vector<1x1x16x16xf32> to vector<16x16xf32>
    %90 = vector.shape_cast %87 : vector<16x16xf32> to vector<1x1x16x16xf32>
    tpu.vector_store %arg2[%c0_61, %c15, %c0_62, %c0_63], %90 {strides = array<i32>} : memref<1x16x16x16xf32, #tpu.memory_space<vmem>>, vector<1x1x16x16xf32>,
    return
  }
  func.func @transform_0(%arg0: i32) -> (i32, i32, i32, i32) {
    %c0_i32 = arith.constant 0 : i32
    %c0_i32_0 = arith.constant 0 : i32
    %c0_i32_1 = arith.constant 0 : i32
    %c0_i32_2 = arith.constant 0 : i32
    return %arg0, %c0_i32, %c0_i32_0, %c0_i32_1 : i32, i32, i32, i32
  }
  func.func @transform_1(%arg0: i32) -> (i32, i32, i32, i32) {
    %c0_i32 = arith.constant 0 : i32
    %c0_i32_0 = arith.constant 0 : i32
    %c0_i32_1 = arith.constant 0 : i32
    %c0_i32_2 = arith.constant 0 : i32
    return %arg0, %c0_i32, %c0_i32_0, %c0_i32_1 : i32, i32, i32, i32
  }
}

module attributes {stable_mosaic.version = 11 : i64} {
  func.func @_block_s2_kernel(%arg0: i32, %arg1: memref<1x4x81x16xf32, #tpu.memory_space<vmem>>, %arg2: memref<4x81x1xf32, #tpu.memory_space<vmem>>, %arg3: memref<9x16xf32, #tpu.memory_space<vmem>>, %arg4: memref<1x16xf32, #tpu.memory_space<vmem>>, %arg5: memref<16x32xf32, #tpu.memory_space<vmem>>, %arg6: memref<1x32xf32, #tpu.memory_space<vmem>>, %arg7: memref<16x16xf32, #tpu.memory_space<vmem>>, %arg8: memref<1x16xf32, #tpu.memory_space<vmem>>, %arg9: memref<9x16xf32, #tpu.memory_space<vmem>>, %arg10: memref<1x16xf32, #tpu.memory_space<vmem>>, %arg11: memref<16x32xf32, #tpu.memory_space<vmem>>, %arg12: memref<1x32xf32, #tpu.memory_space<vmem>>, %arg13: memref<1x8x8x32xf32, #tpu.memory_space<vmem>>) attributes {dimension_semantics = [#tpu.dimension_semantics<parallel>], iteration_bounds = array<i64: 2>, scalar_prefetch = 0 : i64, scratch_operands = 0 : i64, tpu.core_type = #tpu.core_type<tc>, window_params = [{transform_indices = @transform_0, window_bounds = array<i64: 1, 4, 81, 16>}, {pipeline_mode = #tpu.pipeline_mode<synchronous>, transform_indices = @transform_1, window_bounds = array<i64: 4, 81, 1>}, {pipeline_mode = #tpu.pipeline_mode<synchronous>, transform_indices = @transform_2, window_bounds = array<i64: 9, 16>}, {pipeline_mode = #tpu.pipeline_mode<synchronous>, transform_indices = @transform_3, window_bounds = array<i64: 1, 16>}, {pipeline_mode = #tpu.pipeline_mode<synchronous>, transform_indices = @transform_4, window_bounds = array<i64: 16, 32>}, {pipeline_mode = #tpu.pipeline_mode<synchronous>, transform_indices = @transform_5, window_bounds = array<i64: 1, 32>}, {pipeline_mode = #tpu.pipeline_mode<synchronous>, transform_indices = @transform_6, window_bounds = array<i64: 16, 16>}, {pipeline_mode = #tpu.pipeline_mode<synchronous>, transform_indices = @transform_7, window_bounds = array<i64: 1, 16>}, {pipeline_mode = #tpu.pipeline_mode<synchronous>, transform_indices = @transform_8, window_bounds = array<i64: 9, 16>}, {pipeline_mode = #tpu.pipeline_mode<synchronous>, transform_indices = @transform_9, window_bounds = array<i64: 1, 16>}, {pipeline_mode = #tpu.pipeline_mode<synchronous>, transform_indices = @transform_10, window_bounds = array<i64: 16, 32>}, {pipeline_mode = #tpu.pipeline_mode<synchronous>, transform_indices = @transform_11, window_bounds = array<i64: 1, 32>}, {transform_indices = @transform_12, window_bounds = array<i64: 1, 8, 8, 32>}]} {
    %c0 = arith.constant 0 : index
    %c0_0 = arith.constant 0 : index
    %c0_1 = arith.constant 0 : index
    %c0_2 = arith.constant 0 : index
    %0 = vector.load %arg1[%c0, %c0_0, %c0_1, %c0_2] : memref<1x4x81x16xf32, #tpu.memory_space<vmem>>, vector<1x1x81x16xf32>
    %1 = vector.shape_cast %0 : vector<1x1x81x16xf32> to vector<81x16xf32>
    %c0_3 = arith.constant 0 : index
    %c1 = arith.constant 1 : index
    %c0_4 = arith.constant 0 : index
    %c0_5 = arith.constant 0 : index
    %2 = vector.load %arg1[%c0_3, %c1, %c0_4, %c0_5] : memref<1x4x81x16xf32, #tpu.memory_space<vmem>>, vector<1x1x81x16xf32>
    %3 = vector.shape_cast %2 : vector<1x1x81x16xf32> to vector<81x16xf32>
    %c0_6 = arith.constant 0 : index
    %c2 = arith.constant 2 : index
    %c0_7 = arith.constant 0 : index
    %c0_8 = arith.constant 0 : index
    %4 = vector.load %arg1[%c0_6, %c2, %c0_7, %c0_8] : memref<1x4x81x16xf32, #tpu.memory_space<vmem>>, vector<1x1x81x16xf32>
    %5 = vector.shape_cast %4 : vector<1x1x81x16xf32> to vector<81x16xf32>
    %c0_9 = arith.constant 0 : index
    %c3 = arith.constant 3 : index
    %c0_10 = arith.constant 0 : index
    %c0_11 = arith.constant 0 : index
    %6 = vector.load %arg1[%c0_9, %c3, %c0_10, %c0_11] : memref<1x4x81x16xf32, #tpu.memory_space<vmem>>, vector<1x1x81x16xf32>
    %7 = vector.shape_cast %6 : vector<1x1x81x16xf32> to vector<81x16xf32>
    %c0_12 = arith.constant 0 : index
    %c0_13 = arith.constant 0 : index
    %8 = vector.load %arg3[%c0_12, %c0_13] : memref<9x16xf32, #tpu.memory_space<vmem>>, vector<9x16xf32>
    %cst = arith.constant 0.000000e+00 : f32
    %9 = vector.broadcast %cst : f32 to vector<71x16xf32>
    %10 = vector.extract_strided_slice %1 {offsets = [0, 0], sizes = [71, 16], strides = [1, 1]} : vector<81x16xf32> to vector<71x16xf32>
    %11 = vector.extract_strided_slice %8 {offsets = [0, 0], sizes = [1, 16], strides = [1, 1]} : vector<9x16xf32> to vector<1x16xf32>
    %12 = vector.broadcast %11 : vector<1x16xf32> to vector<71x16xf32>
    %13 = arith.mulf %10, %12 : vector<71x16xf32>
    %14 = arith.addf %9, %13 : vector<71x16xf32>
    %15 = vector.extract_strided_slice %3 {offsets = [0, 0], sizes = [71, 16], strides = [1, 1]} : vector<81x16xf32> to vector<71x16xf32>
    %16 = vector.extract_strided_slice %8 {offsets = [1, 0], sizes = [1, 16], strides = [1, 1]} : vector<9x16xf32> to vector<1x16xf32>
    %17 = vector.broadcast %16 : vector<1x16xf32> to vector<71x16xf32>
    %18 = arith.mulf %15, %17 : vector<71x16xf32>
    %19 = arith.addf %14, %18 : vector<71x16xf32>
    %20 = vector.extract_strided_slice %1 {offsets = [1, 0], sizes = [71, 16], strides = [1, 1]} : vector<81x16xf32> to vector<71x16xf32>
    %21 = vector.extract_strided_slice %8 {offsets = [2, 0], sizes = [1, 16], strides = [1, 1]} : vector<9x16xf32> to vector<1x16xf32>
    %22 = vector.broadcast %21 : vector<1x16xf32> to vector<71x16xf32>
    %23 = arith.mulf %20, %22 : vector<71x16xf32>
    %24 = arith.addf %19, %23 : vector<71x16xf32>
    %25 = vector.extract_strided_slice %5 {offsets = [0, 0], sizes = [71, 16], strides = [1, 1]} : vector<81x16xf32> to vector<71x16xf32>
    %26 = vector.extract_strided_slice %8 {offsets = [3, 0], sizes = [1, 16], strides = [1, 1]} : vector<9x16xf32> to vector<1x16xf32>
    %27 = vector.broadcast %26 : vector<1x16xf32> to vector<71x16xf32>
    %28 = arith.mulf %25, %27 : vector<71x16xf32>
    %29 = arith.addf %24, %28 : vector<71x16xf32>
    %30 = vector.extract_strided_slice %7 {offsets = [0, 0], sizes = [71, 16], strides = [1, 1]} : vector<81x16xf32> to vector<71x16xf32>
    %31 = vector.extract_strided_slice %8 {offsets = [4, 0], sizes = [1, 16], strides = [1, 1]} : vector<9x16xf32> to vector<1x16xf32>
    %32 = vector.broadcast %31 : vector<1x16xf32> to vector<71x16xf32>
    %33 = arith.mulf %30, %32 : vector<71x16xf32>
    %34 = arith.addf %29, %33 : vector<71x16xf32>
    %35 = vector.extract_strided_slice %5 {offsets = [1, 0], sizes = [71, 16], strides = [1, 1]} : vector<81x16xf32> to vector<71x16xf32>
    %36 = vector.extract_strided_slice %8 {offsets = [5, 0], sizes = [1, 16], strides = [1, 1]} : vector<9x16xf32> to vector<1x16xf32>
    %37 = vector.broadcast %36 : vector<1x16xf32> to vector<71x16xf32>
    %38 = arith.mulf %35, %37 : vector<71x16xf32>
    %39 = arith.addf %34, %38 : vector<71x16xf32>
    %40 = vector.extract_strided_slice %1 {offsets = [9, 0], sizes = [71, 16], strides = [1, 1]} : vector<81x16xf32> to vector<71x16xf32>
    %41 = vector.extract_strided_slice %8 {offsets = [6, 0], sizes = [1, 16], strides = [1, 1]} : vector<9x16xf32> to vector<1x16xf32>
    %42 = vector.broadcast %41 : vector<1x16xf32> to vector<71x16xf32>
    %43 = arith.mulf %40, %42 : vector<71x16xf32>
    %44 = arith.addf %39, %43 : vector<71x16xf32>
    %45 = vector.extract_strided_slice %3 {offsets = [9, 0], sizes = [71, 16], strides = [1, 1]} : vector<81x16xf32> to vector<71x16xf32>
    %46 = vector.extract_strided_slice %8 {offsets = [7, 0], sizes = [1, 16], strides = [1, 1]} : vector<9x16xf32> to vector<1x16xf32>
    %47 = vector.broadcast %46 : vector<1x16xf32> to vector<71x16xf32>
    %48 = arith.mulf %45, %47 : vector<71x16xf32>
    %49 = arith.addf %44, %48 : vector<71x16xf32>
    %50 = vector.extract_strided_slice %1 {offsets = [10, 0], sizes = [71, 16], strides = [1, 1]} : vector<81x16xf32> to vector<71x16xf32>
    %51 = vector.extract_strided_slice %8 {offsets = [8, 0], sizes = [1, 16], strides = [1, 1]} : vector<9x16xf32> to vector<1x16xf32>
    %52 = vector.broadcast %51 : vector<1x16xf32> to vector<71x16xf32>
    %53 = arith.mulf %50, %52 : vector<71x16xf32>
    %54 = arith.addf %49, %53 : vector<71x16xf32>
    %c0_14 = arith.constant 0 : index
    %c0_15 = arith.constant 0 : index
    %55 = vector.load %arg4[%c0_14, %c0_15] : memref<1x16xf32, #tpu.memory_space<vmem>>, vector<1x16xf32>
    %56 = vector.broadcast %55 : vector<1x16xf32> to vector<71x16xf32>
    %57 = arith.addf %54, %56 : vector<71x16xf32>
    %c0_16 = arith.constant 0 : index
    %c0_17 = arith.constant 0 : index
    %58 = vector.load %arg5[%c0_16, %c0_17] : memref<16x32xf32, #tpu.memory_space<vmem>>, vector<16x32xf32>
    %cst_18 = arith.constant dense<0.000000e+00> : vector<71x32xf32>
    %59 = tpu.matmul %57, %58, %cst_18 {dimension_numbers = #tpu.dot_dimension_numbers<[1], [0], [0], [1], [0, 0, 1, 1], [], []>} : vector<71x16xf32>, vector<16x32xf32>, vector<71x32xf32> -> vector<71x32xf32>
    %c0_19 = arith.constant 0 : index
    %c0_20 = arith.constant 0 : index
    %60 = vector.load %arg6[%c0_19, %c0_20] : memref<1x32xf32, #tpu.memory_space<vmem>>, vector<1x32xf32>
    %61 = vector.broadcast %60 : vector<1x32xf32> to vector<71x32xf32>
    %62 = arith.addf %59, %61 : vector<71x32xf32>
    %cst_21 = arith.constant 0.000000e+00 : f32
    %63 = vector.broadcast %cst_21 : f32 to vector<71x32xf32>
    %64 = arith.maximumf %62, %63 : vector<71x32xf32>
    %c0_22 = arith.constant 0 : index
    %c0_23 = arith.constant 0 : index
    %65 = vector.load %arg7[%c0_22, %c0_23] : memref<16x16xf32, #tpu.memory_space<vmem>>, vector<16x16xf32>
    %cst_24 = arith.constant dense<0.000000e+00> : vector<81x16xf32>
    %66 = tpu.matmul %1, %65, %cst_24 {dimension_numbers = #tpu.dot_dimension_numbers<[1], [0], [0], [1], [0, 0, 1, 1], [], []>} : vector<81x16xf32>, vector<16x16xf32>, vector<81x16xf32> -> vector<81x16xf32>
    %c0_25 = arith.constant 0 : index
    %c0_26 = arith.constant 0 : index
    %67 = vector.load %arg8[%c0_25, %c0_26] : memref<1x16xf32, #tpu.memory_space<vmem>>, vector<1x16xf32>
    %68 = vector.broadcast %67 : vector<1x16xf32> to vector<81x16xf32>
    %69 = arith.addf %66, %68 : vector<81x16xf32>
    %cst_27 = arith.constant 0.000000e+00 : f32
    %70 = vector.broadcast %cst_27 : f32 to vector<81x16xf32>
    %71 = arith.maximumf %69, %70 : vector<81x16xf32>
    %c0_28 = arith.constant 0 : index
    %c0_29 = arith.constant 0 : index
    %c0_30 = arith.constant 0 : index
    %72 = vector.load %arg2[%c0_28, %c0_29, %c0_30] : memref<4x81x1xf32, #tpu.memory_space<vmem>>, vector<1x81x1xf32>
    %73 = vector.shape_cast %72 : vector<1x81x1xf32> to vector<81x1xf32>
    %74 = vector.broadcast %73 : vector<81x1xf32> to vector<81x16xf32>
    %75 = arith.mulf %71, %74 : vector<81x16xf32>
    %c0_31 = arith.constant 0 : index
    %c0_32 = arith.constant 0 : index
    %76 = vector.load %arg7[%c0_31, %c0_32] : memref<16x16xf32, #tpu.memory_space<vmem>>, vector<16x16xf32>
    %cst_33 = arith.constant dense<0.000000e+00> : vector<81x16xf32>
    %77 = tpu.matmul %3, %76, %cst_33 {dimension_numbers = #tpu.dot_dimension_numbers<[1], [0], [0], [1], [0, 0, 1, 1], [], []>} : vector<81x16xf32>, vector<16x16xf32>, vector<81x16xf32> -> vector<81x16xf32>
    %c0_34 = arith.constant 0 : index
    %c0_35 = arith.constant 0 : index
    %78 = vector.load %arg8[%c0_34, %c0_35] : memref<1x16xf32, #tpu.memory_space<vmem>>, vector<1x16xf32>
    %79 = vector.broadcast %78 : vector<1x16xf32> to vector<81x16xf32>
    %80 = arith.addf %77, %79 : vector<81x16xf32>
    %cst_36 = arith.constant 0.000000e+00 : f32
    %81 = vector.broadcast %cst_36 : f32 to vector<81x16xf32>
    %82 = arith.maximumf %80, %81 : vector<81x16xf32>
    %c1_37 = arith.constant 1 : index
    %c0_38 = arith.constant 0 : index
    %c0_39 = arith.constant 0 : index
    %83 = vector.load %arg2[%c1_37, %c0_38, %c0_39] : memref<4x81x1xf32, #tpu.memory_space<vmem>>, vector<1x81x1xf32>
    %84 = vector.shape_cast %83 : vector<1x81x1xf32> to vector<81x1xf32>
    %85 = vector.broadcast %84 : vector<81x1xf32> to vector<81x16xf32>
    %86 = arith.mulf %82, %85 : vector<81x16xf32>
    %c0_40 = arith.constant 0 : index
    %c0_41 = arith.constant 0 : index
    %87 = vector.load %arg7[%c0_40, %c0_41] : memref<16x16xf32, #tpu.memory_space<vmem>>, vector<16x16xf32>
    %cst_42 = arith.constant dense<0.000000e+00> : vector<81x16xf32>
    %88 = tpu.matmul %5, %87, %cst_42 {dimension_numbers = #tpu.dot_dimension_numbers<[1], [0], [0], [1], [0, 0, 1, 1], [], []>} : vector<81x16xf32>, vector<16x16xf32>, vector<81x16xf32> -> vector<81x16xf32>
    %c0_43 = arith.constant 0 : index
    %c0_44 = arith.constant 0 : index
    %89 = vector.load %arg8[%c0_43, %c0_44] : memref<1x16xf32, #tpu.memory_space<vmem>>, vector<1x16xf32>
    %90 = vector.broadcast %89 : vector<1x16xf32> to vector<81x16xf32>
    %91 = arith.addf %88, %90 : vector<81x16xf32>
    %cst_45 = arith.constant 0.000000e+00 : f32
    %92 = vector.broadcast %cst_45 : f32 to vector<81x16xf32>
    %93 = arith.maximumf %91, %92 : vector<81x16xf32>
    %c2_46 = arith.constant 2 : index
    %c0_47 = arith.constant 0 : index
    %c0_48 = arith.constant 0 : index
    %94 = vector.load %arg2[%c2_46, %c0_47, %c0_48] : memref<4x81x1xf32, #tpu.memory_space<vmem>>, vector<1x81x1xf32>
    %95 = vector.shape_cast %94 : vector<1x81x1xf32> to vector<81x1xf32>
    %96 = vector.broadcast %95 : vector<81x1xf32> to vector<81x16xf32>
    %97 = arith.mulf %93, %96 : vector<81x16xf32>
    %c0_49 = arith.constant 0 : index
    %c0_50 = arith.constant 0 : index
    %98 = vector.load %arg7[%c0_49, %c0_50] : memref<16x16xf32, #tpu.memory_space<vmem>>, vector<16x16xf32>
    %cst_51 = arith.constant dense<0.000000e+00> : vector<81x16xf32>
    %99 = tpu.matmul %7, %98, %cst_51 {dimension_numbers = #tpu.dot_dimension_numbers<[1], [0], [0], [1], [0, 0, 1, 1], [], []>} : vector<81x16xf32>, vector<16x16xf32>, vector<81x16xf32> -> vector<81x16xf32>
    %c0_52 = arith.constant 0 : index
    %c0_53 = arith.constant 0 : index
    %100 = vector.load %arg8[%c0_52, %c0_53] : memref<1x16xf32, #tpu.memory_space<vmem>>, vector<1x16xf32>
    %101 = vector.broadcast %100 : vector<1x16xf32> to vector<81x16xf32>
    %102 = arith.addf %99, %101 : vector<81x16xf32>
    %cst_54 = arith.constant 0.000000e+00 : f32
    %103 = vector.broadcast %cst_54 : f32 to vector<81x16xf32>
    %104 = arith.maximumf %102, %103 : vector<81x16xf32>
    %c3_55 = arith.constant 3 : index
    %c0_56 = arith.constant 0 : index
    %c0_57 = arith.constant 0 : index
    %105 = vector.load %arg2[%c3_55, %c0_56, %c0_57] : memref<4x81x1xf32, #tpu.memory_space<vmem>>, vector<1x81x1xf32>
    %106 = vector.shape_cast %105 : vector<1x81x1xf32> to vector<81x1xf32>
    %107 = vector.broadcast %106 : vector<81x1xf32> to vector<81x16xf32>
    %108 = arith.mulf %104, %107 : vector<81x16xf32>
    %c0_58 = arith.constant 0 : index
    %c0_59 = arith.constant 0 : index
    %109 = vector.load %arg9[%c0_58, %c0_59] : memref<9x16xf32, #tpu.memory_space<vmem>>, vector<9x16xf32>
    %cst_60 = arith.constant 0.000000e+00 : f32
    %110 = vector.broadcast %cst_60 : f32 to vector<71x16xf32>
    %111 = vector.extract_strided_slice %75 {offsets = [0, 0], sizes = [71, 16], strides = [1, 1]} : vector<81x16xf32> to vector<71x16xf32>
    %112 = vector.extract_strided_slice %109 {offsets = [0, 0], sizes = [1, 16], strides = [1, 1]} : vector<9x16xf32> to vector<1x16xf32>
    %113 = vector.broadcast %112 : vector<1x16xf32> to vector<71x16xf32>
    %114 = arith.mulf %111, %113 : vector<71x16xf32>
    %115 = arith.addf %110, %114 : vector<71x16xf32>
    %116 = vector.extract_strided_slice %86 {offsets = [0, 0], sizes = [71, 16], strides = [1, 1]} : vector<81x16xf32> to vector<71x16xf32>
    %117 = vector.extract_strided_slice %109 {offsets = [1, 0], sizes = [1, 16], strides = [1, 1]} : vector<9x16xf32> to vector<1x16xf32>
    %118 = vector.broadcast %117 : vector<1x16xf32> to vector<71x16xf32>
    %119 = arith.mulf %116, %118 : vector<71x16xf32>
    %120 = arith.addf %115, %119 : vector<71x16xf32>
    %121 = vector.extract_strided_slice %75 {offsets = [1, 0], sizes = [71, 16], strides = [1, 1]} : vector<81x16xf32> to vector<71x16xf32>
    %122 = vector.extract_strided_slice %109 {offsets = [2, 0], sizes = [1, 16], strides = [1, 1]} : vector<9x16xf32> to vector<1x16xf32>
    %123 = vector.broadcast %122 : vector<1x16xf32> to vector<71x16xf32>
    %124 = arith.mulf %121, %123 : vector<71x16xf32>
    %125 = arith.addf %120, %124 : vector<71x16xf32>
    %126 = vector.extract_strided_slice %97 {offsets = [0, 0], sizes = [71, 16], strides = [1, 1]} : vector<81x16xf32> to vector<71x16xf32>
    %127 = vector.extract_strided_slice %109 {offsets = [3, 0], sizes = [1, 16], strides = [1, 1]} : vector<9x16xf32> to vector<1x16xf32>
    %128 = vector.broadcast %127 : vector<1x16xf32> to vector<71x16xf32>
    %129 = arith.mulf %126, %128 : vector<71x16xf32>
    %130 = arith.addf %125, %129 : vector<71x16xf32>
    %131 = vector.extract_strided_slice %108 {offsets = [0, 0], sizes = [71, 16], strides = [1, 1]} : vector<81x16xf32> to vector<71x16xf32>
    %132 = vector.extract_strided_slice %109 {offsets = [4, 0], sizes = [1, 16], strides = [1, 1]} : vector<9x16xf32> to vector<1x16xf32>
    %133 = vector.broadcast %132 : vector<1x16xf32> to vector<71x16xf32>
    %134 = arith.mulf %131, %133 : vector<71x16xf32>
    %135 = arith.addf %130, %134 : vector<71x16xf32>
    %136 = vector.extract_strided_slice %97 {offsets = [1, 0], sizes = [71, 16], strides = [1, 1]} : vector<81x16xf32> to vector<71x16xf32>
    %137 = vector.extract_strided_slice %109 {offsets = [5, 0], sizes = [1, 16], strides = [1, 1]} : vector<9x16xf32> to vector<1x16xf32>
    %138 = vector.broadcast %137 : vector<1x16xf32> to vector<71x16xf32>
    %139 = arith.mulf %136, %138 : vector<71x16xf32>
    %140 = arith.addf %135, %139 : vector<71x16xf32>
    %141 = vector.extract_strided_slice %75 {offsets = [9, 0], sizes = [71, 16], strides = [1, 1]} : vector<81x16xf32> to vector<71x16xf32>
    %142 = vector.extract_strided_slice %109 {offsets = [6, 0], sizes = [1, 16], strides = [1, 1]} : vector<9x16xf32> to vector<1x16xf32>
    %143 = vector.broadcast %142 : vector<1x16xf32> to vector<71x16xf32>
    %144 = arith.mulf %141, %143 : vector<71x16xf32>
    %145 = arith.addf %140, %144 : vector<71x16xf32>
    %146 = vector.extract_strided_slice %86 {offsets = [9, 0], sizes = [71, 16], strides = [1, 1]} : vector<81x16xf32> to vector<71x16xf32>
    %147 = vector.extract_strided_slice %109 {offsets = [7, 0], sizes = [1, 16], strides = [1, 1]} : vector<9x16xf32> to vector<1x16xf32>
    %148 = vector.broadcast %147 : vector<1x16xf32> to vector<71x16xf32>
    %149 = arith.mulf %146, %148 : vector<71x16xf32>
    %150 = arith.addf %145, %149 : vector<71x16xf32>
    %151 = vector.extract_strided_slice %75 {offsets = [10, 0], sizes = [71, 16], strides = [1, 1]} : vector<81x16xf32> to vector<71x16xf32>
    %152 = vector.extract_strided_slice %109 {offsets = [8, 0], sizes = [1, 16], strides = [1, 1]} : vector<9x16xf32> to vector<1x16xf32>
    %153 = vector.broadcast %152 : vector<1x16xf32> to vector<71x16xf32>
    %154 = arith.mulf %151, %153 : vector<71x16xf32>
    %155 = arith.addf %150, %154 : vector<71x16xf32>
    %c0_61 = arith.constant 0 : index
    %c0_62 = arith.constant 0 : index
    %156 = vector.load %arg10[%c0_61, %c0_62] : memref<1x16xf32, #tpu.memory_space<vmem>>, vector<1x16xf32>
    %157 = vector.broadcast %156 : vector<1x16xf32> to vector<71x16xf32>
    %158 = arith.addf %155, %157 : vector<71x16xf32>
    %c0_63 = arith.constant 0 : index
    %c0_64 = arith.constant 0 : index
    %159 = vector.load %arg11[%c0_63, %c0_64] : memref<16x32xf32, #tpu.memory_space<vmem>>, vector<16x32xf32>
    %cst_65 = arith.constant dense<0.000000e+00> : vector<71x32xf32>
    %160 = tpu.matmul %158, %159, %cst_65 {dimension_numbers = #tpu.dot_dimension_numbers<[1], [0], [0], [1], [0, 0, 1, 1], [], []>} : vector<71x16xf32>, vector<16x32xf32>, vector<71x32xf32> -> vector<71x32xf32>
    %c0_66 = arith.constant 0 : index
    %c0_67 = arith.constant 0 : index
    %161 = vector.load %arg12[%c0_66, %c0_67] : memref<1x32xf32, #tpu.memory_space<vmem>>, vector<1x32xf32>
    %162 = vector.broadcast %161 : vector<1x32xf32> to vector<71x32xf32>
    %163 = arith.addf %160, %162 : vector<71x32xf32>
    %cst_68 = arith.constant 0.000000e+00 : f32
    %164 = vector.broadcast %cst_68 : f32 to vector<71x32xf32>
    %165 = arith.maximumf %163, %164 : vector<71x32xf32>
    %166 = arith.addf %64, %165 : vector<71x32xf32>
    %167 = vector.extract_strided_slice %166 {offsets = [0, 0], sizes = [8, 32], strides = [1, 1]} : vector<71x32xf32> to vector<8x32xf32>
    %c0_69 = arith.constant 0 : index
    %c0_70 = arith.constant 0 : index
    %c0_71 = arith.constant 0 : index
    %c0_72 = arith.constant 0 : index
    %168 = vector.load %arg13[%c0_69, %c0_70, %c0_71, %c0_72] : memref<1x8x8x32xf32, #tpu.memory_space<vmem>>, vector<1x1x8x32xf32>
    %169 = vector.shape_cast %168 : vector<1x1x8x32xf32> to vector<8x32xf32>
    %170 = vector.shape_cast %167 : vector<8x32xf32> to vector<1x1x8x32xf32>
    tpu.vector_store %arg13[%c0_69, %c0_70, %c0_71, %c0_72], %170 {strides = array<i32>} : memref<1x8x8x32xf32, #tpu.memory_space<vmem>>, vector<1x1x8x32xf32>,
    %171 = vector.extract_strided_slice %166 {offsets = [9, 0], sizes = [8, 32], strides = [1, 1]} : vector<71x32xf32> to vector<8x32xf32>
    %c0_73 = arith.constant 0 : index
    %c1_74 = arith.constant 1 : index
    %c0_75 = arith.constant 0 : index
    %c0_76 = arith.constant 0 : index
    %172 = vector.load %arg13[%c0_73, %c1_74, %c0_75, %c0_76] : memref<1x8x8x32xf32, #tpu.memory_space<vmem>>, vector<1x1x8x32xf32>
    %173 = vector.shape_cast %172 : vector<1x1x8x32xf32> to vector<8x32xf32>
    %174 = vector.shape_cast %171 : vector<8x32xf32> to vector<1x1x8x32xf32>
    tpu.vector_store %arg13[%c0_73, %c1_74, %c0_75, %c0_76], %174 {strides = array<i32>} : memref<1x8x8x32xf32, #tpu.memory_space<vmem>>, vector<1x1x8x32xf32>,
    %175 = vector.extract_strided_slice %166 {offsets = [18, 0], sizes = [8, 32], strides = [1, 1]} : vector<71x32xf32> to vector<8x32xf32>
    %c0_77 = arith.constant 0 : index
    %c2_78 = arith.constant 2 : index
    %c0_79 = arith.constant 0 : index
    %c0_80 = arith.constant 0 : index
    %176 = vector.load %arg13[%c0_77, %c2_78, %c0_79, %c0_80] : memref<1x8x8x32xf32, #tpu.memory_space<vmem>>, vector<1x1x8x32xf32>
    %177 = vector.shape_cast %176 : vector<1x1x8x32xf32> to vector<8x32xf32>
    %178 = vector.shape_cast %175 : vector<8x32xf32> to vector<1x1x8x32xf32>
    tpu.vector_store %arg13[%c0_77, %c2_78, %c0_79, %c0_80], %178 {strides = array<i32>} : memref<1x8x8x32xf32, #tpu.memory_space<vmem>>, vector<1x1x8x32xf32>,
    %179 = vector.extract_strided_slice %166 {offsets = [27, 0], sizes = [8, 32], strides = [1, 1]} : vector<71x32xf32> to vector<8x32xf32>
    %c0_81 = arith.constant 0 : index
    %c3_82 = arith.constant 3 : index
    %c0_83 = arith.constant 0 : index
    %c0_84 = arith.constant 0 : index
    %180 = vector.load %arg13[%c0_81, %c3_82, %c0_83, %c0_84] : memref<1x8x8x32xf32, #tpu.memory_space<vmem>>, vector<1x1x8x32xf32>
    %181 = vector.shape_cast %180 : vector<1x1x8x32xf32> to vector<8x32xf32>
    %182 = vector.shape_cast %179 : vector<8x32xf32> to vector<1x1x8x32xf32>
    tpu.vector_store %arg13[%c0_81, %c3_82, %c0_83, %c0_84], %182 {strides = array<i32>} : memref<1x8x8x32xf32, #tpu.memory_space<vmem>>, vector<1x1x8x32xf32>,
    %183 = vector.extract_strided_slice %166 {offsets = [36, 0], sizes = [8, 32], strides = [1, 1]} : vector<71x32xf32> to vector<8x32xf32>
    %c0_85 = arith.constant 0 : index
    %c4 = arith.constant 4 : index
    %c0_86 = arith.constant 0 : index
    %c0_87 = arith.constant 0 : index
    %184 = vector.load %arg13[%c0_85, %c4, %c0_86, %c0_87] : memref<1x8x8x32xf32, #tpu.memory_space<vmem>>, vector<1x1x8x32xf32>
    %185 = vector.shape_cast %184 : vector<1x1x8x32xf32> to vector<8x32xf32>
    %186 = vector.shape_cast %183 : vector<8x32xf32> to vector<1x1x8x32xf32>
    tpu.vector_store %arg13[%c0_85, %c4, %c0_86, %c0_87], %186 {strides = array<i32>} : memref<1x8x8x32xf32, #tpu.memory_space<vmem>>, vector<1x1x8x32xf32>,
    %187 = vector.extract_strided_slice %166 {offsets = [45, 0], sizes = [8, 32], strides = [1, 1]} : vector<71x32xf32> to vector<8x32xf32>
    %c0_88 = arith.constant 0 : index
    %c5 = arith.constant 5 : index
    %c0_89 = arith.constant 0 : index
    %c0_90 = arith.constant 0 : index
    %188 = vector.load %arg13[%c0_88, %c5, %c0_89, %c0_90] : memref<1x8x8x32xf32, #tpu.memory_space<vmem>>, vector<1x1x8x32xf32>
    %189 = vector.shape_cast %188 : vector<1x1x8x32xf32> to vector<8x32xf32>
    %190 = vector.shape_cast %187 : vector<8x32xf32> to vector<1x1x8x32xf32>
    tpu.vector_store %arg13[%c0_88, %c5, %c0_89, %c0_90], %190 {strides = array<i32>} : memref<1x8x8x32xf32, #tpu.memory_space<vmem>>, vector<1x1x8x32xf32>,
    %191 = vector.extract_strided_slice %166 {offsets = [54, 0], sizes = [8, 32], strides = [1, 1]} : vector<71x32xf32> to vector<8x32xf32>
    %c0_91 = arith.constant 0 : index
    %c6 = arith.constant 6 : index
    %c0_92 = arith.constant 0 : index
    %c0_93 = arith.constant 0 : index
    %192 = vector.load %arg13[%c0_91, %c6, %c0_92, %c0_93] : memref<1x8x8x32xf32, #tpu.memory_space<vmem>>, vector<1x1x8x32xf32>
    %193 = vector.shape_cast %192 : vector<1x1x8x32xf32> to vector<8x32xf32>
    %194 = vector.shape_cast %191 : vector<8x32xf32> to vector<1x1x8x32xf32>
    tpu.vector_store %arg13[%c0_91, %c6, %c0_92, %c0_93], %194 {strides = array<i32>} : memref<1x8x8x32xf32, #tpu.memory_space<vmem>>, vector<1x1x8x32xf32>,
    %195 = vector.extract_strided_slice %166 {offsets = [63, 0], sizes = [8, 32], strides = [1, 1]} : vector<71x32xf32> to vector<8x32xf32>
    %c0_94 = arith.constant 0 : index
    %c7 = arith.constant 7 : index
    %c0_95 = arith.constant 0 : index
    %c0_96 = arith.constant 0 : index
    %196 = vector.load %arg13[%c0_94, %c7, %c0_95, %c0_96] : memref<1x8x8x32xf32, #tpu.memory_space<vmem>>, vector<1x1x8x32xf32>
    %197 = vector.shape_cast %196 : vector<1x1x8x32xf32> to vector<8x32xf32>
    %198 = vector.shape_cast %195 : vector<8x32xf32> to vector<1x1x8x32xf32>
    tpu.vector_store %arg13[%c0_94, %c7, %c0_95, %c0_96], %198 {strides = array<i32>} : memref<1x8x8x32xf32, #tpu.memory_space<vmem>>, vector<1x1x8x32xf32>,
    return
  }
  func.func @transform_0(%arg0: i32) -> (i32, i32, i32, i32) {
    %c0_i32 = arith.constant 0 : i32
    %c0_i32_0 = arith.constant 0 : i32
    %c0_i32_1 = arith.constant 0 : i32
    %c0_i32_2 = arith.constant 0 : i32
    return %arg0, %c0_i32, %c0_i32_0, %c0_i32_1 : i32, i32, i32, i32
  }
  func.func @transform_1(%arg0: i32) -> (i32, i32, i32) {
    %c0_i32 = arith.constant 0 : i32
    %c0_i32_0 = arith.constant 0 : i32
    %c0_i32_1 = arith.constant 0 : i32
    %c0_i32_2 = arith.constant 0 : i32
    return %c0_i32, %c0_i32_0, %c0_i32_1 : i32, i32, i32
  }
  func.func @transform_2(%arg0: i32) -> (i32, i32) {
    %c0_i32 = arith.constant 0 : i32
    %c0_i32_0 = arith.constant 0 : i32
    %c0_i32_1 = arith.constant 0 : i32
    return %c0_i32, %c0_i32_0 : i32, i32
  }
  func.func @transform_3(%arg0: i32) -> (i32, i32) {
    %c0_i32 = arith.constant 0 : i32
    %c0_i32_0 = arith.constant 0 : i32
    %c0_i32_1 = arith.constant 0 : i32
    return %c0_i32, %c0_i32_0 : i32, i32
  }
  func.func @transform_4(%arg0: i32) -> (i32, i32) {
    %c0_i32 = arith.constant 0 : i32
    %c0_i32_0 = arith.constant 0 : i32
    %c0_i32_1 = arith.constant 0 : i32
    return %c0_i32, %c0_i32_0 : i32, i32
  }
  func.func @transform_5(%arg0: i32) -> (i32, i32) {
    %c0_i32 = arith.constant 0 : i32
    %c0_i32_0 = arith.constant 0 : i32
    %c0_i32_1 = arith.constant 0 : i32
    return %c0_i32, %c0_i32_0 : i32, i32
  }
  func.func @transform_6(%arg0: i32) -> (i32, i32) {
    %c0_i32 = arith.constant 0 : i32
    %c0_i32_0 = arith.constant 0 : i32
    %c0_i32_1 = arith.constant 0 : i32
    return %c0_i32, %c0_i32_0 : i32, i32
  }
  func.func @transform_7(%arg0: i32) -> (i32, i32) {
    %c0_i32 = arith.constant 0 : i32
    %c0_i32_0 = arith.constant 0 : i32
    %c0_i32_1 = arith.constant 0 : i32
    return %c0_i32, %c0_i32_0 : i32, i32
  }
  func.func @transform_8(%arg0: i32) -> (i32, i32) {
    %c0_i32 = arith.constant 0 : i32
    %c0_i32_0 = arith.constant 0 : i32
    %c0_i32_1 = arith.constant 0 : i32
    return %c0_i32, %c0_i32_0 : i32, i32
  }
  func.func @transform_9(%arg0: i32) -> (i32, i32) {
    %c0_i32 = arith.constant 0 : i32
    %c0_i32_0 = arith.constant 0 : i32
    %c0_i32_1 = arith.constant 0 : i32
    return %c0_i32, %c0_i32_0 : i32, i32
  }
  func.func @transform_10(%arg0: i32) -> (i32, i32) {
    %c0_i32 = arith.constant 0 : i32
    %c0_i32_0 = arith.constant 0 : i32
    %c0_i32_1 = arith.constant 0 : i32
    return %c0_i32, %c0_i32_0 : i32, i32
  }
  func.func @transform_11(%arg0: i32) -> (i32, i32) {
    %c0_i32 = arith.constant 0 : i32
    %c0_i32_0 = arith.constant 0 : i32
    %c0_i32_1 = arith.constant 0 : i32
    return %c0_i32, %c0_i32_0 : i32, i32
  }
  func.func @transform_12(%arg0: i32) -> (i32, i32, i32, i32) {
    %c0_i32 = arith.constant 0 : i32
    %c0_i32_0 = arith.constant 0 : i32
    %c0_i32_1 = arith.constant 0 : i32
    %c0_i32_2 = arith.constant 0 : i32
    return %arg0, %c0_i32, %c0_i32_0, %c0_i32_1 : i32, i32, i32, i32
  }
}

module attributes {stable_mosaic.version = 11 : i64} {
  func.func @_block_s1_kernel(%arg0: i32, %arg1: memref<1x100x32xf32, #tpu.memory_space<vmem>>, %arg2: memref<100x1xf32, #tpu.memory_space<vmem>>, %arg3: memref<32x16xf32, #tpu.memory_space<vmem>>, %arg4: memref<1x16xf32, #tpu.memory_space<vmem>>, %arg5: memref<9x16xf32, #tpu.memory_space<vmem>>, %arg6: memref<1x16xf32, #tpu.memory_space<vmem>>, %arg7: memref<16x32xf32, #tpu.memory_space<vmem>>, %arg8: memref<1x32xf32, #tpu.memory_space<vmem>>, %arg9: memref<32x32xf32, #tpu.memory_space<vmem>>, %arg10: memref<1x8x8x32xf32, #tpu.memory_space<vmem>>) attributes {dimension_semantics = [#tpu.dimension_semantics<parallel>], iteration_bounds = array<i64: 2>, scalar_prefetch = 0 : i64, scratch_operands = 0 : i64, tpu.core_type = #tpu.core_type<tc>, window_params = [{transform_indices = @transform_0, window_bounds = array<i64: 1, 100, 32>}, {pipeline_mode = #tpu.pipeline_mode<synchronous>, transform_indices = @transform_1, window_bounds = array<i64: 100, 1>}, {pipeline_mode = #tpu.pipeline_mode<synchronous>, transform_indices = @transform_2, window_bounds = array<i64: 32, 16>}, {pipeline_mode = #tpu.pipeline_mode<synchronous>, transform_indices = @transform_3, window_bounds = array<i64: 1, 16>}, {pipeline_mode = #tpu.pipeline_mode<synchronous>, transform_indices = @transform_4, window_bounds = array<i64: 9, 16>}, {pipeline_mode = #tpu.pipeline_mode<synchronous>, transform_indices = @transform_5, window_bounds = array<i64: 1, 16>}, {pipeline_mode = #tpu.pipeline_mode<synchronous>, transform_indices = @transform_6, window_bounds = array<i64: 16, 32>}, {pipeline_mode = #tpu.pipeline_mode<synchronous>, transform_indices = @transform_7, window_bounds = array<i64: 1, 32>}, {pipeline_mode = #tpu.pipeline_mode<synchronous>, transform_indices = @transform_8, window_bounds = array<i64: 32, 32>}, {transform_indices = @transform_9, window_bounds = array<i64: 1, 8, 8, 32>}]} {
    %c0 = arith.constant 0 : index
    %c0_0 = arith.constant 0 : index
    %c0_1 = arith.constant 0 : index
    %0 = vector.load %arg1[%c0, %c0_0, %c0_1] : memref<1x100x32xf32, #tpu.memory_space<vmem>>, vector<1x100x32xf32>
    %1 = vector.shape_cast %0 : vector<1x100x32xf32> to vector<100x32xf32>
    %c0_2 = arith.constant 0 : index
    %c0_3 = arith.constant 0 : index
    %2 = vector.load %arg3[%c0_2, %c0_3] : memref<32x16xf32, #tpu.memory_space<vmem>>, vector<32x16xf32>
    %cst = arith.constant dense<0.000000e+00> : vector<100x16xf32>
    %3 = tpu.matmul %1, %2, %cst {dimension_numbers = #tpu.dot_dimension_numbers<[1], [0], [0], [1], [0, 0, 1, 1], [], []>} : vector<100x32xf32>, vector<32x16xf32>, vector<100x16xf32> -> vector<100x16xf32>
    %c0_4 = arith.constant 0 : index
    %c0_5 = arith.constant 0 : index
    %4 = vector.load %arg4[%c0_4, %c0_5] : memref<1x16xf32, #tpu.memory_space<vmem>>, vector<1x16xf32>
    %5 = vector.broadcast %4 : vector<1x16xf32> to vector<100x16xf32>
    %6 = arith.addf %3, %5 : vector<100x16xf32>
    %cst_6 = arith.constant 0.000000e+00 : f32
    %7 = vector.broadcast %cst_6 : f32 to vector<100x16xf32>
    %8 = arith.maximumf %6, %7 : vector<100x16xf32>
    %c0_7 = arith.constant 0 : index
    %c0_8 = arith.constant 0 : index
    %9 = vector.load %arg2[%c0_7, %c0_8] : memref<100x1xf32, #tpu.memory_space<vmem>>, vector<100x1xf32>
    %10 = vector.broadcast %9 : vector<100x1xf32> to vector<100x16xf32>
    %11 = arith.mulf %8, %10 : vector<100x16xf32>
    %c0_9 = arith.constant 0 : index
    %c0_10 = arith.constant 0 : index
    %12 = vector.load %arg5[%c0_9, %c0_10] : memref<9x16xf32, #tpu.memory_space<vmem>>, vector<9x16xf32>
    %cst_11 = arith.constant 0.000000e+00 : f32
    %13 = vector.broadcast %cst_11 : f32 to vector<78x16xf32>
    %14 = vector.extract_strided_slice %11 {offsets = [0, 0], sizes = [78, 16], strides = [1, 1]} : vector<100x16xf32> to vector<78x16xf32>
    %15 = vector.extract_strided_slice %12 {offsets = [0, 0], sizes = [1, 16], strides = [1, 1]} : vector<9x16xf32> to vector<1x16xf32>
    %16 = vector.broadcast %15 : vector<1x16xf32> to vector<78x16xf32>
    %17 = arith.mulf %14, %16 : vector<78x16xf32>
    %18 = arith.addf %13, %17 : vector<78x16xf32>
    %19 = vector.extract_strided_slice %11 {offsets = [1, 0], sizes = [78, 16], strides = [1, 1]} : vector<100x16xf32> to vector<78x16xf32>
    %20 = vector.extract_strided_slice %12 {offsets = [1, 0], sizes = [1, 16], strides = [1, 1]} : vector<9x16xf32> to vector<1x16xf32>
    %21 = vector.broadcast %20 : vector<1x16xf32> to vector<78x16xf32>
    %22 = arith.mulf %19, %21 : vector<78x16xf32>
    %23 = arith.addf %18, %22 : vector<78x16xf32>
    %24 = vector.extract_strided_slice %11 {offsets = [2, 0], sizes = [78, 16], strides = [1, 1]} : vector<100x16xf32> to vector<78x16xf32>
    %25 = vector.extract_strided_slice %12 {offsets = [2, 0], sizes = [1, 16], strides = [1, 1]} : vector<9x16xf32> to vector<1x16xf32>
    %26 = vector.broadcast %25 : vector<1x16xf32> to vector<78x16xf32>
    %27 = arith.mulf %24, %26 : vector<78x16xf32>
    %28 = arith.addf %23, %27 : vector<78x16xf32>
    %29 = vector.extract_strided_slice %11 {offsets = [10, 0], sizes = [78, 16], strides = [1, 1]} : vector<100x16xf32> to vector<78x16xf32>
    %30 = vector.extract_strided_slice %12 {offsets = [3, 0], sizes = [1, 16], strides = [1, 1]} : vector<9x16xf32> to vector<1x16xf32>
    %31 = vector.broadcast %30 : vector<1x16xf32> to vector<78x16xf32>
    %32 = arith.mulf %29, %31 : vector<78x16xf32>
    %33 = arith.addf %28, %32 : vector<78x16xf32>
    %34 = vector.extract_strided_slice %11 {offsets = [11, 0], sizes = [78, 16], strides = [1, 1]} : vector<100x16xf32> to vector<78x16xf32>
    %35 = vector.extract_strided_slice %12 {offsets = [4, 0], sizes = [1, 16], strides = [1, 1]} : vector<9x16xf32> to vector<1x16xf32>
    %36 = vector.broadcast %35 : vector<1x16xf32> to vector<78x16xf32>
    %37 = arith.mulf %34, %36 : vector<78x16xf32>
    %38 = arith.addf %33, %37 : vector<78x16xf32>
    %39 = vector.extract_strided_slice %11 {offsets = [12, 0], sizes = [78, 16], strides = [1, 1]} : vector<100x16xf32> to vector<78x16xf32>
    %40 = vector.extract_strided_slice %12 {offsets = [5, 0], sizes = [1, 16], strides = [1, 1]} : vector<9x16xf32> to vector<1x16xf32>
    %41 = vector.broadcast %40 : vector<1x16xf32> to vector<78x16xf32>
    %42 = arith.mulf %39, %41 : vector<78x16xf32>
    %43 = arith.addf %38, %42 : vector<78x16xf32>
    %44 = vector.extract_strided_slice %11 {offsets = [20, 0], sizes = [78, 16], strides = [1, 1]} : vector<100x16xf32> to vector<78x16xf32>
    %45 = vector.extract_strided_slice %12 {offsets = [6, 0], sizes = [1, 16], strides = [1, 1]} : vector<9x16xf32> to vector<1x16xf32>
    %46 = vector.broadcast %45 : vector<1x16xf32> to vector<78x16xf32>
    %47 = arith.mulf %44, %46 : vector<78x16xf32>
    %48 = arith.addf %43, %47 : vector<78x16xf32>
    %49 = vector.extract_strided_slice %11 {offsets = [21, 0], sizes = [78, 16], strides = [1, 1]} : vector<100x16xf32> to vector<78x16xf32>
    %50 = vector.extract_strided_slice %12 {offsets = [7, 0], sizes = [1, 16], strides = [1, 1]} : vector<9x16xf32> to vector<1x16xf32>
    %51 = vector.broadcast %50 : vector<1x16xf32> to vector<78x16xf32>
    %52 = arith.mulf %49, %51 : vector<78x16xf32>
    %53 = arith.addf %48, %52 : vector<78x16xf32>
    %54 = vector.extract_strided_slice %11 {offsets = [22, 0], sizes = [78, 16], strides = [1, 1]} : vector<100x16xf32> to vector<78x16xf32>
    %55 = vector.extract_strided_slice %12 {offsets = [8, 0], sizes = [1, 16], strides = [1, 1]} : vector<9x16xf32> to vector<1x16xf32>
    %56 = vector.broadcast %55 : vector<1x16xf32> to vector<78x16xf32>
    %57 = arith.mulf %54, %56 : vector<78x16xf32>
    %58 = arith.addf %53, %57 : vector<78x16xf32>
    %c0_12 = arith.constant 0 : index
    %c0_13 = arith.constant 0 : index
    %59 = vector.load %arg6[%c0_12, %c0_13] : memref<1x16xf32, #tpu.memory_space<vmem>>, vector<1x16xf32>
    %60 = vector.broadcast %59 : vector<1x16xf32> to vector<78x16xf32>
    %61 = arith.addf %58, %60 : vector<78x16xf32>
    %62 = vector.extract_strided_slice %1 {offsets = [11, 0], sizes = [78, 32], strides = [1, 1]} : vector<100x32xf32> to vector<78x32xf32>
    %c0_14 = arith.constant 0 : index
    %c0_15 = arith.constant 0 : index
    %63 = vector.load %arg9[%c0_14, %c0_15] : memref<32x32xf32, #tpu.memory_space<vmem>>, vector<32x32xf32>
    %cst_16 = arith.constant dense<0.000000e+00> : vector<78x32xf32>
    %64 = tpu.matmul %62, %63, %cst_16 {dimension_numbers = #tpu.dot_dimension_numbers<[1], [0], [0], [1], [0, 0, 1, 1], [], []>} : vector<78x32xf32>, vector<32x32xf32>, vector<78x32xf32> -> vector<78x32xf32>
    %c0_17 = arith.constant 0 : index
    %c0_18 = arith.constant 0 : index
    %65 = vector.load %arg7[%c0_17, %c0_18] : memref<16x32xf32, #tpu.memory_space<vmem>>, vector<16x32xf32>
    %cst_19 = arith.constant dense<0.000000e+00> : vector<78x32xf32>
    %66 = tpu.matmul %61, %65, %cst_19 {dimension_numbers = #tpu.dot_dimension_numbers<[1], [0], [0], [1], [0, 0, 1, 1], [], []>} : vector<78x16xf32>, vector<16x32xf32>, vector<78x32xf32> -> vector<78x32xf32>
    %c0_20 = arith.constant 0 : index
    %c0_21 = arith.constant 0 : index
    %67 = vector.load %arg8[%c0_20, %c0_21] : memref<1x32xf32, #tpu.memory_space<vmem>>, vector<1x32xf32>
    %68 = vector.broadcast %67 : vector<1x32xf32> to vector<78x32xf32>
    %69 = arith.addf %66, %68 : vector<78x32xf32>
    %cst_22 = arith.constant 0.000000e+00 : f32
    %70 = vector.broadcast %cst_22 : f32 to vector<78x32xf32>
    %71 = arith.maximumf %69, %70 : vector<78x32xf32>
    %72 = arith.addf %64, %71 : vector<78x32xf32>
    %73 = vector.extract_strided_slice %72 {offsets = [0, 0], sizes = [8, 32], strides = [1, 1]} : vector<78x32xf32> to vector<8x32xf32>
    %c0_23 = arith.constant 0 : index
    %c0_24 = arith.constant 0 : index
    %c0_25 = arith.constant 0 : index
    %c0_26 = arith.constant 0 : index
    %74 = vector.load %arg10[%c0_23, %c0_24, %c0_25, %c0_26] : memref<1x8x8x32xf32, #tpu.memory_space<vmem>>, vector<1x1x8x32xf32>
    %75 = vector.shape_cast %74 : vector<1x1x8x32xf32> to vector<8x32xf32>
    %76 = vector.shape_cast %73 : vector<8x32xf32> to vector<1x1x8x32xf32>
    tpu.vector_store %arg10[%c0_23, %c0_24, %c0_25, %c0_26], %76 {strides = array<i32>} : memref<1x8x8x32xf32, #tpu.memory_space<vmem>>, vector<1x1x8x32xf32>,
    %77 = vector.extract_strided_slice %72 {offsets = [10, 0], sizes = [8, 32], strides = [1, 1]} : vector<78x32xf32> to vector<8x32xf32>
    %c0_27 = arith.constant 0 : index
    %c1 = arith.constant 1 : index
    %c0_28 = arith.constant 0 : index
    %c0_29 = arith.constant 0 : index
    %78 = vector.load %arg10[%c0_27, %c1, %c0_28, %c0_29] : memref<1x8x8x32xf32, #tpu.memory_space<vmem>>, vector<1x1x8x32xf32>
    %79 = vector.shape_cast %78 : vector<1x1x8x32xf32> to vector<8x32xf32>
    %80 = vector.shape_cast %77 : vector<8x32xf32> to vector<1x1x8x32xf32>
    tpu.vector_store %arg10[%c0_27, %c1, %c0_28, %c0_29], %80 {strides = array<i32>} : memref<1x8x8x32xf32, #tpu.memory_space<vmem>>, vector<1x1x8x32xf32>,
    %81 = vector.extract_strided_slice %72 {offsets = [20, 0], sizes = [8, 32], strides = [1, 1]} : vector<78x32xf32> to vector<8x32xf32>
    %c0_30 = arith.constant 0 : index
    %c2 = arith.constant 2 : index
    %c0_31 = arith.constant 0 : index
    %c0_32 = arith.constant 0 : index
    %82 = vector.load %arg10[%c0_30, %c2, %c0_31, %c0_32] : memref<1x8x8x32xf32, #tpu.memory_space<vmem>>, vector<1x1x8x32xf32>
    %83 = vector.shape_cast %82 : vector<1x1x8x32xf32> to vector<8x32xf32>
    %84 = vector.shape_cast %81 : vector<8x32xf32> to vector<1x1x8x32xf32>
    tpu.vector_store %arg10[%c0_30, %c2, %c0_31, %c0_32], %84 {strides = array<i32>} : memref<1x8x8x32xf32, #tpu.memory_space<vmem>>, vector<1x1x8x32xf32>,
    %85 = vector.extract_strided_slice %72 {offsets = [30, 0], sizes = [8, 32], strides = [1, 1]} : vector<78x32xf32> to vector<8x32xf32>
    %c0_33 = arith.constant 0 : index
    %c3 = arith.constant 3 : index
    %c0_34 = arith.constant 0 : index
    %c0_35 = arith.constant 0 : index
    %86 = vector.load %arg10[%c0_33, %c3, %c0_34, %c0_35] : memref<1x8x8x32xf32, #tpu.memory_space<vmem>>, vector<1x1x8x32xf32>
    %87 = vector.shape_cast %86 : vector<1x1x8x32xf32> to vector<8x32xf32>
    %88 = vector.shape_cast %85 : vector<8x32xf32> to vector<1x1x8x32xf32>
    tpu.vector_store %arg10[%c0_33, %c3, %c0_34, %c0_35], %88 {strides = array<i32>} : memref<1x8x8x32xf32, #tpu.memory_space<vmem>>, vector<1x1x8x32xf32>,
    %89 = vector.extract_strided_slice %72 {offsets = [40, 0], sizes = [8, 32], strides = [1, 1]} : vector<78x32xf32> to vector<8x32xf32>
    %c0_36 = arith.constant 0 : index
    %c4 = arith.constant 4 : index
    %c0_37 = arith.constant 0 : index
    %c0_38 = arith.constant 0 : index
    %90 = vector.load %arg10[%c0_36, %c4, %c0_37, %c0_38] : memref<1x8x8x32xf32, #tpu.memory_space<vmem>>, vector<1x1x8x32xf32>
    %91 = vector.shape_cast %90 : vector<1x1x8x32xf32> to vector<8x32xf32>
    %92 = vector.shape_cast %89 : vector<8x32xf32> to vector<1x1x8x32xf32>
    tpu.vector_store %arg10[%c0_36, %c4, %c0_37, %c0_38], %92 {strides = array<i32>} : memref<1x8x8x32xf32, #tpu.memory_space<vmem>>, vector<1x1x8x32xf32>,
    %93 = vector.extract_strided_slice %72 {offsets = [50, 0], sizes = [8, 32], strides = [1, 1]} : vector<78x32xf32> to vector<8x32xf32>
    %c0_39 = arith.constant 0 : index
    %c5 = arith.constant 5 : index
    %c0_40 = arith.constant 0 : index
    %c0_41 = arith.constant 0 : index
    %94 = vector.load %arg10[%c0_39, %c5, %c0_40, %c0_41] : memref<1x8x8x32xf32, #tpu.memory_space<vmem>>, vector<1x1x8x32xf32>
    %95 = vector.shape_cast %94 : vector<1x1x8x32xf32> to vector<8x32xf32>
    %96 = vector.shape_cast %93 : vector<8x32xf32> to vector<1x1x8x32xf32>
    tpu.vector_store %arg10[%c0_39, %c5, %c0_40, %c0_41], %96 {strides = array<i32>} : memref<1x8x8x32xf32, #tpu.memory_space<vmem>>, vector<1x1x8x32xf32>,
    %97 = vector.extract_strided_slice %72 {offsets = [60, 0], sizes = [8, 32], strides = [1, 1]} : vector<78x32xf32> to vector<8x32xf32>
    %c0_42 = arith.constant 0 : index
    %c6 = arith.constant 6 : index
    %c0_43 = arith.constant 0 : index
    %c0_44 = arith.constant 0 : index
    %98 = vector.load %arg10[%c0_42, %c6, %c0_43, %c0_44] : memref<1x8x8x32xf32, #tpu.memory_space<vmem>>, vector<1x1x8x32xf32>
    %99 = vector.shape_cast %98 : vector<1x1x8x32xf32> to vector<8x32xf32>
    %100 = vector.shape_cast %97 : vector<8x32xf32> to vector<1x1x8x32xf32>
    tpu.vector_store %arg10[%c0_42, %c6, %c0_43, %c0_44], %100 {strides = array<i32>} : memref<1x8x8x32xf32, #tpu.memory_space<vmem>>, vector<1x1x8x32xf32>,
    %101 = vector.extract_strided_slice %72 {offsets = [70, 0], sizes = [8, 32], strides = [1, 1]} : vector<78x32xf32> to vector<8x32xf32>
    %c0_45 = arith.constant 0 : index
    %c7 = arith.constant 7 : index
    %c0_46 = arith.constant 0 : index
    %c0_47 = arith.constant 0 : index
    %102 = vector.load %arg10[%c0_45, %c7, %c0_46, %c0_47] : memref<1x8x8x32xf32, #tpu.memory_space<vmem>>, vector<1x1x8x32xf32>
    %103 = vector.shape_cast %102 : vector<1x1x8x32xf32> to vector<8x32xf32>
    %104 = vector.shape_cast %101 : vector<8x32xf32> to vector<1x1x8x32xf32>
    tpu.vector_store %arg10[%c0_45, %c7, %c0_46, %c0_47], %104 {strides = array<i32>} : memref<1x8x8x32xf32, #tpu.memory_space<vmem>>, vector<1x1x8x32xf32>,
    return
  }
  func.func @transform_0(%arg0: i32) -> (i32, i32, i32) {
    %c0_i32 = arith.constant 0 : i32
    %c0_i32_0 = arith.constant 0 : i32
    %c0_i32_1 = arith.constant 0 : i32
    return %arg0, %c0_i32, %c0_i32_0 : i32, i32, i32
  }
  func.func @transform_1(%arg0: i32) -> (i32, i32) {
    %c0_i32 = arith.constant 0 : i32
    %c0_i32_0 = arith.constant 0 : i32
    %c0_i32_1 = arith.constant 0 : i32
    return %c0_i32, %c0_i32_0 : i32, i32
  }
  func.func @transform_2(%arg0: i32) -> (i32, i32) {
    %c0_i32 = arith.constant 0 : i32
    %c0_i32_0 = arith.constant 0 : i32
    %c0_i32_1 = arith.constant 0 : i32
    return %c0_i32, %c0_i32_0 : i32, i32
  }
  func.func @transform_3(%arg0: i32) -> (i32, i32) {
    %c0_i32 = arith.constant 0 : i32
    %c0_i32_0 = arith.constant 0 : i32
    %c0_i32_1 = arith.constant 0 : i32
    return %c0_i32, %c0_i32_0 : i32, i32
  }
  func.func @transform_4(%arg0: i32) -> (i32, i32) {
    %c0_i32 = arith.constant 0 : i32
    %c0_i32_0 = arith.constant 0 : i32
    %c0_i32_1 = arith.constant 0 : i32
    return %c0_i32, %c0_i32_0 : i32, i32
  }
  func.func @transform_5(%arg0: i32) -> (i32, i32) {
    %c0_i32 = arith.constant 0 : i32
    %c0_i32_0 = arith.constant 0 : i32
    %c0_i32_1 = arith.constant 0 : i32
    return %c0_i32, %c0_i32_0 : i32, i32
  }
  func.func @transform_6(%arg0: i32) -> (i32, i32) {
    %c0_i32 = arith.constant 0 : i32
    %c0_i32_0 = arith.constant 0 : i32
    %c0_i32_1 = arith.constant 0 : i32
    return %c0_i32, %c0_i32_0 : i32, i32
  }
  func.func @transform_7(%arg0: i32) -> (i32, i32) {
    %c0_i32 = arith.constant 0 : i32
    %c0_i32_0 = arith.constant 0 : i32
    %c0_i32_1 = arith.constant 0 : i32
    return %c0_i32, %c0_i32_0 : i32, i32
  }
  func.func @transform_8(%arg0: i32) -> (i32, i32) {
    %c0_i32 = arith.constant 0 : i32
    %c0_i32_0 = arith.constant 0 : i32
    %c0_i32_1 = arith.constant 0 : i32
    return %c0_i32, %c0_i32_0 : i32, i32
  }
  func.func @transform_9(%arg0: i32) -> (i32, i32, i32, i32) {
    %c0_i32 = arith.constant 0 : i32
    %c0_i32_0 = arith.constant 0 : i32
    %c0_i32_1 = arith.constant 0 : i32
    %c0_i32_2 = arith.constant 0 : i32
    return %arg0, %c0_i32, %c0_i32_0, %c0_i32_1 : i32, i32, i32, i32
  }
}

module attributes {stable_mosaic.version = 11 : i64} {
  func.func @_block_s2_kernel(%arg0: i32, %arg1: memref<1x4x25x32xf32, #tpu.memory_space<vmem>>, %arg2: memref<4x25x1xf32, #tpu.memory_space<vmem>>, %arg3: memref<9x32xf32, #tpu.memory_space<vmem>>, %arg4: memref<1x32xf32, #tpu.memory_space<vmem>>, %arg5: memref<32x64xf32, #tpu.memory_space<vmem>>, %arg6: memref<1x64xf32, #tpu.memory_space<vmem>>, %arg7: memref<32x32xf32, #tpu.memory_space<vmem>>, %arg8: memref<1x32xf32, #tpu.memory_space<vmem>>, %arg9: memref<9x32xf32, #tpu.memory_space<vmem>>, %arg10: memref<1x32xf32, #tpu.memory_space<vmem>>, %arg11: memref<32x64xf32, #tpu.memory_space<vmem>>, %arg12: memref<1x64xf32, #tpu.memory_space<vmem>>, %arg13: memref<1x4x4x64xf32, #tpu.memory_space<vmem>>) attributes {dimension_semantics = [#tpu.dimension_semantics<parallel>], iteration_bounds = array<i64: 2>, scalar_prefetch = 0 : i64, scratch_operands = 0 : i64, tpu.core_type = #tpu.core_type<tc>, window_params = [{transform_indices = @transform_0, window_bounds = array<i64: 1, 4, 25, 32>}, {pipeline_mode = #tpu.pipeline_mode<synchronous>, transform_indices = @transform_1, window_bounds = array<i64: 4, 25, 1>}, {pipeline_mode = #tpu.pipeline_mode<synchronous>, transform_indices = @transform_2, window_bounds = array<i64: 9, 32>}, {pipeline_mode = #tpu.pipeline_mode<synchronous>, transform_indices = @transform_3, window_bounds = array<i64: 1, 32>}, {pipeline_mode = #tpu.pipeline_mode<synchronous>, transform_indices = @transform_4, window_bounds = array<i64: 32, 64>}, {pipeline_mode = #tpu.pipeline_mode<synchronous>, transform_indices = @transform_5, window_bounds = array<i64: 1, 64>}, {pipeline_mode = #tpu.pipeline_mode<synchronous>, transform_indices = @transform_6, window_bounds = array<i64: 32, 32>}, {pipeline_mode = #tpu.pipeline_mode<synchronous>, transform_indices = @transform_7, window_bounds = array<i64: 1, 32>}, {pipeline_mode = #tpu.pipeline_mode<synchronous>, transform_indices = @transform_8, window_bounds = array<i64: 9, 32>}, {pipeline_mode = #tpu.pipeline_mode<synchronous>, transform_indices = @transform_9, window_bounds = array<i64: 1, 32>}, {pipeline_mode = #tpu.pipeline_mode<synchronous>, transform_indices = @transform_10, window_bounds = array<i64: 32, 64>}, {pipeline_mode = #tpu.pipeline_mode<synchronous>, transform_indices = @transform_11, window_bounds = array<i64: 1, 64>}, {transform_indices = @transform_12, window_bounds = array<i64: 1, 4, 4, 64>}]} {
    %c0 = arith.constant 0 : index
    %c0_0 = arith.constant 0 : index
    %c0_1 = arith.constant 0 : index
    %c0_2 = arith.constant 0 : index
    %0 = vector.load %arg1[%c0, %c0_0, %c0_1, %c0_2] : memref<1x4x25x32xf32, #tpu.memory_space<vmem>>, vector<1x1x25x32xf32>
    %1 = vector.shape_cast %0 : vector<1x1x25x32xf32> to vector<25x32xf32>
    %c0_3 = arith.constant 0 : index
    %c1 = arith.constant 1 : index
    %c0_4 = arith.constant 0 : index
    %c0_5 = arith.constant 0 : index
    %2 = vector.load %arg1[%c0_3, %c1, %c0_4, %c0_5] : memref<1x4x25x32xf32, #tpu.memory_space<vmem>>, vector<1x1x25x32xf32>
    %3 = vector.shape_cast %2 : vector<1x1x25x32xf32> to vector<25x32xf32>
    %c0_6 = arith.constant 0 : index
    %c2 = arith.constant 2 : index
    %c0_7 = arith.constant 0 : index
    %c0_8 = arith.constant 0 : index
    %4 = vector.load %arg1[%c0_6, %c2, %c0_7, %c0_8] : memref<1x4x25x32xf32, #tpu.memory_space<vmem>>, vector<1x1x25x32xf32>
    %5 = vector.shape_cast %4 : vector<1x1x25x32xf32> to vector<25x32xf32>
    %c0_9 = arith.constant 0 : index
    %c3 = arith.constant 3 : index
    %c0_10 = arith.constant 0 : index
    %c0_11 = arith.constant 0 : index
    %6 = vector.load %arg1[%c0_9, %c3, %c0_10, %c0_11] : memref<1x4x25x32xf32, #tpu.memory_space<vmem>>, vector<1x1x25x32xf32>
    %7 = vector.shape_cast %6 : vector<1x1x25x32xf32> to vector<25x32xf32>
    %c0_12 = arith.constant 0 : index
    %c0_13 = arith.constant 0 : index
    %8 = vector.load %arg3[%c0_12, %c0_13] : memref<9x32xf32, #tpu.memory_space<vmem>>, vector<9x32xf32>
    %cst = arith.constant 0.000000e+00 : f32
    %9 = vector.broadcast %cst : f32 to vector<19x32xf32>
    %10 = vector.extract_strided_slice %1 {offsets = [0, 0], sizes = [19, 32], strides = [1, 1]} : vector<25x32xf32> to vector<19x32xf32>
    %11 = vector.extract_strided_slice %8 {offsets = [0, 0], sizes = [1, 32], strides = [1, 1]} : vector<9x32xf32> to vector<1x32xf32>
    %12 = vector.broadcast %11 : vector<1x32xf32> to vector<19x32xf32>
    %13 = arith.mulf %10, %12 : vector<19x32xf32>
    %14 = arith.addf %9, %13 : vector<19x32xf32>
    %15 = vector.extract_strided_slice %3 {offsets = [0, 0], sizes = [19, 32], strides = [1, 1]} : vector<25x32xf32> to vector<19x32xf32>
    %16 = vector.extract_strided_slice %8 {offsets = [1, 0], sizes = [1, 32], strides = [1, 1]} : vector<9x32xf32> to vector<1x32xf32>
    %17 = vector.broadcast %16 : vector<1x32xf32> to vector<19x32xf32>
    %18 = arith.mulf %15, %17 : vector<19x32xf32>
    %19 = arith.addf %14, %18 : vector<19x32xf32>
    %20 = vector.extract_strided_slice %1 {offsets = [1, 0], sizes = [19, 32], strides = [1, 1]} : vector<25x32xf32> to vector<19x32xf32>
    %21 = vector.extract_strided_slice %8 {offsets = [2, 0], sizes = [1, 32], strides = [1, 1]} : vector<9x32xf32> to vector<1x32xf32>
    %22 = vector.broadcast %21 : vector<1x32xf32> to vector<19x32xf32>
    %23 = arith.mulf %20, %22 : vector<19x32xf32>
    %24 = arith.addf %19, %23 : vector<19x32xf32>
    %25 = vector.extract_strided_slice %5 {offsets = [0, 0], sizes = [19, 32], strides = [1, 1]} : vector<25x32xf32> to vector<19x32xf32>
    %26 = vector.extract_strided_slice %8 {offsets = [3, 0], sizes = [1, 32], strides = [1, 1]} : vector<9x32xf32> to vector<1x32xf32>
    %27 = vector.broadcast %26 : vector<1x32xf32> to vector<19x32xf32>
    %28 = arith.mulf %25, %27 : vector<19x32xf32>
    %29 = arith.addf %24, %28 : vector<19x32xf32>
    %30 = vector.extract_strided_slice %7 {offsets = [0, 0], sizes = [19, 32], strides = [1, 1]} : vector<25x32xf32> to vector<19x32xf32>
    %31 = vector.extract_strided_slice %8 {offsets = [4, 0], sizes = [1, 32], strides = [1, 1]} : vector<9x32xf32> to vector<1x32xf32>
    %32 = vector.broadcast %31 : vector<1x32xf32> to vector<19x32xf32>
    %33 = arith.mulf %30, %32 : vector<19x32xf32>
    %34 = arith.addf %29, %33 : vector<19x32xf32>
    %35 = vector.extract_strided_slice %5 {offsets = [1, 0], sizes = [19, 32], strides = [1, 1]} : vector<25x32xf32> to vector<19x32xf32>
    %36 = vector.extract_strided_slice %8 {offsets = [5, 0], sizes = [1, 32], strides = [1, 1]} : vector<9x32xf32> to vector<1x32xf32>
    %37 = vector.broadcast %36 : vector<1x32xf32> to vector<19x32xf32>
    %38 = arith.mulf %35, %37 : vector<19x32xf32>
    %39 = arith.addf %34, %38 : vector<19x32xf32>
    %40 = vector.extract_strided_slice %1 {offsets = [5, 0], sizes = [19, 32], strides = [1, 1]} : vector<25x32xf32> to vector<19x32xf32>
    %41 = vector.extract_strided_slice %8 {offsets = [6, 0], sizes = [1, 32], strides = [1, 1]} : vector<9x32xf32> to vector<1x32xf32>
    %42 = vector.broadcast %41 : vector<1x32xf32> to vector<19x32xf32>
    %43 = arith.mulf %40, %42 : vector<19x32xf32>
    %44 = arith.addf %39, %43 : vector<19x32xf32>
    %45 = vector.extract_strided_slice %3 {offsets = [5, 0], sizes = [19, 32], strides = [1, 1]} : vector<25x32xf32> to vector<19x32xf32>
    %46 = vector.extract_strided_slice %8 {offsets = [7, 0], sizes = [1, 32], strides = [1, 1]} : vector<9x32xf32> to vector<1x32xf32>
    %47 = vector.broadcast %46 : vector<1x32xf32> to vector<19x32xf32>
    %48 = arith.mulf %45, %47 : vector<19x32xf32>
    %49 = arith.addf %44, %48 : vector<19x32xf32>
    %50 = vector.extract_strided_slice %1 {offsets = [6, 0], sizes = [19, 32], strides = [1, 1]} : vector<25x32xf32> to vector<19x32xf32>
    %51 = vector.extract_strided_slice %8 {offsets = [8, 0], sizes = [1, 32], strides = [1, 1]} : vector<9x32xf32> to vector<1x32xf32>
    %52 = vector.broadcast %51 : vector<1x32xf32> to vector<19x32xf32>
    %53 = arith.mulf %50, %52 : vector<19x32xf32>
    %54 = arith.addf %49, %53 : vector<19x32xf32>
    %c0_14 = arith.constant 0 : index
    %c0_15 = arith.constant 0 : index
    %55 = vector.load %arg4[%c0_14, %c0_15] : memref<1x32xf32, #tpu.memory_space<vmem>>, vector<1x32xf32>
    %56 = vector.broadcast %55 : vector<1x32xf32> to vector<19x32xf32>
    %57 = arith.addf %54, %56 : vector<19x32xf32>
    %c0_16 = arith.constant 0 : index
    %c0_17 = arith.constant 0 : index
    %58 = vector.load %arg5[%c0_16, %c0_17] : memref<32x64xf32, #tpu.memory_space<vmem>>, vector<32x64xf32>
    %cst_18 = arith.constant dense<0.000000e+00> : vector<19x64xf32>
    %59 = tpu.matmul %57, %58, %cst_18 {dimension_numbers = #tpu.dot_dimension_numbers<[1], [0], [0], [1], [0, 0, 1, 1], [], []>} : vector<19x32xf32>, vector<32x64xf32>, vector<19x64xf32> -> vector<19x64xf32>
    %c0_19 = arith.constant 0 : index
    %c0_20 = arith.constant 0 : index
    %60 = vector.load %arg6[%c0_19, %c0_20] : memref<1x64xf32, #tpu.memory_space<vmem>>, vector<1x64xf32>
    %61 = vector.broadcast %60 : vector<1x64xf32> to vector<19x64xf32>
    %62 = arith.addf %59, %61 : vector<19x64xf32>
    %cst_21 = arith.constant 0.000000e+00 : f32
    %63 = vector.broadcast %cst_21 : f32 to vector<19x64xf32>
    %64 = arith.maximumf %62, %63 : vector<19x64xf32>
    %c0_22 = arith.constant 0 : index
    %c0_23 = arith.constant 0 : index
    %65 = vector.load %arg7[%c0_22, %c0_23] : memref<32x32xf32, #tpu.memory_space<vmem>>, vector<32x32xf32>
    %cst_24 = arith.constant dense<0.000000e+00> : vector<25x32xf32>
    %66 = tpu.matmul %1, %65, %cst_24 {dimension_numbers = #tpu.dot_dimension_numbers<[1], [0], [0], [1], [0, 0, 1, 1], [], []>} : vector<25x32xf32>, vector<32x32xf32>, vector<25x32xf32> -> vector<25x32xf32>
    %c0_25 = arith.constant 0 : index
    %c0_26 = arith.constant 0 : index
    %67 = vector.load %arg8[%c0_25, %c0_26] : memref<1x32xf32, #tpu.memory_space<vmem>>, vector<1x32xf32>
    %68 = vector.broadcast %67 : vector<1x32xf32> to vector<25x32xf32>
    %69 = arith.addf %66, %68 : vector<25x32xf32>
    %cst_27 = arith.constant 0.000000e+00 : f32
    %70 = vector.broadcast %cst_27 : f32 to vector<25x32xf32>
    %71 = arith.maximumf %69, %70 : vector<25x32xf32>
    %c0_28 = arith.constant 0 : index
    %c0_29 = arith.constant 0 : index
    %c0_30 = arith.constant 0 : index
    %72 = vector.load %arg2[%c0_28, %c0_29, %c0_30] : memref<4x25x1xf32, #tpu.memory_space<vmem>>, vector<1x25x1xf32>
    %73 = vector.shape_cast %72 : vector<1x25x1xf32> to vector<25x1xf32>
    %74 = vector.broadcast %73 : vector<25x1xf32> to vector<25x32xf32>
    %75 = arith.mulf %71, %74 : vector<25x32xf32>
    %c0_31 = arith.constant 0 : index
    %c0_32 = arith.constant 0 : index
    %76 = vector.load %arg7[%c0_31, %c0_32] : memref<32x32xf32, #tpu.memory_space<vmem>>, vector<32x32xf32>
    %cst_33 = arith.constant dense<0.000000e+00> : vector<25x32xf32>
    %77 = tpu.matmul %3, %76, %cst_33 {dimension_numbers = #tpu.dot_dimension_numbers<[1], [0], [0], [1], [0, 0, 1, 1], [], []>} : vector<25x32xf32>, vector<32x32xf32>, vector<25x32xf32> -> vector<25x32xf32>
    %c0_34 = arith.constant 0 : index
    %c0_35 = arith.constant 0 : index
    %78 = vector.load %arg8[%c0_34, %c0_35] : memref<1x32xf32, #tpu.memory_space<vmem>>, vector<1x32xf32>
    %79 = vector.broadcast %78 : vector<1x32xf32> to vector<25x32xf32>
    %80 = arith.addf %77, %79 : vector<25x32xf32>
    %cst_36 = arith.constant 0.000000e+00 : f32
    %81 = vector.broadcast %cst_36 : f32 to vector<25x32xf32>
    %82 = arith.maximumf %80, %81 : vector<25x32xf32>
    %c1_37 = arith.constant 1 : index
    %c0_38 = arith.constant 0 : index
    %c0_39 = arith.constant 0 : index
    %83 = vector.load %arg2[%c1_37, %c0_38, %c0_39] : memref<4x25x1xf32, #tpu.memory_space<vmem>>, vector<1x25x1xf32>
    %84 = vector.shape_cast %83 : vector<1x25x1xf32> to vector<25x1xf32>
    %85 = vector.broadcast %84 : vector<25x1xf32> to vector<25x32xf32>
    %86 = arith.mulf %82, %85 : vector<25x32xf32>
    %c0_40 = arith.constant 0 : index
    %c0_41 = arith.constant 0 : index
    %87 = vector.load %arg7[%c0_40, %c0_41] : memref<32x32xf32, #tpu.memory_space<vmem>>, vector<32x32xf32>
    %cst_42 = arith.constant dense<0.000000e+00> : vector<25x32xf32>
    %88 = tpu.matmul %5, %87, %cst_42 {dimension_numbers = #tpu.dot_dimension_numbers<[1], [0], [0], [1], [0, 0, 1, 1], [], []>} : vector<25x32xf32>, vector<32x32xf32>, vector<25x32xf32> -> vector<25x32xf32>
    %c0_43 = arith.constant 0 : index
    %c0_44 = arith.constant 0 : index
    %89 = vector.load %arg8[%c0_43, %c0_44] : memref<1x32xf32, #tpu.memory_space<vmem>>, vector<1x32xf32>
    %90 = vector.broadcast %89 : vector<1x32xf32> to vector<25x32xf32>
    %91 = arith.addf %88, %90 : vector<25x32xf32>
    %cst_45 = arith.constant 0.000000e+00 : f32
    %92 = vector.broadcast %cst_45 : f32 to vector<25x32xf32>
    %93 = arith.maximumf %91, %92 : vector<25x32xf32>
    %c2_46 = arith.constant 2 : index
    %c0_47 = arith.constant 0 : index
    %c0_48 = arith.constant 0 : index
    %94 = vector.load %arg2[%c2_46, %c0_47, %c0_48] : memref<4x25x1xf32, #tpu.memory_space<vmem>>, vector<1x25x1xf32>
    %95 = vector.shape_cast %94 : vector<1x25x1xf32> to vector<25x1xf32>
    %96 = vector.broadcast %95 : vector<25x1xf32> to vector<25x32xf32>
    %97 = arith.mulf %93, %96 : vector<25x32xf32>
    %c0_49 = arith.constant 0 : index
    %c0_50 = arith.constant 0 : index
    %98 = vector.load %arg7[%c0_49, %c0_50] : memref<32x32xf32, #tpu.memory_space<vmem>>, vector<32x32xf32>
    %cst_51 = arith.constant dense<0.000000e+00> : vector<25x32xf32>
    %99 = tpu.matmul %7, %98, %cst_51 {dimension_numbers = #tpu.dot_dimension_numbers<[1], [0], [0], [1], [0, 0, 1, 1], [], []>} : vector<25x32xf32>, vector<32x32xf32>, vector<25x32xf32> -> vector<25x32xf32>
    %c0_52 = arith.constant 0 : index
    %c0_53 = arith.constant 0 : index
    %100 = vector.load %arg8[%c0_52, %c0_53] : memref<1x32xf32, #tpu.memory_space<vmem>>, vector<1x32xf32>
    %101 = vector.broadcast %100 : vector<1x32xf32> to vector<25x32xf32>
    %102 = arith.addf %99, %101 : vector<25x32xf32>
    %cst_54 = arith.constant 0.000000e+00 : f32
    %103 = vector.broadcast %cst_54 : f32 to vector<25x32xf32>
    %104 = arith.maximumf %102, %103 : vector<25x32xf32>
    %c3_55 = arith.constant 3 : index
    %c0_56 = arith.constant 0 : index
    %c0_57 = arith.constant 0 : index
    %105 = vector.load %arg2[%c3_55, %c0_56, %c0_57] : memref<4x25x1xf32, #tpu.memory_space<vmem>>, vector<1x25x1xf32>
    %106 = vector.shape_cast %105 : vector<1x25x1xf32> to vector<25x1xf32>
    %107 = vector.broadcast %106 : vector<25x1xf32> to vector<25x32xf32>
    %108 = arith.mulf %104, %107 : vector<25x32xf32>
    %c0_58 = arith.constant 0 : index
    %c0_59 = arith.constant 0 : index
    %109 = vector.load %arg9[%c0_58, %c0_59] : memref<9x32xf32, #tpu.memory_space<vmem>>, vector<9x32xf32>
    %cst_60 = arith.constant 0.000000e+00 : f32
    %110 = vector.broadcast %cst_60 : f32 to vector<19x32xf32>
    %111 = vector.extract_strided_slice %75 {offsets = [0, 0], sizes = [19, 32], strides = [1, 1]} : vector<25x32xf32> to vector<19x32xf32>
    %112 = vector.extract_strided_slice %109 {offsets = [0, 0], sizes = [1, 32], strides = [1, 1]} : vector<9x32xf32> to vector<1x32xf32>
    %113 = vector.broadcast %112 : vector<1x32xf32> to vector<19x32xf32>
    %114 = arith.mulf %111, %113 : vector<19x32xf32>
    %115 = arith.addf %110, %114 : vector<19x32xf32>
    %116 = vector.extract_strided_slice %86 {offsets = [0, 0], sizes = [19, 32], strides = [1, 1]} : vector<25x32xf32> to vector<19x32xf32>
    %117 = vector.extract_strided_slice %109 {offsets = [1, 0], sizes = [1, 32], strides = [1, 1]} : vector<9x32xf32> to vector<1x32xf32>
    %118 = vector.broadcast %117 : vector<1x32xf32> to vector<19x32xf32>
    %119 = arith.mulf %116, %118 : vector<19x32xf32>
    %120 = arith.addf %115, %119 : vector<19x32xf32>
    %121 = vector.extract_strided_slice %75 {offsets = [1, 0], sizes = [19, 32], strides = [1, 1]} : vector<25x32xf32> to vector<19x32xf32>
    %122 = vector.extract_strided_slice %109 {offsets = [2, 0], sizes = [1, 32], strides = [1, 1]} : vector<9x32xf32> to vector<1x32xf32>
    %123 = vector.broadcast %122 : vector<1x32xf32> to vector<19x32xf32>
    %124 = arith.mulf %121, %123 : vector<19x32xf32>
    %125 = arith.addf %120, %124 : vector<19x32xf32>
    %126 = vector.extract_strided_slice %97 {offsets = [0, 0], sizes = [19, 32], strides = [1, 1]} : vector<25x32xf32> to vector<19x32xf32>
    %127 = vector.extract_strided_slice %109 {offsets = [3, 0], sizes = [1, 32], strides = [1, 1]} : vector<9x32xf32> to vector<1x32xf32>
    %128 = vector.broadcast %127 : vector<1x32xf32> to vector<19x32xf32>
    %129 = arith.mulf %126, %128 : vector<19x32xf32>
    %130 = arith.addf %125, %129 : vector<19x32xf32>
    %131 = vector.extract_strided_slice %108 {offsets = [0, 0], sizes = [19, 32], strides = [1, 1]} : vector<25x32xf32> to vector<19x32xf32>
    %132 = vector.extract_strided_slice %109 {offsets = [4, 0], sizes = [1, 32], strides = [1, 1]} : vector<9x32xf32> to vector<1x32xf32>
    %133 = vector.broadcast %132 : vector<1x32xf32> to vector<19x32xf32>
    %134 = arith.mulf %131, %133 : vector<19x32xf32>
    %135 = arith.addf %130, %134 : vector<19x32xf32>
    %136 = vector.extract_strided_slice %97 {offsets = [1, 0], sizes = [19, 32], strides = [1, 1]} : vector<25x32xf32> to vector<19x32xf32>
    %137 = vector.extract_strided_slice %109 {offsets = [5, 0], sizes = [1, 32], strides = [1, 1]} : vector<9x32xf32> to vector<1x32xf32>
    %138 = vector.broadcast %137 : vector<1x32xf32> to vector<19x32xf32>
    %139 = arith.mulf %136, %138 : vector<19x32xf32>
    %140 = arith.addf %135, %139 : vector<19x32xf32>
    %141 = vector.extract_strided_slice %75 {offsets = [5, 0], sizes = [19, 32], strides = [1, 1]} : vector<25x32xf32> to vector<19x32xf32>
    %142 = vector.extract_strided_slice %109 {offsets = [6, 0], sizes = [1, 32], strides = [1, 1]} : vector<9x32xf32> to vector<1x32xf32>
    %143 = vector.broadcast %142 : vector<1x32xf32> to vector<19x32xf32>
    %144 = arith.mulf %141, %143 : vector<19x32xf32>
    %145 = arith.addf %140, %144 : vector<19x32xf32>
    %146 = vector.extract_strided_slice %86 {offsets = [5, 0], sizes = [19, 32], strides = [1, 1]} : vector<25x32xf32> to vector<19x32xf32>
    %147 = vector.extract_strided_slice %109 {offsets = [7, 0], sizes = [1, 32], strides = [1, 1]} : vector<9x32xf32> to vector<1x32xf32>
    %148 = vector.broadcast %147 : vector<1x32xf32> to vector<19x32xf32>
    %149 = arith.mulf %146, %148 : vector<19x32xf32>
    %150 = arith.addf %145, %149 : vector<19x32xf32>
    %151 = vector.extract_strided_slice %75 {offsets = [6, 0], sizes = [19, 32], strides = [1, 1]} : vector<25x32xf32> to vector<19x32xf32>
    %152 = vector.extract_strided_slice %109 {offsets = [8, 0], sizes = [1, 32], strides = [1, 1]} : vector<9x32xf32> to vector<1x32xf32>
    %153 = vector.broadcast %152 : vector<1x32xf32> to vector<19x32xf32>
    %154 = arith.mulf %151, %153 : vector<19x32xf32>
    %155 = arith.addf %150, %154 : vector<19x32xf32>
    %c0_61 = arith.constant 0 : index
    %c0_62 = arith.constant 0 : index
    %156 = vector.load %arg10[%c0_61, %c0_62] : memref<1x32xf32, #tpu.memory_space<vmem>>, vector<1x32xf32>
    %157 = vector.broadcast %156 : vector<1x32xf32> to vector<19x32xf32>
    %158 = arith.addf %155, %157 : vector<19x32xf32>
    %c0_63 = arith.constant 0 : index
    %c0_64 = arith.constant 0 : index
    %159 = vector.load %arg11[%c0_63, %c0_64] : memref<32x64xf32, #tpu.memory_space<vmem>>, vector<32x64xf32>
    %cst_65 = arith.constant dense<0.000000e+00> : vector<19x64xf32>
    %160 = tpu.matmul %158, %159, %cst_65 {dimension_numbers = #tpu.dot_dimension_numbers<[1], [0], [0], [1], [0, 0, 1, 1], [], []>} : vector<19x32xf32>, vector<32x64xf32>, vector<19x64xf32> -> vector<19x64xf32>
    %c0_66 = arith.constant 0 : index
    %c0_67 = arith.constant 0 : index
    %161 = vector.load %arg12[%c0_66, %c0_67] : memref<1x64xf32, #tpu.memory_space<vmem>>, vector<1x64xf32>
    %162 = vector.broadcast %161 : vector<1x64xf32> to vector<19x64xf32>
    %163 = arith.addf %160, %162 : vector<19x64xf32>
    %cst_68 = arith.constant 0.000000e+00 : f32
    %164 = vector.broadcast %cst_68 : f32 to vector<19x64xf32>
    %165 = arith.maximumf %163, %164 : vector<19x64xf32>
    %166 = arith.addf %64, %165 : vector<19x64xf32>
    %167 = vector.extract_strided_slice %166 {offsets = [0, 0], sizes = [4, 64], strides = [1, 1]} : vector<19x64xf32> to vector<4x64xf32>
    %c0_69 = arith.constant 0 : index
    %c0_70 = arith.constant 0 : index
    %c0_71 = arith.constant 0 : index
    %c0_72 = arith.constant 0 : index
    %168 = vector.load %arg13[%c0_69, %c0_70, %c0_71, %c0_72] : memref<1x4x4x64xf32, #tpu.memory_space<vmem>>, vector<1x1x4x64xf32>
    %169 = vector.shape_cast %168 : vector<1x1x4x64xf32> to vector<4x64xf32>
    %170 = vector.shape_cast %167 : vector<4x64xf32> to vector<1x1x4x64xf32>
    tpu.vector_store %arg13[%c0_69, %c0_70, %c0_71, %c0_72], %170 {strides = array<i32>} : memref<1x4x4x64xf32, #tpu.memory_space<vmem>>, vector<1x1x4x64xf32>,
    %171 = vector.extract_strided_slice %166 {offsets = [5, 0], sizes = [4, 64], strides = [1, 1]} : vector<19x64xf32> to vector<4x64xf32>
    %c0_73 = arith.constant 0 : index
    %c1_74 = arith.constant 1 : index
    %c0_75 = arith.constant 0 : index
    %c0_76 = arith.constant 0 : index
    %172 = vector.load %arg13[%c0_73, %c1_74, %c0_75, %c0_76] : memref<1x4x4x64xf32, #tpu.memory_space<vmem>>, vector<1x1x4x64xf32>
    %173 = vector.shape_cast %172 : vector<1x1x4x64xf32> to vector<4x64xf32>
    %174 = vector.shape_cast %171 : vector<4x64xf32> to vector<1x1x4x64xf32>
    tpu.vector_store %arg13[%c0_73, %c1_74, %c0_75, %c0_76], %174 {strides = array<i32>} : memref<1x4x4x64xf32, #tpu.memory_space<vmem>>, vector<1x1x4x64xf32>,
    %175 = vector.extract_strided_slice %166 {offsets = [10, 0], sizes = [4, 64], strides = [1, 1]} : vector<19x64xf32> to vector<4x64xf32>
    %c0_77 = arith.constant 0 : index
    %c2_78 = arith.constant 2 : index
    %c0_79 = arith.constant 0 : index
    %c0_80 = arith.constant 0 : index
    %176 = vector.load %arg13[%c0_77, %c2_78, %c0_79, %c0_80] : memref<1x4x4x64xf32, #tpu.memory_space<vmem>>, vector<1x1x4x64xf32>
    %177 = vector.shape_cast %176 : vector<1x1x4x64xf32> to vector<4x64xf32>
    %178 = vector.shape_cast %175 : vector<4x64xf32> to vector<1x1x4x64xf32>
    tpu.vector_store %arg13[%c0_77, %c2_78, %c0_79, %c0_80], %178 {strides = array<i32>} : memref<1x4x4x64xf32, #tpu.memory_space<vmem>>, vector<1x1x4x64xf32>,
    %179 = vector.extract_strided_slice %166 {offsets = [15, 0], sizes = [4, 64], strides = [1, 1]} : vector<19x64xf32> to vector<4x64xf32>
    %c0_81 = arith.constant 0 : index
    %c3_82 = arith.constant 3 : index
    %c0_83 = arith.constant 0 : index
    %c0_84 = arith.constant 0 : index
    %180 = vector.load %arg13[%c0_81, %c3_82, %c0_83, %c0_84] : memref<1x4x4x64xf32, #tpu.memory_space<vmem>>, vector<1x1x4x64xf32>
    %181 = vector.shape_cast %180 : vector<1x1x4x64xf32> to vector<4x64xf32>
    %182 = vector.shape_cast %179 : vector<4x64xf32> to vector<1x1x4x64xf32>
    tpu.vector_store %arg13[%c0_81, %c3_82, %c0_83, %c0_84], %182 {strides = array<i32>} : memref<1x4x4x64xf32, #tpu.memory_space<vmem>>, vector<1x1x4x64xf32>,
    return
  }
  func.func @transform_0(%arg0: i32) -> (i32, i32, i32, i32) {
    %c0_i32 = arith.constant 0 : i32
    %c0_i32_0 = arith.constant 0 : i32
    %c0_i32_1 = arith.constant 0 : i32
    %c0_i32_2 = arith.constant 0 : i32
    return %arg0, %c0_i32, %c0_i32_0, %c0_i32_1 : i32, i32, i32, i32
  }
  func.func @transform_1(%arg0: i32) -> (i32, i32, i32) {
    %c0_i32 = arith.constant 0 : i32
    %c0_i32_0 = arith.constant 0 : i32
    %c0_i32_1 = arith.constant 0 : i32
    %c0_i32_2 = arith.constant 0 : i32
    return %c0_i32, %c0_i32_0, %c0_i32_1 : i32, i32, i32
  }
  func.func @transform_2(%arg0: i32) -> (i32, i32) {
    %c0_i32 = arith.constant 0 : i32
    %c0_i32_0 = arith.constant 0 : i32
    %c0_i32_1 = arith.constant 0 : i32
    return %c0_i32, %c0_i32_0 : i32, i32
  }
  func.func @transform_3(%arg0: i32) -> (i32, i32) {
    %c0_i32 = arith.constant 0 : i32
    %c0_i32_0 = arith.constant 0 : i32
    %c0_i32_1 = arith.constant 0 : i32
    return %c0_i32, %c0_i32_0 : i32, i32
  }
  func.func @transform_4(%arg0: i32) -> (i32, i32) {
    %c0_i32 = arith.constant 0 : i32
    %c0_i32_0 = arith.constant 0 : i32
    %c0_i32_1 = arith.constant 0 : i32
    return %c0_i32, %c0_i32_0 : i32, i32
  }
  func.func @transform_5(%arg0: i32) -> (i32, i32) {
    %c0_i32 = arith.constant 0 : i32
    %c0_i32_0 = arith.constant 0 : i32
    %c0_i32_1 = arith.constant 0 : i32
    return %c0_i32, %c0_i32_0 : i32, i32
  }
  func.func @transform_6(%arg0: i32) -> (i32, i32) {
    %c0_i32 = arith.constant 0 : i32
    %c0_i32_0 = arith.constant 0 : i32
    %c0_i32_1 = arith.constant 0 : i32
    return %c0_i32, %c0_i32_0 : i32, i32
  }
  func.func @transform_7(%arg0: i32) -> (i32, i32) {
    %c0_i32 = arith.constant 0 : i32
    %c0_i32_0 = arith.constant 0 : i32
    %c0_i32_1 = arith.constant 0 : i32
    return %c0_i32, %c0_i32_0 : i32, i32
  }
  func.func @transform_8(%arg0: i32) -> (i32, i32) {
    %c0_i32 = arith.constant 0 : i32
    %c0_i32_0 = arith.constant 0 : i32
    %c0_i32_1 = arith.constant 0 : i32
    return %c0_i32, %c0_i32_0 : i32, i32
  }
  func.func @transform_9(%arg0: i32) -> (i32, i32) {
    %c0_i32 = arith.constant 0 : i32
    %c0_i32_0 = arith.constant 0 : i32
    %c0_i32_1 = arith.constant 0 : i32
    return %c0_i32, %c0_i32_0 : i32, i32
  }
  func.func @transform_10(%arg0: i32) -> (i32, i32) {
    %c0_i32 = arith.constant 0 : i32
    %c0_i32_0 = arith.constant 0 : i32
    %c0_i32_1 = arith.constant 0 : i32
    return %c0_i32, %c0_i32_0 : i32, i32
  }
  func.func @transform_11(%arg0: i32) -> (i32, i32) {
    %c0_i32 = arith.constant 0 : i32
    %c0_i32_0 = arith.constant 0 : i32
    %c0_i32_1 = arith.constant 0 : i32
    return %c0_i32, %c0_i32_0 : i32, i32
  }
  func.func @transform_12(%arg0: i32) -> (i32, i32, i32, i32) {
    %c0_i32 = arith.constant 0 : i32
    %c0_i32_0 = arith.constant 0 : i32
    %c0_i32_1 = arith.constant 0 : i32
    %c0_i32_2 = arith.constant 0 : i32
    return %arg0, %c0_i32, %c0_i32_0, %c0_i32_1 : i32, i32, i32, i32
  }
}

module attributes {stable_mosaic.version = 11 : i64} {
  func.func @_block_s1_kernel(%arg0: i32, %arg1: memref<1x36x64xf32, #tpu.memory_space<vmem>>, %arg2: memref<36x1xf32, #tpu.memory_space<vmem>>, %arg3: memref<64x32xf32, #tpu.memory_space<vmem>>, %arg4: memref<1x32xf32, #tpu.memory_space<vmem>>, %arg5: memref<9x32xf32, #tpu.memory_space<vmem>>, %arg6: memref<1x32xf32, #tpu.memory_space<vmem>>, %arg7: memref<32x64xf32, #tpu.memory_space<vmem>>, %arg8: memref<1x64xf32, #tpu.memory_space<vmem>>, %arg9: memref<64x64xf32, #tpu.memory_space<vmem>>, %arg10: memref<1x4x4x64xf32, #tpu.memory_space<vmem>>) attributes {dimension_semantics = [#tpu.dimension_semantics<parallel>], iteration_bounds = array<i64: 2>, scalar_prefetch = 0 : i64, scratch_operands = 0 : i64, tpu.core_type = #tpu.core_type<tc>, window_params = [{transform_indices = @transform_0, window_bounds = array<i64: 1, 36, 64>}, {pipeline_mode = #tpu.pipeline_mode<synchronous>, transform_indices = @transform_1, window_bounds = array<i64: 36, 1>}, {pipeline_mode = #tpu.pipeline_mode<synchronous>, transform_indices = @transform_2, window_bounds = array<i64: 64, 32>}, {pipeline_mode = #tpu.pipeline_mode<synchronous>, transform_indices = @transform_3, window_bounds = array<i64: 1, 32>}, {pipeline_mode = #tpu.pipeline_mode<synchronous>, transform_indices = @transform_4, window_bounds = array<i64: 9, 32>}, {pipeline_mode = #tpu.pipeline_mode<synchronous>, transform_indices = @transform_5, window_bounds = array<i64: 1, 32>}, {pipeline_mode = #tpu.pipeline_mode<synchronous>, transform_indices = @transform_6, window_bounds = array<i64: 32, 64>}, {pipeline_mode = #tpu.pipeline_mode<synchronous>, transform_indices = @transform_7, window_bounds = array<i64: 1, 64>}, {pipeline_mode = #tpu.pipeline_mode<synchronous>, transform_indices = @transform_8, window_bounds = array<i64: 64, 64>}, {transform_indices = @transform_9, window_bounds = array<i64: 1, 4, 4, 64>}]} {
    %c0 = arith.constant 0 : index
    %c0_0 = arith.constant 0 : index
    %c0_1 = arith.constant 0 : index
    %0 = vector.load %arg1[%c0, %c0_0, %c0_1] : memref<1x36x64xf32, #tpu.memory_space<vmem>>, vector<1x36x64xf32>
    %1 = vector.shape_cast %0 : vector<1x36x64xf32> to vector<36x64xf32>
    %c0_2 = arith.constant 0 : index
    %c0_3 = arith.constant 0 : index
    %2 = vector.load %arg3[%c0_2, %c0_3] : memref<64x32xf32, #tpu.memory_space<vmem>>, vector<64x32xf32>
    %cst = arith.constant dense<0.000000e+00> : vector<36x32xf32>
    %3 = tpu.matmul %1, %2, %cst {dimension_numbers = #tpu.dot_dimension_numbers<[1], [0], [0], [1], [0, 0, 1, 1], [], []>} : vector<36x64xf32>, vector<64x32xf32>, vector<36x32xf32> -> vector<36x32xf32>
    %c0_4 = arith.constant 0 : index
    %c0_5 = arith.constant 0 : index
    %4 = vector.load %arg4[%c0_4, %c0_5] : memref<1x32xf32, #tpu.memory_space<vmem>>, vector<1x32xf32>
    %5 = vector.broadcast %4 : vector<1x32xf32> to vector<36x32xf32>
    %6 = arith.addf %3, %5 : vector<36x32xf32>
    %cst_6 = arith.constant 0.000000e+00 : f32
    %7 = vector.broadcast %cst_6 : f32 to vector<36x32xf32>
    %8 = arith.maximumf %6, %7 : vector<36x32xf32>
    %c0_7 = arith.constant 0 : index
    %c0_8 = arith.constant 0 : index
    %9 = vector.load %arg2[%c0_7, %c0_8] : memref<36x1xf32, #tpu.memory_space<vmem>>, vector<36x1xf32>
    %10 = vector.broadcast %9 : vector<36x1xf32> to vector<36x32xf32>
    %11 = arith.mulf %8, %10 : vector<36x32xf32>
    %c0_9 = arith.constant 0 : index
    %c0_10 = arith.constant 0 : index
    %12 = vector.load %arg5[%c0_9, %c0_10] : memref<9x32xf32, #tpu.memory_space<vmem>>, vector<9x32xf32>
    %cst_11 = arith.constant 0.000000e+00 : f32
    %13 = vector.broadcast %cst_11 : f32 to vector<22x32xf32>
    %14 = vector.extract_strided_slice %11 {offsets = [0, 0], sizes = [22, 32], strides = [1, 1]} : vector<36x32xf32> to vector<22x32xf32>
    %15 = vector.extract_strided_slice %12 {offsets = [0, 0], sizes = [1, 32], strides = [1, 1]} : vector<9x32xf32> to vector<1x32xf32>
    %16 = vector.broadcast %15 : vector<1x32xf32> to vector<22x32xf32>
    %17 = arith.mulf %14, %16 : vector<22x32xf32>
    %18 = arith.addf %13, %17 : vector<22x32xf32>
    %19 = vector.extract_strided_slice %11 {offsets = [1, 0], sizes = [22, 32], strides = [1, 1]} : vector<36x32xf32> to vector<22x32xf32>
    %20 = vector.extract_strided_slice %12 {offsets = [1, 0], sizes = [1, 32], strides = [1, 1]} : vector<9x32xf32> to vector<1x32xf32>
    %21 = vector.broadcast %20 : vector<1x32xf32> to vector<22x32xf32>
    %22 = arith.mulf %19, %21 : vector<22x32xf32>
    %23 = arith.addf %18, %22 : vector<22x32xf32>
    %24 = vector.extract_strided_slice %11 {offsets = [2, 0], sizes = [22, 32], strides = [1, 1]} : vector<36x32xf32> to vector<22x32xf32>
    %25 = vector.extract_strided_slice %12 {offsets = [2, 0], sizes = [1, 32], strides = [1, 1]} : vector<9x32xf32> to vector<1x32xf32>
    %26 = vector.broadcast %25 : vector<1x32xf32> to vector<22x32xf32>
    %27 = arith.mulf %24, %26 : vector<22x32xf32>
    %28 = arith.addf %23, %27 : vector<22x32xf32>
    %29 = vector.extract_strided_slice %11 {offsets = [6, 0], sizes = [22, 32], strides = [1, 1]} : vector<36x32xf32> to vector<22x32xf32>
    %30 = vector.extract_strided_slice %12 {offsets = [3, 0], sizes = [1, 32], strides = [1, 1]} : vector<9x32xf32> to vector<1x32xf32>
    %31 = vector.broadcast %30 : vector<1x32xf32> to vector<22x32xf32>
    %32 = arith.mulf %29, %31 : vector<22x32xf32>
    %33 = arith.addf %28, %32 : vector<22x32xf32>
    %34 = vector.extract_strided_slice %11 {offsets = [7, 0], sizes = [22, 32], strides = [1, 1]} : vector<36x32xf32> to vector<22x32xf32>
    %35 = vector.extract_strided_slice %12 {offsets = [4, 0], sizes = [1, 32], strides = [1, 1]} : vector<9x32xf32> to vector<1x32xf32>
    %36 = vector.broadcast %35 : vector<1x32xf32> to vector<22x32xf32>
    %37 = arith.mulf %34, %36 : vector<22x32xf32>
    %38 = arith.addf %33, %37 : vector<22x32xf32>
    %39 = vector.extract_strided_slice %11 {offsets = [8, 0], sizes = [22, 32], strides = [1, 1]} : vector<36x32xf32> to vector<22x32xf32>
    %40 = vector.extract_strided_slice %12 {offsets = [5, 0], sizes = [1, 32], strides = [1, 1]} : vector<9x32xf32> to vector<1x32xf32>
    %41 = vector.broadcast %40 : vector<1x32xf32> to vector<22x32xf32>
    %42 = arith.mulf %39, %41 : vector<22x32xf32>
    %43 = arith.addf %38, %42 : vector<22x32xf32>
    %44 = vector.extract_strided_slice %11 {offsets = [12, 0], sizes = [22, 32], strides = [1, 1]} : vector<36x32xf32> to vector<22x32xf32>
    %45 = vector.extract_strided_slice %12 {offsets = [6, 0], sizes = [1, 32], strides = [1, 1]} : vector<9x32xf32> to vector<1x32xf32>
    %46 = vector.broadcast %45 : vector<1x32xf32> to vector<22x32xf32>
    %47 = arith.mulf %44, %46 : vector<22x32xf32>
    %48 = arith.addf %43, %47 : vector<22x32xf32>
    %49 = vector.extract_strided_slice %11 {offsets = [13, 0], sizes = [22, 32], strides = [1, 1]} : vector<36x32xf32> to vector<22x32xf32>
    %50 = vector.extract_strided_slice %12 {offsets = [7, 0], sizes = [1, 32], strides = [1, 1]} : vector<9x32xf32> to vector<1x32xf32>
    %51 = vector.broadcast %50 : vector<1x32xf32> to vector<22x32xf32>
    %52 = arith.mulf %49, %51 : vector<22x32xf32>
    %53 = arith.addf %48, %52 : vector<22x32xf32>
    %54 = vector.extract_strided_slice %11 {offsets = [14, 0], sizes = [22, 32], strides = [1, 1]} : vector<36x32xf32> to vector<22x32xf32>
    %55 = vector.extract_strided_slice %12 {offsets = [8, 0], sizes = [1, 32], strides = [1, 1]} : vector<9x32xf32> to vector<1x32xf32>
    %56 = vector.broadcast %55 : vector<1x32xf32> to vector<22x32xf32>
    %57 = arith.mulf %54, %56 : vector<22x32xf32>
    %58 = arith.addf %53, %57 : vector<22x32xf32>
    %c0_12 = arith.constant 0 : index
    %c0_13 = arith.constant 0 : index
    %59 = vector.load %arg6[%c0_12, %c0_13] : memref<1x32xf32, #tpu.memory_space<vmem>>, vector<1x32xf32>
    %60 = vector.broadcast %59 : vector<1x32xf32> to vector<22x32xf32>
    %61 = arith.addf %58, %60 : vector<22x32xf32>
    %62 = vector.extract_strided_slice %1 {offsets = [7, 0], sizes = [22, 64], strides = [1, 1]} : vector<36x64xf32> to vector<22x64xf32>
    %c0_14 = arith.constant 0 : index
    %c0_15 = arith.constant 0 : index
    %63 = vector.load %arg9[%c0_14, %c0_15] : memref<64x64xf32, #tpu.memory_space<vmem>>, vector<64x64xf32>
    %cst_16 = arith.constant dense<0.000000e+00> : vector<22x64xf32>
    %64 = tpu.matmul %62, %63, %cst_16 {dimension_numbers = #tpu.dot_dimension_numbers<[1], [0], [0], [1], [0, 0, 1, 1], [], []>} : vector<22x64xf32>, vector<64x64xf32>, vector<22x64xf32> -> vector<22x64xf32>
    %c0_17 = arith.constant 0 : index
    %c0_18 = arith.constant 0 : index
    %65 = vector.load %arg7[%c0_17, %c0_18] : memref<32x64xf32, #tpu.memory_space<vmem>>, vector<32x64xf32>
    %cst_19 = arith.constant dense<0.000000e+00> : vector<22x64xf32>
    %66 = tpu.matmul %61, %65, %cst_19 {dimension_numbers = #tpu.dot_dimension_numbers<[1], [0], [0], [1], [0, 0, 1, 1], [], []>} : vector<22x32xf32>, vector<32x64xf32>, vector<22x64xf32> -> vector<22x64xf32>
    %c0_20 = arith.constant 0 : index
    %c0_21 = arith.constant 0 : index
    %67 = vector.load %arg8[%c0_20, %c0_21] : memref<1x64xf32, #tpu.memory_space<vmem>>, vector<1x64xf32>
    %68 = vector.broadcast %67 : vector<1x64xf32> to vector<22x64xf32>
    %69 = arith.addf %66, %68 : vector<22x64xf32>
    %cst_22 = arith.constant 0.000000e+00 : f32
    %70 = vector.broadcast %cst_22 : f32 to vector<22x64xf32>
    %71 = arith.maximumf %69, %70 : vector<22x64xf32>
    %72 = arith.addf %64, %71 : vector<22x64xf32>
    %73 = vector.extract_strided_slice %72 {offsets = [0, 0], sizes = [4, 64], strides = [1, 1]} : vector<22x64xf32> to vector<4x64xf32>
    %c0_23 = arith.constant 0 : index
    %c0_24 = arith.constant 0 : index
    %c0_25 = arith.constant 0 : index
    %c0_26 = arith.constant 0 : index
    %74 = vector.load %arg10[%c0_23, %c0_24, %c0_25, %c0_26] : memref<1x4x4x64xf32, #tpu.memory_space<vmem>>, vector<1x1x4x64xf32>
    %75 = vector.shape_cast %74 : vector<1x1x4x64xf32> to vector<4x64xf32>
    %76 = vector.shape_cast %73 : vector<4x64xf32> to vector<1x1x4x64xf32>
    tpu.vector_store %arg10[%c0_23, %c0_24, %c0_25, %c0_26], %76 {strides = array<i32>} : memref<1x4x4x64xf32, #tpu.memory_space<vmem>>, vector<1x1x4x64xf32>,
    %77 = vector.extract_strided_slice %72 {offsets = [6, 0], sizes = [4, 64], strides = [1, 1]} : vector<22x64xf32> to vector<4x64xf32>
    %c0_27 = arith.constant 0 : index
    %c1 = arith.constant 1 : index
    %c0_28 = arith.constant 0 : index
    %c0_29 = arith.constant 0 : index
    %78 = vector.load %arg10[%c0_27, %c1, %c0_28, %c0_29] : memref<1x4x4x64xf32, #tpu.memory_space<vmem>>, vector<1x1x4x64xf32>
    %79 = vector.shape_cast %78 : vector<1x1x4x64xf32> to vector<4x64xf32>
    %80 = vector.shape_cast %77 : vector<4x64xf32> to vector<1x1x4x64xf32>
    tpu.vector_store %arg10[%c0_27, %c1, %c0_28, %c0_29], %80 {strides = array<i32>} : memref<1x4x4x64xf32, #tpu.memory_space<vmem>>, vector<1x1x4x64xf32>,
    %81 = vector.extract_strided_slice %72 {offsets = [12, 0], sizes = [4, 64], strides = [1, 1]} : vector<22x64xf32> to vector<4x64xf32>
    %c0_30 = arith.constant 0 : index
    %c2 = arith.constant 2 : index
    %c0_31 = arith.constant 0 : index
    %c0_32 = arith.constant 0 : index
    %82 = vector.load %arg10[%c0_30, %c2, %c0_31, %c0_32] : memref<1x4x4x64xf32, #tpu.memory_space<vmem>>, vector<1x1x4x64xf32>
    %83 = vector.shape_cast %82 : vector<1x1x4x64xf32> to vector<4x64xf32>
    %84 = vector.shape_cast %81 : vector<4x64xf32> to vector<1x1x4x64xf32>
    tpu.vector_store %arg10[%c0_30, %c2, %c0_31, %c0_32], %84 {strides = array<i32>} : memref<1x4x4x64xf32, #tpu.memory_space<vmem>>, vector<1x1x4x64xf32>,
    %85 = vector.extract_strided_slice %72 {offsets = [18, 0], sizes = [4, 64], strides = [1, 1]} : vector<22x64xf32> to vector<4x64xf32>
    %c0_33 = arith.constant 0 : index
    %c3 = arith.constant 3 : index
    %c0_34 = arith.constant 0 : index
    %c0_35 = arith.constant 0 : index
    %86 = vector.load %arg10[%c0_33, %c3, %c0_34, %c0_35] : memref<1x4x4x64xf32, #tpu.memory_space<vmem>>, vector<1x1x4x64xf32>
    %87 = vector.shape_cast %86 : vector<1x1x4x64xf32> to vector<4x64xf32>
    %88 = vector.shape_cast %85 : vector<4x64xf32> to vector<1x1x4x64xf32>
    tpu.vector_store %arg10[%c0_33, %c3, %c0_34, %c0_35], %88 {strides = array<i32>} : memref<1x4x4x64xf32, #tpu.memory_space<vmem>>, vector<1x1x4x64xf32>,
    return
  }
  func.func @transform_0(%arg0: i32) -> (i32, i32, i32) {
    %c0_i32 = arith.constant 0 : i32
    %c0_i32_0 = arith.constant 0 : i32
    %c0_i32_1 = arith.constant 0 : i32
    return %arg0, %c0_i32, %c0_i32_0 : i32, i32, i32
  }
  func.func @transform_1(%arg0: i32) -> (i32, i32) {
    %c0_i32 = arith.constant 0 : i32
    %c0_i32_0 = arith.constant 0 : i32
    %c0_i32_1 = arith.constant 0 : i32
    return %c0_i32, %c0_i32_0 : i32, i32
  }
  func.func @transform_2(%arg0: i32) -> (i32, i32) {
    %c0_i32 = arith.constant 0 : i32
    %c0_i32_0 = arith.constant 0 : i32
    %c0_i32_1 = arith.constant 0 : i32
    return %c0_i32, %c0_i32_0 : i32, i32
  }
  func.func @transform_3(%arg0: i32) -> (i32, i32) {
    %c0_i32 = arith.constant 0 : i32
    %c0_i32_0 = arith.constant 0 : i32
    %c0_i32_1 = arith.constant 0 : i32
    return %c0_i32, %c0_i32_0 : i32, i32
  }
  func.func @transform_4(%arg0: i32) -> (i32, i32) {
    %c0_i32 = arith.constant 0 : i32
    %c0_i32_0 = arith.constant 0 : i32
    %c0_i32_1 = arith.constant 0 : i32
    return %c0_i32, %c0_i32_0 : i32, i32
  }
  func.func @transform_5(%arg0: i32) -> (i32, i32) {
    %c0_i32 = arith.constant 0 : i32
    %c0_i32_0 = arith.constant 0 : i32
    %c0_i32_1 = arith.constant 0 : i32
    return %c0_i32, %c0_i32_0 : i32, i32
  }
  func.func @transform_6(%arg0: i32) -> (i32, i32) {
    %c0_i32 = arith.constant 0 : i32
    %c0_i32_0 = arith.constant 0 : i32
    %c0_i32_1 = arith.constant 0 : i32
    return %c0_i32, %c0_i32_0 : i32, i32
  }
  func.func @transform_7(%arg0: i32) -> (i32, i32) {
    %c0_i32 = arith.constant 0 : i32
    %c0_i32_0 = arith.constant 0 : i32
    %c0_i32_1 = arith.constant 0 : i32
    return %c0_i32, %c0_i32_0 : i32, i32
  }
  func.func @transform_8(%arg0: i32) -> (i32, i32) {
    %c0_i32 = arith.constant 0 : i32
    %c0_i32_0 = arith.constant 0 : i32
    %c0_i32_1 = arith.constant 0 : i32
    return %c0_i32, %c0_i32_0 : i32, i32
  }
  func.func @transform_9(%arg0: i32) -> (i32, i32, i32, i32) {
    %c0_i32 = arith.constant 0 : i32
    %c0_i32_0 = arith.constant 0 : i32
    %c0_i32_1 = arith.constant 0 : i32
    %c0_i32_2 = arith.constant 0 : i32
    return %arg0, %c0_i32, %c0_i32_0, %c0_i32_1 : i32, i32, i32, i32
  }
}

module attributes {stable_mosaic.version = 11 : i64} {
  func.func @_block_s2_kernel(%arg0: i32, %arg1: memref<1x4x9x64xf32, #tpu.memory_space<vmem>>, %arg2: memref<4x9x1xf32, #tpu.memory_space<vmem>>, %arg3: memref<9x64xf32, #tpu.memory_space<vmem>>, %arg4: memref<1x64xf32, #tpu.memory_space<vmem>>, %arg5: memref<64x128xf32, #tpu.memory_space<vmem>>, %arg6: memref<1x128xf32, #tpu.memory_space<vmem>>, %arg7: memref<64x64xf32, #tpu.memory_space<vmem>>, %arg8: memref<1x64xf32, #tpu.memory_space<vmem>>, %arg9: memref<9x64xf32, #tpu.memory_space<vmem>>, %arg10: memref<1x64xf32, #tpu.memory_space<vmem>>, %arg11: memref<64x128xf32, #tpu.memory_space<vmem>>, %arg12: memref<1x128xf32, #tpu.memory_space<vmem>>, %arg13: memref<1x2x2x128xf32, #tpu.memory_space<vmem>>) attributes {dimension_semantics = [#tpu.dimension_semantics<parallel>], iteration_bounds = array<i64: 2>, scalar_prefetch = 0 : i64, scratch_operands = 0 : i64, tpu.core_type = #tpu.core_type<tc>, window_params = [{transform_indices = @transform_0, window_bounds = array<i64: 1, 4, 9, 64>}, {pipeline_mode = #tpu.pipeline_mode<synchronous>, transform_indices = @transform_1, window_bounds = array<i64: 4, 9, 1>}, {pipeline_mode = #tpu.pipeline_mode<synchronous>, transform_indices = @transform_2, window_bounds = array<i64: 9, 64>}, {pipeline_mode = #tpu.pipeline_mode<synchronous>, transform_indices = @transform_3, window_bounds = array<i64: 1, 64>}, {pipeline_mode = #tpu.pipeline_mode<synchronous>, transform_indices = @transform_4, window_bounds = array<i64: 64, 128>}, {pipeline_mode = #tpu.pipeline_mode<synchronous>, transform_indices = @transform_5, window_bounds = array<i64: 1, 128>}, {pipeline_mode = #tpu.pipeline_mode<synchronous>, transform_indices = @transform_6, window_bounds = array<i64: 64, 64>}, {pipeline_mode = #tpu.pipeline_mode<synchronous>, transform_indices = @transform_7, window_bounds = array<i64: 1, 64>}, {pipeline_mode = #tpu.pipeline_mode<synchronous>, transform_indices = @transform_8, window_bounds = array<i64: 9, 64>}, {pipeline_mode = #tpu.pipeline_mode<synchronous>, transform_indices = @transform_9, window_bounds = array<i64: 1, 64>}, {pipeline_mode = #tpu.pipeline_mode<synchronous>, transform_indices = @transform_10, window_bounds = array<i64: 64, 128>}, {pipeline_mode = #tpu.pipeline_mode<synchronous>, transform_indices = @transform_11, window_bounds = array<i64: 1, 128>}, {transform_indices = @transform_12, window_bounds = array<i64: 1, 2, 2, 128>}]} {
    %c0 = arith.constant 0 : index
    %c0_0 = arith.constant 0 : index
    %c0_1 = arith.constant 0 : index
    %c0_2 = arith.constant 0 : index
    %0 = vector.load %arg1[%c0, %c0_0, %c0_1, %c0_2] : memref<1x4x9x64xf32, #tpu.memory_space<vmem>>, vector<1x1x9x64xf32>
    %1 = vector.shape_cast %0 : vector<1x1x9x64xf32> to vector<9x64xf32>
    %c0_3 = arith.constant 0 : index
    %c1 = arith.constant 1 : index
    %c0_4 = arith.constant 0 : index
    %c0_5 = arith.constant 0 : index
    %2 = vector.load %arg1[%c0_3, %c1, %c0_4, %c0_5] : memref<1x4x9x64xf32, #tpu.memory_space<vmem>>, vector<1x1x9x64xf32>
    %3 = vector.shape_cast %2 : vector<1x1x9x64xf32> to vector<9x64xf32>
    %c0_6 = arith.constant 0 : index
    %c2 = arith.constant 2 : index
    %c0_7 = arith.constant 0 : index
    %c0_8 = arith.constant 0 : index
    %4 = vector.load %arg1[%c0_6, %c2, %c0_7, %c0_8] : memref<1x4x9x64xf32, #tpu.memory_space<vmem>>, vector<1x1x9x64xf32>
    %5 = vector.shape_cast %4 : vector<1x1x9x64xf32> to vector<9x64xf32>
    %c0_9 = arith.constant 0 : index
    %c3 = arith.constant 3 : index
    %c0_10 = arith.constant 0 : index
    %c0_11 = arith.constant 0 : index
    %6 = vector.load %arg1[%c0_9, %c3, %c0_10, %c0_11] : memref<1x4x9x64xf32, #tpu.memory_space<vmem>>, vector<1x1x9x64xf32>
    %7 = vector.shape_cast %6 : vector<1x1x9x64xf32> to vector<9x64xf32>
    %c0_12 = arith.constant 0 : index
    %c0_13 = arith.constant 0 : index
    %8 = vector.load %arg3[%c0_12, %c0_13] : memref<9x64xf32, #tpu.memory_space<vmem>>, vector<9x64xf32>
    %cst = arith.constant 0.000000e+00 : f32
    %9 = vector.broadcast %cst : f32 to vector<5x64xf32>
    %10 = vector.extract_strided_slice %1 {offsets = [0, 0], sizes = [5, 64], strides = [1, 1]} : vector<9x64xf32> to vector<5x64xf32>
    %11 = vector.extract_strided_slice %8 {offsets = [0, 0], sizes = [1, 64], strides = [1, 1]} : vector<9x64xf32> to vector<1x64xf32>
    %12 = vector.broadcast %11 : vector<1x64xf32> to vector<5x64xf32>
    %13 = arith.mulf %10, %12 : vector<5x64xf32>
    %14 = arith.addf %9, %13 : vector<5x64xf32>
    %15 = vector.extract_strided_slice %3 {offsets = [0, 0], sizes = [5, 64], strides = [1, 1]} : vector<9x64xf32> to vector<5x64xf32>
    %16 = vector.extract_strided_slice %8 {offsets = [1, 0], sizes = [1, 64], strides = [1, 1]} : vector<9x64xf32> to vector<1x64xf32>
    %17 = vector.broadcast %16 : vector<1x64xf32> to vector<5x64xf32>
    %18 = arith.mulf %15, %17 : vector<5x64xf32>
    %19 = arith.addf %14, %18 : vector<5x64xf32>
    %20 = vector.extract_strided_slice %1 {offsets = [1, 0], sizes = [5, 64], strides = [1, 1]} : vector<9x64xf32> to vector<5x64xf32>
    %21 = vector.extract_strided_slice %8 {offsets = [2, 0], sizes = [1, 64], strides = [1, 1]} : vector<9x64xf32> to vector<1x64xf32>
    %22 = vector.broadcast %21 : vector<1x64xf32> to vector<5x64xf32>
    %23 = arith.mulf %20, %22 : vector<5x64xf32>
    %24 = arith.addf %19, %23 : vector<5x64xf32>
    %25 = vector.extract_strided_slice %5 {offsets = [0, 0], sizes = [5, 64], strides = [1, 1]} : vector<9x64xf32> to vector<5x64xf32>
    %26 = vector.extract_strided_slice %8 {offsets = [3, 0], sizes = [1, 64], strides = [1, 1]} : vector<9x64xf32> to vector<1x64xf32>
    %27 = vector.broadcast %26 : vector<1x64xf32> to vector<5x64xf32>
    %28 = arith.mulf %25, %27 : vector<5x64xf32>
    %29 = arith.addf %24, %28 : vector<5x64xf32>
    %30 = vector.extract_strided_slice %7 {offsets = [0, 0], sizes = [5, 64], strides = [1, 1]} : vector<9x64xf32> to vector<5x64xf32>
    %31 = vector.extract_strided_slice %8 {offsets = [4, 0], sizes = [1, 64], strides = [1, 1]} : vector<9x64xf32> to vector<1x64xf32>
    %32 = vector.broadcast %31 : vector<1x64xf32> to vector<5x64xf32>
    %33 = arith.mulf %30, %32 : vector<5x64xf32>
    %34 = arith.addf %29, %33 : vector<5x64xf32>
    %35 = vector.extract_strided_slice %5 {offsets = [1, 0], sizes = [5, 64], strides = [1, 1]} : vector<9x64xf32> to vector<5x64xf32>
    %36 = vector.extract_strided_slice %8 {offsets = [5, 0], sizes = [1, 64], strides = [1, 1]} : vector<9x64xf32> to vector<1x64xf32>
    %37 = vector.broadcast %36 : vector<1x64xf32> to vector<5x64xf32>
    %38 = arith.mulf %35, %37 : vector<5x64xf32>
    %39 = arith.addf %34, %38 : vector<5x64xf32>
    %40 = vector.extract_strided_slice %1 {offsets = [3, 0], sizes = [5, 64], strides = [1, 1]} : vector<9x64xf32> to vector<5x64xf32>
    %41 = vector.extract_strided_slice %8 {offsets = [6, 0], sizes = [1, 64], strides = [1, 1]} : vector<9x64xf32> to vector<1x64xf32>
    %42 = vector.broadcast %41 : vector<1x64xf32> to vector<5x64xf32>
    %43 = arith.mulf %40, %42 : vector<5x64xf32>
    %44 = arith.addf %39, %43 : vector<5x64xf32>
    %45 = vector.extract_strided_slice %3 {offsets = [3, 0], sizes = [5, 64], strides = [1, 1]} : vector<9x64xf32> to vector<5x64xf32>
    %46 = vector.extract_strided_slice %8 {offsets = [7, 0], sizes = [1, 64], strides = [1, 1]} : vector<9x64xf32> to vector<1x64xf32>
    %47 = vector.broadcast %46 : vector<1x64xf32> to vector<5x64xf32>
    %48 = arith.mulf %45, %47 : vector<5x64xf32>
    %49 = arith.addf %44, %48 : vector<5x64xf32>
    %50 = vector.extract_strided_slice %1 {offsets = [4, 0], sizes = [5, 64], strides = [1, 1]} : vector<9x64xf32> to vector<5x64xf32>
    %51 = vector.extract_strided_slice %8 {offsets = [8, 0], sizes = [1, 64], strides = [1, 1]} : vector<9x64xf32> to vector<1x64xf32>
    %52 = vector.broadcast %51 : vector<1x64xf32> to vector<5x64xf32>
    %53 = arith.mulf %50, %52 : vector<5x64xf32>
    %54 = arith.addf %49, %53 : vector<5x64xf32>
    %c0_14 = arith.constant 0 : index
    %c0_15 = arith.constant 0 : index
    %55 = vector.load %arg4[%c0_14, %c0_15] : memref<1x64xf32, #tpu.memory_space<vmem>>, vector<1x64xf32>
    %56 = vector.broadcast %55 : vector<1x64xf32> to vector<5x64xf32>
    %57 = arith.addf %54, %56 : vector<5x64xf32>
    %c0_16 = arith.constant 0 : index
    %c0_17 = arith.constant 0 : index
    %58 = vector.load %arg5[%c0_16, %c0_17] : memref<64x128xf32, #tpu.memory_space<vmem>>, vector<64x128xf32>
    %cst_18 = arith.constant dense<0.000000e+00> : vector<5x128xf32>
    %59 = tpu.matmul %57, %58, %cst_18 {dimension_numbers = #tpu.dot_dimension_numbers<[1], [0], [0], [1], [0, 0, 1, 1], [], []>} : vector<5x64xf32>, vector<64x128xf32>, vector<5x128xf32> -> vector<5x128xf32>
    %c0_19 = arith.constant 0 : index
    %c0_20 = arith.constant 0 : index
    %60 = vector.load %arg6[%c0_19, %c0_20] : memref<1x128xf32, #tpu.memory_space<vmem>>, vector<1x128xf32>
    %61 = vector.broadcast %60 : vector<1x128xf32> to vector<5x128xf32>
    %62 = arith.addf %59, %61 : vector<5x128xf32>
    %cst_21 = arith.constant 0.000000e+00 : f32
    %63 = vector.broadcast %cst_21 : f32 to vector<5x128xf32>
    %64 = arith.maximumf %62, %63 : vector<5x128xf32>
    %c0_22 = arith.constant 0 : index
    %c0_23 = arith.constant 0 : index
    %65 = vector.load %arg7[%c0_22, %c0_23] : memref<64x64xf32, #tpu.memory_space<vmem>>, vector<64x64xf32>
    %cst_24 = arith.constant dense<0.000000e+00> : vector<9x64xf32>
    %66 = tpu.matmul %1, %65, %cst_24 {dimension_numbers = #tpu.dot_dimension_numbers<[1], [0], [0], [1], [0, 0, 1, 1], [], []>} : vector<9x64xf32>, vector<64x64xf32>, vector<9x64xf32> -> vector<9x64xf32>
    %c0_25 = arith.constant 0 : index
    %c0_26 = arith.constant 0 : index
    %67 = vector.load %arg8[%c0_25, %c0_26] : memref<1x64xf32, #tpu.memory_space<vmem>>, vector<1x64xf32>
    %68 = vector.broadcast %67 : vector<1x64xf32> to vector<9x64xf32>
    %69 = arith.addf %66, %68 : vector<9x64xf32>
    %cst_27 = arith.constant 0.000000e+00 : f32
    %70 = vector.broadcast %cst_27 : f32 to vector<9x64xf32>
    %71 = arith.maximumf %69, %70 : vector<9x64xf32>
    %c0_28 = arith.constant 0 : index
    %c0_29 = arith.constant 0 : index
    %c0_30 = arith.constant 0 : index
    %72 = vector.load %arg2[%c0_28, %c0_29, %c0_30] : memref<4x9x1xf32, #tpu.memory_space<vmem>>, vector<1x9x1xf32>
    %73 = vector.shape_cast %72 : vector<1x9x1xf32> to vector<9x1xf32>
    %74 = vector.broadcast %73 : vector<9x1xf32> to vector<9x64xf32>
    %75 = arith.mulf %71, %74 : vector<9x64xf32>
    %c0_31 = arith.constant 0 : index
    %c0_32 = arith.constant 0 : index
    %76 = vector.load %arg7[%c0_31, %c0_32] : memref<64x64xf32, #tpu.memory_space<vmem>>, vector<64x64xf32>
    %cst_33 = arith.constant dense<0.000000e+00> : vector<9x64xf32>
    %77 = tpu.matmul %3, %76, %cst_33 {dimension_numbers = #tpu.dot_dimension_numbers<[1], [0], [0], [1], [0, 0, 1, 1], [], []>} : vector<9x64xf32>, vector<64x64xf32>, vector<9x64xf32> -> vector<9x64xf32>
    %c0_34 = arith.constant 0 : index
    %c0_35 = arith.constant 0 : index
    %78 = vector.load %arg8[%c0_34, %c0_35] : memref<1x64xf32, #tpu.memory_space<vmem>>, vector<1x64xf32>
    %79 = vector.broadcast %78 : vector<1x64xf32> to vector<9x64xf32>
    %80 = arith.addf %77, %79 : vector<9x64xf32>
    %cst_36 = arith.constant 0.000000e+00 : f32
    %81 = vector.broadcast %cst_36 : f32 to vector<9x64xf32>
    %82 = arith.maximumf %80, %81 : vector<9x64xf32>
    %c1_37 = arith.constant 1 : index
    %c0_38 = arith.constant 0 : index
    %c0_39 = arith.constant 0 : index
    %83 = vector.load %arg2[%c1_37, %c0_38, %c0_39] : memref<4x9x1xf32, #tpu.memory_space<vmem>>, vector<1x9x1xf32>
    %84 = vector.shape_cast %83 : vector<1x9x1xf32> to vector<9x1xf32>
    %85 = vector.broadcast %84 : vector<9x1xf32> to vector<9x64xf32>
    %86 = arith.mulf %82, %85 : vector<9x64xf32>
    %c0_40 = arith.constant 0 : index
    %c0_41 = arith.constant 0 : index
    %87 = vector.load %arg7[%c0_40, %c0_41] : memref<64x64xf32, #tpu.memory_space<vmem>>, vector<64x64xf32>
    %cst_42 = arith.constant dense<0.000000e+00> : vector<9x64xf32>
    %88 = tpu.matmul %5, %87, %cst_42 {dimension_numbers = #tpu.dot_dimension_numbers<[1], [0], [0], [1], [0, 0, 1, 1], [], []>} : vector<9x64xf32>, vector<64x64xf32>, vector<9x64xf32> -> vector<9x64xf32>
    %c0_43 = arith.constant 0 : index
    %c0_44 = arith.constant 0 : index
    %89 = vector.load %arg8[%c0_43, %c0_44] : memref<1x64xf32, #tpu.memory_space<vmem>>, vector<1x64xf32>
    %90 = vector.broadcast %89 : vector<1x64xf32> to vector<9x64xf32>
    %91 = arith.addf %88, %90 : vector<9x64xf32>
    %cst_45 = arith.constant 0.000000e+00 : f32
    %92 = vector.broadcast %cst_45 : f32 to vector<9x64xf32>
    %93 = arith.maximumf %91, %92 : vector<9x64xf32>
    %c2_46 = arith.constant 2 : index
    %c0_47 = arith.constant 0 : index
    %c0_48 = arith.constant 0 : index
    %94 = vector.load %arg2[%c2_46, %c0_47, %c0_48] : memref<4x9x1xf32, #tpu.memory_space<vmem>>, vector<1x9x1xf32>
    %95 = vector.shape_cast %94 : vector<1x9x1xf32> to vector<9x1xf32>
    %96 = vector.broadcast %95 : vector<9x1xf32> to vector<9x64xf32>
    %97 = arith.mulf %93, %96 : vector<9x64xf32>
    %c0_49 = arith.constant 0 : index
    %c0_50 = arith.constant 0 : index
    %98 = vector.load %arg7[%c0_49, %c0_50] : memref<64x64xf32, #tpu.memory_space<vmem>>, vector<64x64xf32>
    %cst_51 = arith.constant dense<0.000000e+00> : vector<9x64xf32>
    %99 = tpu.matmul %7, %98, %cst_51 {dimension_numbers = #tpu.dot_dimension_numbers<[1], [0], [0], [1], [0, 0, 1, 1], [], []>} : vector<9x64xf32>, vector<64x64xf32>, vector<9x64xf32> -> vector<9x64xf32>
    %c0_52 = arith.constant 0 : index
    %c0_53 = arith.constant 0 : index
    %100 = vector.load %arg8[%c0_52, %c0_53] : memref<1x64xf32, #tpu.memory_space<vmem>>, vector<1x64xf32>
    %101 = vector.broadcast %100 : vector<1x64xf32> to vector<9x64xf32>
    %102 = arith.addf %99, %101 : vector<9x64xf32>
    %cst_54 = arith.constant 0.000000e+00 : f32
    %103 = vector.broadcast %cst_54 : f32 to vector<9x64xf32>
    %104 = arith.maximumf %102, %103 : vector<9x64xf32>
    %c3_55 = arith.constant 3 : index
    %c0_56 = arith.constant 0 : index
    %c0_57 = arith.constant 0 : index
    %105 = vector.load %arg2[%c3_55, %c0_56, %c0_57] : memref<4x9x1xf32, #tpu.memory_space<vmem>>, vector<1x9x1xf32>
    %106 = vector.shape_cast %105 : vector<1x9x1xf32> to vector<9x1xf32>
    %107 = vector.broadcast %106 : vector<9x1xf32> to vector<9x64xf32>
    %108 = arith.mulf %104, %107 : vector<9x64xf32>
    %c0_58 = arith.constant 0 : index
    %c0_59 = arith.constant 0 : index
    %109 = vector.load %arg9[%c0_58, %c0_59] : memref<9x64xf32, #tpu.memory_space<vmem>>, vector<9x64xf32>
    %cst_60 = arith.constant 0.000000e+00 : f32
    %110 = vector.broadcast %cst_60 : f32 to vector<5x64xf32>
    %111 = vector.extract_strided_slice %75 {offsets = [0, 0], sizes = [5, 64], strides = [1, 1]} : vector<9x64xf32> to vector<5x64xf32>
    %112 = vector.extract_strided_slice %109 {offsets = [0, 0], sizes = [1, 64], strides = [1, 1]} : vector<9x64xf32> to vector<1x64xf32>
    %113 = vector.broadcast %112 : vector<1x64xf32> to vector<5x64xf32>
    %114 = arith.mulf %111, %113 : vector<5x64xf32>
    %115 = arith.addf %110, %114 : vector<5x64xf32>
    %116 = vector.extract_strided_slice %86 {offsets = [0, 0], sizes = [5, 64], strides = [1, 1]} : vector<9x64xf32> to vector<5x64xf32>
    %117 = vector.extract_strided_slice %109 {offsets = [1, 0], sizes = [1, 64], strides = [1, 1]} : vector<9x64xf32> to vector<1x64xf32>
    %118 = vector.broadcast %117 : vector<1x64xf32> to vector<5x64xf32>
    %119 = arith.mulf %116, %118 : vector<5x64xf32>
    %120 = arith.addf %115, %119 : vector<5x64xf32>
    %121 = vector.extract_strided_slice %75 {offsets = [1, 0], sizes = [5, 64], strides = [1, 1]} : vector<9x64xf32> to vector<5x64xf32>
    %122 = vector.extract_strided_slice %109 {offsets = [2, 0], sizes = [1, 64], strides = [1, 1]} : vector<9x64xf32> to vector<1x64xf32>
    %123 = vector.broadcast %122 : vector<1x64xf32> to vector<5x64xf32>
    %124 = arith.mulf %121, %123 : vector<5x64xf32>
    %125 = arith.addf %120, %124 : vector<5x64xf32>
    %126 = vector.extract_strided_slice %97 {offsets = [0, 0], sizes = [5, 64], strides = [1, 1]} : vector<9x64xf32> to vector<5x64xf32>
    %127 = vector.extract_strided_slice %109 {offsets = [3, 0], sizes = [1, 64], strides = [1, 1]} : vector<9x64xf32> to vector<1x64xf32>
    %128 = vector.broadcast %127 : vector<1x64xf32> to vector<5x64xf32>
    %129 = arith.mulf %126, %128 : vector<5x64xf32>
    %130 = arith.addf %125, %129 : vector<5x64xf32>
    %131 = vector.extract_strided_slice %108 {offsets = [0, 0], sizes = [5, 64], strides = [1, 1]} : vector<9x64xf32> to vector<5x64xf32>
    %132 = vector.extract_strided_slice %109 {offsets = [4, 0], sizes = [1, 64], strides = [1, 1]} : vector<9x64xf32> to vector<1x64xf32>
    %133 = vector.broadcast %132 : vector<1x64xf32> to vector<5x64xf32>
    %134 = arith.mulf %131, %133 : vector<5x64xf32>
    %135 = arith.addf %130, %134 : vector<5x64xf32>
    %136 = vector.extract_strided_slice %97 {offsets = [1, 0], sizes = [5, 64], strides = [1, 1]} : vector<9x64xf32> to vector<5x64xf32>
    %137 = vector.extract_strided_slice %109 {offsets = [5, 0], sizes = [1, 64], strides = [1, 1]} : vector<9x64xf32> to vector<1x64xf32>
    %138 = vector.broadcast %137 : vector<1x64xf32> to vector<5x64xf32>
    %139 = arith.mulf %136, %138 : vector<5x64xf32>
    %140 = arith.addf %135, %139 : vector<5x64xf32>
    %141 = vector.extract_strided_slice %75 {offsets = [3, 0], sizes = [5, 64], strides = [1, 1]} : vector<9x64xf32> to vector<5x64xf32>
    %142 = vector.extract_strided_slice %109 {offsets = [6, 0], sizes = [1, 64], strides = [1, 1]} : vector<9x64xf32> to vector<1x64xf32>
    %143 = vector.broadcast %142 : vector<1x64xf32> to vector<5x64xf32>
    %144 = arith.mulf %141, %143 : vector<5x64xf32>
    %145 = arith.addf %140, %144 : vector<5x64xf32>
    %146 = vector.extract_strided_slice %86 {offsets = [3, 0], sizes = [5, 64], strides = [1, 1]} : vector<9x64xf32> to vector<5x64xf32>
    %147 = vector.extract_strided_slice %109 {offsets = [7, 0], sizes = [1, 64], strides = [1, 1]} : vector<9x64xf32> to vector<1x64xf32>
    %148 = vector.broadcast %147 : vector<1x64xf32> to vector<5x64xf32>
    %149 = arith.mulf %146, %148 : vector<5x64xf32>
    %150 = arith.addf %145, %149 : vector<5x64xf32>
    %151 = vector.extract_strided_slice %75 {offsets = [4, 0], sizes = [5, 64], strides = [1, 1]} : vector<9x64xf32> to vector<5x64xf32>
    %152 = vector.extract_strided_slice %109 {offsets = [8, 0], sizes = [1, 64], strides = [1, 1]} : vector<9x64xf32> to vector<1x64xf32>
    %153 = vector.broadcast %152 : vector<1x64xf32> to vector<5x64xf32>
    %154 = arith.mulf %151, %153 : vector<5x64xf32>
    %155 = arith.addf %150, %154 : vector<5x64xf32>
    %c0_61 = arith.constant 0 : index
    %c0_62 = arith.constant 0 : index
    %156 = vector.load %arg10[%c0_61, %c0_62] : memref<1x64xf32, #tpu.memory_space<vmem>>, vector<1x64xf32>
    %157 = vector.broadcast %156 : vector<1x64xf32> to vector<5x64xf32>
    %158 = arith.addf %155, %157 : vector<5x64xf32>
    %c0_63 = arith.constant 0 : index
    %c0_64 = arith.constant 0 : index
    %159 = vector.load %arg11[%c0_63, %c0_64] : memref<64x128xf32, #tpu.memory_space<vmem>>, vector<64x128xf32>
    %cst_65 = arith.constant dense<0.000000e+00> : vector<5x128xf32>
    %160 = tpu.matmul %158, %159, %cst_65 {dimension_numbers = #tpu.dot_dimension_numbers<[1], [0], [0], [1], [0, 0, 1, 1], [], []>} : vector<5x64xf32>, vector<64x128xf32>, vector<5x128xf32> -> vector<5x128xf32>
    %c0_66 = arith.constant 0 : index
    %c0_67 = arith.constant 0 : index
    %161 = vector.load %arg12[%c0_66, %c0_67] : memref<1x128xf32, #tpu.memory_space<vmem>>, vector<1x128xf32>
    %162 = vector.broadcast %161 : vector<1x128xf32> to vector<5x128xf32>
    %163 = arith.addf %160, %162 : vector<5x128xf32>
    %cst_68 = arith.constant 0.000000e+00 : f32
    %164 = vector.broadcast %cst_68 : f32 to vector<5x128xf32>
    %165 = arith.maximumf %163, %164 : vector<5x128xf32>
    %166 = arith.addf %64, %165 : vector<5x128xf32>
    %167 = vector.extract_strided_slice %166 {offsets = [0, 0], sizes = [2, 128], strides = [1, 1]} : vector<5x128xf32> to vector<2x128xf32>
    %c0_69 = arith.constant 0 : index
    %c0_70 = arith.constant 0 : index
    %c0_71 = arith.constant 0 : index
    %c0_72 = arith.constant 0 : index
    %168 = vector.load %arg13[%c0_69, %c0_70, %c0_71, %c0_72] : memref<1x2x2x128xf32, #tpu.memory_space<vmem>>, vector<1x1x2x128xf32>
    %169 = vector.shape_cast %168 : vector<1x1x2x128xf32> to vector<2x128xf32>
    %170 = vector.shape_cast %167 : vector<2x128xf32> to vector<1x1x2x128xf32>
    tpu.vector_store %arg13[%c0_69, %c0_70, %c0_71, %c0_72], %170 {strides = array<i32>} : memref<1x2x2x128xf32, #tpu.memory_space<vmem>>, vector<1x1x2x128xf32>,
    %171 = vector.extract_strided_slice %166 {offsets = [3, 0], sizes = [2, 128], strides = [1, 1]} : vector<5x128xf32> to vector<2x128xf32>
    %c0_73 = arith.constant 0 : index
    %c1_74 = arith.constant 1 : index
    %c0_75 = arith.constant 0 : index
    %c0_76 = arith.constant 0 : index
    %172 = vector.load %arg13[%c0_73, %c1_74, %c0_75, %c0_76] : memref<1x2x2x128xf32, #tpu.memory_space<vmem>>, vector<1x1x2x128xf32>
    %173 = vector.shape_cast %172 : vector<1x1x2x128xf32> to vector<2x128xf32>
    %174 = vector.shape_cast %171 : vector<2x128xf32> to vector<1x1x2x128xf32>
    tpu.vector_store %arg13[%c0_73, %c1_74, %c0_75, %c0_76], %174 {strides = array<i32>} : memref<1x2x2x128xf32, #tpu.memory_space<vmem>>, vector<1x1x2x128xf32>,
    return
  }
  func.func @transform_0(%arg0: i32) -> (i32, i32, i32, i32) {
    %c0_i32 = arith.constant 0 : i32
    %c0_i32_0 = arith.constant 0 : i32
    %c0_i32_1 = arith.constant 0 : i32
    %c0_i32_2 = arith.constant 0 : i32
    return %arg0, %c0_i32, %c0_i32_0, %c0_i32_1 : i32, i32, i32, i32
  }
  func.func @transform_1(%arg0: i32) -> (i32, i32, i32) {
    %c0_i32 = arith.constant 0 : i32
    %c0_i32_0 = arith.constant 0 : i32
    %c0_i32_1 = arith.constant 0 : i32
    %c0_i32_2 = arith.constant 0 : i32
    return %c0_i32, %c0_i32_0, %c0_i32_1 : i32, i32, i32
  }
  func.func @transform_2(%arg0: i32) -> (i32, i32) {
    %c0_i32 = arith.constant 0 : i32
    %c0_i32_0 = arith.constant 0 : i32
    %c0_i32_1 = arith.constant 0 : i32
    return %c0_i32, %c0_i32_0 : i32, i32
  }
  func.func @transform_3(%arg0: i32) -> (i32, i32) {
    %c0_i32 = arith.constant 0 : i32
    %c0_i32_0 = arith.constant 0 : i32
    %c0_i32_1 = arith.constant 0 : i32
    return %c0_i32, %c0_i32_0 : i32, i32
  }
  func.func @transform_4(%arg0: i32) -> (i32, i32) {
    %c0_i32 = arith.constant 0 : i32
    %c0_i32_0 = arith.constant 0 : i32
    %c0_i32_1 = arith.constant 0 : i32
    return %c0_i32, %c0_i32_0 : i32, i32
  }
  func.func @transform_5(%arg0: i32) -> (i32, i32) {
    %c0_i32 = arith.constant 0 : i32
    %c0_i32_0 = arith.constant 0 : i32
    %c0_i32_1 = arith.constant 0 : i32
    return %c0_i32, %c0_i32_0 : i32, i32
  }
  func.func @transform_6(%arg0: i32) -> (i32, i32) {
    %c0_i32 = arith.constant 0 : i32
    %c0_i32_0 = arith.constant 0 : i32
    %c0_i32_1 = arith.constant 0 : i32
    return %c0_i32, %c0_i32_0 : i32, i32
  }
  func.func @transform_7(%arg0: i32) -> (i32, i32) {
    %c0_i32 = arith.constant 0 : i32
    %c0_i32_0 = arith.constant 0 : i32
    %c0_i32_1 = arith.constant 0 : i32
    return %c0_i32, %c0_i32_0 : i32, i32
  }
  func.func @transform_8(%arg0: i32) -> (i32, i32) {
    %c0_i32 = arith.constant 0 : i32
    %c0_i32_0 = arith.constant 0 : i32
    %c0_i32_1 = arith.constant 0 : i32
    return %c0_i32, %c0_i32_0 : i32, i32
  }
  func.func @transform_9(%arg0: i32) -> (i32, i32) {
    %c0_i32 = arith.constant 0 : i32
    %c0_i32_0 = arith.constant 0 : i32
    %c0_i32_1 = arith.constant 0 : i32
    return %c0_i32, %c0_i32_0 : i32, i32
  }
  func.func @transform_10(%arg0: i32) -> (i32, i32) {
    %c0_i32 = arith.constant 0 : i32
    %c0_i32_0 = arith.constant 0 : i32
    %c0_i32_1 = arith.constant 0 : i32
    return %c0_i32, %c0_i32_0 : i32, i32
  }
  func.func @transform_11(%arg0: i32) -> (i32, i32) {
    %c0_i32 = arith.constant 0 : i32
    %c0_i32_0 = arith.constant 0 : i32
    %c0_i32_1 = arith.constant 0 : i32
    return %c0_i32, %c0_i32_0 : i32, i32
  }
  func.func @transform_12(%arg0: i32) -> (i32, i32, i32, i32) {
    %c0_i32 = arith.constant 0 : i32
    %c0_i32_0 = arith.constant 0 : i32
    %c0_i32_1 = arith.constant 0 : i32
    %c0_i32_2 = arith.constant 0 : i32
    return %arg0, %c0_i32, %c0_i32_0, %c0_i32_1 : i32, i32, i32, i32
  }
}

module attributes {stable_mosaic.version = 11 : i64} {
  func.func @_conv5_gap_kernel(%arg0: i32, %arg1: memref<1x4x128xf32, #tpu.memory_space<vmem>>, %arg2: memref<128x256xf32, #tpu.memory_space<vmem>>, %arg3: memref<1x256xf32, #tpu.memory_space<vmem>>, %arg4: memref<1x1x256xf32, #tpu.memory_space<vmem>>) attributes {dimension_semantics = [#tpu.dimension_semantics<parallel>], iteration_bounds = array<i64: 2>, scalar_prefetch = 0 : i64, scratch_operands = 0 : i64, tpu.core_type = #tpu.core_type<tc>, window_params = [{transform_indices = @transform_0, window_bounds = array<i64: 1, 4, 128>}, {pipeline_mode = #tpu.pipeline_mode<synchronous>, transform_indices = @transform_1, window_bounds = array<i64: 128, 256>}, {pipeline_mode = #tpu.pipeline_mode<synchronous>, transform_indices = @transform_2, window_bounds = array<i64: 1, 256>}, {transform_indices = @transform_3, window_bounds = array<i64: 1, 1, 256>}]} {
    %c0 = arith.constant 0 : index
    %c0_0 = arith.constant 0 : index
    %c0_1 = arith.constant 0 : index
    %0 = vector.load %arg1[%c0, %c0_0, %c0_1] : memref<1x4x128xf32, #tpu.memory_space<vmem>>, vector<1x4x128xf32>
    %1 = vector.shape_cast %0 : vector<1x4x128xf32> to vector<4x128xf32>
    %c0_2 = arith.constant 0 : index
    %c0_3 = arith.constant 0 : index
    %2 = vector.load %arg2[%c0_2, %c0_3] : memref<128x256xf32, #tpu.memory_space<vmem>>, vector<128x256xf32>
    %cst = arith.constant dense<0.000000e+00> : vector<4x256xf32>
    %3 = tpu.matmul %1, %2, %cst {dimension_numbers = #tpu.dot_dimension_numbers<[1], [0], [0], [1], [0, 0, 1, 1], [], []>} : vector<4x128xf32>, vector<128x256xf32>, vector<4x256xf32> -> vector<4x256xf32>
    %c0_4 = arith.constant 0 : index
    %c0_5 = arith.constant 0 : index
    %4 = vector.load %arg3[%c0_4, %c0_5] : memref<1x256xf32, #tpu.memory_space<vmem>>, vector<1x256xf32>
    %5 = vector.broadcast %4 : vector<1x256xf32> to vector<4x256xf32>
    %6 = arith.addf %3, %5 : vector<4x256xf32>
    %cst_6 = arith.constant 0.000000e+00 : f32
    %7 = vector.broadcast %cst_6 : f32 to vector<4x256xf32>
    %8 = arith.maximumf %6, %7 : vector<4x256xf32>
    %cst_7 = arith.constant dense<0.000000e+00> : vector<256xf32>
    %9 = vector.multi_reduction <add>, %8, %cst_7 [0] : vector<4x256xf32> to vector<256xf32>
    %10 = vector.shape_cast %9 : vector<256xf32> to vector<1x256xf32>
    %cst_8 = arith.constant 4.000000e+00 : f32
    %11 = vector.broadcast %cst_8 : f32 to vector<1x256xf32>
    %12 = arith.divf %10, %11 : vector<1x256xf32>
    %c0_9 = arith.constant 0 : index
    %c0_10 = arith.constant 0 : index
    %c0_11 = arith.constant 0 : index
    %13 = vector.load %arg4[%c0_9, %c0_10, %c0_11] : memref<1x1x256xf32, #tpu.memory_space<vmem>>, vector<1x1x256xf32>
    %14 = vector.shape_cast %13 : vector<1x1x256xf32> to vector<1x256xf32>
    %15 = vector.shape_cast %12 : vector<1x256xf32> to vector<1x1x256xf32>
    tpu.vector_store %arg4[%c0_9, %c0_10, %c0_11], %15 {strides = array<i32>} : memref<1x1x256xf32, #tpu.memory_space<vmem>>, vector<1x1x256xf32>,
    return
  }
  func.func @transform_0(%arg0: i32) -> (i32, i32, i32) {
    %c0_i32 = arith.constant 0 : i32
    %c0_i32_0 = arith.constant 0 : i32
    %c0_i32_1 = arith.constant 0 : i32
    return %arg0, %c0_i32, %c0_i32_0 : i32, i32, i32
  }
  func.func @transform_1(%arg0: i32) -> (i32, i32) {
    %c0_i32 = arith.constant 0 : i32
    %c0_i32_0 = arith.constant 0 : i32
    %c0_i32_1 = arith.constant 0 : i32
    return %c0_i32, %c0_i32_0 : i32, i32
  }
  func.func @transform_2(%arg0: i32) -> (i32, i32) {
    %c0_i32 = arith.constant 0 : i32
    %c0_i32_0 = arith.constant 0 : i32
    %c0_i32_1 = arith.constant 0 : i32
    return %c0_i32, %c0_i32_0 : i32, i32
  }
  func.func @transform_3(%arg0: i32) -> (i32, i32, i32) {
    %c0_i32 = arith.constant 0 : i32
    %c0_i32_0 = arith.constant 0 : i32
    %c0_i32_1 = arith.constant 0 : i32
    return %arg0, %c0_i32, %c0_i32_0 : i32, i32, i32
  }
}

module attributes {stable_mosaic.version = 11 : i64} {
  func.func @_block_s1_kernel(%arg0: i32, %arg1: memref<1x16x128xf32, #tpu.memory_space<vmem>>, %arg2: memref<16x1xf32, #tpu.memory_space<vmem>>, %arg3: memref<128x64xf32, #tpu.memory_space<vmem>>, %arg4: memref<1x64xf32, #tpu.memory_space<vmem>>, %arg5: memref<9x64xf32, #tpu.memory_space<vmem>>, %arg6: memref<1x64xf32, #tpu.memory_space<vmem>>, %arg7: memref<64x128xf32, #tpu.memory_space<vmem>>, %arg8: memref<1x128xf32, #tpu.memory_space<vmem>>, %arg9: memref<128x128xf32, #tpu.memory_space<vmem>>, %arg10: memref<1x2x2x128xf32, #tpu.memory_space<vmem>>) attributes {dimension_semantics = [#tpu.dimension_semantics<parallel>], iteration_bounds = array<i64: 2>, scalar_prefetch = 0 : i64, scratch_operands = 0 : i64, tpu.core_type = #tpu.core_type<tc>, window_params = [{transform_indices = @transform_0, window_bounds = array<i64: 1, 16, 128>}, {pipeline_mode = #tpu.pipeline_mode<synchronous>, transform_indices = @transform_1, window_bounds = array<i64: 16, 1>}, {pipeline_mode = #tpu.pipeline_mode<synchronous>, transform_indices = @transform_2, window_bounds = array<i64: 128, 64>}, {pipeline_mode = #tpu.pipeline_mode<synchronous>, transform_indices = @transform_3, window_bounds = array<i64: 1, 64>}, {pipeline_mode = #tpu.pipeline_mode<synchronous>, transform_indices = @transform_4, window_bounds = array<i64: 9, 64>}, {pipeline_mode = #tpu.pipeline_mode<synchronous>, transform_indices = @transform_5, window_bounds = array<i64: 1, 64>}, {pipeline_mode = #tpu.pipeline_mode<synchronous>, transform_indices = @transform_6, window_bounds = array<i64: 64, 128>}, {pipeline_mode = #tpu.pipeline_mode<synchronous>, transform_indices = @transform_7, window_bounds = array<i64: 1, 128>}, {pipeline_mode = #tpu.pipeline_mode<synchronous>, transform_indices = @transform_8, window_bounds = array<i64: 128, 128>}, {transform_indices = @transform_9, window_bounds = array<i64: 1, 2, 2, 128>}]} {
    %c0 = arith.constant 0 : index
    %c0_0 = arith.constant 0 : index
    %c0_1 = arith.constant 0 : index
    %0 = vector.load %arg1[%c0, %c0_0, %c0_1] : memref<1x16x128xf32, #tpu.memory_space<vmem>>, vector<1x16x128xf32>
    %1 = vector.shape_cast %0 : vector<1x16x128xf32> to vector<16x128xf32>
    %c0_2 = arith.constant 0 : index
    %c0_3 = arith.constant 0 : index
    %2 = vector.load %arg3[%c0_2, %c0_3] : memref<128x64xf32, #tpu.memory_space<vmem>>, vector<128x64xf32>
    %cst = arith.constant dense<0.000000e+00> : vector<16x64xf32>
    %3 = tpu.matmul %1, %2, %cst {dimension_numbers = #tpu.dot_dimension_numbers<[1], [0], [0], [1], [0, 0, 1, 1], [], []>} : vector<16x128xf32>, vector<128x64xf32>, vector<16x64xf32> -> vector<16x64xf32>
    %c0_4 = arith.constant 0 : index
    %c0_5 = arith.constant 0 : index
    %4 = vector.load %arg4[%c0_4, %c0_5] : memref<1x64xf32, #tpu.memory_space<vmem>>, vector<1x64xf32>
    %5 = vector.broadcast %4 : vector<1x64xf32> to vector<16x64xf32>
    %6 = arith.addf %3, %5 : vector<16x64xf32>
    %cst_6 = arith.constant 0.000000e+00 : f32
    %7 = vector.broadcast %cst_6 : f32 to vector<16x64xf32>
    %8 = arith.maximumf %6, %7 : vector<16x64xf32>
    %c0_7 = arith.constant 0 : index
    %c0_8 = arith.constant 0 : index
    %9 = vector.load %arg2[%c0_7, %c0_8] : memref<16x1xf32, #tpu.memory_space<vmem>>, vector<16x1xf32>
    %10 = vector.broadcast %9 : vector<16x1xf32> to vector<16x64xf32>
    %11 = arith.mulf %8, %10 : vector<16x64xf32>
    %c0_9 = arith.constant 0 : index
    %c0_10 = arith.constant 0 : index
    %12 = vector.load %arg5[%c0_9, %c0_10] : memref<9x64xf32, #tpu.memory_space<vmem>>, vector<9x64xf32>
    %cst_11 = arith.constant 0.000000e+00 : f32
    %13 = vector.broadcast %cst_11 : f32 to vector<6x64xf32>
    %14 = vector.extract_strided_slice %11 {offsets = [0, 0], sizes = [6, 64], strides = [1, 1]} : vector<16x64xf32> to vector<6x64xf32>
    %15 = vector.extract_strided_slice %12 {offsets = [0, 0], sizes = [1, 64], strides = [1, 1]} : vector<9x64xf32> to vector<1x64xf32>
    %16 = vector.broadcast %15 : vector<1x64xf32> to vector<6x64xf32>
    %17 = arith.mulf %14, %16 : vector<6x64xf32>
    %18 = arith.addf %13, %17 : vector<6x64xf32>
    %19 = vector.extract_strided_slice %11 {offsets = [1, 0], sizes = [6, 64], strides = [1, 1]} : vector<16x64xf32> to vector<6x64xf32>
    %20 = vector.extract_strided_slice %12 {offsets = [1, 0], sizes = [1, 64], strides = [1, 1]} : vector<9x64xf32> to vector<1x64xf32>
    %21 = vector.broadcast %20 : vector<1x64xf32> to vector<6x64xf32>
    %22 = arith.mulf %19, %21 : vector<6x64xf32>
    %23 = arith.addf %18, %22 : vector<6x64xf32>
    %24 = vector.extract_strided_slice %11 {offsets = [2, 0], sizes = [6, 64], strides = [1, 1]} : vector<16x64xf32> to vector<6x64xf32>
    %25 = vector.extract_strided_slice %12 {offsets = [2, 0], sizes = [1, 64], strides = [1, 1]} : vector<9x64xf32> to vector<1x64xf32>
    %26 = vector.broadcast %25 : vector<1x64xf32> to vector<6x64xf32>
    %27 = arith.mulf %24, %26 : vector<6x64xf32>
    %28 = arith.addf %23, %27 : vector<6x64xf32>
    %29 = vector.extract_strided_slice %11 {offsets = [4, 0], sizes = [6, 64], strides = [1, 1]} : vector<16x64xf32> to vector<6x64xf32>
    %30 = vector.extract_strided_slice %12 {offsets = [3, 0], sizes = [1, 64], strides = [1, 1]} : vector<9x64xf32> to vector<1x64xf32>
    %31 = vector.broadcast %30 : vector<1x64xf32> to vector<6x64xf32>
    %32 = arith.mulf %29, %31 : vector<6x64xf32>
    %33 = arith.addf %28, %32 : vector<6x64xf32>
    %34 = vector.extract_strided_slice %11 {offsets = [5, 0], sizes = [6, 64], strides = [1, 1]} : vector<16x64xf32> to vector<6x64xf32>
    %35 = vector.extract_strided_slice %12 {offsets = [4, 0], sizes = [1, 64], strides = [1, 1]} : vector<9x64xf32> to vector<1x64xf32>
    %36 = vector.broadcast %35 : vector<1x64xf32> to vector<6x64xf32>
    %37 = arith.mulf %34, %36 : vector<6x64xf32>
    %38 = arith.addf %33, %37 : vector<6x64xf32>
    %39 = vector.extract_strided_slice %11 {offsets = [6, 0], sizes = [6, 64], strides = [1, 1]} : vector<16x64xf32> to vector<6x64xf32>
    %40 = vector.extract_strided_slice %12 {offsets = [5, 0], sizes = [1, 64], strides = [1, 1]} : vector<9x64xf32> to vector<1x64xf32>
    %41 = vector.broadcast %40 : vector<1x64xf32> to vector<6x64xf32>
    %42 = arith.mulf %39, %41 : vector<6x64xf32>
    %43 = arith.addf %38, %42 : vector<6x64xf32>
    %44 = vector.extract_strided_slice %11 {offsets = [8, 0], sizes = [6, 64], strides = [1, 1]} : vector<16x64xf32> to vector<6x64xf32>
    %45 = vector.extract_strided_slice %12 {offsets = [6, 0], sizes = [1, 64], strides = [1, 1]} : vector<9x64xf32> to vector<1x64xf32>
    %46 = vector.broadcast %45 : vector<1x64xf32> to vector<6x64xf32>
    %47 = arith.mulf %44, %46 : vector<6x64xf32>
    %48 = arith.addf %43, %47 : vector<6x64xf32>
    %49 = vector.extract_strided_slice %11 {offsets = [9, 0], sizes = [6, 64], strides = [1, 1]} : vector<16x64xf32> to vector<6x64xf32>
    %50 = vector.extract_strided_slice %12 {offsets = [7, 0], sizes = [1, 64], strides = [1, 1]} : vector<9x64xf32> to vector<1x64xf32>
    %51 = vector.broadcast %50 : vector<1x64xf32> to vector<6x64xf32>
    %52 = arith.mulf %49, %51 : vector<6x64xf32>
    %53 = arith.addf %48, %52 : vector<6x64xf32>
    %54 = vector.extract_strided_slice %11 {offsets = [10, 0], sizes = [6, 64], strides = [1, 1]} : vector<16x64xf32> to vector<6x64xf32>
    %55 = vector.extract_strided_slice %12 {offsets = [8, 0], sizes = [1, 64], strides = [1, 1]} : vector<9x64xf32> to vector<1x64xf32>
    %56 = vector.broadcast %55 : vector<1x64xf32> to vector<6x64xf32>
    %57 = arith.mulf %54, %56 : vector<6x64xf32>
    %58 = arith.addf %53, %57 : vector<6x64xf32>
    %c0_12 = arith.constant 0 : index
    %c0_13 = arith.constant 0 : index
    %59 = vector.load %arg6[%c0_12, %c0_13] : memref<1x64xf32, #tpu.memory_space<vmem>>, vector<1x64xf32>
    %60 = vector.broadcast %59 : vector<1x64xf32> to vector<6x64xf32>
    %61 = arith.addf %58, %60 : vector<6x64xf32>
    %62 = vector.extract_strided_slice %1 {offsets = [5, 0], sizes = [6, 128], strides = [1, 1]} : vector<16x128xf32> to vector<6x128xf32>
    %c0_14 = arith.constant 0 : index
    %c0_15 = arith.constant 0 : index
    %63 = vector.load %arg9[%c0_14, %c0_15] : memref<128x128xf32, #tpu.memory_space<vmem>>, vector<128x128xf32>
    %cst_16 = arith.constant dense<0.000000e+00> : vector<6x128xf32>
    %64 = tpu.matmul %62, %63, %cst_16 {dimension_numbers = #tpu.dot_dimension_numbers<[1], [0], [0], [1], [0, 0, 1, 1], [], []>} : vector<6x128xf32>, vector<128x128xf32>, vector<6x128xf32> -> vector<6x128xf32>
    %c0_17 = arith.constant 0 : index
    %c0_18 = arith.constant 0 : index
    %65 = vector.load %arg7[%c0_17, %c0_18] : memref<64x128xf32, #tpu.memory_space<vmem>>, vector<64x128xf32>
    %cst_19 = arith.constant dense<0.000000e+00> : vector<6x128xf32>
    %66 = tpu.matmul %61, %65, %cst_19 {dimension_numbers = #tpu.dot_dimension_numbers<[1], [0], [0], [1], [0, 0, 1, 1], [], []>} : vector<6x64xf32>, vector<64x128xf32>, vector<6x128xf32> -> vector<6x128xf32>
    %c0_20 = arith.constant 0 : index
    %c0_21 = arith.constant 0 : index
    %67 = vector.load %arg8[%c0_20, %c0_21] : memref<1x128xf32, #tpu.memory_space<vmem>>, vector<1x128xf32>
    %68 = vector.broadcast %67 : vector<1x128xf32> to vector<6x128xf32>
    %69 = arith.addf %66, %68 : vector<6x128xf32>
    %cst_22 = arith.constant 0.000000e+00 : f32
    %70 = vector.broadcast %cst_22 : f32 to vector<6x128xf32>
    %71 = arith.maximumf %69, %70 : vector<6x128xf32>
    %72 = arith.addf %64, %71 : vector<6x128xf32>
    %73 = vector.extract_strided_slice %72 {offsets = [0, 0], sizes = [2, 128], strides = [1, 1]} : vector<6x128xf32> to vector<2x128xf32>
    %c0_23 = arith.constant 0 : index
    %c0_24 = arith.constant 0 : index
    %c0_25 = arith.constant 0 : index
    %c0_26 = arith.constant 0 : index
    %74 = vector.load %arg10[%c0_23, %c0_24, %c0_25, %c0_26] : memref<1x2x2x128xf32, #tpu.memory_space<vmem>>, vector<1x1x2x128xf32>
    %75 = vector.shape_cast %74 : vector<1x1x2x128xf32> to vector<2x128xf32>
    %76 = vector.shape_cast %73 : vector<2x128xf32> to vector<1x1x2x128xf32>
    tpu.vector_store %arg10[%c0_23, %c0_24, %c0_25, %c0_26], %76 {strides = array<i32>} : memref<1x2x2x128xf32, #tpu.memory_space<vmem>>, vector<1x1x2x128xf32>,
    %77 = vector.extract_strided_slice %72 {offsets = [4, 0], sizes = [2, 128], strides = [1, 1]} : vector<6x128xf32> to vector<2x128xf32>
    %c0_27 = arith.constant 0 : index
    %c1 = arith.constant 1 : index
    %c0_28 = arith.constant 0 : index
    %c0_29 = arith.constant 0 : index
    %78 = vector.load %arg10[%c0_27, %c1, %c0_28, %c0_29] : memref<1x2x2x128xf32, #tpu.memory_space<vmem>>, vector<1x1x2x128xf32>
    %79 = vector.shape_cast %78 : vector<1x1x2x128xf32> to vector<2x128xf32>
    %80 = vector.shape_cast %77 : vector<2x128xf32> to vector<1x1x2x128xf32>
    tpu.vector_store %arg10[%c0_27, %c1, %c0_28, %c0_29], %80 {strides = array<i32>} : memref<1x2x2x128xf32, #tpu.memory_space<vmem>>, vector<1x1x2x128xf32>,
    return
  }
  func.func @transform_0(%arg0: i32) -> (i32, i32, i32) {
    %c0_i32 = arith.constant 0 : i32
    %c0_i32_0 = arith.constant 0 : i32
    %c0_i32_1 = arith.constant 0 : i32
    return %arg0, %c0_i32, %c0_i32_0 : i32, i32, i32
  }
  func.func @transform_1(%arg0: i32) -> (i32, i32) {
    %c0_i32 = arith.constant 0 : i32
    %c0_i32_0 = arith.constant 0 : i32
    %c0_i32_1 = arith.constant 0 : i32
    return %c0_i32, %c0_i32_0 : i32, i32
  }
  func.func @transform_2(%arg0: i32) -> (i32, i32) {
    %c0_i32 = arith.constant 0 : i32
    %c0_i32_0 = arith.constant 0 : i32
    %c0_i32_1 = arith.constant 0 : i32
    return %c0_i32, %c0_i32_0 : i32, i32
  }
  func.func @transform_3(%arg0: i32) -> (i32, i32) {
    %c0_i32 = arith.constant 0 : i32
    %c0_i32_0 = arith.constant 0 : i32
    %c0_i32_1 = arith.constant 0 : i32
    return %c0_i32, %c0_i32_0 : i32, i32
  }
  func.func @transform_4(%arg0: i32) -> (i32, i32) {
    %c0_i32 = arith.constant 0 : i32
    %c0_i32_0 = arith.constant 0 : i32
    %c0_i32_1 = arith.constant 0 : i32
    return %c0_i32, %c0_i32_0 : i32, i32
  }
  func.func @transform_5(%arg0: i32) -> (i32, i32) {
    %c0_i32 = arith.constant 0 : i32
    %c0_i32_0 = arith.constant 0 : i32
    %c0_i32_1 = arith.constant 0 : i32
    return %c0_i32, %c0_i32_0 : i32, i32
  }
  func.func @transform_6(%arg0: i32) -> (i32, i32) {
    %c0_i32 = arith.constant 0 : i32
    %c0_i32_0 = arith.constant 0 : i32
    %c0_i32_1 = arith.constant 0 : i32
    return %c0_i32, %c0_i32_0 : i32, i32
  }
  func.func @transform_7(%arg0: i32) -> (i32, i32) {
    %c0_i32 = arith.constant 0 : i32
    %c0_i32_0 = arith.constant 0 : i32
    %c0_i32_1 = arith.constant 0 : i32
    return %c0_i32, %c0_i32_0 : i32, i32
  }
  func.func @transform_8(%arg0: i32) -> (i32, i32) {
    %c0_i32 = arith.constant 0 : i32
    %c0_i32_0 = arith.constant 0 : i32
    %c0_i32_1 = arith.constant 0 : i32
    return %c0_i32, %c0_i32_0 : i32, i32
  }
  func.func @transform_9(%arg0: i32) -> (i32, i32, i32, i32) {
    %c0_i32 = arith.constant 0 : i32
    %c0_i32_0 = arith.constant 0 : i32
    %c0_i32_1 = arith.constant 0 : i32
    %c0_i32_2 = arith.constant 0 : i32
    return %arg0, %c0_i32, %c0_i32_0, %c0_i32_1 : i32, i32, i32, i32
  }
}

</mosaic_0001>

<bundles_post_ra>
// kernel: forward.9
= control target key start
LH: loop header
LB: loop body
LE: loop exit
PB: predicated region body
PF: predicated region fallthrough
CT: control target
= control target key end

     0   :  { %s1317_s12 = smov 0   ;;  %s1682_s0 = inlined_call_operand.vmem [shape: f32[2048,27], index: 0, kind: input, shape index: {}]   ;;  %s1683_s1 = inlined_call_operand.vmem [shape: f32[27,16], index: 1, kind: input, shape index: {}]   ;;  %s1684_s2 = inlined_call_operand.vmem [shape: f32[1,16], index: 2, kind: input, shape index: {}]   ;;  %s1685_s3 = inlined_call_operand.vmem [shape: f32[2048,16], index: 3, kind: output, shape index: {}]  }
   0x1 LB: > { %s1016_s13 = sadd.s32 4294967295, %s1294_s12   ;;  %p1020_p0 = scmp.ge.s32.totalorder %s1294_s12, 1  ;;  %s1294_s12 = sphi %s1317_s12, %s13_s12  }
   0x2   : > { %p138_p1 = scmp.lt.s32.totalorder %s1294_s12, 5 }
   0x4   : > { %p139_p2 = pnand %p1020_p0, %p138_p1 }
   0x5   : > { %v238_v0 = vld [vmem:[%s1683_s1] sm:$0xff] (!%p139_p2)  ;;  %v239_v1 = vld [vmem:[%s1683_s1 + $0x8] sm:$0xff] (!%p139_p2)  ;;  %v240_v2 = vld [vmem:[%s1683_s1 + $0x10] sm:$0xff] (!%p139_p2)  ;;  %vm442_vm0 = vcmask (!%p139_p2), 1042432   ;;  %s1021_s20 = sshll.u32 (!%p139_p2), %s1016_s13, 6  ;;  %vm1296_vm1 = vmmov (!%p139_p2), 1  }
   0x6   : > { %142 = sbr.rel (%p139_p2) target bundleno = 297 (0x129), region = 32  ;;  %v1265_v3 = vpack.c.bf16 (!%p139_p2), %v239_v1, %v238_v0  ;;  %v241_v4 = vld [vmem:[%s1683_s1 + $0x18] sm:$0x7] (!%p139_p2)  ;;  %p163_p3 = scmp.lt.s32.totalorder (!%p139_p2), %s1021_s20, 255  ;;  %vm1270_vm2 = vmpackc.low (!%p139_p2), %vm442_vm0, %vm1296_vm1  ;;  %vm249_vm3 = vcmask (!%p139_p2), 220160   ;;  %vm895_vm4 = vcmask (!%p139_p2), 130048  }
   0x7   : > { %v1269_v5 = vpack.c.bf16 (!%p139_p2), %v241_v4, %v240_v2 }
   0x8   : > { %1266 = vmatprep.subr.bf16.mxu0 (!%p139_p2), %v1265_v3  ;;  %1275 = vmatprep.subr.bf16.mxu1 (!%p139_p2), %v1265_v3 }
   0x9   : > { %1268 = vmatpush3.bf16.msra.mxu0 (!%p139_p2), %v1265_v3  ;;  %1277 = vmatpush3.bf16.msra.mxu1 (!%p139_p2), %v1265_v3 }
   0xa   : > { %1271 = vmatprep.subr.msk.bf16.mxu0 (!%p139_p2), %vm1270_vm2, %v1269_v5  ;;  %1276 = vmatprep.subr.msk.bf16.mxu1 (!%p139_p2), %vm1270_vm2, %v1269_v5 }
   0xd   : > { %s1687_s20 = smov (!%p163_p3, %s1021_s20), 255  ;;  %1274 = vmatpush3.bf16.msk.msra.mxu0 %vm1270_vm2, %v1269_v5  ;;  %1278 = vmatpush3.bf16.msk.msra.mxu1 %vm1270_vm2, %v1269_v5 }
   0xe   : > { %s1022_s23 = sshll.u32 %s1687_s20, 3 }
   0xf   : > { %s1345_s26 = scalar_lea.vmem %s1682_s0, %s1022_s23  ;;  %s1487_s4 = scalar_lea.vmem %s1685_s3, %s1022_s23 }
  0x10   : > { %v174_v6 = vld [vmem:[%s1345_s26] sm:$0xff]  ;;  %v175_v8 = vld [vmem:[%s1345_s26 + $0x8] sm:$0xff]  ;;  %v176_v10 = vld [vmem:[%s1345_s26 + $0x10] sm:$0xff] }
  0x11   : > { %v206_v7 = vld [vmem:[%s1345_s26 + $0x100] sm:$0xff]  ;;  %v207_v9 = vld [vmem:[%s1345_s26 + $0x108] sm:$0xff]  ;;  %1169 = vmatprep.mubr.msk.f32.mxu0 %vm249_vm3, %v174_v6  ;;  %v208_v11 = vld [vmem:[%s1345_s26 + $0x110] sm:$0xff] }
  0x12   : > { %1217 = vmatprep.mubr.msk.f32.mxu1 %vm249_vm3, %v206_v7  ;;  %1170 = vmatmul.mubr.msk.f32.vlgmr.msra.gmra.mrb[0].mxu0 %vm249_vm3, %v175_v8  ;;  %v177_v12 = vld [vmem:[%s1345_s26 + $0x18] sm:$0xff]  ;;  %v178_v14 = vld [vmem:[%s1345_s26 + $0x20] sm:$0xff]  ;;  %v179_v16 = vld [vmem:[%s1345_s26 + $0x28] sm:$0xff] }
  0x13   : > { %1218 = vmatmul.mubr.msk.f32.vlgmr.msra.gmra.mrb[0].mxu1 %vm249_vm3, %v207_v9  ;;  %1172 = vmatprep.mubr.msk.f32.mxu0 %vm249_vm3, %v176_v10  ;;  %v209_v13 = vld [vmem:[%s1345_s26 + $0x118] sm:$0xff]  ;;  %v210_v15 = vld [vmem:[%s1345_s26 + $0x120] sm:$0xff]  ;;  %v211_v17 = vld [vmem:[%s1345_s26 + $0x128] sm:$0xff] }
  0x14   : > { %1220 = vmatprep.mubr.msk.f32.mxu1 %vm249_vm3, %v208_v11  ;;  %v180_v18 = vld [vmem:[%s1345_s26 + $0x30] sm:$0xff]  ;;  %v181_v20 = vld [vmem:[%s1345_s26 + $0x38] sm:$0xff]  ;;  %v182_v22 = vld [vmem:[%s1345_s26 + $0x40] sm:$0xff] }
  0x15   : > { %v212_v19 = vld [vmem:[%s1345_s26 + $0x130] sm:$0xff]  ;;  %v213_v21 = vld [vmem:[%s1345_s26 + $0x138] sm:$0xff]  ;;  %v214_v23 = vld [vmem:[%s1345_s26 + $0x140] sm:$0xff] }
  0x16   : > { %1173 = vmatmul.mubr.msk.f32.gmra.mrb[2].mxu0 %vm249_vm3, %v177_v12  ;;  %v183_v24 = vld [vmem:[%s1345_s26 + $0x48] sm:$0xff]  ;;  %v184_v26 = vld [vmem:[%s1345_s26 + $0x50] sm:$0xff]  ;;  %v185_v28 = vld [vmem:[%s1345_s26 + $0x58] sm:$0xff] }
  0x17   : > { %1221 = vmatmul.mubr.msk.f32.gmra.mrb[2].mxu1 %vm249_vm3, %v209_v13  ;;  %1175 = vmatprep.mubr.msk.f32.mxu0 %vm249_vm3, %v178_v14  ;;  %v215_v25 = vld [vmem:[%s1345_s26 + $0x148] sm:$0xff]  ;;  %v216_v27 = vld [vmem:[%s1345_s26 + $0x150] sm:$0xff]  ;;  %v217_v29 = vld [vmem:[%s1345_s26 + $0x158] sm:$0xff] }
  0x18   : > { %1223 = vmatprep.mubr.msk.f32.mxu1 %vm249_vm3, %v210_v15  ;;  %v186_v30 = vld [vmem:[%s1345_s26 + $0x60] sm:$0xff]  ;;  %v187_v32 = vld [vmem:[%s1345_s26 + $0x68] sm:$0xff]  ;;  %v188_v34 = vld [vmem:[%s1345_s26 + $0x70] sm:$0xff] }
  0x19   : > { %v218_v31 = vld [vmem:[%s1345_s26 + $0x160] sm:$0xff]  ;;  %v219_v33 = vld [vmem:[%s1345_s26 + $0x168] sm:$0xff]  ;;  %v220_v35 = vld [vmem:[%s1345_s26 + $0x170] sm:$0xff] }
  0x1a   : > { %1176 = vmatmul.mubr.msk.f32.gmra.mrb[4].mxu0 %vm249_vm3, %v179_v16  ;;  %v189_v36 = vld [vmem:[%s1345_s26 + $0x78] sm:$0xff]  ;;  %v190_v38 = vld [vmem:[%s1345_s26 + $0x80] sm:$0xff]  ;;  %v191_v40 = vld [vmem:[%s1345_s26 + $0x88] sm:$0xff] }
  0x1b   : > { %1224 = vmatmul.mubr.msk.f32.gmra.mrb[4].mxu1 %vm249_vm3, %v211_v17  ;;  %1178 = vmatprep.mubr.msk.f32.mxu0 %vm249_vm3, %v180_v18  ;;  %v221_v37 = vld [vmem:[%s1345_s26 + $0x178] sm:$0xff]  ;;  %v222_v39 = vld [vmem:[%s1345_s26 + $0x180] sm:$0xff]  ;;  %v223_v41 = vld [vmem:[%s1345_s26 + $0x188] sm:$0xff] }
  0x1c   : > { %1226 = vmatprep.mubr.msk.f32.mxu1 %vm249_vm3, %v212_v19  ;;  %v192_v42 = vld [vmem:[%s1345_s26 + $0x90] sm:$0xff]  ;;  %v193_v44 = vld [vmem:[%s1345_s26 + $0x98] sm:$0xff]  ;;  %v194_v46 = vld [vmem:[%s1345_s26 + $0xa0] sm:$0xff] }
  0x1d   : > { %v224_v43 = vld [vmem:[%s1345_s26 + $0x190] sm:$0xff]  ;;  %v225_v45 = vld [vmem:[%s1345_s26 + $0x198] sm:$0xff]  ;;  %v226_v47 = vld [vmem:[%s1345_s26 + $0x1a0] sm:$0xff] }
  0x1e   : > { %1179 = vmatmul.mubr.msk.f32.gmra.mrb[6].mxu0 %vm249_vm3, %v181_v20  ;;  %v195_v48 = vld [vmem:[%s1345_s26 + $0xa8] sm:$0xff]  ;;  %v196_v50 = vld [vmem:[%s1345_s26 + $0xb0] sm:$0xff]  ;;  %v197_v52 = vld [vmem:[%s1345_s26 + $0xb8] sm:$0xff] }
  0x1f   : > { %1227 = vmatmul.mubr.msk.f32.gmra.mrb[6].mxu1 %vm249_vm3, %v213_v21  ;;  %1181 = vmatprep.mubr.msk.f32.mxu0 %vm249_vm3, %v182_v22  ;;  %v227_v49 = vld [vmem:[%s1345_s26 + $0x1a8] sm:$0xff]  ;;  %v228_v51 = vld [vmem:[%s1345_s26 + $0x1b0] sm:$0xff]  ;;  %v229_v53 = vld [vmem:[%s1345_s26 + $0x1b8] sm:$0xff] }
  0x20   : > { %1229 = vmatprep.mubr.msk.f32.mxu1 %vm249_vm3, %v214_v23  ;;  %v198_v54 = vld [vmem:[%s1345_s26 + $0xc0] sm:$0xff]  ;;  %v199_v56 = vld [vmem:[%s1345_s26 + $0xc8] sm:$0xff]  ;;  %v200_v58 = vld [vmem:[%s1345_s26 + $0xd0] sm:$0xff] }
  0x21   : > { %v230_v55 = vld [vmem:[%s1345_s26 + $0x1c0] sm:$0xff]  ;;  %v231_v57 = vld [vmem:[%s1345_s26 + $0x1c8] sm:$0xff]  ;;  %v232_v59 = vld [vmem:[%s1345_s26 + $0x1d0] sm:$0xff] }
  0x22   : > { %1182 = vmatmul.mubr.msk.f32.gmra.mrb[8].mxu0 %vm249_vm3, %v183_v24  ;;  %v201_v60 = vld [vmem:[%s1345_s26 + $0xd8] sm:$0xff]  ;;  %v202_v62 = vld [vmem:[%s1345_s26 + $0xe0] sm:$0xff]  ;;  %v203_v0 = vld [vmem:[%s1345_s26 + $0xe8] sm:$0xff] }
  0x23   : > { %1230 = vmatmul.mubr.msk.f32.gmra.mrb[8].mxu1 %vm249_vm3, %v215_v25  ;;  %1184 = vmatprep.mubr.msk.f32.mxu0 %vm249_vm3, %v184_v26  ;;  %v233_v61 = vld [vmem:[%s1345_s26 + $0x1d8] sm:$0xff]  ;;  %v234_v63 = vld [vmem:[%s1345_s26 + $0x1e0] sm:$0xff]  ;;  %v235_v1 = vld [vmem:[%s1345_s26 + $0x1e8] sm:$0xff] }
  0x24   : > { %1232 = vmatprep.mubr.msk.f32.mxu1 %vm249_vm3, %v216_v27  ;;  %v204_v2 = vld [vmem:[%s1345_s26 + $0xf0] sm:$0xff]  ;;  %v205_v4 = vld [vmem:[%s1345_s26 + $0xf8] sm:$0xff]  ;;  %v1478_v6 = vld [vmem:[%s1684_s2] ss:$0 sm:$0xff] }
  0x25   : > { %v236_v3 = vld [vmem:[%s1345_s26 + $0x1f0] sm:$0xff]  ;;  %v237_v5 = vld [vmem:[%s1345_s26 + $0x1f8] sm:$0xff] }
  0x26   : > { %1185 = vmatmul.mubr.msk.f32.gmra.mrb[10].mxu0 %vm249_vm3, %v185_v28 }
  0x27   : > { %1233 = vmatmul.mubr.msk.f32.gmra.mrb[10].mxu1 %vm249_vm3, %v217_v29  ;;  %1187 = vmatprep.mubr.msk.f32.mxu0 %vm249_vm3, %v186_v30 }
  0x28   : > { %1235 = vmatprep.mubr.msk.f32.mxu1 %vm249_vm3, %v218_v31 }
  0x2a   : > { %1188 = vmatmul.mubr.msk.f32.gmra.mrb[12].mxu0 %vm249_vm3, %v187_v32 }
  0x2b   : > { %1236 = vmatmul.mubr.msk.f32.gmra.mrb[12].mxu1 %vm249_vm3, %v219_v33  ;;  %1190 = vmatprep.mubr.msk.f32.mxu0 %vm249_vm3, %v188_v34 }
  0x2c   : > { %1238 = vmatprep.mubr.msk.f32.mxu1 %vm249_vm3, %v220_v35 }
  0x2e   : > { %1191 = vmatmul.mubr.msk.f32.gmra.mrb[14].mxu0 %vm249_vm3, %v189_v36 }
  0x2f   : > { %1239 = vmatmul.mubr.msk.f32.gmra.mrb[14].mxu1 %vm249_vm3, %v221_v37  ;;  %1193 = vmatprep.mubr.msk.f32.mxu0 %vm249_vm3, %v190_v38 }
  0x30   : > { %1241 = vmatprep.mubr.msk.f32.mxu1 %vm249_vm3, %v222_v39 }
  0x32   : > { %1194 = vmatmul.mubr.msk.f32.gmra.mrb[16].mxu0 %vm249_vm3, %v191_v40 }
  0x33   : > { %1242 = vmatmul.mubr.msk.f32.gmra.mrb[16].mxu1 %vm249_vm3, %v223_v41  ;;  %1196 = vmatprep.mubr.msk.f32.mxu0 %vm249_vm3, %v192_v42 }
  0x34   : > { %1244 = vmatprep.mubr.msk.f32.mxu1 %vm249_vm3, %v224_v43 }
  0x36   : > { %1197 = vmatmul.mubr.msk.f32.gmra.mrb[18].mxu0 %vm249_vm3, %v193_v44 }
  0x37   : > { %1245 = vmatmul.mubr.msk.f32.gmra.mrb[18].mxu1 %vm249_vm3, %v225_v45  ;;  %1199 = vmatprep.mubr.msk.f32.mxu0 %vm249_vm3, %v194_v46 }
  0x38   : > { %1247 = vmatprep.mubr.msk.f32.mxu1 %vm249_vm3, %v226_v47 }
  0x3a   : > { %1200 = vmatmul.mubr.msk.f32.gmra.mrb[20].mxu0 %vm249_vm3, %v195_v48 }
  0x3b   : > { %1248 = vmatmul.mubr.msk.f32.gmra.mrb[20].mxu1 %vm249_vm3, %v227_v49  ;;  %1202 = vmatprep.mubr.msk.f32.mxu0 %vm249_vm3, %v196_v50 }
  0x3c   : > { %1250 = vmatprep.mubr.msk.f32.mxu1 %vm249_vm3, %v228_v51 }
  0x3e   : > { %1203 = vmatmul.mubr.msk.f32.gmra.mrb[22].mxu0 %vm249_vm3, %v197_v52 }
  0x3f   : > { %1251 = vmatmul.mubr.msk.f32.gmra.mrb[22].mxu1 %vm249_vm3, %v229_v53  ;;  %1205 = vmatprep.mubr.msk.f32.mxu0 %vm249_vm3, %v198_v54 }
  0x40   : > { %1253 = vmatprep.mubr.msk.f32.mxu1 %vm249_vm3, %v230_v55 }
  0x42   : > { %1206 = vmatmul.mubr.msk.f32.gmra.mrb[24].mxu0 %vm249_vm3, %v199_v56 }
  0x43   : > { %1254 = vmatmul.mubr.msk.f32.gmra.mrb[24].mxu1 %vm249_vm3, %v231_v57  ;;  %1208 = vmatprep.mubr.msk.f32.mxu0 %vm249_vm3, %v200_v58 }
  0x44   : > { %1256 = vmatprep.mubr.msk.f32.mxu1 %vm249_vm3, %v232_v59 }
  0x46   : > { %1209 = vmatmul.mubr.msk.f32.gmra.mrb[26].mxu0 %vm249_vm3, %v201_v60 }
  0x47   : > { %1257 = vmatmul.mubr.msk.f32.gmra.mrb[26].mxu1 %vm249_vm3, %v233_v61  ;;  %1211 = vmatprep.mubr.msk.f32.mxu0 %vm249_vm3, %v202_v62 }
  0x48   : > { %1259 = vmatprep.mubr.msk.f32.mxu1 %vm249_vm3, %v234_v63 }
  0x4a   : > { %1212 = vmatmul.mubr.msk.f32.gmra.mrb[28].mxu0 %vm249_vm3, %v203_v0 }
  0x4b   : > { %1260 = vmatmul.mubr.msk.f32.gmra.mrb[28].mxu1 %vm249_vm3, %v235_v1  ;;  %1214 = vmatprep.mubr.msk.f32.mxu0 %vm249_vm3, %v204_v2 }
  0x4c   : > { %1262 = vmatprep.mubr.msk.f32.mxu1 %vm249_vm3, %v236_v3 }
  0x4e   : > { %1215 = vmatmul.mubr.msk.f32.gmra.mrb[30].mxu0 %vm249_vm3, %v205_v4 }
  0x4f   : > { %1263 = vmatmul.mubr.msk.f32.gmra.mrb[30].mxu1 %vm249_vm3, %v237_v5 }
  0xe5   : > { %v1171_v7 = vpop.f32.mrb[0].mxu0 }
  0xe6   : > { %v1219_v8 = vpop.f32.mrb[0].mxu1  ;;  %v518_v9 = vadd.f32 %v1171_v7, %v1478_v6  ;;  %v512_v11 = vpop.f32.mrb[1].mxu0 }
  0xe7   : > { %v678_v10 = vadd.f32 %v1219_v8, %v1478_v6  ;;  %v672_v12 = vpop.f32.mrb[1].mxu1  ;;  %v513_v13 = vadd.f32 %v1478_v6, %v512_v11 }
  0xe8   : > { %v673_v14 = vadd.f32 %v1478_v6, %v672_v12  ;;  %v832_v15 = vmax.f32 %v518_v9, 0.0 }
  0xe9   : > { %v864_v16 = vmax.f32 %v678_v10, 0.0  ;;  %v831_v17 = vmax.f32 %v513_v13, 0.0  ;;  %v1174_v19 = vpop.f32.mrb[2].mxu0 }
  0xea   : > { %v863_v18 = vmax.f32 %v673_v14, 0.0  ;;  %v1222_v20 = vpop.f32.mrb[2].mxu1  ;;  %897 = vst.msk [vmem:[%s1487_s4 + $0x8] sm:$0xff] %vm895_vm4, %v832_v15  ;;  %v528_v21 = vadd.f32 %v1174_v19, %v1478_v6  ;;  %v522_v23 = vpop.f32.mrb[3].mxu0 }
  0xeb   : > { %929 = vst.msk [vmem:[%s1487_s4 + $0x108] sm:$0xff] %vm895_vm4, %v864_v16  ;;  %v688_v22 = vadd.f32 %v1222_v20, %v1478_v6  ;;  %v682_v24 = vpop.f32.mrb[3].mxu1  ;;  %896 = vst.msk [vmem:[%s1487_s4] sm:$0xff] %vm895_vm4, %v831_v17  ;;  %v523_v25 = vadd.f32 %v1478_v6, %v522_v23 }
  0xec   : > { %928 = vst.msk [vmem:[%s1487_s4 + $0x100] sm:$0xff] %vm895_vm4, %v863_v18  ;;  %v683_v26 = vadd.f32 %v1478_v6, %v682_v24  ;;  %v834_v27 = vmax.f32 %v528_v21, 0.0 }
  0xed   : > { %v866_v28 = vmax.f32 %v688_v22, 0.0  ;;  %v833_v29 = vmax.f32 %v523_v25, 0.0  ;;  %v1177_v31 = vpop.f32.mrb[4].mxu0 }
  0xee   : > { %v865_v30 = vmax.f32 %v683_v26, 0.0  ;;  %v1225_v32 = vpop.f32.mrb[4].mxu1  ;;  %899 = vst.msk [vmem:[%s1487_s4 + $0x18] sm:$0xff] %vm895_vm4, %v834_v27  ;;  %v538_v33 = vadd.f32 %v1177_v31, %v1478_v6  ;;  %v532_v35 = vpop.f32.mrb[5].mxu0 }
  0xef   : > { %931 = vst.msk [vmem:[%s1487_s4 + $0x118] sm:$0xff] %vm895_vm4, %v866_v28  ;;  %v698_v34 = vadd.f32 %v1225_v32, %v1478_v6  ;;  %v692_v36 = vpop.f32.mrb[5].mxu1  ;;  %898 = vst.msk [vmem:[%s1487_s4 + $0x10] sm:$0xff] %vm895_vm4, %v833_v29  ;;  %v533_v37 = vadd.f32 %v1478_v6, %v532_v35 }
  0xf0   : > { %930 = vst.msk [vmem:[%s1487_s4 + $0x110] sm:$0xff] %vm895_vm4, %v865_v30  ;;  %v693_v38 = vadd.f32 %v1478_v6, %v692_v36  ;;  %v836_v39 = vmax.f32 %v538_v33, 0.0 }
  0xf1   : > { %v868_v40 = vmax.f32 %v698_v34, 0.0  ;;  %v835_v41 = vmax.f32 %v533_v37, 0.0  ;;  %v1180_v43 = vpop.f32.mrb[6].mxu0 }
  0xf2   : > { %v867_v42 = vmax.f32 %v693_v38, 0.0  ;;  %v1228_v44 = vpop.f32.mrb[6].mxu1  ;;  %901 = vst.msk [vmem:[%s1487_s4 + $0x28] sm:$0xff] %vm895_vm4, %v836_v39  ;;  %v548_v45 = vadd.f32 %v1180_v43, %v1478_v6  ;;  %v542_v47 = vpop.f32.mrb[7].mxu0 }
  0xf3   : > { %933 = vst.msk [vmem:[%s1487_s4 + $0x128] sm:$0xff] %vm895_vm4, %v868_v40  ;;  %v708_v46 = vadd.f32 %v1228_v44, %v1478_v6  ;;  %v702_v48 = vpop.f32.mrb[7].mxu1  ;;  %900 = vst.msk [vmem:[%s1487_s4 + $0x20] sm:$0xff] %vm895_vm4, %v835_v41  ;;  %v543_v49 = vadd.f32 %v1478_v6, %v542_v47 }
  0xf4   : > { %932 = vst.msk [vmem:[%s1487_s4 + $0x120] sm:$0xff] %vm895_vm4, %v867_v42  ;;  %v703_v50 = vadd.f32 %v1478_v6, %v702_v48  ;;  %v838_v51 = vmax.f32 %v548_v45, 0.0 }
  0xf5   : > { %v870_v52 = vmax.f32 %v708_v46, 0.0  ;;  %v837_v53 = vmax.f32 %v543_v49, 0.0  ;;  %v1183_v55 = vpop.f32.mrb[8].mxu0 }
  0xf6   : > { %v869_v54 = vmax.f32 %v703_v50, 0.0  ;;  %v1231_v56 = vpop.f32.mrb[8].mxu1  ;;  %903 = vst.msk [vmem:[%s1487_s4 + $0x38] sm:$0xff] %vm895_vm4, %v838_v51  ;;  %v558_v57 = vadd.f32 %v1183_v55, %v1478_v6  ;;  %v552_v59 = vpop.f32.mrb[9].mxu0 }
  0xf7   : > { %935 = vst.msk [vmem:[%s1487_s4 + $0x138] sm:$0xff] %vm895_vm4, %v870_v52  ;;  %v718_v58 = vadd.f32 %v1231_v56, %v1478_v6  ;;  %v712_v60 = vpop.f32.mrb[9].mxu1  ;;  %902 = vst.msk [vmem:[%s1487_s4 + $0x30] sm:$0xff] %vm895_vm4, %v837_v53  ;;  %v553_v61 = vadd.f32 %v1478_v6, %v552_v59 }
  0xf8   : > { %934 = vst.msk [vmem:[%s1487_s4 + $0x130] sm:$0xff] %vm895_vm4, %v869_v54  ;;  %v713_v62 = vadd.f32 %v1478_v6, %v712_v60  ;;  %v840_v63 = vmax.f32 %v558_v57, 0.0 }
  0xf9   : > { %v872_v0 = vmax.f32 %v718_v58, 0.0  ;;  %v839_v1 = vmax.f32 %v553_v61, 0.0  ;;  %v1186_v3 = vpop.f32.mrb[10].mxu0 }
  0xfa   : > { %v871_v2 = vmax.f32 %v713_v62, 0.0  ;;  %v1234_v4 = vpop.f32.mrb[10].mxu1  ;;  %905 = vst.msk [vmem:[%s1487_s4 + $0x48] sm:$0xff] %vm895_vm4, %v840_v63  ;;  %v568_v5 = vadd.f32 %v1186_v3, %v1478_v6  ;;  %v562_v8 = vpop.f32.mrb[11].mxu0 }
  0xfb   : > { %937 = vst.msk [vmem:[%s1487_s4 + $0x148] sm:$0xff] %vm895_vm4, %v872_v0  ;;  %v728_v7 = vadd.f32 %v1234_v4, %v1478_v6  ;;  %v722_v9 = vpop.f32.mrb[11].mxu1  ;;  %904 = vst.msk [vmem:[%s1487_s4 + $0x40] sm:$0xff] %vm895_vm4, %v839_v1  ;;  %v563_v10 = vadd.f32 %v1478_v6, %v562_v8 }
  0xfc   : > { %936 = vst.msk [vmem:[%s1487_s4 + $0x140] sm:$0xff] %vm895_vm4, %v871_v2  ;;  %v723_v11 = vadd.f32 %v1478_v6, %v722_v9  ;;  %v842_v12 = vmax.f32 %v568_v5, 0.0 }
  0xfd   : > { %v874_v13 = vmax.f32 %v728_v7, 0.0  ;;  %v841_v14 = vmax.f32 %v563_v10, 0.0  ;;  %v1189_v16 = vpop.f32.mrb[12].mxu0 }
  0xfe   : > { %v873_v15 = vmax.f32 %v723_v11, 0.0  ;;  %v1237_v17 = vpop.f32.mrb[12].mxu1  ;;  %907 = vst.msk [vmem:[%s1487_s4 + $0x58] sm:$0xff] %vm895_vm4, %v842_v12  ;;  %v578_v18 = vadd.f32 %v1189_v16, %v1478_v6  ;;  %v572_v20 = vpop.f32.mrb[13].mxu0 }
  0xff   : > { %939 = vst.msk [vmem:[%s1487_s4 + $0x158] sm:$0xff] %vm895_vm4, %v874_v13  ;;  %v738_v19 = vadd.f32 %v1237_v17, %v1478_v6  ;;  %v732_v21 = vpop.f32.mrb[13].mxu1  ;;  %906 = vst.msk [vmem:[%s1487_s4 + $0x50] sm:$0xff] %vm895_vm4, %v841_v14  ;;  %v573_v22 = vadd.f32 %v1478_v6, %v572_v20 }
 0x100   : > { %938 = vst.msk [vmem:[%s1487_s4 + $0x150] sm:$0xff] %vm895_vm4, %v873_v15  ;;  %v733_v23 = vadd.f32 %v1478_v6, %v732_v21  ;;  %v844_v24 = vmax.f32 %v578_v18, 0.0 }
 0x101   : > { %v876_v25 = vmax.f32 %v738_v19, 0.0  ;;  %v843_v26 = vmax.f32 %v573_v22, 0.0  ;;  %v1192_v28 = vpop.f32.mrb[14].mxu0 }
 0x102   : > { %v875_v27 = vmax.f32 %v733_v23, 0.0  ;;  %v1240_v29 = vpop.f32.mrb[14].mxu1  ;;  %909 = vst.msk [vmem:[%s1487_s4 + $0x68] sm:$0xff] %vm895_vm4, %v844_v24  ;;  %v588_v30 = vadd.f32 %v1192_v28, %v1478_v6  ;;  %v582_v32 = vpop.f32.mrb[15].mxu0 }
 0x103   : > { %941 = vst.msk [vmem:[%s1487_s4 + $0x168] sm:$0xff] %vm895_vm4, %v876_v25  ;;  %v748_v31 = vadd.f32 %v1240_v29, %v1478_v6  ;;  %v742_v33 = vpop.f32.mrb[15].mxu1  ;;  %908 = vst.msk [vmem:[%s1487_s4 + $0x60] sm:$0xff] %vm895_vm4, %v843_v26  ;;  %v583_v34 = vadd.f32 %v1478_v6, %v582_v32 }
 0x104   : > { %940 = vst.msk [vmem:[%s1487_s4 + $0x160] sm:$0xff] %vm895_vm4, %v875_v27  ;;  %v743_v35 = vadd.f32 %v1478_v6, %v742_v33  ;;  %v846_v36 = vmax.f32 %v588_v30, 0.0 }
 0x105   : > { %v878_v37 = vmax.f32 %v748_v31, 0.0  ;;  %v845_v38 = vmax.f32 %v583_v34, 0.0  ;;  %v1195_v40 = vpop.f32.mrb[16].mxu0 }
 0x106   : > { %v877_v39 = vmax.f32 %v743_v35, 0.0  ;;  %v1243_v41 = vpop.f32.mrb[16].mxu1  ;;  %911 = vst.msk [vmem:[%s1487_s4 + $0x78] sm:$0xff] %vm895_vm4, %v846_v36  ;;  %v598_v42 = vadd.f32 %v1195_v40, %v1478_v6  ;;  %v592_v44 = vpop.f32.mrb[17].mxu0 }
 0x107   : > { %943 = vst.msk [vmem:[%s1487_s4 + $0x178] sm:$0xff] %vm895_vm4, %v878_v37  ;;  %v758_v43 = vadd.f32 %v1243_v41, %v1478_v6  ;;  %v752_v45 = vpop.f32.mrb[17].mxu1  ;;  %910 = vst.msk [vmem:[%s1487_s4 + $0x70] sm:$0xff] %vm895_vm4, %v845_v38  ;;  %v593_v46 = vadd.f32 %v1478_v6, %v592_v44 }
 0x108   : > { %942 = vst.msk [vmem:[%s1487_s4 + $0x170] sm:$0xff] %vm895_vm4, %v877_v39  ;;  %v753_v47 = vadd.f32 %v1478_v6, %v752_v45  ;;  %v848_v48 = vmax.f32 %v598_v42, 0.0 }
 0x109   : > { %v880_v49 = vmax.f32 %v758_v43, 0.0  ;;  %v847_v50 = vmax.f32 %v593_v46, 0.0  ;;  %v1198_v52 = vpop.f32.mrb[18].mxu0 }
 0x10a   : > { %v879_v51 = vmax.f32 %v753_v47, 0.0  ;;  %v1246_v53 = vpop.f32.mrb[18].mxu1  ;;  %913 = vst.msk [vmem:[%s1487_s4 + $0x88] sm:$0xff] %vm895_vm4, %v848_v48  ;;  %v608_v54 = vadd.f32 %v1198_v52, %v1478_v6  ;;  %v602_v56 = vpop.f32.mrb[19].mxu0 }
 0x10b   : > { %945 = vst.msk [vmem:[%s1487_s4 + $0x188] sm:$0xff] %vm895_vm4, %v880_v49  ;;  %v768_v55 = vadd.f32 %v1246_v53, %v1478_v6  ;;  %v762_v57 = vpop.f32.mrb[19].mxu1  ;;  %912 = vst.msk [vmem:[%s1487_s4 + $0x80] sm:$0xff] %vm895_vm4, %v847_v50  ;;  %v603_v58 = vadd.f32 %v1478_v6, %v602_v56 }
 0x10c   : > { %944 = vst.msk [vmem:[%s1487_s4 + $0x180] sm:$0xff] %vm895_vm4, %v879_v51  ;;  %v763_v59 = vadd.f32 %v1478_v6, %v762_v57  ;;  %v850_v60 = vmax.f32 %v608_v54, 0.0 }
 0x10d   : > { %v882_v61 = vmax.f32 %v768_v55, 0.0  ;;  %v849_v62 = vmax.f32 %v603_v58, 0.0  ;;  %v1201_v0 = vpop.f32.mrb[20].mxu0 }
 0x10e   : > { %v881_v63 = vmax.f32 %v763_v59, 0.0  ;;  %v1249_v1 = vpop.f32.mrb[20].mxu1  ;;  %915 = vst.msk [vmem:[%s1487_s4 + $0x98] sm:$0xff] %vm895_vm4, %v850_v60  ;;  %v618_v2 = vadd.f32 %v1201_v0, %v1478_v6  ;;  %v612_v4 = vpop.f32.mrb[21].mxu0 }
 0x10f   : > { %947 = vst.msk [vmem:[%s1487_s4 + $0x198] sm:$0xff] %vm895_vm4, %v882_v61  ;;  %v778_v3 = vadd.f32 %v1249_v1, %v1478_v6  ;;  %v772_v5 = vpop.f32.mrb[21].mxu1  ;;  %914 = vst.msk [vmem:[%s1487_s4 + $0x90] sm:$0xff] %vm895_vm4, %v849_v62  ;;  %v613_v7 = vadd.f32 %v1478_v6, %v612_v4 }
 0x110   : > { %946 = vst.msk [vmem:[%s1487_s4 + $0x190] sm:$0xff] %vm895_vm4, %v881_v63  ;;  %v773_v8 = vadd.f32 %v1478_v6, %v772_v5  ;;  %v852_v9 = vmax.f32 %v618_v2, 0.0 }
 0x111   : > { %v884_v10 = vmax.f32 %v778_v3, 0.0  ;;  %v851_v11 = vmax.f32 %v613_v7, 0.0  ;;  %v1204_v13 = vpop.f32.mrb[22].mxu0 }
 0x112   : > { %v883_v12 = vmax.f32 %v773_v8, 0.0  ;;  %v1252_v14 = vpop.f32.mrb[22].mxu1  ;;  %917 = vst.msk [vmem:[%s1487_s4 + $0xa8] sm:$0xff] %vm895_vm4, %v852_v9  ;;  %v628_v15 = vadd.f32 %v1204_v13, %v1478_v6  ;;  %v622_v17 = vpop.f32.mrb[23].mxu0 }
 0x113   : > { %949 = vst.msk [vmem:[%s1487_s4 + $0x1a8] sm:$0xff] %vm895_vm4, %v884_v10  ;;  %v788_v16 = vadd.f32 %v1252_v14, %v1478_v6  ;;  %v782_v18 = vpop.f32.mrb[23].mxu1  ;;  %916 = vst.msk [vmem:[%s1487_s4 + $0xa0] sm:$0xff] %vm895_vm4, %v851_v11  ;;  %v623_v19 = vadd.f32 %v1478_v6, %v622_v17 }
 0x114   : > { %948 = vst.msk [vmem:[%s1487_s4 + $0x1a0] sm:$0xff] %vm895_vm4, %v883_v12  ;;  %v783_v20 = vadd.f32 %v1478_v6, %v782_v18  ;;  %v854_v21 = vmax.f32 %v628_v15, 0.0 }
 0x115   : > { %v886_v22 = vmax.f32 %v788_v16, 0.0  ;;  %v853_v23 = vmax.f32 %v623_v19, 0.0  ;;  %v1207_v25 = vpop.f32.mrb[24].mxu0 }
 0x116   : > { %v885_v24 = vmax.f32 %v783_v20, 0.0  ;;  %v1255_v26 = vpop.f32.mrb[24].mxu1  ;;  %919 = vst.msk [vmem:[%s1487_s4 + $0xb8] sm:$0xff] %vm895_vm4, %v854_v21  ;;  %v638_v27 = vadd.f32 %v1207_v25, %v1478_v6  ;;  %v632_v29 = vpop.f32.mrb[25].mxu0 }
 0x117   : > { %951 = vst.msk [vmem:[%s1487_s4 + $0x1b8] sm:$0xff] %vm895_vm4, %v886_v22  ;;  %v798_v28 = vadd.f32 %v1255_v26, %v1478_v6  ;;  %v792_v30 = vpop.f32.mrb[25].mxu1  ;;  %918 = vst.msk [vmem:[%s1487_s4 + $0xb0] sm:$0xff] %vm895_vm4, %v853_v23  ;;  %v633_v31 = vadd.f32 %v1478_v6, %v632_v29 }
 0x118   : > { %950 = vst.msk [vmem:[%s1487_s4 + $0x1b0] sm:$0xff] %vm895_vm4, %v885_v24  ;;  %v793_v32 = vadd.f32 %v1478_v6, %v792_v30  ;;  %v856_v33 = vmax.f32 %v638_v27, 0.0 }
 0x119   : > { %v888_v34 = vmax.f32 %v798_v28, 0.0  ;;  %v855_v35 = vmax.f32 %v633_v31, 0.0  ;;  %v1210_v37 = vpop.f32.mrb[26].mxu0 }
 0x11a   : > { %v887_v36 = vmax.f32 %v793_v32, 0.0  ;;  %v1258_v38 = vpop.f32.mrb[26].mxu1  ;;  %921 = vst.msk [vmem:[%s1487_s4 + $0xc8] sm:$0xff] %vm895_vm4, %v856_v33  ;;  %v648_v39 = vadd.f32 %v1210_v37, %v1478_v6  ;;  %v642_v41 = vpop.f32.mrb[27].mxu0 }
 0x11b   : > { %953 = vst.msk [vmem:[%s1487_s4 + $0x1c8] sm:$0xff] %vm895_vm4, %v888_v34  ;;  %v808_v40 = vadd.f32 %v1258_v38, %v1478_v6  ;;  %v802_v42 = vpop.f32.mrb[27].mxu1  ;;  %920 = vst.msk [vmem:[%s1487_s4 + $0xc0] sm:$0xff] %vm895_vm4, %v855_v35  ;;  %v643_v43 = vadd.f32 %v1478_v6, %v642_v41 }
 0x11c   : > { %952 = vst.msk [vmem:[%s1487_s4 + $0x1c0] sm:$0xff] %vm895_vm4, %v887_v36  ;;  %v803_v44 = vadd.f32 %v1478_v6, %v802_v42  ;;  %v858_v45 = vmax.f32 %v648_v39, 0.0 }
 0x11d   : > { %v890_v46 = vmax.f32 %v808_v40, 0.0  ;;  %v857_v47 = vmax.f32 %v643_v43, 0.0  ;;  %v1213_v49 = vpop.f32.mrb[28].mxu0 }
 0x11e   : > { %v889_v48 = vmax.f32 %v803_v44, 0.0  ;;  %v1261_v50 = vpop.f32.mrb[28].mxu1  ;;  %923 = vst.msk [vmem:[%s1487_s4 + $0xd8] sm:$0xff] %vm895_vm4, %v858_v45  ;;  %v658_v51 = vadd.f32 %v1213_v49, %v1478_v6  ;;  %v652_v53 = vpop.f32.mrb[29].mxu0 }
 0x11f   : > { %955 = vst.msk [vmem:[%s1487_s4 + $0x1d8] sm:$0xff] %vm895_vm4, %v890_v46  ;;  %v818_v52 = vadd.f32 %v1261_v50, %v1478_v6  ;;  %v812_v54 = vpop.f32.mrb[29].mxu1  ;;  %922 = vst.msk [vmem:[%s1487_s4 + $0xd0] sm:$0xff] %vm895_vm4, %v857_v47  ;;  %v653_v55 = vadd.f32 %v1478_v6, %v652_v53 }
 0x120   : > { %954 = vst.msk [vmem:[%s1487_s4 + $0x1d0] sm:$0xff] %vm895_vm4, %v889_v48  ;;  %v813_v56 = vadd.f32 %v1478_v6, %v812_v54  ;;  %v860_v57 = vmax.f32 %v658_v51, 0.0 }
 0x121   : > { %v892_v58 = vmax.f32 %v818_v52, 0.0  ;;  %v859_v59 = vmax.f32 %v653_v55, 0.0  ;;  %v1216_v61 = vpop.f32.mrb[30].mxu0 }
 0x122   : > { %v891_v60 = vmax.f32 %v813_v56, 0.0  ;;  %v1264_v62 = vpop.f32.mrb[30].mxu1  ;;  %925 = vst.msk [vmem:[%s1487_s4 + $0xe8] sm:$0xff] %vm895_vm4, %v860_v57  ;;  %v668_v63 = vadd.f32 %v1216_v61, %v1478_v6  ;;  %v662_v1 = vpop.f32.mrb[31].mxu0 }
 0x123   : > { %957 = vst.msk [vmem:[%s1487_s4 + $0x1e8] sm:$0xff] %vm895_vm4, %v892_v58  ;;  %v828_v0 = vadd.f32 %v1264_v62, %v1478_v6  ;;  %v822_v2 = vpop.f32.mrb[31].mxu1  ;;  %924 = vst.msk [vmem:[%s1487_s4 + $0xe0] sm:$0xff] %vm895_vm4, %v859_v59  ;;  %v663_v3 = vadd.f32 %v1478_v6, %v662_v1 }
 0x124   : > { %956 = vst.msk [vmem:[%s1487_s4 + $0x1e0] sm:$0xff] %vm895_vm4, %v891_v60  ;;  %v823_v4 = vadd.f32 %v1478_v6, %v822_v2  ;;  %v862_v5 = vmax.f32 %v668_v63, 0.0 }
 0x125   : > { %v894_v7 = vmax.f32 %v828_v0, 0.0  ;;  %v861_v8 = vmax.f32 %v663_v3, 0.0 }
 0x126   : > { %v893_v9 = vmax.f32 %v823_v4, 0.0  ;;  %927 = vst.msk [vmem:[%s1487_s4 + $0xf8] sm:$0xff] %vm895_vm4, %v862_v5 }
 0x127   : > { %959 = vst.msk [vmem:[%s1487_s4 + $0x1f8] sm:$0xff] %vm895_vm4, %v894_v7  ;;  %926 = vst.msk [vmem:[%s1487_s4 + $0xf0] sm:$0xff] %vm895_vm4, %v861_v8 }
 0x128   : > { %958 = vst.msk [vmem:[%s1487_s4 + $0x1f0] sm:$0xff] %vm895_vm4, %v893_v9 }
 0x129 PF: > { %s13_s12 = sadd.s32 1, %s1294_s12  }
 0x12a   : > { %p10_p4 = scmp.ge.s32.totalorder %s13_s12, 6  }
 0x12c   :  { %12 = sbr.rel (!%p10_p4) target bundleno = 1 (0x1), region = 62 }

// kernel: forward.10
= control target key start
LH: loop header
LB: loop body
LE: loop exit
PB: predicated region body
PF: predicated region fallthrough
CT: control target
= control target key end

     0   :  { %s1370_s6 = smov 0   ;;  %s1944_s0 = inlined_call_operand.vmem [shape: f32[2,4,289,16], index: 0, kind: input, shape index: {}]   ;;  %s1945_s1 = inlined_call_operand.vmem [shape: f32[2,16,16,16], index: 1, kind: output, shape index: {}]  }
   0x1 LB: > { %s1184_s7 = sadd.s32 4294967295, %s1358_s6   ;;  %p1188_p0 = scmp.ge.s32.totalorder %s1358_s6, 1  ;;  %s1358_s6 = sphi %s1370_s6, %s11_s6  }
   0x2   : > { %p87_p1 = scmp.lt.s32.totalorder %s1358_s6, 3 }
   0x4   : > { %p88_p2 = pnand %p1188_p0, %p87_p1 }
   0x5   : > { %p107_p3 = scmp.lt.s32.totalorder (!%p88_p2), %s1184_s7, 1  ;;  %vm329_vm0 = vcmask (!%p88_p2), 1046528   ;;  %vm915_vm1 = vcmask (!%p88_p2), 1045504   ;;  %vm1053_vm2 = vcmask (!%p88_p2), 130048   ;;  %vm1057_vm3 = vcmask (!%p88_p2), 130049  }
   0x6   : > { %91 = sbr.rel (%p88_p2) target bundleno = 164 (0xa4), region = 24  ;;  %vm1060_vm4 = vcmask (!%p88_p2), 122880   ;;  %vm1063_vm5 = vcmask (!%p88_p2), 130050   ;;  %vm1066_vm6 = vcmask (!%p88_p2), 123904   ;;  %vm1069_vm7 = vcmask (!%p88_p2), 130051  }
   0x7   : > { %vm1072_vm8 = vcmask (!%p88_p2), 124928   ;;  %vm1075_vm9 = vcmask (!%p88_p2), 130052   ;;  %vm1078_vm10 = vcmask (!%p88_p2), 125952   ;;  %vm1081_vm11 = vcmask (!%p88_p2), 130053  }
   0x8   : > { %vm1084_vm12 = vcmask (!%p88_p2), 126976   ;;  %vm1946_vm13 = vcmask (!%p88_p2), 130054   ;;  %vm1090_vm14 = vcmask (!%p88_p2), 128000   ;;  %vm1093_vm15 = vcmask (!%p88_p2), 130055  }
   0xd   : > { %s1949_s7 = smov (!%p107_p3, %s1184_s7), 1 }
   0xe   : > { %s1343_s8 = smul.u32 1184, %s1949_s7  ;;  %s1342_s12 = sshll.u32 %s1949_s7, 8 }
   0xf   : > { %s1438_s15 = scalar_lea.vmem %s1945_s1, %s1342_s12 }
  0x10   : > { %s1384_s11 = scalar_lea.vmem %s1944_s0, %s1343_s8 }
  0x11   : > { %v117_v0 = vld [vmem:[%s1384_s11] sm:$0xff]  ;;  %v118_v1 = vld [vmem:[%s1384_s11 + $0x8] sm:$0xff]  ;;  %v119_v2 = vld [vmem:[%s1384_s11 + $0x10] sm:$0xff] }
  0x12   : > { %v120_v3 = vld [vmem:[%s1384_s11 + $0x18] sm:$0xff]  ;;  %v1192_v4 = vld [vmem:[%s1384_s11 + $0x128] sm:$0xff]  ;;  %v330_v6 = vrot.slane %v117_v0, 1  ;;  %v331_v7 = vrot.slane %v118_v1, 1  ;;  %v333_v8 = vrot.slane %v119_v2, 1  ;;  %v1195_v9 = vld [vmem:[%s1384_s11 + $0x140] sm:$0xff] }
  0x13   : > { %v1194_v5 = vld [vmem:[%s1384_s11 + $0x138] sm:$0xff]  ;;  %v1228_v10 = vld [vmem:[%s1384_s11 + $0x250] sm:$0xff]  ;;  %v261_v12 = vmax.f32 %v117_v0, %v1192_v4  ;;  %v335_v14 = vrot.slane %v120_v3, 1  ;;  %v1230_v16 = vld [vmem:[%s1384_s11 + $0x260] sm:$0xff]  ;;  %v780_v20 = vrot.slane %v1195_v9, 1  ;;  %v916_v24 = vrot.slane %v119_v2, 2 }
  0x14   : > { %v1229_v11 = vld [vmem:[%s1384_s11 + $0x258] sm:$0xff]  ;;  %v263_v13 = vmax.f32 %v119_v2, %v1194_v5  ;;  %v779_v15 = vrot.slane %v1194_v5, 1  ;;  %v332_v17 = vsel %vm329_vm0, %v330_v6, %v331_v7  ;;  %v567_v18 = vrot.slane %v1228_v10, 1  ;;  %v121_v25 = vld [vmem:[%s1384_s11 + $0x20] sm:$0xff]  ;;  %v1193_v26 = vld [vmem:[%s1384_s11 + $0x130] sm:$0xff] }
  0x15   : > { %v568_v19 = vrot.slane %v1229_v11, 1  ;;  %v336_v21 = vsel %vm329_vm0, %v333_v8, %v335_v14  ;;  %v431_v22 = vmax.f32 %v261_v12, %v332_v17  ;;  %v570_v23 = vrot.slane %v1230_v16, 1  ;;  %v1262_v27 = vld [vmem:[%s1384_s11 + $0x378] sm:$0xff]  ;;  %v1231_v32 = vld [vmem:[%s1384_s11 + $0x268] sm:$0xff]  ;;  %v1263_v48 = vld [vmem:[%s1384_s11 + $0x380] sm:$0xff] }
  0x16   : > { %v433_v28 = vmax.f32 %v263_v13, %v336_v21  ;;  %v781_v30 = vsel %vm329_vm0, %v779_v15, %v780_v20  ;;  %v917_v31 = vrot.slane %v120_v3, 2  ;;  %v1196_v34 = vld [vmem:[%s1384_s11 + $0x148] sm:$0xff]  ;;  %v262_v35 = vmax.f32 %v118_v1, %v1193_v26  ;;  %v1417_v57 = vld [vmem:[%s1384_s11 + $0x270] sm:$0xff]  ;;  %v1432_v12 = vld [vmem:[%s1384_s11 + $0x278] sm:$0xff] }
  0x17   : > { %v569_v29 = vsel %vm329_vm0, %v567_v18, %v568_v19  ;;  %v465_v33 = vmax.f32 %v431_v22, %v1228_v10  ;;  %v264_v36 = vmax.f32 %v120_v3, %v1195_v9  ;;  %v334_v37 = vsel %vm329_vm0, %v331_v7, %v333_v8  ;;  %v1407_v38 = vld [vmem:[%s1384_s11 + $0x28] sm:$0xff]  ;;  %v1197_v59 = vld [vmem:[%s1384_s11 + $0x150] sm:$0xff] }
  0x18   : > { %v467_v39 = vmax.f32 %v433_v28, %v1230_v16  ;;  %v918_v40 = vsel %vm915_vm1, %v916_v24, %v917_v31  ;;  %v337_v41 = vrot.slane %v121_v25, 1  ;;  %v571_v42 = vsel %vm329_vm0, %v568_v19, %v570_v23  ;;  %v1264_v47 = vld [vmem:[%s1384_s11 + $0x388] sm:$0xff]  ;;  %v1425_v3 = vld [vmem:[%s1384_s11 + $0x30] sm:$0xff] }
  0x19   : > { %v499_v43 = vmax.f32 %v465_v33, %v1262_v27  ;;  %v432_v44 = vmax.f32 %v262_v35, %v334_v37  ;;  %v572_v45 = vrot.slane %v1231_v32, 1  ;;  %v782_v46 = vrot.slane %v1196_v34, 1  ;;  %v1265_v8 = vld [vmem:[%s1384_s11 + $0x390] sm:$0xff]  ;;  %v1266_v33 = vld [vmem:[%s1384_s11 + $0x398] sm:$0xff] }
  0x1a   : > { %v338_v49 = vsel %vm329_vm0, %v335_v14, %v337_v41  ;;  %v919_v50 = vrot.slane %v121_v25, 2  ;;  %v265_v51 = vmax.f32 %v121_v25, %v1196_v34  ;;  %v339_v52 = vrot.slane %v1407_v38, 1 }
  0x1b   : > { %v668_v53 = vmax.f32 %v499_v43, %v569_v29  ;;  %v434_v54 = vmax.f32 %v264_v36, %v338_v49  ;;  %v466_v55 = vmax.f32 %v432_v44, %v1229_v11  ;;  %v783_v56 = vsel %vm329_vm0, %v780_v20, %v782_v46  ;;  %v1198_v20 = vld [vmem:[%s1384_s11 + $0x158] sm:$0xff]  ;;  %v1464_v43 = vld [vmem:[%s1384_s11 + $0x40] sm:$0xff] }
  0x1c   : > { %v920_v58 = vsel %vm915_vm1, %v917_v31, %v919_v50  ;;  %v340_v60 = vsel %vm329_vm0, %v337_v41, %v339_v52  ;;  %v501_v61 = vmax.f32 %v467_v39, %v1264_v47  ;;  %v573_v62 = vsel %vm329_vm0, %v570_v23, %v572_v45  ;;  %v1446_v23 = vld [vmem:[%s1384_s11 + $0x38] sm:$0xff]  ;;  %v1267_v44 = vld [vmem:[%s1384_s11 + $0x3a0] sm:$0xff] }
  0x1d   : > { %v711_v63 = vmax.f32 %v668_v53, %v336_v21  ;;  %v468_v0 = vmax.f32 %v434_v54, %v1231_v32  ;;  %v500_v1 = vmax.f32 %v466_v55, %v1263_v48  ;;  %v435_v2 = vmax.f32 %v265_v51, %v340_v60  ;;  %v1454_v32 = vld [vmem:[%s1384_s11 + $0x280] sm:$0xff]  ;;  %v1235_v53 = vld [vmem:[%s1384_s11 + $0x288] sm:$0xff] }
  0x1e   : > { %v574_v4 = vrot.slane %v1417_v57, 1  ;;  %v670_v5 = vmax.f32 %v501_v61, %v573_v62  ;;  %v784_v6 = vrot.slane %v1197_v59, 1  ;;  %v921_v7 = vrot.slane %v1407_v38, 2  ;;  %v1200_v62 = vld [vmem:[%s1384_s11 + $0x168] sm:$0xff] }
  0x1f   : > { %v880_v9 = vmax.f32 %v711_v63, %v781_v30  ;;  %v669_v10 = vmax.f32 %v500_v1, %v571_v42  ;;  %v469_v11 = vmax.f32 %v435_v2, %v1417_v57  ;;  %v266_v13 = vmax.f32 %v1407_v38, %v1197_v59  ;;  %v1199_v42 = vld [vmem:[%s1384_s11 + $0x160] sm:$0xff]  ;;  %v1483_v63 = vld [vmem:[%s1384_s11 + $0x48] sm:$0xff] }
  0x20   : > { %v713_v14 = vmax.f32 %v670_v5, %v340_v60  ;;  %v785_v15 = vsel %vm329_vm0, %v782_v46, %v784_v6  ;;  %v922_v16 = vsel %vm915_vm1, %v919_v50, %v921_v7  ;;  %v341_v17 = vrot.slane %v1425_v3, 1 }
  0x21   : > { %v1019_v18 = vmax.f32 %v880_v9, %v918_v40  ;;  %v712_v19 = vmax.f32 %v669_v10, %v338_v49  ;;  %v502_v21 = vmax.f32 %v468_v0, %v1265_v8  ;;  %v575_v22 = vsel %vm329_vm0, %v572_v45, %v574_v4  ;;  %v1268_v0 = vld [vmem:[%s1384_s11 + $0x3a8] sm:$0xff]  ;;  %v1492_v9 = vld [vmem:[%s1384_s11 + $0x290] sm:$0xff] }
  0x22   : > { %v882_v24 = vmax.f32 %v713_v14, %v785_v15  ;;  %v342_v25 = vsel %vm329_vm0, %v339_v52, %v341_v17  ;;  %v576_v26 = vrot.slane %v1432_v12, 1  ;;  %v786_v27 = vrot.slane %v1198_v20, 1 }
  0x23   : > { %1054 = vst.msk [vmem:[%s1438_s15] sm:$0xff] %vm1053_vm2, %v1019_v18  ;;  %v881_v28 = vmax.f32 %v712_v19, %v783_v56  ;;  %v436_v29 = vmax.f32 %v266_v13, %v342_v25  ;;  %v671_v30 = vmax.f32 %v502_v21, %v575_v22  ;;  %v923_v31 = vrot.slane %v1425_v3, 2  ;;  %v1201_v18 = vld [vmem:[%s1384_s11 + $0x170] sm:$0xff] }
  0x24   : > { %v1021_v34 = vmax.f32 %v882_v24, %v922_v16  ;;  %v787_v35 = vsel %vm329_vm0, %v784_v6, %v786_v27  ;;  %v267_v36 = vmax.f32 %v1425_v3, %v1198_v20  ;;  %v343_v37 = vrot.slane %v1446_v23, 1  ;;  %v1500_v19 = vld [vmem:[%s1384_s11 + $0x50] sm:$0xff] }
  0x25   : > { %v1020_v38 = vmax.f32 %v881_v28, %v920_v58  ;;  %v470_v39 = vmax.f32 %v436_v29, %v1432_v12  ;;  %v714_v40 = vmax.f32 %v671_v30, %v342_v25  ;;  %v924_v41 = vsel %vm915_vm1, %v921_v7, %v923_v31  ;;  %v1269_v20 = vld [vmem:[%s1384_s11 + $0x3b0] sm:$0xff]  ;;  %v1507_v29 = vld [vmem:[%s1384_s11 + $0x298] sm:$0xff] }
  0x26   : > { %1296 = vst.msk [vmem:[%s1438_s15 + $0xf] sm:$0xfe] %vm1057_vm3, %v1021_v34  ;;  %v344_v45 = vsel %vm329_vm0, %v341_v17, %v343_v37  ;;  %v503_v46 = vmax.f32 %v469_v11, %v1266_v33  ;;  %v577_v47 = vsel %vm329_vm0, %v574_v4, %v576_v26  ;;  %v578_v48 = vrot.slane %v1454_v32, 1 }
  0x27   : > { %1055 = vst.msk [vmem:[%s1438_s15 + $0x8] sm:$0xff] %vm1053_vm2, %v1020_v38  ;;  %v883_v49 = vmax.f32 %v714_v40, %v787_v35  ;;  %v437_v50 = vmax.f32 %v267_v36, %v344_v45  ;;  %v788_v51 = vrot.slane %v1199_v42, 1  ;;  %v925_v52 = vrot.slane %v1446_v23, 2  ;;  %v1202_v38 = vld [vmem:[%s1384_s11 + $0x178] sm:$0xff] }
  0x28   : > { %v672_v54 = vmax.f32 %v503_v46, %v577_v47  ;;  %v268_v55 = vmax.f32 %v1446_v23, %v1199_v42  ;;  %v345_v56 = vrot.slane %v1464_v43, 1  ;;  %v504_v57 = vmax.f32 %v470_v39, %v1267_v44  ;;  %v1520_v39 = vld [vmem:[%s1384_s11 + $0x58] sm:$0xff] }
  0x29   : > { %v1022_v58 = vmax.f32 %v883_v49, %v924_v41  ;;  %v471_v59 = vmax.f32 %v437_v50, %v1454_v32  ;;  %v789_v60 = vsel %vm329_vm0, %v786_v27, %v788_v51  ;;  %v926_v61 = vsel %vm915_vm1, %v923_v31, %v925_v52  ;;  %v1270_v40 = vld [vmem:[%s1384_s11 + $0x3b8] sm:$0xff]  ;;  %v1530_v49 = vld [vmem:[%s1384_s11 + $0x2a0] sm:$0xff] }
  0x2a   : > { %v715_v1 = vmax.f32 %v672_v54, %v344_v45  ;;  %v346_v2 = vsel %vm329_vm0, %v343_v37, %v345_v56  ;;  %v579_v3 = vsel %vm329_vm0, %v576_v26, %v578_v48  ;;  %v580_v4 = vrot.slane %v1235_v53, 1 }
  0x2b   : > { %1297 = vst.msk [vmem:[%s1438_s15 + $0x17] sm:$0xff] %vm1053_vm2, %v1022_v58  ;;  %v438_v5 = vmax.f32 %v268_v55, %v346_v2  ;;  %v673_v6 = vmax.f32 %v504_v57, %v579_v3  ;;  %v790_v7 = vrot.slane %v1200_v62, 1  ;;  %v927_v8 = vrot.slane %v1464_v43, 2  ;;  %v1203_v58 = vld [vmem:[%s1384_s11 + $0x180] sm:$0xff] }
  0x2c   : > { %v884_v10 = vmax.f32 %v715_v1, %v789_v60  ;;  %v269_v11 = vmax.f32 %v1464_v43, %v1200_v62  ;;  %v347_v12 = vrot.slane %v1483_v63, 1  ;;  %v505_v13 = vmax.f32 %v471_v59, %v1268_v0  ;;  %v1539_v59 = vld [vmem:[%s1384_s11 + $0x60] sm:$0xff] }
  0x2d   : > { %v472_v14 = vmax.f32 %v438_v5, %v1235_v53  ;;  %v716_v15 = vmax.f32 %v673_v6, %v346_v2  ;;  %v791_v16 = vsel %vm329_vm0, %v788_v51, %v790_v7  ;;  %v928_v17 = vsel %vm915_vm1, %v925_v52, %v927_v8  ;;  %v1271_v60 = vld [vmem:[%s1384_s11 + $0x3c0] sm:$0xff]  ;;  %v1239_v5 = vld [vmem:[%s1384_s11 + $0x2a8] sm:$0xff] }
  0x2e   : > { %v1023_v21 = vmax.f32 %v884_v10, %v926_v61  ;;  %v348_v22 = vsel %vm329_vm0, %v345_v56, %v347_v12  ;;  %v581_v23 = vsel %vm329_vm0, %v578_v48, %v580_v4  ;;  %v582_v24 = vrot.slane %v1492_v9, 1 }
  0x2f   : > { %v885_v25 = vmax.f32 %v716_v15, %v791_v16  ;;  %v439_v26 = vmax.f32 %v269_v11, %v348_v22  ;;  %v674_v27 = vmax.f32 %v505_v13, %v581_v23  ;;  %v792_v28 = vrot.slane %v1201_v18, 1  ;;  %v1558_v15 = vld [vmem:[%s1384_s11 + $0x68] sm:$0xff] }
  0x30   : > { %1298 = vst.msk [vmem:[%s1438_s15 + $0x1f] sm:$0x1] %vm1060_vm4, %v1023_v21  ;;  %v929_v30 = vrot.slane %v1483_v63, 2  ;;  %v270_v31 = vmax.f32 %v1483_v63, %v1201_v18  ;;  %v349_v32 = vrot.slane %v1500_v19, 1  ;;  %v506_v33 = vmax.f32 %v472_v14, %v1269_v20  ;;  %v1204_v14 = vld [vmem:[%s1384_s11 + $0x188] sm:$0xff] }
  0x31   : > { %1299 = vst.msk [vmem:[%s1438_s15 + $0x1e] sm:$0xfc] %vm1063_vm5, %v1023_v21  ;;  %v1024_v34 = vmax.f32 %v885_v25, %v928_v17  ;;  %v473_v35 = vmax.f32 %v439_v26, %v1492_v9  ;;  %v717_v36 = vmax.f32 %v674_v27, %v348_v22  ;;  %v793_v37 = vsel %vm329_vm0, %v790_v7, %v792_v28  ;;  %v1272_v16 = vld [vmem:[%s1384_s11 + $0x3c8] sm:$0xff]  ;;  %v1567_v25 = vld [vmem:[%s1384_s11 + $0x2b0] sm:$0xff] }
  0x32   : > { %v930_v41 = vsel %vm915_vm1, %v927_v8, %v929_v30  ;;  %v350_v42 = vsel %vm329_vm0, %v347_v12, %v349_v32  ;;  %v583_v43 = vsel %vm329_vm0, %v580_v4, %v582_v24  ;;  %v584_v44 = vrot.slane %v1507_v29, 1 }
  0x33   : > { %1300 = vst.msk [vmem:[%s1438_s15 + $0x26] sm:$0xff] %vm1053_vm2, %v1024_v34  ;;  %v886_v45 = vmax.f32 %v717_v36, %v793_v37  ;;  %v440_v46 = vmax.f32 %v270_v31, %v350_v42  ;;  %v675_v47 = vmax.f32 %v506_v33, %v583_v43  ;;  %v794_v48 = vrot.slane %v1202_v38, 1  ;;  %v1205_v34 = vld [vmem:[%s1384_s11 + $0x190] sm:$0xff] }
  0x34   : > { %v931_v50 = vrot.slane %v1500_v19, 2  ;;  %v271_v51 = vmax.f32 %v1500_v19, %v1202_v38  ;;  %v351_v52 = vrot.slane %v1520_v39, 1  ;;  %v507_v53 = vmax.f32 %v473_v35, %v1270_v40  ;;  %v1575_v35 = vld [vmem:[%s1384_s11 + $0x70] sm:$0xff] }
  0x35   : > { %v1025_v54 = vmax.f32 %v886_v45, %v930_v41  ;;  %v474_v55 = vmax.f32 %v440_v46, %v1507_v29  ;;  %v718_v56 = vmax.f32 %v675_v47, %v350_v42  ;;  %v795_v57 = vsel %vm329_vm0, %v792_v28, %v794_v48  ;;  %v1273_v36 = vld [vmem:[%s1384_s11 + $0x3d0] sm:$0xff]  ;;  %v1241_v45 = vld [vmem:[%s1384_s11 + $0x2b8] sm:$0xff] }
  0x36   : > { %v932_v61 = vsel %vm915_vm1, %v929_v30, %v931_v50  ;;  %v352_v62 = vsel %vm329_vm0, %v349_v32, %v351_v52  ;;  %v585_v63 = vsel %vm329_vm0, %v582_v24, %v584_v44  ;;  %v586_v0 = vrot.slane %v1530_v49, 1 }
  0x37   : > { %1301 = vst.msk [vmem:[%s1438_s15 + $0x2e] sm:$0x3] %vm1066_vm6, %v1025_v54  ;;  %v887_v1 = vmax.f32 %v718_v56, %v795_v57  ;;  %v441_v2 = vmax.f32 %v271_v51, %v352_v62  ;;  %v676_v3 = vmax.f32 %v507_v53, %v585_v63  ;;  %v796_v4 = vrot.slane %v1203_v58, 1  ;;  %v1274_v56 = vld [vmem:[%s1384_s11 + $0x3d8] sm:$0xff] }
  0x38   : > { %1302 = vst.msk [vmem:[%s1438_s15 + $0x2d] sm:$0xf8] %vm1069_vm7, %v1025_v54  ;;  %v933_v6 = vrot.slane %v1520_v39, 2  ;;  %v272_v7 = vmax.f32 %v1520_v39, %v1203_v58  ;;  %v353_v8 = vrot.slane %v1539_v59, 1  ;;  %v508_v9 = vmax.f32 %v474_v55, %v1271_v60  ;;  %v1206_v54 = vld [vmem:[%s1384_s11 + $0x198] sm:$0xff] }
  0x39   : > { %v1026_v10 = vmax.f32 %v887_v1, %v932_v61  ;;  %v475_v11 = vmax.f32 %v441_v2, %v1530_v49  ;;  %v719_v12 = vmax.f32 %v676_v3, %v352_v62  ;;  %v797_v13 = vsel %vm329_vm0, %v794_v48, %v796_v4  ;;  %v1594_v55 = vld [vmem:[%s1384_s11 + $0x78] sm:$0xff]  ;;  %v1603_v1 = vld [vmem:[%s1384_s11 + $0x2c0] sm:$0xff] }
  0x3a   : > { %v934_v17 = vsel %vm915_vm1, %v931_v50, %v933_v6  ;;  %v354_v18 = vsel %vm329_vm0, %v351_v52, %v353_v8  ;;  %v587_v19 = vsel %vm329_vm0, %v584_v44, %v586_v0  ;;  %v588_v20 = vrot.slane %v1239_v5, 1 }
  0x3b   : > { %1303 = vst.msk [vmem:[%s1438_s15 + $0x35] sm:$0xff] %vm1053_vm2, %v1026_v10  ;;  %v888_v21 = vmax.f32 %v719_v12, %v797_v13  ;;  %v442_v22 = vmax.f32 %v272_v7, %v354_v18  ;;  %v677_v23 = vmax.f32 %v508_v9, %v587_v19  ;;  %v798_v24 = vrot.slane %v1204_v14, 1  ;;  %v1207_v10 = vld [vmem:[%s1384_s11 + $0x1a0] sm:$0xff] }
  0x3c   : > { %v935_v26 = vrot.slane %v1539_v59, 2  ;;  %v273_v27 = vmax.f32 %v1539_v59, %v1204_v14  ;;  %v355_v28 = vrot.slane %v1558_v15, 1  ;;  %v509_v29 = vmax.f32 %v475_v11, %v1272_v16  ;;  %v1611_v11 = vld [vmem:[%s1384_s11 + $0x80] sm:$0xff] }
  0x3d   : > { %v1027_v30 = vmax.f32 %v888_v21, %v934_v17  ;;  %v476_v31 = vmax.f32 %v442_v22, %v1239_v5  ;;  %v720_v32 = vmax.f32 %v677_v23, %v354_v18  ;;  %v799_v33 = vsel %vm329_vm0, %v796_v4, %v798_v24  ;;  %v1275_v12 = vld [vmem:[%s1384_s11 + $0x3e0] sm:$0xff]  ;;  %v1243_v21 = vld [vmem:[%s1384_s11 + $0x2c8] sm:$0xff] }
  0x3e   : > { %v936_v37 = vsel %vm915_vm1, %v933_v6, %v935_v26  ;;  %v356_v38 = vsel %vm329_vm0, %v353_v8, %v355_v28  ;;  %v589_v39 = vsel %vm329_vm0, %v586_v0, %v588_v20  ;;  %v590_v40 = vrot.slane %v1567_v25, 1 }
  0x3f   : > { %1304 = vst.msk [vmem:[%s1438_s15 + $0x3d] sm:$0x7] %vm1072_vm8, %v1027_v30  ;;  %v889_v41 = vmax.f32 %v720_v32, %v799_v33  ;;  %v443_v42 = vmax.f32 %v273_v27, %v356_v38  ;;  %v678_v43 = vmax.f32 %v509_v29, %v589_v39  ;;  %v800_v44 = vrot.slane %v1205_v34, 1  ;;  %v1276_v32 = vld [vmem:[%s1384_s11 + $0x3e8] sm:$0xff] }
  0x40   : > { %1305 = vst.msk [vmem:[%s1438_s15 + $0x3c] sm:$0xf0] %vm1075_vm9, %v1027_v30  ;;  %v937_v46 = vrot.slane %v1558_v15, 2  ;;  %v274_v47 = vmax.f32 %v1558_v15, %v1205_v34  ;;  %v357_v48 = vrot.slane %v1575_v35, 1  ;;  %v510_v49 = vmax.f32 %v476_v31, %v1273_v36  ;;  %v1208_v30 = vld [vmem:[%s1384_s11 + $0x1a8] sm:$0xff] }
  0x41   : > { %v1028_v50 = vmax.f32 %v889_v41, %v936_v37  ;;  %v477_v51 = vmax.f32 %v443_v42, %v1567_v25  ;;  %v721_v52 = vmax.f32 %v678_v43, %v356_v38  ;;  %v801_v53 = vsel %vm329_vm0, %v798_v24, %v800_v44  ;;  %v1630_v31 = vld [vmem:[%s1384_s11 + $0x88] sm:$0xff]  ;;  %v1244_v41 = vld [vmem:[%s1384_s11 + $0x2d0] sm:$0xff] }
  0x42   : > { %v938_v57 = vsel %vm915_vm1, %v935_v26, %v937_v46  ;;  %v358_v58 = vsel %vm329_vm0, %v355_v28, %v357_v48  ;;  %v591_v59 = vsel %vm329_vm0, %v588_v20, %v590_v40  ;;  %v592_v60 = vrot.slane %v1241_v45, 1 }
  0x43   : > { %1306 = vst.msk [vmem:[%s1438_s15 + $0x44] sm:$0xff] %vm1053_vm2, %v1028_v50  ;;  %v890_v61 = vmax.f32 %v721_v52, %v801_v53  ;;  %v444_v62 = vmax.f32 %v274_v47, %v358_v58  ;;  %v679_v63 = vmax.f32 %v510_v49, %v591_v59  ;;  %v802_v0 = vrot.slane %v1206_v54, 1  ;;  %v1209_v50 = vld [vmem:[%s1384_s11 + $0x1b0] sm:$0xff] }
  0x44   : > { %v939_v2 = vrot.slane %v1575_v35, 2  ;;  %v275_v3 = vmax.f32 %v1575_v35, %v1206_v54  ;;  %v359_v4 = vrot.slane %v1594_v55, 1  ;;  %v511_v5 = vmax.f32 %v477_v51, %v1274_v56  ;;  %v1645_v51 = vld [vmem:[%s1384_s11 + $0x90] sm:$0xff] }
  0x45   : > { %v1029_v6 = vmax.f32 %v890_v61, %v938_v57  ;;  %v478_v7 = vmax.f32 %v444_v62, %v1241_v45  ;;  %v722_v8 = vmax.f32 %v679_v63, %v358_v58  ;;  %v803_v9 = vsel %vm329_vm0, %v800_v44, %v802_v0  ;;  %v1277_v52 = vld [vmem:[%s1384_s11 + $0x3f0] sm:$0xff]  ;;  %v1245_v61 = vld [vmem:[%s1384_s11 + $0x2d8] sm:$0xff] }
  0x46   : > { %v940_v13 = vsel %vm915_vm1, %v937_v46, %v939_v2  ;;  %v360_v14 = vsel %vm329_vm0, %v357_v48, %v359_v4  ;;  %v593_v15 = vsel %vm329_vm0, %v590_v40, %v592_v60  ;;  %v594_v16 = vrot.slane %v1603_v1, 1 }
  0x47   : > { %1307 = vst.msk [vmem:[%s1438_s15 + $0x4c] sm:$0xf] %vm1078_vm10, %v1029_v6  ;;  %v891_v17 = vmax.f32 %v722_v8, %v803_v9  ;;  %v445_v18 = vmax.f32 %v275_v3, %v360_v14  ;;  %v680_v19 = vmax.f32 %v511_v5, %v593_v15  ;;  %v804_v20 = vrot.slane %v1207_v10, 1  ;;  %v1278_v8 = vld [vmem:[%s1384_s11 + $0x3f8] sm:$0xff] }
  0x48   : > { %1308 = vst.msk [vmem:[%s1438_s15 + $0x4b] sm:$0xe0] %vm1081_vm11, %v1029_v6  ;;  %v941_v22 = vrot.slane %v1594_v55, 2  ;;  %v276_v23 = vmax.f32 %v1594_v55, %v1207_v10  ;;  %v361_v24 = vrot.slane %v1611_v11, 1  ;;  %v512_v25 = vmax.f32 %v478_v7, %v1275_v12  ;;  %v1210_v6 = vld [vmem:[%s1384_s11 + $0x1b8] sm:$0xff] }
  0x49   : > { %v1030_v26 = vmax.f32 %v891_v17, %v940_v13  ;;  %v479_v27 = vmax.f32 %v445_v18, %v1603_v1  ;;  %v723_v28 = vmax.f32 %v680_v19, %v360_v14  ;;  %v805_v29 = vsel %vm329_vm0, %v802_v0, %v804_v20  ;;  %v1662_v7 = vld [vmem:[%s1384_s11 + $0x98] sm:$0xff]  ;;  %v1246_v17 = vld [vmem:[%s1384_s11 + $0x2e0] sm:$0xff] }
  0x4a   : > { %v942_v33 = vsel %vm915_vm1, %v939_v2, %v941_v22  ;;  %v362_v34 = vsel %vm329_vm0, %v359_v4, %v361_v24  ;;  %v595_v35 = vsel %vm329_vm0, %v592_v60, %v594_v16  ;;  %v596_v36 = vrot.slane %v1243_v21, 1 }
  0x4b   : > { %1309 = vst.msk [vmem:[%s1438_s15 + $0x53] sm:$0xff] %vm1053_vm2, %v1030_v26  ;;  %v892_v37 = vmax.f32 %v723_v28, %v805_v29  ;;  %v446_v38 = vmax.f32 %v276_v23, %v362_v34  ;;  %v681_v39 = vmax.f32 %v512_v25, %v595_v35  ;;  %v806_v40 = vrot.slane %v1208_v30, 1  ;;  %v1211_v26 = vld [vmem:[%s1384_s11 + $0x1c0] sm:$0xff] }
  0x4c   : > { %v943_v42 = vrot.slane %v1611_v11, 2  ;;  %v277_v43 = vmax.f32 %v1611_v11, %v1208_v30  ;;  %v363_v44 = vrot.slane %v1630_v31, 1  ;;  %v513_v45 = vmax.f32 %v479_v27, %v1276_v32  ;;  %v1677_v27 = vld [vmem:[%s1384_s11 + $0xa0] sm:$0xff] }
  0x4d   : > { %v1031_v46 = vmax.f32 %v892_v37, %v942_v33  ;;  %v480_v47 = vmax.f32 %v446_v38, %v1243_v21  ;;  %v724_v48 = vmax.f32 %v681_v39, %v362_v34  ;;  %v807_v49 = vsel %vm329_vm0, %v804_v20, %v806_v40  ;;  %v1279_v28 = vld [vmem:[%s1384_s11 + $0x400] sm:$0xff]  ;;  %v1247_v37 = vld [vmem:[%s1384_s11 + $0x2e8] sm:$0xff] }
  0x4e   : > { %v944_v53 = vsel %vm915_vm1, %v941_v22, %v943_v42  ;;  %v364_v54 = vsel %vm329_vm0, %v361_v24, %v363_v44  ;;  %v597_v55 = vsel %vm329_vm0, %v594_v16, %v596_v36  ;;  %v598_v56 = vrot.slane %v1244_v41, 1 }
  0x4f   : > { %1310 = vst.msk [vmem:[%s1438_s15 + $0x5b] sm:$0x1f] %vm1084_vm12, %v1031_v46  ;;  %v893_v57 = vmax.f32 %v724_v48, %v807_v49  ;;  %v447_v58 = vmax.f32 %v277_v43, %v364_v54  ;;  %v682_v59 = vmax.f32 %v513_v45, %v597_v55  ;;  %v808_v60 = vrot.slane %v1209_v50, 1  ;;  %v1280_v48 = vld [vmem:[%s1384_s11 + $0x408] sm:$0xff] }
  0x50   : > { %1311 = vst.msk [vmem:[%s1438_s15 + $0x5a] sm:$0xc0] %vm1946_vm13, %v1031_v46  ;;  %v945_v62 = vrot.slane %v1630_v31, 2  ;;  %v278_v63 = vmax.f32 %v1630_v31, %v1209_v50  ;;  %v365_v0 = vrot.slane %v1645_v51, 1  ;;  %v514_v1 = vmax.f32 %v480_v47, %v1277_v52  ;;  %v1212_v46 = vld [vmem:[%s1384_s11 + $0x1c8] sm:$0xff] }
  0x51   : > { %v1032_v2 = vmax.f32 %v893_v57, %v944_v53  ;;  %v481_v3 = vmax.f32 %v447_v58, %v1244_v41  ;;  %v725_v4 = vmax.f32 %v682_v59, %v364_v54  ;;  %v809_v5 = vsel %vm329_vm0, %v806_v40, %v808_v60  ;;  %v1694_v47 = vld [vmem:[%s1384_s11 + $0xa8] sm:$0xff]  ;;  %v1248_v57 = vld [vmem:[%s1384_s11 + $0x2f0] sm:$0xff] }
  0x52   : > { %v946_v9 = vsel %vm915_vm1, %v943_v42, %v945_v62  ;;  %v366_v10 = vsel %vm329_vm0, %v363_v44, %v365_v0  ;;  %v599_v11 = vsel %vm329_vm0, %v596_v36, %v598_v56  ;;  %v600_v12 = vrot.slane %v1245_v61, 1 }
  0x53   : > { %1312 = vst.msk [vmem:[%s1438_s15 + $0x62] sm:$0xff] %vm1053_vm2, %v1032_v2  ;;  %v894_v13 = vmax.f32 %v725_v4, %v809_v5  ;;  %v448_v14 = vmax.f32 %v278_v63, %v366_v10  ;;  %v683_v15 = vmax.f32 %v514_v1, %v599_v11  ;;  %v810_v16 = vrot.slane %v1210_v6, 1  ;;  %v1213_v2 = vld [vmem:[%s1384_s11 + $0x1d0] sm:$0xff] }
  0x54   : > { %v947_v18 = vrot.slane %v1645_v51, 2  ;;  %v279_v19 = vmax.f32 %v1645_v51, %v1210_v6  ;;  %v367_v20 = vrot.slane %v1662_v7, 1  ;;  %v515_v21 = vmax.f32 %v481_v3, %v1278_v8  ;;  %v1709_v3 = vld [vmem:[%s1384_s11 + $0xb0] sm:$0xff] }
  0x55   : > { %vm1096_vm13 = vcmask 129024   ;;  %v1033_v22 = vmax.f32 %v894_v13, %v946_v9  ;;  %v482_v23 = vmax.f32 %v448_v14, %v1245_v61  ;;  %v726_v24 = vmax.f32 %v683_v15, %v366_v10  ;;  %v1281_v4 = vld [vmem:[%s1384_s11 + $0x410] sm:$0xff]  ;;  %v1249_v13 = vld [vmem:[%s1384_s11 + $0x2f8] sm:$0xff] }
  0x56   : > { %v811_v25 = vsel %vm329_vm0, %v808_v60, %v810_v16  ;;  %v948_v29 = vsel %vm915_vm1, %v945_v62, %v947_v18  ;;  %v368_v30 = vsel %vm329_vm0, %v365_v0, %v367_v20  ;;  %v601_v31 = vsel %vm329_vm0, %v598_v56, %v600_v12 }
  0x57   : > { %v602_v32 = vrot.slane %v1246_v17, 1  ;;  %1313 = vst.msk [vmem:[%s1438_s15 + $0x6a] sm:$0x3f] %vm1090_vm14, %v1033_v22  ;;  %v895_v33 = vmax.f32 %v726_v24, %v811_v25  ;;  %v449_v34 = vmax.f32 %v279_v19, %v368_v30  ;;  %v684_v35 = vmax.f32 %v515_v21, %v601_v31  ;;  %v1282_v24 = vld [vmem:[%s1384_s11 + $0x418] sm:$0xff] }
  0x58   : > { %1314 = vst.msk [vmem:[%s1438_s15 + $0x69] sm:$0x80] %vm1093_vm15, %v1033_v22  ;;  %v812_v36 = vrot.slane %v1211_v26, 1  ;;  %v949_v38 = vrot.slane %v1662_v7, 2  ;;  %v280_v39 = vmax.f32 %v1662_v7, %v1211_v26  ;;  %v369_v40 = vrot.slane %v1677_v27, 1  ;;  %v1214_v22 = vld [vmem:[%s1384_s11 + $0x1d8] sm:$0xff] }
  0x59   : > { %v516_v41 = vmax.f32 %v482_v23, %v1279_v28  ;;  %v1034_v42 = vmax.f32 %v895_v33, %v948_v29  ;;  %v483_v43 = vmax.f32 %v449_v34, %v1246_v17  ;;  %v727_v44 = vmax.f32 %v684_v35, %v368_v30  ;;  %v1724_v23 = vld [vmem:[%s1384_s11 + $0xb8] sm:$0xff]  ;;  %v1250_v33 = vld [vmem:[%s1384_s11 + $0x300] sm:$0xff] }
  0x5a   : > { %v813_v45 = vsel %vm329_vm0, %v810_v16, %v812_v36  ;;  %v950_v49 = vsel %vm915_vm1, %v947_v18, %v949_v38  ;;  %v370_v50 = vsel %vm329_vm0, %v367_v20, %v369_v40  ;;  %v603_v51 = vsel %vm329_vm0, %v600_v12, %v602_v32 }
  0x5b   : > { %v604_v52 = vrot.slane %v1247_v37, 1  ;;  %1315 = vst.msk [vmem:[%s1438_s15 + $0x71] sm:$0xff] %vm1053_vm2, %v1034_v42  ;;  %v896_v53 = vmax.f32 %v727_v44, %v813_v45  ;;  %v450_v54 = vmax.f32 %v280_v39, %v370_v50  ;;  %v685_v55 = vmax.f32 %v516_v41, %v603_v51  ;;  %v1215_v42 = vld [vmem:[%s1384_s11 + $0x1e0] sm:$0xff] }
  0x5c   : > { %v814_v56 = vrot.slane %v1212_v46, 1  ;;  %v951_v58 = vrot.slane %v1677_v27, 2  ;;  %v281_v59 = vmax.f32 %v1677_v27, %v1212_v46  ;;  %v371_v60 = vrot.slane %v1694_v47, 1  ;;  %v1283_v44 = vld [vmem:[%s1384_s11 + $0x420] sm:$0xff] }
  0x5d   : > { %v517_v61 = vmax.f32 %v483_v43, %v1280_v48  ;;  %v1035_v62 = vmax.f32 %v896_v53, %v950_v49  ;;  %v484_v63 = vmax.f32 %v450_v54, %v1247_v37  ;;  %v728_v0 = vmax.f32 %v685_v55, %v370_v50  ;;  %v1739_v43 = vld [vmem:[%s1384_s11 + $0xc0] sm:$0xff]  ;;  %v1251_v53 = vld [vmem:[%s1384_s11 + $0x308] sm:$0xff] }
  0x5e   : > { %v815_v1 = vsel %vm329_vm0, %v812_v36, %v814_v56  ;;  %v952_v5 = vsel %vm915_vm1, %v949_v38, %v951_v58  ;;  %v372_v6 = vsel %vm329_vm0, %v369_v40, %v371_v60  ;;  %v605_v7 = vsel %vm329_vm0, %v602_v32, %v604_v52 }
  0x5f   : > { %v606_v8 = vrot.slane %v1248_v57, 1  ;;  %1316 = vst.msk [vmem:[%s1438_s15 + $0x79] sm:$0x7f] %vm1096_vm13, %v1035_v62  ;;  %v897_v9 = vmax.f32 %v728_v0, %v815_v1  ;;  %v451_v10 = vmax.f32 %v281_v59, %v372_v6  ;;  %v686_v11 = vmax.f32 %v517_v61, %v605_v7  ;;  %v1216_v62 = vld [vmem:[%s1384_s11 + $0x1e8] sm:$0xff] }
  0x60   : > { %v816_v12 = vrot.slane %v1213_v2, 1  ;;  %v953_v14 = vrot.slane %v1694_v47, 2  ;;  %v282_v15 = vmax.f32 %v1694_v47, %v1213_v2  ;;  %v373_v16 = vrot.slane %v1709_v3, 1  ;;  %v1284_v0 = vld [vmem:[%s1384_s11 + $0x428] sm:$0xff] }
  0x61   : > { %v518_v17 = vmax.f32 %v484_v63, %v1281_v4  ;;  %v1036_v18 = vmax.f32 %v897_v9, %v952_v5  ;;  %v485_v19 = vmax.f32 %v451_v10, %v1248_v57  ;;  %v729_v20 = vmax.f32 %v686_v11, %v372_v6  ;;  %v1754_v63 = vld [vmem:[%s1384_s11 + $0xc8] sm:$0xff]  ;;  %v1252_v9 = vld [vmem:[%s1384_s11 + $0x310] sm:$0xff] }
  0x62   : > { %v817_v21 = vsel %vm329_vm0, %v814_v56, %v816_v12  ;;  %v954_v25 = vsel %vm915_vm1, %v951_v58, %v953_v14  ;;  %v374_v26 = vsel %vm329_vm0, %v371_v60, %v373_v16  ;;  %v607_v27 = vsel %vm329_vm0, %v604_v52, %v606_v8 }
  0x63   : > { %v608_v28 = vrot.slane %v1249_v13, 1  ;;  %1317 = vst.msk [vmem:[%s1438_s15 + $0x80] sm:$0xff] %vm1053_vm2, %v1036_v18  ;;  %v898_v29 = vmax.f32 %v729_v20, %v817_v21  ;;  %v452_v30 = vmax.f32 %v282_v15, %v374_v26  ;;  %v687_v31 = vmax.f32 %v518_v17, %v607_v27  ;;  %v1217_v18 = vld [vmem:[%s1384_s11 + $0x1f0] sm:$0xff] }
  0x64   : > { %v818_v32 = vrot.slane %v1214_v22, 1  ;;  %v955_v34 = vrot.slane %v1709_v3, 2  ;;  %v283_v35 = vmax.f32 %v1709_v3, %v1214_v22  ;;  %v375_v36 = vrot.slane %v1724_v23, 1  ;;  %v1285_v20 = vld [vmem:[%s1384_s11 + $0x430] sm:$0xff] }
  0x65   : > { %v519_v37 = vmax.f32 %v485_v19, %v1282_v24  ;;  %v1037_v38 = vmax.f32 %v898_v29, %v954_v25  ;;  %v486_v39 = vmax.f32 %v452_v30, %v1249_v13  ;;  %v730_v40 = vmax.f32 %v687_v31, %v374_v26  ;;  %v1769_v19 = vld [vmem:[%s1384_s11 + $0xd0] sm:$0xff]  ;;  %v1253_v29 = vld [vmem:[%s1384_s11 + $0x318] sm:$0xff] }
  0x66   : > { %v819_v41 = vsel %vm329_vm0, %v816_v12, %v818_v32  ;;  %v956_v45 = vsel %vm915_vm1, %v953_v14, %v955_v34  ;;  %v376_v46 = vsel %vm329_vm0, %v373_v16, %v375_v36  ;;  %v609_v47 = vsel %vm329_vm0, %v606_v8, %v608_v28 }
  0x67   : > { %v610_v48 = vrot.slane %v1250_v33, 1  ;;  %1318 = vst.msk [vmem:[%s1438_s15 + $0x88] sm:$0xff] %vm1053_vm2, %v1037_v38  ;;  %v899_v49 = vmax.f32 %v730_v40, %v819_v41  ;;  %v453_v50 = vmax.f32 %v283_v35, %v376_v46  ;;  %v688_v51 = vmax.f32 %v519_v37, %v609_v47  ;;  %v1218_v38 = vld [vmem:[%s1384_s11 + $0x1f8] sm:$0xff] }
  0x68   : > { %v820_v52 = vrot.slane %v1215_v42, 1  ;;  %v957_v54 = vrot.slane %v1724_v23, 2  ;;  %v284_v55 = vmax.f32 %v1724_v23, %v1215_v42  ;;  %v377_v56 = vrot.slane %v1739_v43, 1  ;;  %v1286_v40 = vld [vmem:[%s1384_s11 + $0x438] sm:$0xff] }
  0x69   : > { %v520_v57 = vmax.f32 %v486_v39, %v1283_v44  ;;  %v1038_v58 = vmax.f32 %v899_v49, %v956_v45  ;;  %v487_v59 = vmax.f32 %v453_v50, %v1250_v33  ;;  %v731_v60 = vmax.f32 %v688_v51, %v376_v46  ;;  %v1784_v39 = vld [vmem:[%s1384_s11 + $0xd8] sm:$0xff]  ;;  %v1254_v49 = vld [vmem:[%s1384_s11 + $0x320] sm:$0xff] }
  0x6a   : > { %v821_v61 = vsel %vm329_vm0, %v818_v32, %v820_v52  ;;  %v958_v1 = vsel %vm915_vm1, %v955_v34, %v957_v54  ;;  %v378_v2 = vsel %vm329_vm0, %v375_v36, %v377_v56  ;;  %v611_v3 = vsel %vm329_vm0, %v608_v28, %v610_v48 }
  0x6b   : > { %v612_v4 = vrot.slane %v1251_v53, 1  ;;  %1319 = vst.msk [vmem:[%s1438_s15 + $0x8f] sm:$0xfe] %vm1057_vm3, %v1038_v58  ;;  %v900_v5 = vmax.f32 %v731_v60, %v821_v61  ;;  %v454_v6 = vmax.f32 %v284_v55, %v378_v2  ;;  %v689_v7 = vmax.f32 %v520_v57, %v611_v3  ;;  %v1219_v58 = vld [vmem:[%s1384_s11 + $0x200] sm:$0xff] }
  0x6c   : > { %v822_v8 = vrot.slane %v1216_v62, 1  ;;  %v959_v10 = vrot.slane %v1739_v43, 2  ;;  %v285_v11 = vmax.f32 %v1739_v43, %v1216_v62  ;;  %v379_v12 = vrot.slane %v1754_v63, 1  ;;  %v1287_v60 = vld [vmem:[%s1384_s11 + $0x440] sm:$0xff] }
  0x6d   : > { %v521_v13 = vmax.f32 %v487_v59, %v1284_v0  ;;  %v1039_v14 = vmax.f32 %v900_v5, %v958_v1  ;;  %v488_v15 = vmax.f32 %v454_v6, %v1251_v53  ;;  %v732_v16 = vmax.f32 %v689_v7, %v378_v2  ;;  %v1801_v59 = vld [vmem:[%s1384_s11 + $0xe0] sm:$0xff]  ;;  %v1255_v5 = vld [vmem:[%s1384_s11 + $0x328] sm:$0xff] }
  0x6e   : > { %v823_v17 = vsel %vm329_vm0, %v820_v52, %v822_v8  ;;  %v960_v21 = vsel %vm915_vm1, %v957_v54, %v959_v10  ;;  %v380_v22 = vsel %vm329_vm0, %v377_v56, %v379_v12  ;;  %v613_v23 = vsel %vm329_vm0, %v610_v48, %v612_v4 }
  0x6f   : > { %v614_v24 = vrot.slane %v1252_v9, 1  ;;  %1320 = vst.msk [vmem:[%s1438_s15 + $0x97] sm:$0xff] %vm1053_vm2, %v1039_v14  ;;  %v901_v25 = vmax.f32 %v732_v16, %v823_v17  ;;  %v455_v26 = vmax.f32 %v285_v11, %v380_v22  ;;  %v690_v27 = vmax.f32 %v521_v13, %v613_v23  ;;  %v1220_v14 = vld [vmem:[%s1384_s11 + $0x208] sm:$0xff] }
  0x70   : > { %v824_v28 = vrot.slane %v1217_v18, 1  ;;  %v961_v30 = vrot.slane %v1754_v63, 2  ;;  %v286_v31 = vmax.f32 %v1754_v63, %v1217_v18  ;;  %v381_v32 = vrot.slane %v1769_v19, 1  ;;  %v1288_v16 = vld [vmem:[%s1384_s11 + $0x448] sm:$0xff] }
  0x71   : > { %v522_v33 = vmax.f32 %v488_v15, %v1285_v20  ;;  %v1040_v34 = vmax.f32 %v901_v25, %v960_v21  ;;  %v489_v35 = vmax.f32 %v455_v26, %v1252_v9  ;;  %v733_v36 = vmax.f32 %v690_v27, %v380_v22  ;;  %v1816_v15 = vld [vmem:[%s1384_s11 + $0xe8] sm:$0xff]  ;;  %v1256_v25 = vld [vmem:[%s1384_s11 + $0x330] sm:$0xff] }
  0x72   : > { %v825_v37 = vsel %vm329_vm0, %v822_v8, %v824_v28  ;;  %v962_v41 = vsel %vm915_vm1, %v959_v10, %v961_v30  ;;  %v382_v42 = vsel %vm329_vm0, %v379_v12, %v381_v32  ;;  %v615_v43 = vsel %vm329_vm0, %v612_v4, %v614_v24 }
  0x73   : > { %v616_v44 = vrot.slane %v1253_v29, 1  ;;  %1321 = vst.msk [vmem:[%s1438_s15 + $0x9f] sm:$0x1] %vm1060_vm4, %v1040_v34  ;;  %v902_v45 = vmax.f32 %v733_v36, %v825_v37  ;;  %v456_v46 = vmax.f32 %v286_v31, %v382_v42  ;;  %v691_v47 = vmax.f32 %v522_v33, %v615_v43  ;;  %v1289_v36 = vld [vmem:[%s1384_s11 + $0x450] sm:$0xff] }
  0x74   : > { %1322 = vst.msk [vmem:[%s1438_s15 + $0x9e] sm:$0xfc] %vm1063_vm5, %v1040_v34  ;;  %v826_v48 = vrot.slane %v1218_v38, 1  ;;  %v963_v50 = vrot.slane %v1769_v19, 2  ;;  %v287_v51 = vmax.f32 %v1769_v19, %v1218_v38  ;;  %v383_v52 = vrot.slane %v1784_v39, 1  ;;  %v1221_v34 = vld [vmem:[%s1384_s11 + $0x210] sm:$0xff] }
  0x75   : > { %v523_v53 = vmax.f32 %v489_v35, %v1286_v40  ;;  %v1041_v54 = vmax.f32 %v902_v45, %v962_v41  ;;  %v490_v55 = vmax.f32 %v456_v46, %v1253_v29  ;;  %v734_v56 = vmax.f32 %v691_v47, %v382_v42  ;;  %v1833_v35 = vld [vmem:[%s1384_s11 + $0xf0] sm:$0xff]  ;;  %v1257_v45 = vld [vmem:[%s1384_s11 + $0x338] sm:$0xff] }
  0x76   : > { %v827_v57 = vsel %vm329_vm0, %v824_v28, %v826_v48  ;;  %v964_v61 = vsel %vm915_vm1, %v961_v30, %v963_v50  ;;  %v384_v62 = vsel %vm329_vm0, %v381_v32, %v383_v52  ;;  %v617_v63 = vsel %vm329_vm0, %v614_v24, %v616_v44 }
  0x77   : > { %v618_v0 = vrot.slane %v1254_v49, 1  ;;  %1323 = vst.msk [vmem:[%s1438_s15 + $0xa6] sm:$0xff] %vm1053_vm2, %v1041_v54  ;;  %v903_v1 = vmax.f32 %v734_v56, %v827_v57  ;;  %v457_v2 = vmax.f32 %v287_v51, %v384_v62  ;;  %v692_v3 = vmax.f32 %v523_v53, %v617_v63  ;;  %v1222_v54 = vld [vmem:[%s1384_s11 + $0x218] sm:$0xff] }
  0x78   : > { %v828_v4 = vrot.slane %v1219_v58, 1  ;;  %v965_v6 = vrot.slane %v1784_v39, 2  ;;  %v288_v7 = vmax.f32 %v1784_v39, %v1219_v58  ;;  %v385_v8 = vrot.slane %v1801_v59, 1  ;;  %v1290_v56 = vld [vmem:[%s1384_s11 + $0x458] sm:$0xff] }
  0x79   : > { %v524_v9 = vmax.f32 %v490_v55, %v1287_v60  ;;  %v1042_v10 = vmax.f32 %v903_v1, %v964_v61  ;;  %v491_v11 = vmax.f32 %v457_v2, %v1254_v49  ;;  %v735_v12 = vmax.f32 %v692_v3, %v384_v62  ;;  %v1848_v55 = vld [vmem:[%s1384_s11 + $0xf8] sm:$0xff]  ;;  %v1859_v1 = vld [vmem:[%s1384_s11 + $0x340] sm:$0xff] }
  0x7a   : > { %v829_v13 = vsel %vm329_vm0, %v826_v48, %v828_v4  ;;  %v966_v17 = vsel %vm915_vm1, %v963_v50, %v965_v6  ;;  %v386_v18 = vsel %vm329_vm0, %v383_v52, %v385_v8  ;;  %v619_v19 = vsel %vm329_vm0, %v616_v44, %v618_v0 }
  0x7b   : > { %v620_v20 = vrot.slane %v1255_v5, 1  ;;  %1324 = vst.msk [vmem:[%s1438_s15 + $0xae] sm:$0x3] %vm1066_vm6, %v1042_v10  ;;  %v904_v21 = vmax.f32 %v735_v12, %v829_v13  ;;  %v458_v22 = vmax.f32 %v288_v7, %v386_v18  ;;  %v693_v23 = vmax.f32 %v524_v9, %v619_v19  ;;  %v1291_v12 = vld [vmem:[%s1384_s11 + $0x460] sm:$0xff] }
  0x7c   : > { %1325 = vst.msk [vmem:[%s1438_s15 + $0xad] sm:$0xf8] %vm1069_vm7, %v1042_v10  ;;  %v830_v24 = vrot.slane %v1220_v14, 1  ;;  %v967_v26 = vrot.slane %v1801_v59, 2  ;;  %v289_v27 = vmax.f32 %v1801_v59, %v1220_v14  ;;  %v387_v28 = vrot.slane %v1816_v15, 1  ;;  %v1223_v10 = vld [vmem:[%s1384_s11 + $0x220] sm:$0xff] }
  0x7d   : > { %v525_v29 = vmax.f32 %v491_v11, %v1288_v16  ;;  %v1043_v30 = vmax.f32 %v904_v21, %v966_v17  ;;  %v492_v31 = vmax.f32 %v458_v22, %v1255_v5  ;;  %v736_v32 = vmax.f32 %v693_v23, %v386_v18  ;;  %v1867_v11 = vld [vmem:[%s1384_s11 + $0x100] sm:$0xff]  ;;  %v1259_v21 = vld [vmem:[%s1384_s11 + $0x348] sm:$0xff] }
  0x7e   : > { %v831_v33 = vsel %vm329_vm0, %v828_v4, %v830_v24  ;;  %v968_v37 = vsel %vm915_vm1, %v965_v6, %v967_v26  ;;  %v388_v38 = vsel %vm329_vm0, %v385_v8, %v387_v28  ;;  %v621_v39 = vsel %vm329_vm0, %v618_v0, %v620_v20 }
  0x7f   : > { %v622_v40 = vrot.slane %v1256_v25, 1  ;;  %1326 = vst.msk [vmem:[%s1438_s15 + $0xb5] sm:$0xff] %vm1053_vm2, %v1043_v30  ;;  %v905_v41 = vmax.f32 %v736_v32, %v831_v33  ;;  %v459_v42 = vmax.f32 %v289_v27, %v388_v38  ;;  %v694_v43 = vmax.f32 %v525_v29, %v621_v39  ;;  %v1224_v30 = vld [vmem:[%s1384_s11 + $0x228] sm:$0xff]  ;;  %v1225_v32 = vld [vmem:[%s1384_s11 + $0x230] sm:$0xff] }
  0x80   : > { %v832_v44 = vrot.slane %v1221_v34, 1  ;;  %v969_v46 = vrot.slane %v1816_v15, 2  ;;  %v290_v47 = vmax.f32 %v1816_v15, %v1221_v34  ;;  %v389_v48 = vrot.slane %v1833_v35, 1 }
  0x81   : > { %v526_v49 = vmax.f32 %v492_v31, %v1289_v36  ;;  %v1044_v50 = vmax.f32 %v905_v41, %v968_v37  ;;  %v493_v51 = vmax.f32 %v459_v42, %v1256_v25  ;;  %v737_v52 = vmax.f32 %v694_v43, %v388_v38  ;;  %v1884_v31 = vld [vmem:[%s1384_s11 + $0x108] sm:$0xff]  ;;  %v1260_v43 = vld [vmem:[%s1384_s11 + $0x350] sm:$0xff] }
  0x82   : > { %v833_v53 = vsel %vm329_vm0, %v830_v24, %v832_v44  ;;  %v970_v57 = vsel %vm915_vm1, %v967_v26, %v969_v46  ;;  %v390_v58 = vsel %vm329_vm0, %v387_v28, %v389_v48  ;;  %v623_v59 = vsel %vm329_vm0, %v620_v20, %v622_v40  ;;  %v1292_v41 = vld [vmem:[%s1384_s11 + $0x468] sm:$0xff] }
  0x83   : > { %v624_v60 = vrot.slane %v1257_v45, 1  ;;  %1327 = vst.msk [vmem:[%s1438_s15 + $0xbd] sm:$0x7] %vm1072_vm8, %v1044_v50  ;;  %v906_v61 = vmax.f32 %v737_v52, %v833_v53  ;;  %v460_v62 = vmax.f32 %v290_v47, %v390_v58  ;;  %v695_v63 = vmax.f32 %v526_v49, %v623_v59 }
  0x84   : > { %1328 = vst.msk [vmem:[%s1438_s15 + $0xbc] sm:$0xf0] %vm1075_vm9, %v1044_v50  ;;  %v834_v0 = vrot.slane %v1222_v54, 1  ;;  %v971_v2 = vrot.slane %v1833_v35, 2  ;;  %v291_v3 = vmax.f32 %v1833_v35, %v1222_v54  ;;  %v391_v4 = vrot.slane %v1848_v55, 1 }
  0x85   : > { %v527_v5 = vmax.f32 %v493_v51, %v1290_v56  ;;  %v1045_v6 = vmax.f32 %v906_v61, %v970_v57  ;;  %v494_v7 = vmax.f32 %v460_v62, %v1257_v45  ;;  %v738_v8 = vmax.f32 %v695_v63, %v390_v58  ;;  %v1293_v51 = vld [vmem:[%s1384_s11 + $0x470] sm:$0xff] }
  0x86   : > { %v835_v9 = vsel %vm329_vm0, %v832_v44, %v834_v0  ;;  %v972_v13 = vsel %vm915_vm1, %v969_v46, %v971_v2  ;;  %v392_v14 = vsel %vm329_vm0, %v389_v48, %v391_v4  ;;  %v625_v15 = vsel %vm329_vm0, %v622_v40, %v624_v60  ;;  %v151_v56 = vld [vmem:[%s1384_s11 + $0x110] sm:$0xff] }
  0x87   : > { %v626_v16 = vrot.slane %v1859_v1, 1  ;;  %1329 = vst.msk [vmem:[%s1438_s15 + $0xc4] sm:$0xff] %vm1053_vm2, %v1045_v6  ;;  %v907_v17 = vmax.f32 %v738_v8, %v835_v9  ;;  %v461_v18 = vmax.f32 %v291_v3, %v392_v14  ;;  %v696_v19 = vmax.f32 %v527_v5, %v625_v15  ;;  %v1261_v8 = vld [vmem:[%s1384_s11 + $0x358] sm:$0xff] }
  0x88   : > { %v836_v20 = vrot.slane %v1223_v10, 1  ;;  %v973_v22 = vrot.slane %v1848_v55, 2  ;;  %v292_v23 = vmax.f32 %v1848_v55, %v1223_v10  ;;  %v393_v24 = vrot.slane %v1867_v11, 1 }
  0x89   : > { %v528_v25 = vmax.f32 %v494_v7, %v1291_v12  ;;  %v1046_v26 = vmax.f32 %v907_v17, %v972_v13  ;;  %v495_v27 = vmax.f32 %v461_v18, %v1859_v1  ;;  %v739_v28 = vmax.f32 %v696_v19, %v392_v14  ;;  %v152_v7 = vld [vmem:[%s1384_s11 + $0x118] sm:$0xff]  ;;  %v1227_v13 = vld [vmem:[%s1384_s11 + $0x240] sm:$0xff] }
  0x8a   : > { %v837_v29 = vsel %vm329_vm0, %v834_v0, %v836_v20  ;;  %v974_v33 = vsel %vm915_vm1, %v971_v2, %v973_v22  ;;  %v394_v34 = vsel %vm329_vm0, %v391_v4, %v393_v24  ;;  %v627_v35 = vsel %vm329_vm0, %v624_v60, %v626_v16  ;;  %v1226_v0 = vld [vmem:[%s1384_s11 + $0x238] sm:$0xff] }
  0x8b   : > { %v628_v36 = vrot.slane %v1259_v21, 1  ;;  %1330 = vst.msk [vmem:[%s1438_s15 + $0xcc] sm:$0xf] %vm1078_vm10, %v1046_v26  ;;  %v908_v37 = vmax.f32 %v739_v28, %v837_v29  ;;  %v462_v38 = vmax.f32 %v292_v23, %v394_v34  ;;  %v697_v39 = vmax.f32 %v528_v25, %v627_v35  ;;  %v1294_v2 = vld [vmem:[%s1384_s11 + $0x478] sm:$0xff] }
  0x8c   : > { %1331 = vst.msk [vmem:[%s1438_s15 + $0xcb] sm:$0xe0] %vm1081_vm11, %v1046_v26  ;;  %v838_v40 = vrot.slane %v1224_v30, 1  ;;  %v975_v42 = vrot.slane %v1867_v11, 2  ;;  %v293_v44 = vmax.f32 %v1867_v11, %v1224_v30  ;;  %v294_v45 = vmax.f32 %v1884_v31, %v1225_v32  ;;  %v1295_v30 = vld [vmem:[%s1384_s11 + $0x480] sm:$0xff] }
  0x8d   : > { %v395_v46 = vrot.slane %v1884_v31, 1  ;;  %v1047_v47 = vmax.f32 %v908_v37, %v974_v33  ;;  %v496_v48 = vmax.f32 %v462_v38, %v1259_v21  ;;  %v740_v49 = vmax.f32 %v697_v39, %v394_v34 }
  0x8e   : > { %v839_v50 = vsel %vm329_vm0, %v836_v20, %v838_v40  ;;  %v976_v52 = vsel %vm915_vm1, %v973_v22, %v975_v42  ;;  %v529_v55 = vmax.f32 %v495_v27, %v1292_v41  ;;  %v629_v59 = vsel %vm329_vm0, %v626_v16, %v628_v36 }
  0x8f   : > { %v396_v53 = vsel %vm329_vm0, %v393_v24, %v395_v46  ;;  %v464_v54 = vmax.f32 %v294_v45, %v395_v46  ;;  %1332 = vst.msk [vmem:[%s1438_s15 + $0xd3] sm:$0xff] %vm1053_vm2, %v1047_v47  ;;  %v909_v57 = vmax.f32 %v740_v49, %v839_v50  ;;  %v630_v60 = vrot.slane %v1260_v43, 1 }
  0x90   : > { %v463_v58 = vmax.f32 %v293_v44, %v396_v53  ;;  %v698_v61 = vmax.f32 %v529_v55, %v629_v59  ;;  %v840_v62 = vrot.slane %v1225_v32, 1  ;;  %v977_v63 = vrot.slane %v1884_v31, 2  ;;  %v153_v32 = vld [vmem:[%s1384_s11 + $0x120] sm:$0x1] }
  0x91   : > { %v530_v1 = vmax.f32 %v496_v48, %v1293_v51  ;;  %v1048_v3 = vmax.f32 %v909_v57, %v976_v52  ;;  %v631_v5 = vsel %vm329_vm0, %v628_v36, %v630_v60  ;;  %v704_v6 = vrot.slane %v151_v56, 1 }
  0x92   : > { %v497_v4 = vmax.f32 %v463_v58, %v1260_v43  ;;  %v741_v9 = vmax.f32 %v698_v61, %v396_v53  ;;  %v841_v10 = vsel %vm329_vm0, %v838_v40, %v840_v62  ;;  %v978_v11 = vsel %vm915_vm1, %v975_v42, %v977_v63 }
  0x93   : > { %v699_v12 = vmax.f32 %v530_v1, %v631_v5  ;;  %1333 = vst.msk [vmem:[%s1438_s15 + $0xdb] sm:$0x1f] %vm1084_vm12, %v1048_v3  ;;  %vm1947_vm3 = vcmask 130054   ;;  %v705_v14 = vsel %vm329_vm0, %v395_v46, %v704_v6  ;;  %v842_v15 = vrot.slane %v1226_v0, 1 }
  0x94   : > { %1334 = vst.msk [vmem:[%s1438_s15 + $0xda] sm:$0xc0] %vm1947_vm3, %v1048_v3  ;;  %v979_v16 = vrot.slane %v151_v56, 2  ;;  %v531_v17 = vmax.f32 %v497_v4, %v1294_v2  ;;  %v910_v18 = vmax.f32 %v741_v9, %v841_v10  ;;  %v632_v20 = vrot.slane %v1261_v8, 1 }
  0x95   : > { %v742_v19 = vmax.f32 %v699_v12, %v705_v14  ;;  %v706_v21 = vrot.slane %v152_v7, 1  ;;  %v843_v22 = vsel %vm329_vm0, %v840_v62, %v842_v15  ;;  %v844_v24 = vrot.slane %v1227_v13, 1 }
  0x96   : > { %v980_v23 = vsel %vm915_vm1, %v977_v63, %v979_v16  ;;  %v981_v25 = vrot.slane %v152_v7, 2  ;;  %v1049_v26 = vmax.f32 %v910_v18, %v978_v11  ;;  %v633_v28 = vsel %vm329_vm0, %v630_v60, %v632_v20 }
  0x97   : > { %v911_v27 = vmax.f32 %v742_v19, %v843_v22  ;;  %v707_v29 = vsel %vm329_vm0, %v704_v6, %v706_v21  ;;  %v700_v31 = vmax.f32 %v531_v17, %v633_v28  ;;  %v498_v33 = vmax.f32 %v464_v54, %v1261_v8 }
  0x98   : > { %1335 = vst.msk [vmem:[%s1438_s15 + $0xe2] sm:$0xff] %vm1053_vm2, %v1049_v26  ;;  %v845_v35 = vsel %vm329_vm0, %v842_v15, %v844_v24  ;;  %v982_v38 = vsel %vm915_vm1, %v979_v16, %v981_v25  ;;  %v983_v39 = vrot.slane %v153_v32, 2 }
  0x99   : > { %v1050_v34 = vmax.f32 %v911_v27, %v980_v23  ;;  %v743_v36 = vmax.f32 %v700_v31, %v707_v29  ;;  %v532_v37 = vmax.f32 %v498_v33, %v1295_v30 }
  0x9a   : > { %v984_v44 = vsel %vm915_vm1, %v981_v25, %v983_v39 }
  0x9b   : > { %1336 = vst.msk [vmem:[%s1438_s15 + $0xea] sm:$0x3f] %vm1090_vm14, %v1050_v34  ;;  %v912_v40 = vmax.f32 %v743_v36, %v845_v35  ;;  %v701_v41 = vmax.f32 %v532_v37, %v632_v20 }
  0x9c   : > { %1337 = vst.msk [vmem:[%s1438_s15 + $0xe9] sm:$0x80] %vm1093_vm15, %v1050_v34 }
  0x9d   : > { %v1051_v42 = vmax.f32 %v912_v40, %v982_v38  ;;  %v744_v43 = vmax.f32 %v701_v41, %v706_v21 }
  0x9f   : > { %1338 = vst.msk [vmem:[%s1438_s15 + $0xf1] sm:$0xff] %vm1053_vm2, %v1051_v42  ;;  %v913_v45 = vmax.f32 %v744_v43, %v844_v24 }
  0xa1   : > { %v1052_v46 = vmax.f32 %v913_v45, %v984_v44 }
  0xa3   : > { %1339 = vst.msk [vmem:[%s1438_s15 + $0xf9] sm:$0x7f] %vm1096_vm13, %v1052_v46 }
  0xa4 PF: > { %s11_s6 = sadd.s32 1, %s1358_s6  }
  0xa5   : > { %p8_p4 = scmp.ge.s32.totalorder %s11_s6, 4  }
  0xa7   :  { %10 = sbr.rel (!%p8_p4) target bundleno = 1 (0x1), region = 72 }

// kernel: forward.12
= control target key start
LH: loop header
LB: loop body
LE: loop exit
PB: predicated region body
PF: predicated region fallthrough
CT: control target
= control target key end

     0   :  { %s1903_s30 = smov 0   ;;  %s2711_s0 = inlined_call_operand.vmem [shape: f32[2,100,32], index: 0, kind: input, shape index: {}]   ;;  %s2712_s1 = inlined_call_operand.vmem [shape: f32[100,1], index: 1, kind: input, shape index: {}]   ;;  %s2713_s2 = inlined_call_operand.vmem [shape: f32[32,16], index: 2, kind: input, shape index: {}]   ;;  %s2714_s3 = inlined_call_operand.vmem [shape: f32[1,16], index: 3, kind: input, shape index: {}]   ;;  %s2715_s4 = inlined_call_operand.vmem [shape: f32[9,16], index: 4, kind: input, shape index: {}]   ;;  %s2716_s5 = inlined_call_operand.vmem [shape: f32[1,16], index: 5, kind: input, shape index: {}]   ;;  %s2717_s6 = inlined_call_operand.vmem [shape: f32[16,32], index: 6, kind: input, shape index: {}]   ;;  %s2718_s7 = inlined_call_operand.vmem [shape: f32[1,32], index: 7, kind: input, shape index: {}]   ;;  %s2719_s8 = inlined_call_operand.vmem [shape: f32[32,32], index: 8, kind: input, shape index: {}]   ;;  %s2720_s9 = inlined_call_operand.vmem [shape: f32[2,8,8,32], index: 9, kind: output, shape index: {}]  }
   0x1 LB: > { %s1611_s10 = sadd.s32 4294967295, %s1847_s30   ;;  %p1615_p0 = scmp.ge.s32.totalorder %s1847_s30, 1  ;;  %s1847_s30 = sphi %s1903_s30, %s19_s30  }
   0x2   : > { %p287_p1 = scmp.lt.s32.totalorder %s1847_s30, 3 }
   0x4   : > { %p288_p2 = pnand %p1615_p0, %p287_p1 }
   0x6   : > { %291 = sbr.rel (%p288_p2) target bundleno = 590 (0x24e), region = 56 }
   0xd   : > { %v346_v0 = vld [vmem:[%s2713_s2] sm:$0xff]  ;;  %v347_v1 = vld [vmem:[%s2713_s2 + $0x8] sm:$0xff]  ;;  %v348_v2 = vld [vmem:[%s2713_s2 + $0x10] sm:$0xff]  ;;  %v1849_v3 = vmov 0.0|0.0   ;;  %vm1850_vm0 = vmmov 0   ;;  %v1851_v6 = vmov 0.0   ;;  %v633_v51 = vlaneseq }
   0xe   : > { %1804 = vmatprep.subr.bf16.mxu0 %v1849_v3  ;;  %v1805_v4 = vpack.c.bf16 %v347_v1, %v346_v0  ;;  %v349_v5 = vld [vmem:[%s2713_s2 + $0x18] sm:$0xff]  ;;  %1723 = vmatprep.mubr.msk.f32.mxu0 %vm1850_vm0, %v1851_v6  ;;  %p323_p3 = scmp.lt.s32.totalorder %s1611_s10, 1  ;;  %v540_v8 = vld [vmem:[%s2712_s1] sm:$0xff]  ;;  %v542_v9 = vld [vmem:[%s2712_s1 + $0x10] sm:$0xff]  ;;  %v1852_v10 = vmov 0   ;;  %vm357_vm1 = vcmask 261120  }
   0xf   : > { %1822 = vmatprep.subr.bf16.mxu1 %v1849_v3  ;;  %1759 = vmatprep.mubr.msk.f32.mxu1 %vm1850_vm0, %v1851_v6  ;;  %v1808_v7 = vpack.c.bf16 %v349_v5, %v348_v2  ;;  %v541_v12 = vld [vmem:[%s2712_s1 + $0x8] sm:$0xff]  ;;  %v543_v14 = vld [vmem:[%s2712_s1 + $0x18] sm:$0xff]  ;;  %v544_v16 = vld [vmem:[%s2712_s1 + $0x20] sm:$0xff]  ;;  %vm874_vm2 = vcmask 1044480   ;;  %v634_v57 = vshrl.u32 %v633_v51, 7  ;;  %vm681_vm3 = vcmask 1046528  }
  0x10   : > { %1806 = vmatpush3.bf16.msra.mxu0 %v1805_v4  ;;  %s2761_s10 = smov (!%p323_p3, %s1611_s10), 1  ;;  %1824 = vmatpush3.bf16.msra.mxu1 %v1805_v4  ;;  %v545_v17 = vld [vmem:[%s2712_s1 + $0x28] sm:$0xff]  ;;  %v546_v19 = vld [vmem:[%s2712_s1 + $0x30] sm:$0xff]  ;;  %v547_v20 = vld [vmem:[%s2712_s1 + $0x38] sm:$0xff]  ;;  %vm745_vm4 = vcmask 1045504   ;;  %vm942_vm5 = vcmask 1043456  }
  0x11   : > { %1807 = vmatprep.subr.bf16.mxu0 %v1849_v3  ;;  %1823 = vmatprep.subr.bf16.mxu1 %v1849_v3  ;;  %s1826_s23 = smul.u32 104, %s2761_s10  ;;  %v548_v22 = vld [vmem:[%s2712_s1 + $0x40] sm:$0xff]  ;;  %v549_v23 = vld [vmem:[%s2712_s1 + $0x48] sm:$0xff]  ;;  %v550_v25 = vld [vmem:[%s2712_s1 + $0x50] sm:$0xff]  ;;  %v659_v63 = vsub.s32 1, %v634_v57  ;;  %v723_v3 = vsub.s32 2, %v634_v57 }
  0x12   : > { %1839 = vset.pattern.permute.xlu0 %v1852_v10  ;;  %1840 = vset.pattern.permute.xlu1 %v1852_v10  ;;  %v551_v26 = vld [vmem:[%s2712_s1 + $0x58] sm:$0xff]  ;;  %v552_v28 = vld [vmem:[%s2712_s1 + $0x60] sm:$0xf]  ;;  %v1209_v36 = vld [vmem:[%s2717_s6 + $0x8] sm:$0xff]  ;;  %vm1077_vm6 = vcmask 1042432   ;;  %vm1145_vm7 = vcmask 1041408  }
  0x13   : > { %555 = vperm.xlu0 %1839, %v540_v8   ;;  %565 = vperm.xlu1 %1840, %v542_v9   ;;  %s1939_s26 = scalar_lea.vmem %s2711_s0, %s1826_s23  ;;  %v1208_v35 = vld [vmem:[%s2717_s6] sm:$0xff]  ;;  %v1205_v39 = vld [vmem:[%s2719_s8 + $0x8] sm:$0xff]  ;;  %vm1217_vm8 = vcmask 130048   ;;  %s1671_s15 = sshll.u32 %s2761_s10, 6  ;;  %vm1531_vm9 = vcmask 261122   ;;  %vm1538_vm10 = vcmask 257024  }
  0x14   : > { %1809 = vmatpush3.bf16.msra.mxu0 %v1808_v7  ;;  %1825 = vmatpush3.bf16.msra.mxu1 %v1808_v7  ;;  %v333_v11 = vld [vmem:[%s1939_s26] sm:$0xff]  ;;  %v1954_v15 = vld [vmem:[%s1939_s26 + $0x8] sm:$0xff]  ;;  %v1967_v18 = vld [vmem:[%s1939_s26 + $0x10] sm:$0xff]  ;;  %v1810_v37 = vpack.c.bf16 %v1209_v36, %v1208_v35  ;;  %v635_v7 = vsub.s32 0, %v634_v57  ;;  %vm1541_vm11 = vcmask 261126   ;;  %vm1533_vm12 = vcmask 254976  }
  0x15   : > { %v345_v13 = vld [vmem:[%s1939_s26 + $0x60] sm:$0xf]  ;;  %v1980_v21 = vld [vmem:[%s1939_s26 + $0x18] sm:$0xff]  ;;  %v338_v27 = vld [vmem:[%s1939_s26 + $0x28] sm:$0xff]  ;;  %v1373_v44 = vrot.slane %v1954_v15, 3  ;;  %v1374_v45 = vrot.slane %v1967_v18, 3 }
  0x16   : > { %v337_v24 = vld [vmem:[%s1939_s26 + $0x20] sm:$0xff]  ;;  %v339_v29 = vld [vmem:[%s1939_s26 + $0x30] sm:$0xff]  ;;  %v340_v30 = vld [vmem:[%s1939_s26 + $0x38] sm:$0xff]  ;;  %1811 = vmatprep.subr.bf16.mxu1 %v1810_v37  ;;  %v1376_v47 = vrot.slane %v1980_v21, 3  ;;  %v1380_v50 = vrot.slane %v338_v27, 3  ;;  %vm1536_vm13 = vcmask 261124  }
  0x17   : > { %1724 = vmatmul.mubr.msk.f32.vlgmr.msra.gmra.mrb[0].mxu0 %vm357_vm1, %v333_v11  ;;  %1760 = vmatmul.mubr.msk.f32.vlgmr.msra.gmra.mrb[0].mxu1 %vm357_vm1, %v345_v13  ;;  %v341_v31 = vld [vmem:[%s1939_s26 + $0x40] sm:$0xff]  ;;  %v2022_v32 = vld [vmem:[%s1939_s26 + $0x48] sm:$0xff]  ;;  %v2029_v33 = vld [vmem:[%s1939_s26 + $0x50] sm:$0xff]  ;;  %v1378_v48 = vrot.slane %v337_v24, 3  ;;  %v2065_v49 = vsel %vm874_vm2, %v1373_v44, %v1374_v45  ;;  %v1382_v54 = vrot.slane %v339_v29, 3  ;;  %v1384_v56 = vrot.slane %v340_v30, 3 }
  0x18   : > { %1726 = vmatprep.mubr.msk.f32.mxu0 %vm1850_vm0, %v1851_v6  ;;  %560 = vperm.xlu0 %1839, %v541_v12   ;;  %v2036_v34 = vld [vmem:[%s1939_s26 + $0x58] sm:$0xff]  ;;  %v1204_v38 = vld [vmem:[%s2719_s8] sm:$0xff]  ;;  %v2068_v52 = vsel %vm874_vm2, %v1374_v45, %v1376_v47  ;;  %v1386_v59 = vrot.slane %v341_v31, 3  ;;  %v1388_v62 = vrot.slane %v2022_v32, 3  ;;  %v1390_v4 = vrot.slane %v2029_v33, 3  ;;  %v1206_v44 = vld [vmem:[%s2719_s8 + $0x10] sm:$0xff]  ;;  %s2678_s26 = scalar_lea.vmem %s2720_s9, %s1671_s15 }
  0x19   : > { %570 = vperm.xlu1 %1840, %v543_v14   ;;  %1813 = vmatpush3.bf16.msra.mxu1 %v1810_v37  ;;  %v2052_v40 = vpack.c.bf16 %v1205_v39, %v1204_v38  ;;  %v2073_v55 = vsel %vm874_vm2, %v1376_v47, %v1378_v48  ;;  %v2076_v58 = vsel %vm874_vm2, %v1378_v48, %v1380_v50  ;;  %v2090_v1 = vld [vmem:[%s2714_s3] ss:$0 sm:$0xff]  ;;  %v1392_v5 = vrot.slane %v2036_v34, 3  ;;  %v1207_v45 = vld [vmem:[%s2719_s8 + $0x18] sm:$0xff]  ;;  %v2139_v48 = vld [vmem:[%s2715_s4 + $0x8] ss:$0 sm:$0xff] }
  0x1a   : > { %v2081_v61 = vsel %vm874_vm2, %v1380_v50, %v1382_v54  ;;  %v2085_v0 = vsel %vm874_vm2, %v1382_v54, %v1384_v56  ;;  %v631_v2 = vld [vmem:[%s2715_s4] sm:$0xff]  ;;  %v2098_v9 = vsel %vm874_vm2, %v1384_v56, %v1386_v59  ;;  %vm1543_vm14 = vcmask 259072  }
  0x1b   : > { %1727 = vmatmul.mubr.msk.f32.gmra.mrb[2].mxu0 %vm357_vm1, %v1954_v15  ;;  %1815 = vmatprep.subr.bf16.mxu1 %v2052_v40  ;;  %2729 = vst [vmem:[#allocation2_spill] sm:$0xff] %v2085_v0  ;;  %2730 = vst [vmem:[#allocation3_spill] sm:$0xff] %v2098_v9  ;;  %v2101_v11 = vrot.slane %v631_v2, %v659_v63  ;;  %v2105_v15 = vsel %vm874_vm2, %v1386_v59, %v1388_v62 }
  0x1c   : > { %1729 = vmatprep.mubr.msk.f32.mxu0 %vm1850_vm0, %v1851_v6  ;;  %575 = vperm.xlu0 %1839, %v544_v16   ;;  %2731 = vst [vmem:[#allocation4_spill] sm:$0xff] %v2105_v15  ;;  %v787_v16 = vsub.s32 3, %v634_v57 }
  0x1d   : > { %580 = vperm.xlu1 %1840, %v545_v17   ;;  %v850_v17 = vsub.s32 4, %v634_v57 }
  0x1f   : > { %1730 = vmatmul.mubr.msk.f32.gmra.mrb[4].mxu0 %vm357_vm1, %v1967_v18  ;;  %v986_v18 = vsub.s32 6, %v634_v57 }
  0x20   : > { %1732 = vmatprep.mubr.msk.f32.mxu0 %vm1850_vm0, %v1851_v6  ;;  %585 = vperm.xlu0 %1839, %v546_v19   ;;  %v1053_v19 = vsub.s32 7, %v634_v57 }
  0x21   : > { %590 = vperm.xlu1 %1840, %v547_v20   ;;  %v2122_v35 = vrot.slane %v631_v2, %v986_v18 }
  0x22   : > { %v2124_v36 = vrot.slane %v631_v2, %v1053_v19 }
  0x23   : > { %1733 = vmatmul.mubr.msk.f32.gmra.mrb[6].mxu0 %vm357_vm1, %v1980_v21 }
  0x24   : > { %1735 = vmatprep.mubr.msk.f32.mxu0 %vm1850_vm0, %v1851_v6  ;;  %595 = vperm.xlu0 %1839, %v548_v22   ;;  %v2107_v22 = vrot.slane %v631_v2, %v723_v3 }
  0x25   : > { %600 = vperm.xlu1 %1840, %v549_v23   ;;  %v918_v23 = vsub.s32 5, %v634_v57 }
  0x27   : > { %1736 = vmatmul.mubr.msk.f32.gmra.mrb[8].mxu0 %vm357_vm1, %v337_v24 }
  0x28   : > { %1738 = vmatprep.mubr.msk.f32.mxu0 %vm1850_vm0, %v1851_v6  ;;  %605 = vperm.xlu0 %1839, %v550_v25   ;;  %v2109_v25 = vrot.slane %v631_v2, %v635_v7 }
  0x29   : > { %610 = vperm.xlu1 %1840, %v551_v26  }
  0x2b   : > { %1739 = vmatmul.mubr.msk.f32.gmra.mrb[10].mxu0 %vm357_vm1, %v338_v27  ;;  %v2112_v27 = vsel %vm874_vm2, %v1388_v62, %v1390_v4 }
  0x2c   : > { %1741 = vmatprep.mubr.msk.f32.mxu0 %vm1850_vm0, %v1851_v6  ;;  %615 = vperm.xlu0 %1839, %v552_v28   ;;  %2732 = vst [vmem:[#allocation5_spill] sm:$0xff] %v2112_v27 }
  0x2f   : > { %1742 = vmatmul.mubr.msk.f32.gmra.mrb[12].mxu0 %vm357_vm1, %v339_v29 }
  0x30   : > { %1744 = vmatprep.mubr.msk.f32.mxu0 %vm1850_vm0, %v1851_v6 }
  0x33   : > { %1745 = vmatmul.mubr.msk.f32.gmra.mrb[14].mxu0 %vm357_vm1, %v340_v30 }
  0x34   : > { %1747 = vmatprep.mubr.msk.f32.mxu0 %vm1850_vm0, %v1851_v6 }
  0x37   : > { %1748 = vmatmul.mubr.msk.f32.gmra.mrb[16].mxu0 %vm357_vm1, %v341_v31 }
  0x38   : > { %1750 = vmatprep.mubr.msk.f32.mxu0 %vm1850_vm0, %v1851_v6 }
  0x3b   : > { %1751 = vmatmul.mubr.msk.f32.gmra.mrb[18].mxu0 %vm357_vm1, %v2022_v32  ;;  %v2116_v32 = vsel %vm874_vm2, %v1390_v4, %v1392_v5  ;;  %v2153_v4 = vpack.c.bf16 %v1207_v45, %v1206_v44 }
  0x3c   : > { %1753 = vmatprep.mubr.msk.f32.mxu0 %vm1850_vm0, %v1851_v6  ;;  %2733 = vst [vmem:[#allocation6_spill] sm:$0xff] %v2116_v32 }
  0x3f   : > { %1754 = vmatmul.mubr.msk.f32.gmra.mrb[20].mxu0 %vm357_vm1, %v2029_v33  ;;  %v2118_v33 = vrot.slane %v631_v2, %v787_v16 }
  0x40   : > { %1756 = vmatprep.mubr.msk.f32.mxu0 %vm1850_vm0, %v1851_v6 }
  0x43   : > { %1757 = vmatmul.mubr.msk.f32.gmra.mrb[22].mxu0 %vm357_vm1, %v2036_v34  ;;  %v2120_v34 = vrot.slane %v631_v2, %v850_v17 }
  0x92   : > { %v556_v41 = vpop.permute.xlu0 %555  ;;  %v566_v3 = vpop.permute.xlu1 %565 }
  0x97   : > { %v2055_v42 = vpop.permute.xlu0 %560 }
  0x9b   : > { %v2057_v43 = vpop.permute.xlu0 %575 }
  0x9f   : > { %v2061_v46 = vpop.permute.xlu0 %585 }
  0xa3   : > { %v2070_v53 = vpop.permute.xlu0 %595 }
  0xa7   : > { %v2078_v60 = vpop.permute.xlu0 %605 }
  0xab   : > { %v616_v20 = vpop.permute.xlu0 %615 }
  0xea   : > { %v463_v6 = vpop.f32.mrb[0].mxu0  ;;  %v523_v8 = vpop.f32.mrb[0].mxu1 }
  0xeb   : > { %v464_v10 = vadd.f32 %v2090_v1, %v463_v6  ;;  %v1725_v12 = vpop.f32.mrb[1].mxu0  ;;  %v524_v13 = vadd.f32 %v2090_v1, %v523_v8  ;;  %v1761_v14 = vpop.f32.mrb[1].mxu1 }
  0xed   : > { %v527_v21 = vmax.f32 %v464_v10, 0.0  ;;  %v539_v24 = vmax.f32 %v524_v13, 0.0 }
  0xee   : > { %v468_v26 = vpop.f32.mrb[2].mxu0 }
  0xef   : > { %v618_v28 = vmul.f32 %v556_v41, %v527_v21  ;;  %v469_v29 = vadd.f32 %v2090_v1, %v468_v26  ;;  %v1728_v30 = vpop.f32.mrb[3].mxu0  ;;  %v630_v31 = vmul.f32 %v616_v20, %v539_v24  ;;  %v2128_v41 = vrot.slane %v631_v2, %v918_v23 }
  0xf1   : > { %v661_v37 = vmul.f32 %v2101_v11, %v618_v28  ;;  %v725_v38 = vmul.f32 %v2107_v22, %v618_v28  ;;  %v528_v39 = vmax.f32 %v469_v29, 0.0  ;;  %v2142_v50 = vmul.f32 %v2122_v35, %v630_v31 }
  0xf2   : > { %v473_v47 = vpop.f32.mrb[4].mxu0  ;;  %v2145_v51 = vmul.f32 %v2124_v36, %v630_v31  ;;  %v2150_v59 = vmul.f32 %v2139_v48, %v630_v31  ;;  %v637_v62 = vmul.f32 %v2109_v25, %v618_v28 }
  0xf3   : > { %v619_v54 = vmul.f32 %v2055_v42, %v528_v39  ;;  %v474_v56 = vadd.f32 %v2090_v1, %v473_v47  ;;  %v1731_v57 = vpop.f32.mrb[5].mxu0  ;;  %v682_v63 = vrot.slane %v661_v37, 1  ;;  %v746_v2 = vrot.slane %v725_v38, 2  ;;  %v571_v37 = vpop.permute.xlu1 %570 }
  0xf5   : > { %v2156_v5 = vmul.f32 %v2101_v11, %v619_v54  ;;  %v2159_v6 = vmul.f32 %v2107_v22, %v619_v54  ;;  %v789_v42 = vmul.f32 %v2118_v33, %v619_v54  ;;  %v852_v8 = vmul.f32 %v2120_v34, %v619_v54 }
  0xf6   : > { %v920_v10 = vmul.f32 %v2128_v41, %v619_v54  ;;  %v529_v12 = vmax.f32 %v474_v56, 0.0  ;;  %v478_v13 = vpop.f32.mrb[6].mxu0  ;;  %v2171_v21 = vmul.f32 %v2109_v25, %v619_v54 }
  0xf7   : > { %v683_v16 = vrot.slane %v2156_v5, 1  ;;  %v747_v17 = vrot.slane %v2159_v6, 2  ;;  %v479_v18 = vadd.f32 %v2090_v1, %v478_v13  ;;  %v1734_v19 = vpop.f32.mrb[7].mxu0  ;;  %v809_v23 = vrot.slane %v789_v42, 2 }
  0xf8   : > { %v875_v24 = vrot.slane %v852_v8, 3  ;;  %v2173_v26 = vmul.f32 %v566_v3, %v529_v12  ;;  %v943_v31 = vrot.slane %v920_v10, 4 }
  0xf9   : > { %v530_v28 = vmax.f32 %v479_v18, 0.0  ;;  %v684_v29 = vsel %vm681_vm3, %v682_v63, %v683_v16  ;;  %v748_v30 = vsel %vm745_vm4, %v746_v2, %v747_v17 }
  0xfa   : > { %v483_v38 = vpop.f32.mrb[8].mxu0  ;;  %v711_v39 = vadd.f32 %v684_v29, %v637_v62  ;;  %v2183_v44 = vmul.f32 %v2118_v33, %v2173_v26  ;;  %v2187_v45 = vmul.f32 %v2120_v34, %v2173_v26  ;;  %v2191_v47 = vmul.f32 %v2128_v41, %v2173_v26 }
  0xfb   : > { %v2193_v54 = vmul.f32 %v571_v37, %v530_v28  ;;  %v484_v56 = vadd.f32 %v2090_v1, %v483_v38  ;;  %v1737_v57 = vpop.f32.mrb[9].mxu0  ;;  %v988_v62 = vmul.f32 %v2122_v35, %v2173_v26  ;;  %v1055_v63 = vmul.f32 %v2124_v36, %v2173_v26 }
  0xfc   : > { %v775_v2 = vadd.f32 %v748_v30, %v711_v39  ;;  %v810_v3 = vrot.slane %v2183_v44, 2  ;;  %v876_v42 = vrot.slane %v2187_v45, 3  ;;  %v944_v8 = vrot.slane %v2191_v47, 4 }
  0xfd   : > { %v531_v10 = vmax.f32 %v484_v56, 0.0  ;;  %v2205_v12 = vmul.f32 %v2122_v35, %v2193_v54  ;;  %v1010_v13 = vrot.slane %v988_v62, 4  ;;  %v2209_v18 = vmul.f32 %v2124_v36, %v2193_v54 }
  0xfe   : > { %v488_v19 = vpop.f32.mrb[10].mxu0  ;;  %v811_v28 = vsel %vm745_vm4, %v809_v23, %v810_v3  ;;  %v877_v29 = vsel %vm874_vm2, %v875_v24, %v876_v42  ;;  %v945_v30 = vsel %vm942_vm5, %v943_v31, %v944_v8  ;;  %v1078_v37 = vrot.slane %v1055_v63, 5 }
  0xff   : > { %v2217_v38 = vmul.f32 %v2057_v43, %v531_v10  ;;  %v489_v39 = vadd.f32 %v2090_v1, %v488_v19  ;;  %v1740_v44 = vpop.f32.mrb[11].mxu0  ;;  %v838_v45 = vadd.f32 %v811_v28, %v775_v2  ;;  %v1011_v56 = vrot.slane %v2205_v12, 4  ;;  %v581_v10 = vpop.permute.xlu1 %580 }
 0x100   : > { %v1079_v57 = vrot.slane %v2209_v18, 5  ;;  %v1123_v23 = vmul.f32 %v2139_v48, %v2173_v26  ;;  %v2226_v24 = vmul.f32 %v2139_v48, %v2193_v54  ;;  %v2230_v31 = vmul.f32 %v2101_v11, %v2173_v26 }
 0x101   : > { %v532_v43 = vmax.f32 %v489_v39, 0.0  ;;  %v906_v62 = vadd.f32 %v877_v29, %v838_v45  ;;  %v1012_v63 = vsel %vm942_vm5, %v1010_v13, %v1011_v56  ;;  %v2235_v2 = vmul.f32 %v2107_v22, %v2173_v26 }
 0x102   : > { %v493_v12 = vpop.f32.mrb[12].mxu0  ;;  %v1080_v19 = vsel %vm1077_vm6, %v1078_v37, %v1079_v57  ;;  %v1146_v28 = vrot.slane %v1123_v23, 6  ;;  %v1147_v44 = vrot.slane %v2226_v24, 6  ;;  %v2721_v20 = vrot.slane %v2230_v31, 1 }
 0x103   : > { %v2242_v39 = vmul.f32 %v581_v10, %v532_v43  ;;  %v494_v13 = vadd.f32 %v2090_v1, %v493_v12  ;;  %v1743_v29 = vpop.f32.mrb[13].mxu0  ;;  %v974_v45 = vadd.f32 %v945_v30, %v906_v62  ;;  %v749_v14 = vrot.slane %v2235_v2, 2 }
 0x104   : > { %v1148_v7 = vsel %vm1145_vm7, %v1146_v28, %v1147_v44  ;;  %v686_v37 = vsel %vm681_vm3, %v683_v16, %v2721_v20  ;;  %v2254_v23 = vmul.f32 %v2118_v33, %v2193_v54  ;;  %v2258_v24 = vmul.f32 %v2120_v34, %v2193_v54  ;;  %v2281_v29 = vld [vmem:[%s2716_s5] ss:$0 sm:$0xff] }
 0x105   : > { %v533_v43 = vmax.f32 %v494_v13, 0.0  ;;  %v1041_v30 = vadd.f32 %v1012_v63, %v974_v45  ;;  %v712_v62 = vadd.f32 %v686_v37, %v2171_v21  ;;  %v750_v2 = vsel %vm745_vm4, %v747_v17, %v749_v14 }
 0x106   : > { %v498_v10 = vpop.f32.mrb[14].mxu0  ;;  %v812_v5 = vrot.slane %v2254_v23, 2  ;;  %v878_v16 = vrot.slane %v2258_v24, 3  ;;  %v2268_v12 = vmul.f32 %v2128_v41, %v2193_v54  ;;  %v2272_v28 = vmul.f32 %v2122_v35, %v2217_v38 }
 0x107   : > { %v2275_v63 = vmul.f32 %v2061_v46, %v533_v43  ;;  %v499_v6 = vadd.f32 %v2090_v1, %v498_v10  ;;  %v1746_v21 = vpop.f32.mrb[15].mxu0  ;;  %v1109_v17 = vadd.f32 %v1080_v19, %v1041_v30  ;;  %v776_v13 = vadd.f32 %v750_v2, %v712_v62  ;;  %v591_v30 = vpop.permute.xlu1 %590 }
 0x108   : > { %v813_v45 = vsel %vm745_vm4, %v810_v3, %v812_v5  ;;  %v879_v37 = vsel %vm874_vm2, %v876_v42, %v878_v16  ;;  %v946_v23 = vrot.slane %v2268_v12, 4  ;;  %v1013_v24 = vrot.slane %v2272_v28, 4 }
 0x109   : > { %v534_v46 = vmax.f32 %v499_v6, 0.0  ;;  %v1177_v43 = vadd.f32 %v1148_v7, %v1109_v17  ;;  %v839_v20 = vadd.f32 %v813_v45, %v776_v13  ;;  %v1057_v19 = vmul.f32 %v2124_v36, %v2217_v38 }
 0x10a   : > { %v503_v62 = vpop.f32.mrb[16].mxu0  ;;  %v947_v2 = vsel %vm942_vm5, %v944_v8, %v946_v23  ;;  %v1014_v3 = vsel %vm942_vm5, %v1011_v56, %v1013_v24  ;;  %v2297_v42 = vmul.f32 %v2139_v48, %v2217_v38  ;;  %v639_v7 = vmul.f32 %v2109_v25, %v2173_v26 }
 0x10b   : > { %v2301_v10 = vmul.f32 %v591_v30, %v534_v46  ;;  %v504_v12 = vadd.f32 %v2090_v1, %v503_v62  ;;  %v1749_v6 = vpop.f32.mrb[17].mxu0  ;;  %v1194_v47 = vadd.f32 %v2281_v29, %v1177_v43  ;;  %v907_v21 = vadd.f32 %v879_v37, %v839_v20 }
 0x10c   : > { %v1081_v8 = vrot.slane %v1057_v19, 5  ;;  %v1149_v17 = vrot.slane %v2297_v42, 6  ;;  %v2308_v56 = vmul.f32 %v2101_v11, %v2193_v54  ;;  %v2312_v13 = vmul.f32 %v2107_v22, %v2193_v54 }
 0x10d   : > { %v535_v26 = vmax.f32 %v504_v12, 0.0  ;;  %1766 = vmatprep.mubr.msk.f32.mxu1 %vm1217_vm8, %v1194_v47  ;;  %v975_v45 = vadd.f32 %v947_v2, %v907_v21  ;;  %v2317_v46 = vmul.f32 %v2118_v33, %v2217_v38  ;;  %v2321_v20 = vmul.f32 %v2120_v34, %v2217_v38 }
 0x10e   : > { %v508_v37 = vpop.f32.mrb[18].mxu0  ;;  %v1082_v43 = vsel %vm1077_vm6, %v1079_v57, %v1081_v8  ;;  %v1150_v19 = vsel %vm1145_vm7, %v1147_v44, %v1149_v17  ;;  %v687_v30 = vrot.slane %v2308_v56, 1  ;;  %v2723_v62 = vrot.slane %v2312_v13, 2 }
 0x10f   : > { %v2330_v2 = vmul.f32 %v2070_v53, %v535_v26  ;;  %v509_v42 = vadd.f32 %v2090_v1, %v508_v37  ;;  %v1752_v12 = vpop.f32.mrb[19].mxu0  ;;  %v1042_v6 = vadd.f32 %v1014_v3, %v975_v45  ;;  %v814_v47 = vrot.slane %v2317_v46, 2  ;;  %v601_v45 = vpop.permute.xlu1 %600 }
 0x110   : > { %v2734_v21 = vrot.slane %v2230_v31, 1  ;;  %v752_v57 = vsel %vm745_vm4, %v749_v14, %v2723_v62  ;;  %v2722_v44 = vrot.slane %v2321_v20, 3  ;;  %v2343_v53 = vmul.f32 %v2128_v41, %v2217_v38 }
 0x111   : > { %v536_v56 = vmax.f32 %v509_v42, 0.0  ;;  %v1110_v26 = vadd.f32 %v1082_v43, %v1042_v6  ;;  %v815_v3 = vsel %vm745_vm4, %v812_v5, %v814_v47  ;;  %v2352_v14 = vmul.f32 %v2122_v35, %v2242_v39 }
 0x112   : > { %v688_v18 = vsel %vm681_vm3, %v2734_v21, %v687_v30  ;;  %v513_v46 = vpop.f32.mrb[20].mxu0  ;;  %v881_v31 = vsel %vm874_vm2, %v878_v16, %v2722_v44  ;;  %v2727_v12 = vrot.slane %v2343_v53, 4  ;;  %v2356_v21 = vmul.f32 %v2124_v36, %v2242_v39 }
 0x113   : > { %v713_v37 = vadd.f32 %v688_v18, %v639_v7  ;;  %v2358_v43 = vmul.f32 %v601_v45, %v536_v56  ;;  %v1178_v7 = vadd.f32 %v1150_v19, %v1110_v26  ;;  %v514_v5 = vadd.f32 %v2090_v1, %v513_v46  ;;  %v1755_v42 = vpop.f32.mrb[21].mxu0 }
 0x114   : > { %v949_v16 = vsel %vm942_vm5, %v946_v23, %v2727_v12  ;;  %v2726_v18 = vrot.slane %v2352_v14, 4  ;;  %v2725_v44 = vrot.slane %v2356_v21, 5  ;;  %v2368_v62 = vmul.f32 %v2139_v48, %v2242_v39 }
 0x115   : > { %v777_v6 = vadd.f32 %v752_v57, %v713_v37  ;;  %v1195_v56 = vadd.f32 %v2281_v29, %v1178_v7  ;;  %v537_v45 = vmax.f32 %v514_v5, 0.0  ;;  %v640_v26 = vmul.f32 %v2109_v25, %v2193_v54 }
 0x116   : > { %v1016_v23 = vsel %vm942_vm5, %v1013_v24, %v2726_v18  ;;  %v1084_v57 = vsel %vm1077_vm6, %v1081_v8, %v2725_v44  ;;  %v2724_v37 = vrot.slane %v2368_v62, 6  ;;  %v518_v46 = vpop.f32.mrb[22].mxu0  ;;  %v2384_v7 = vmul.f32 %v2101_v11, %v2217_v38 }
 0x117   : > { %v840_v19 = vadd.f32 %v815_v3, %v777_v6  ;;  %1767 = vmatmul.mubr.msk.f32.vlgmr.msra.gmra.mrb[2].mxu1 %vm1217_vm8, %v1195_v56  ;;  %v2388_v54 = vmul.f32 %v2078_v60, %v537_v45  ;;  %v519_v28 = vadd.f32 %v2090_v1, %v518_v46  ;;  %v1758_v24 = vpop.f32.mrb[23].mxu0  ;;  %v2393_v5 = vmul.f32 %v2107_v22, %v2217_v38 }
 0x118   : > { %v1152_v8 = vsel %vm1145_vm7, %v1149_v17, %v2724_v37  ;;  %v2728_v42 = vrot.slane %v2384_v7, 1  ;;  %v2401_v6 = vmul.f32 %v2118_v33, %v2242_v39  ;;  %v2405_v60 = vmul.f32 %v2120_v34, %v2242_v39  ;;  %1817 = vmatpush3.bf16.msra.mxu1 %v2052_v40  ;;  %v611_v24 = vpop.permute.xlu1 %610 }
 0x119   : > { %v908_v3 = vadd.f32 %v881_v31, %v840_v19  ;;  %v2410_v1 = vmul.f32 %v2118_v33, %v2388_v54  ;;  %v2414_v31 = vmul.f32 %v2120_v34, %v2388_v54  ;;  %v2418_v17 = vmul.f32 %v2128_v41, %v2388_v54  ;;  %1819 = vmatprep.subr.bf16.mxu1 %v2153_v4 }
 0x11a   : > { %v538_v45 = vmax.f32 %v519_v28, 0.0  ;;  %v690_v40 = vsel %vm681_vm3, %v687_v30, %v2728_v42  ;;  %v753_v19 = vrot.slane %v2393_v5, 2  ;;  %v816_v46 = vrot.slane %v2401_v6, 2 }
 0x11b   : > { %v976_v56 = vadd.f32 %v949_v16, %v908_v3  ;;  %v714_v12 = vadd.f32 %v690_v40, %v640_v26  ;;  %v2735_v16 = vrot.slane %v2312_v13, 2  ;;  %v882_v30 = vrot.slane %v2405_v60, 3 }
 0x11c   : > { %v2428_v32 = vmul.f32 %v611_v24, %v538_v45  ;;  %v817_v28 = vsel %vm745_vm4, %v814_v47, %v816_v46  ;;  %1821 = vmatpush3.bf16.msra.mxu1 %v2153_v4  ;;  %v924_v37 = vmul.f32 %v2128_v41, %v2242_v39  ;;  %v992_v26 = vmul.f32 %v2122_v35, %v2275_v63 }
 0x11d   : > { %v1043_v18 = vadd.f32 %v1016_v23, %v976_v56  ;;  %v754_v3 = vsel %vm745_vm4, %v2735_v16, %v753_v19  ;;  %v2737_v42 = vrot.slane %v2343_v53, 4  ;;  %v2738_v53 = vrot.slane %v2352_v14, 4 }
 0x11e   : > { %v778_v6 = vadd.f32 %v754_v3, %v714_v12  ;;  %v2442_v23 = vmul.f32 %v2120_v34, %v2428_v32  ;;  %v2446_v13 = vmul.f32 %v2128_v41, %v2428_v32  ;;  %v2450_v47 = vmul.f32 %v2122_v35, %v2428_v32 }
 0x11f   : > { %v1111_v5 = vadd.f32 %v1084_v57, %v1043_v18  ;;  %v2454_v4 = vmul.f32 %v2124_v36, %v2428_v32  ;;  %v2736_v57 = vrot.slane %v2321_v20, 3  ;;  %v950_v56 = vrot.slane %v924_v37, 4 }
 0x120   : > { %v841_v18 = vadd.f32 %v817_v28, %v778_v6  ;;  %v1017_v28 = vrot.slane %v992_v26, 4  ;;  %v1059_v20 = vmul.f32 %v2124_v36, %v2275_v63  ;;  %v1127_v37 = vmul.f32 %v2139_v48, %v2275_v63 }
 0x121   : > { %v1179_v12 = vadd.f32 %v1152_v8, %v1111_v5  ;;  %v883_v60 = vsel %vm874_vm2, %v2736_v57, %v882_v30  ;;  %v951_v8 = vsel %vm942_vm5, %v2737_v42, %v950_v56  ;;  %v641_v5 = vmul.f32 %v2109_v25, %v2217_v38 }
 0x122   : > { %v909_v44 = vadd.f32 %v883_v60, %v841_v18  ;;  %v666_v6 = vmul.f32 %v2101_v11, %v2242_v39  ;;  %v1018_v42 = vsel %vm942_vm5, %v2738_v53, %v1017_v28  ;;  %v730_v26 = vmul.f32 %v2107_v22, %v2242_v39 }
 0x123   : > { %v1196_v3 = vadd.f32 %v2281_v29, %v1179_v12  ;;  %v794_v18 = vmul.f32 %v2118_v33, %v2275_v63  ;;  %v1085_v57 = vrot.slane %v1059_v20, 5  ;;  %v1153_v60 = vrot.slane %v1127_v37, 6 }
 0x124   : > { %v977_v12 = vadd.f32 %v951_v8, %v909_v44  ;;  %v691_v40 = vrot.slane %v666_v6, 1  ;;  %v857_v38 = vmul.f32 %v2120_v34, %v2275_v63  ;;  %v755_v16 = vrot.slane %v730_v26, 2 }
 0x125   : > { %1769 = vmatprep.mubr.msk.f32.mxu1 %vm1217_vm8, %v1196_v3  ;;  %v818_v3 = vrot.slane %v794_v18, 2  ;;  %v925_v44 = vmul.f32 %v2128_v41, %v2275_v63  ;;  %v2739_v14 = vrot.slane %v2356_v21, 5  ;;  %v2740_v53 = vrot.slane %v2368_v62, 6 }
 0x126   : > { %v1044_v45 = vadd.f32 %v1018_v42, %v977_v12  ;;  %v2741_v20 = vrot.slane %v2384_v7, 1  ;;  %v884_v6 = vrot.slane %v857_v38, 3  ;;  %v756_v42 = vsel %vm745_vm4, %v753_v19, %v755_v16 }
 0x127   : > { %v1086_v8 = vsel %vm1077_vm6, %v2739_v14, %v1085_v57  ;;  %v1154_v24 = vsel %vm1145_vm7, %v2740_v53, %v1153_v60  ;;  %v819_v26 = vsel %vm745_vm4, %v816_v46, %v818_v3  ;;  %v952_v21 = vrot.slane %v925_v44, 4 }
 0x128   : > { %v692_v37 = vsel %vm681_vm3, %v2741_v20, %v691_v40  ;;  %v1112_v27 = vadd.f32 %v1086_v8, %v1044_v45  ;;  %v885_v18 = vsel %vm874_vm2, %v882_v30, %v884_v6  ;;  %v993_v14 = vmul.f32 %v2122_v35, %v2301_v10 }
 0x129   : > { %v715_v12 = vadd.f32 %v692_v37, %v641_v5  ;;  %v1060_v62 = vmul.f32 %v2124_v36, %v2301_v10  ;;  %v1128_v38 = vmul.f32 %v2139_v48, %v2301_v10  ;;  %v642_v45 = vmul.f32 %v2109_v25, %v2242_v39 }
 0x12a   : > { %v1180_v53 = vadd.f32 %v1154_v24, %v1112_v27  ;;  %v953_v19 = vsel %vm942_vm5, %v950_v56, %v952_v21  ;;  %v1019_v46 = vrot.slane %v993_v14, 4  ;;  %v667_v30 = vmul.f32 %v2101_v11, %v2275_v63 }
 0x12b   : > { %v779_v7 = vadd.f32 %v756_v42, %v715_v12  ;;  %v1087_v5 = vrot.slane %v1060_v62, 5  ;;  %v1155_v20 = vrot.slane %v1128_v38, 6  ;;  %v731_v27 = vmul.f32 %v2107_v22, %v2275_v63 }
 0x12c   : > { %v1197_v44 = vadd.f32 %v2281_v29, %v1180_v53  ;;  %v1020_v24 = vsel %vm942_vm5, %v1017_v28, %v1019_v46  ;;  %v693_v12 = vrot.slane %v667_v30, 1  ;;  %v795_v39 = vmul.f32 %v2118_v33, %v2301_v10 }
 0x12d   : > { %v842_v8 = vadd.f32 %v819_v26, %v779_v7  ;;  %v1088_v37 = vsel %vm1077_vm6, %v1085_v57, %v1087_v5  ;;  %v1156_v42 = vsel %vm1145_vm7, %v1153_v60, %v1155_v20  ;;  %v757_v14 = vrot.slane %v731_v27, 2 }
 0x12e   : > { %1770 = vmatmul.mubr.msk.f32.gmra.mrb[4].mxu1 %vm1217_vm8, %v1197_v44  ;;  %v858_v26 = vmul.f32 %v2120_v34, %v2301_v10  ;;  %v694_v62 = vsel %vm681_vm3, %v691_v40, %v693_v12  ;;  %v820_v53 = vrot.slane %v795_v39, 2  ;;  %v926_v28 = vmul.f32 %v2128_v41, %v2301_v10 }
 0x12f   : > { %v910_v56 = vadd.f32 %v885_v18, %v842_v8  ;;  %v994_v57 = vmul.f32 %v2122_v35, %v2330_v2  ;;  %v716_v38 = vadd.f32 %v694_v62, %v642_v45  ;;  %v758_v30 = vsel %vm745_vm4, %v755_v16, %v757_v14 }
 0x130   : > { %v886_v18 = vrot.slane %v858_v26, 3  ;;  %v821_v60 = vsel %vm745_vm4, %v818_v3, %v820_v53  ;;  %v954_v44 = vrot.slane %v926_v28, 4  ;;  %v1061_v27 = vmul.f32 %v2124_v36, %v2330_v2 }
 0x131   : > { %v978_v7 = vadd.f32 %v953_v19, %v910_v56  ;;  %v1021_v8 = vrot.slane %v994_v57, 4  ;;  %v780_v39 = vadd.f32 %v758_v30, %v716_v38  ;;  %v1129_v9 = vmul.f32 %v2139_v48, %v2330_v2 }
 0x132   : > { %v887_v15 = vsel %vm874_vm2, %v884_v6, %v886_v18  ;;  %v955_v19 = vsel %vm942_vm5, %v952_v21, %v954_v44  ;;  %v1089_v16 = vrot.slane %v1061_v27, 5  ;;  %v643_v3 = vmul.f32 %v2109_v25, %v2275_v63 }
 0x133   : > { %v1045_v40 = vadd.f32 %v1020_v24, %v978_v7  ;;  %v1022_v45 = vsel %vm942_vm5, %v1019_v46, %v1021_v8  ;;  %v843_v26 = vadd.f32 %v821_v60, %v780_v39  ;;  %v1157_v62 = vrot.slane %v1129_v9, 6 }
 0x134   : > { %v668_v24 = vmul.f32 %v2101_v11, %v2301_v10  ;;  %v1090_v28 = vsel %vm1077_vm6, %v1087_v5, %v1089_v16  ;;  %v732_v6 = vmul.f32 %v2107_v22, %v2301_v10  ;;  %v796_v21 = vmul.f32 %v2118_v33, %v2330_v2 }
 0x135   : > { %v1113_v56 = vadd.f32 %v1088_v37, %v1045_v40  ;;  %v859_v46 = vmul.f32 %v2120_v34, %v2330_v2  ;;  %v911_v7 = vadd.f32 %v887_v15, %v843_v26  ;;  %v1158_v63 = vsel %vm1145_vm7, %v1155_v20, %v1157_v62 }
 0x136   : > { %v695_v37 = vrot.slane %v668_v24, 1  ;;  %v759_v9 = vrot.slane %v732_v6, 2  ;;  %v822_v38 = vrot.slane %v796_v21, 2  ;;  %v927_v5 = vmul.f32 %v2128_v41, %v2330_v2 }
 0x137   : > { %v1181_v57 = vadd.f32 %v1156_v42, %v1113_v56  ;;  %v888_v30 = vrot.slane %v859_v46, 3  ;;  %v979_v27 = vadd.f32 %v955_v19, %v911_v7  ;;  %v995_v39 = vmul.f32 %v2122_v35, %v2358_v43 }
 0x138   : > { %v696_v40 = vsel %vm681_vm3, %v693_v12, %v695_v37  ;;  %v760_v15 = vsel %vm745_vm4, %v757_v14, %v759_v9  ;;  %v823_v20 = vsel %vm745_vm4, %v820_v53, %v822_v38  ;;  %v956_v26 = vrot.slane %v927_v5, 4 }
 0x139   : > { %v1198_v60 = vadd.f32 %v2281_v29, %v1181_v57  ;;  %v717_v0 = vadd.f32 %v696_v40, %v643_v3  ;;  %v889_v42 = vsel %vm874_vm2, %v886_v18, %v888_v30  ;;  %v1046_v56 = vadd.f32 %v1022_v45, %v979_v27 }
 0x13a   : > { %v1023_v24 = vrot.slane %v995_v39, 4  ;;  %v1062_v19 = vmul.f32 %v2124_v36, %v2358_v43  ;;  %v1130_v12 = vmul.f32 %v2139_v48, %v2358_v43  ;;  %v644_v3 = vmul.f32 %v2109_v25, %v2301_v10 }
 0x13b   : > { %1772 = vmatprep.mubr.msk.f32.mxu1 %vm1217_vm8, %v1198_v60  ;;  %v781_v6 = vadd.f32 %v760_v15, %v717_v0  ;;  %v669_v14 = vmul.f32 %v2101_v11, %v2330_v2  ;;  %v1114_v53 = vadd.f32 %v1090_v28, %v1046_v56  ;;  %v957_v18 = vsel %vm942_vm5, %v954_v44, %v956_v26 }
 0x13c   : > { %v1024_v45 = vsel %vm942_vm5, %v1021_v8, %v1023_v24  ;;  %v1091_v21 = vrot.slane %v1062_v19, 5  ;;  %v1159_v57 = vrot.slane %v1130_v12, 6  ;;  %v733_v0 = vmul.f32 %v2107_v22, %v2330_v2 }
 0x13d   : > { %v844_v46 = vadd.f32 %v823_v20, %v781_v6  ;;  %v697_v7 = vrot.slane %v669_v14, 1  ;;  %v1182_v5 = vadd.f32 %v1158_v63, %v1114_v53  ;;  %v797_v10 = vmul.f32 %v2118_v33, %v2358_v43 }
 0x13e   : > { %v1092_v60 = vsel %vm1077_vm6, %v1089_v16, %v1091_v21  ;;  %v860_v28 = vmul.f32 %v2120_v34, %v2358_v43  ;;  %v1160_v44 = vsel %vm1145_vm7, %v1157_v62, %v1159_v57  ;;  %v761_v40 = vrot.slane %v733_v0, 2 }
 0x13f   : > { %v912_v27 = vadd.f32 %v889_v42, %v844_v46  ;;  %v698_v8 = vsel %vm681_vm3, %v695_v37, %v697_v7  ;;  %v1199_v39 = vadd.f32 %v2281_v29, %v1182_v5  ;;  %v824_v20 = vrot.slane %v797_v10, 2 }
 0x140   : > { %v718_v15 = vadd.f32 %v698_v8, %v644_v3  ;;  %v890_v56 = vrot.slane %v860_v28, 3  ;;  %v762_v16 = vsel %vm745_vm4, %v759_v9, %v761_v40  ;;  %v928_v33 = vmul.f32 %v2128_v41, %v2358_v43 }
 0x141   : > { %v980_v63 = vadd.f32 %v957_v18, %v912_v27  ;;  %v996_v34 = vmul.f32 %v2122_v35, %v2388_v54  ;;  %1773 = vmatmul.mubr.msk.f32.gmra.mrb[6].mxu1 %vm1217_vm8, %v1199_v39  ;;  %v825_v37 = vsel %vm745_vm4, %v822_v38, %v824_v20  ;;  %v1063_v19 = vmul.f32 %v2124_v36, %v2388_v54 }
 0x142   : > { %v782_v62 = vadd.f32 %v762_v16, %v718_v15  ;;  %v891_v42 = vsel %vm874_vm2, %v888_v30, %v890_v56  ;;  %v958_v12 = vrot.slane %v928_v33, 4  ;;  %v1131_v9 = vmul.f32 %v2139_v48, %v2388_v54 }
 0x143   : > { %v1047_v6 = vadd.f32 %v1024_v45, %v980_v63  ;;  %v1025_v3 = vrot.slane %v996_v34, 4  ;;  %v1093_v14 = vrot.slane %v1063_v19, 5  ;;  %v645_v35 = vmul.f32 %v2109_v25, %v2330_v2 }
 0x144   : > { %v845_v41 = vadd.f32 %v825_v37, %v782_v62  ;;  %v670_v53 = vmul.f32 %v2101_v11, %v2358_v43  ;;  %v959_v30 = vsel %vm942_vm5, %v956_v26, %v958_v12  ;;  %v1161_v36 = vrot.slane %v1131_v9, 6 }
 0x145   : > { %v1115_v38 = vadd.f32 %v1092_v60, %v1047_v6  ;;  %v1026_v18 = vsel %vm942_vm5, %v1023_v24, %v1025_v3  ;;  %v1094_v46 = vsel %vm1077_vm6, %v1091_v21, %v1093_v14  ;;  %v734_v54 = vmul.f32 %v2107_v22, %v2358_v43 }
 0x146   : > { %v913_v45 = vadd.f32 %v891_v42, %v845_v41  ;;  %v699_v0 = vrot.slane %v670_v53, 1  ;;  %v1162_v10 = vsel %vm1145_vm7, %v1159_v57, %v1161_v36  ;;  %v2742_v2 = vrot.slane %v2410_v1, 2  ;;  %v2755_v1 = vld [vmem:[#allocation2_spill] sm:$0xff] }
 0x147   : > { %v1183_v5 = vadd.f32 %v1160_v44, %v1115_v38  ;;  %v2743_v60 = vrot.slane %v2414_v31, 3  ;;  %v763_v27 = vrot.slane %v734_v54, 2  ;;  %v960_v21 = vrot.slane %v2418_v17, 4 }
 0x148   : > { %v827_v11 = vsel %vm745_vm4, %v824_v20, %v2742_v2  ;;  %v981_v24 = vadd.f32 %v959_v30, %v913_v45  ;;  %v700_v28 = vsel %vm681_vm3, %v697_v7, %v699_v0  ;;  %v2744_v44 = vrot.slane %v2450_v47, 4 }
 0x149   : > { %v893_v26 = vsel %vm874_vm2, %v890_v56, %v2743_v60  ;;  %v1200_v8 = vadd.f32 %v2281_v29, %v1183_v5  ;;  %v719_v22 = vadd.f32 %v700_v28, %v645_v35  ;;  %v2745_v39 = vrot.slane %v2454_v4, 5  ;;  %v2757_v5 = vld [vmem:[#allocation4_spill] sm:$0xff] }
 0x14a   : > { %v1028_v57 = vsel %vm942_vm5, %v1025_v3, %v2744_v44  ;;  %v1048_v20 = vadd.f32 %v1026_v18, %v981_v24  ;;  %v764_v56 = vsel %vm745_vm4, %v761_v40, %v763_v27  ;;  %v961_v63 = vsel %vm942_vm5, %v958_v12, %v960_v21  ;;  %v1635_v24 = vld [vmem:[%s2718_s7] ss:$0 sm:$0xff] }
 0x14b   : > { %v1096_v15 = vsel %vm1077_vm6, %v1093_v14, %v2745_v39  ;;  %v1132_v7 = vmul.f32 %v2139_v48, %v2428_v32  ;;  %1775 = vmatprep.mubr.msk.f32.mxu1 %vm1217_vm8, %v1200_v8  ;;  %v783_v17 = vadd.f32 %v764_v56, %v719_v22  ;;  %v646_v16 = vmul.f32 %v2109_v25, %v2358_v43 }
 0x14c   : > { %v2746_v33 = vrot.slane %v2442_v23, 3  ;;  %v2747_v34 = vmov %v2743_v60  ;;  %v2748_v37 = vrot.slane %v2446_v13, 4  ;;  %v1116_v42 = vadd.f32 %v1094_v46, %v1048_v20 }
 0x14d   : > { %v1163_v19 = vrot.slane %v1132_v7, 6  ;;  %v2749_v32 = vrot.slane %v2142_v50, 4  ;;  %v2750_v48 = vmov %v2744_v44  ;;  %v2751_v25 = vrot.slane %v2145_v51, 5 }
 0x14e   : > { %v895_v62 = vsel %vm874_vm2, %v2747_v34, %v2746_v33  ;;  %v963_v40 = vsel %vm942_vm5, %v960_v21, %v2748_v37  ;;  %v2752_v43 = vmov %v2745_v39  ;;  %v846_v23 = vadd.f32 %v827_v11, %v783_v17 }
 0x14f   : > { %v1030_v6 = vsel %vm942_vm5, %v2750_v48, %v2749_v32  ;;  %v1098_v31 = vsel %vm1077_vm6, %v2752_v43, %v2751_v25  ;;  %v720_v12 = vadd.f32 %v699_v0, %v646_v16  ;;  %v1184_v3 = vadd.f32 %v1162_v10, %v1116_v42 }
 0x150   : > { %v1164_v13 = vsel %vm1145_vm7, %v1161_v36, %v1163_v19  ;;  %v2753_v9 = vrot.slane %v2150_v59, 6  ;;  %v914_v50 = vadd.f32 %v893_v26, %v846_v23  ;;  %v2754_v51 = vmov %v2742_v2 }
 0x151   : > { %v784_v14 = vadd.f32 %v763_v27, %v720_v12  ;;  %v1201_v47 = vadd.f32 %v2281_v29, %v1184_v3 }
 0x152   : > { %v1166_v41 = vsel %vm1145_vm7, %v1163_v19, %v2753_v9  ;;  %v982_v35 = vadd.f32 %v961_v63, %v914_v50 }
 0x153   : > { %v847_v53 = vadd.f32 %v2754_v51, %v784_v14  ;;  %1776 = vmatmul.mubr.msk.f32.gmra.mrb[8].mxu1 %vm1217_vm8, %v1201_v47 }
 0x154   : > { %v1049_v4 = vadd.f32 %v1028_v57, %v982_v35 }
 0x155   : > { %v915_v38 = vadd.f32 %v895_v62, %v847_v53 }
 0x156   : > { %v1117_v30 = vadd.f32 %v1096_v15, %v1049_v4 }
 0x157   : > { %v983_v18 = vadd.f32 %v963_v40, %v915_v38 }
 0x158   : > { %v1185_v45 = vadd.f32 %v1164_v13, %v1117_v30 }
 0x159   : > { %v1050_v36 = vadd.f32 %v1030_v6, %v983_v18 }
 0x15a   : > { %v1202_v59 = vadd.f32 %v2281_v29, %v1185_v45 }
 0x15b   : > { %v1118_v46 = vadd.f32 %v1098_v31, %v1050_v36 }
 0x15c   : > { %1778 = vmatprep.mubr.msk.f32.mxu1 %vm1217_vm8, %v1202_v59 }
 0x15d   : > { %v1186_v0 = vadd.f32 %v1166_v41, %v1118_v46 }
 0x15f   : > { %v1203_v54 = vadd.f32 %v2281_v29, %v1186_v0  ;;  %v2756_v29 = vld [vmem:[#allocation3_spill] sm:$0xff] }
 0x161   : > { %1779 = vmatmul.mubr.msk.f32.gmra.mrb[10].mxu1 %vm1217_vm8, %v1203_v54 }
 0x162   : > { %1789 = vmatprep.mubr.msk.f32.mxu1 %vm357_vm1, %v2065_v49  ;;  %v2758_v49 = vld [vmem:[#allocation5_spill] sm:$0xff] }
 0x165   : > { %1790 = vmatmul.mubr.msk.f32.vlgmr.msra.gmra.mrb[12].mxu1 %vm357_vm1, %v2068_v52  ;;  %v2759_v52 = vld [vmem:[#allocation6_spill] sm:$0xff] }
 0x166   : > { %1792 = vmatprep.mubr.msk.f32.mxu1 %vm357_vm1, %v2073_v55 }
 0x169   : > { %1793 = vmatmul.mubr.msk.f32.gmra.mrb[14].mxu1 %vm357_vm1, %v2076_v58 }
 0x16a   : > { %1795 = vmatprep.mubr.msk.f32.mxu1 %vm357_vm1, %v2081_v61 }
 0x16d   : > { %1796 = vmatmul.mubr.msk.f32.gmra.mrb[16].mxu1 %vm357_vm1, %v2755_v1 }
 0x16e   : > { %1798 = vmatprep.mubr.msk.f32.mxu1 %vm357_vm1, %v2756_v29 }
 0x171   : > { %1799 = vmatmul.mubr.msk.f32.gmra.mrb[18].mxu1 %vm357_vm1, %v2757_v5 }
 0x172   : > { %1801 = vmatprep.mubr.msk.f32.mxu1 %vm357_vm1, %v2758_v49 }
 0x175   : > { %1802 = vmatmul.mubr.msk.f32.gmra.mrb[20].mxu1 %vm357_vm1, %v2759_v52 }
 0x1ea   : > { %v1768_v55 = vpop.f32.mrb[2].mxu1 }
 0x1eb   : > { %v1314_v58 = vpop.f32.mrb[3].mxu1  ;;  %v1320_v28 = vadd.f32 %v1768_v55, %v1635_v24 }
 0x1ec   : > { %v1315_v27 = vadd.f32 %v1635_v24, %v1314_v58 }
 0x1ed   : > { %v1364_v22 = vmax.f32 %v1320_v28, 0.0 }
 0x1ee   : > { %v1363_v57 = vmax.f32 %v1315_v27, 0.0 }
 0x201   : > { %v1771_v10 = vpop.f32.mrb[4].mxu1 }
 0x202   : > { %v1324_v61 = vpop.f32.mrb[5].mxu1  ;;  %v1330_v44 = vadd.f32 %v1771_v10, %v1635_v24 }
 0x203   : > { %v1325_v39 = vadd.f32 %v1635_v24, %v1324_v61 }
 0x204   : > { %v1366_v7 = vmax.f32 %v1330_v44, 0.0 }
 0x205   : > { %v1365_v16 = vmax.f32 %v1325_v39, 0.0 }
 0x214   : > { %v1774_v2 = vpop.f32.mrb[6].mxu1 }
 0x215   : > { %v1334_v11 = vpop.f32.mrb[7].mxu1  ;;  %v1340_v17 = vadd.f32 %v1774_v2, %v1635_v24 }
 0x216   : > { %v1335_v33 = vadd.f32 %v1635_v24, %v1334_v11 }
 0x217   : > { %v1368_v42 = vmax.f32 %v1340_v17, 0.0 }
 0x218   : > { %v1367_v32 = vmax.f32 %v1335_v33, 0.0 }
 0x226   : > { %v1777_v60 = vpop.f32.mrb[8].mxu1 }
 0x227   : > { %v1344_v26 = vpop.f32.mrb[9].mxu1  ;;  %v1350_v19 = vadd.f32 %v1777_v60, %v1635_v24 }
 0x228   : > { %v1345_v48 = vadd.f32 %v1635_v24, %v1344_v26 }
 0x229   : > { %v1370_v23 = vmax.f32 %v1350_v19, 0.0 }
 0x22a   : > { %v1369_v3 = vmax.f32 %v1345_v48, 0.0 }
 0x234   : > { %v1780_v21 = vpop.f32.mrb[10].mxu1 }
 0x235   : > { %v1354_v8 = vpop.f32.mrb[11].mxu1  ;;  %v1360_v12 = vadd.f32 %v1780_v21, %v1635_v24 }
 0x236   : > { %v1355_v13 = vadd.f32 %v1635_v24, %v1354_v8 }
 0x237   : > { %v1372_v47 = vmax.f32 %v1360_v12, 0.0 }
 0x238   : > { %v1791_v15 = vpop.f32.mrb[12].mxu1  ;;  %v1371_v35 = vmax.f32 %v1355_v13, 0.0 }
 0x239   : > { %v1486_v20 = vadd.f32 %v1791_v15, %v1364_v22  ;;  %v1480_v56 = vpop.f32.mrb[13].mxu1 }
 0x23a   : > { %v1481_v63 = vadd.f32 %v1480_v56, %v1363_v57 }
 0x23b   : > { %1656 = vst.msk [vmem:[%s2678_s26 + $0x6] sm:$0xfc] %vm1531_vm9, %v1486_v20 }
 0x23c   : > { %1529 = vst.msk [vmem:[%s2678_s26] sm:$0xff] %vm357_vm1, %v1481_v63  ;;  %v1794_v34 = vpop.f32.mrb[14].mxu1 }
 0x23d   : > { %v1496_v62 = vadd.f32 %v1794_v34, %v1366_v7  ;;  %v1490_v37 = vpop.f32.mrb[15].mxu1 }
 0x23e   : > { %v1491_v40 = vadd.f32 %v1490_v37, %v1365_v16 }
 0x23f   : > { %1659 = vst.msk [vmem:[%s2678_s26 + $0x14] sm:$0xf] %vm1538_vm10, %v1496_v62 }
 0x240   : > { %1660 = vst.msk [vmem:[%s2678_s26 + $0x12] sm:$0xc0] %vm1541_vm11, %v1496_v62  ;;  %v1797_v6 = vpop.f32.mrb[16].mxu1 }
 0x241   : > { %1657 = vst.msk [vmem:[%s2678_s26 + $0xe] sm:$0x3] %vm1533_vm12, %v1491_v40  ;;  %v1506_v25 = vadd.f32 %v1797_v6, %v1368_v42  ;;  %v1500_v43 = vpop.f32.mrb[17].mxu1 }
 0x242   : > { %1658 = vst.msk [vmem:[%s2678_s26 + $0xc] sm:$0xf0] %vm1536_vm13, %v1491_v40  ;;  %v1501_v31 = vadd.f32 %v1500_v43, %v1367_v32 }
 0x243   : > { %1662 = vst.msk [vmem:[%s2678_s26 + $0x20] sm:$0xff] %vm357_vm1, %v1506_v25 }
 0x244   : > { %1661 = vst.msk [vmem:[%s2678_s26 + $0x1a] sm:$0x3f] %vm1543_vm14, %v1501_v31  ;;  %v1800_v9 = vpop.f32.mrb[18].mxu1 }
 0x245   : > { %v1516_v41 = vadd.f32 %v1800_v9, %v1370_v23  ;;  %v1510_v50 = vpop.f32.mrb[19].mxu1 }
 0x246   : > { %v1511_v14 = vadd.f32 %v1510_v50, %v1369_v3 }
 0x247   : > { %1664 = vst.msk [vmem:[%s2678_s26 + $0x2e] sm:$0x3] %vm1533_vm12, %v1516_v41 }
 0x248   : > { %1665 = vst.msk [vmem:[%s2678_s26 + $0x2c] sm:$0xf0] %vm1536_vm13, %v1516_v41  ;;  %v1803_v51 = vpop.f32.mrb[20].mxu1 }
 0x249   : > { %1663 = vst.msk [vmem:[%s2678_s26 + $0x26] sm:$0xfc] %vm1531_vm9, %v1511_v14  ;;  %v1526_v53 = vadd.f32 %v1803_v51, %v1372_v47  ;;  %v1520_v4 = vpop.f32.mrb[21].mxu1 }
 0x24a   : > { %v1521_v38 = vadd.f32 %v1520_v4, %v1371_v35 }
 0x24b   : > { %1668 = vst.msk [vmem:[%s2678_s26 + $0x3a] sm:$0x3f] %vm1543_vm14, %v1526_v53 }
 0x24c   : > { %1666 = vst.msk [vmem:[%s2678_s26 + $0x34] sm:$0xf] %vm1538_vm10, %v1521_v38 }
 0x24d   : > { %1667 = vst.msk [vmem:[%s2678_s26 + $0x32] sm:$0xc0] %vm1541_vm11, %v1521_v38 }
 0x24e PF: > { %s19_s30 = sadd.s32 1, %s1847_s30  }
 0x24f   : > { %p16_p4 = scmp.ge.s32.totalorder %s19_s30, 4  }
 0x251   :  { %18 = sbr.rel (!%p16_p4) target bundleno = 1 (0x1), region = 93 }

// kernel: forward.11
= control target key start
LH: loop header
LB: loop body
LE: loop exit
PB: predicated region body
PF: predicated region fallthrough
CT: control target
= control target key end

     0   :  { %s3145_s21 = smov 0   ;;  %s4793_s0 = inlined_call_operand.vmem [shape: f32[2,4,81,16], index: 0, kind: input, shape index: {}]   ;;  %s4794_s1 = inlined_call_operand.vmem [shape: f32[4,81,1], index: 1, kind: input, shape index: {}]   ;;  %s4795_s2 = inlined_call_operand.vmem [shape: f32[9,16], index: 2, kind: input, shape index: {}]   ;;  %s4796_s3 = inlined_call_operand.vmem [shape: f32[1,16], index: 3, kind: input, shape index: {}]   ;;  %s4797_s4 = inlined_call_operand.vmem [shape: f32[16,32], index: 4, kind: input, shape index: {}]   ;;  %s4798_s5 = inlined_call_operand.vmem [shape: f32[1,32], index: 5, kind: input, shape index: {}]   ;;  %s4799_s6 = inlined_call_operand.vmem [shape: f32[16,16], index: 6, kind: input, shape index: {}]   ;;  %s4800_s7 = inlined_call_operand.vmem [shape: f32[1,16], index: 7, kind: input, shape index: {}]   ;;  %s4801_s8 = inlined_call_operand.vmem [shape: f32[9,16], index: 8, kind: input, shape index: {}]   ;;  %s4802_s9 = inlined_call_operand.vmem [shape: f32[1,16], index: 9, kind: input, shape index: {}]   ;;  %s4803_s10 = inlined_call_operand.vmem [shape: f32[16,32], index: 10, kind: input, shape index: {}]   ;;  %s4804_s11 = inlined_call_operand.vmem [shape: f32[1,32], index: 11, kind: input, shape index: {}]   ;;  %s4805_s12 = inlined_call_operand.vmem [shape: f32[2,8,8,32], index: 12, kind: output, shape index: {}]  }
   0x1 LB: > { %s2596_s22 = sadd.s32 4294967295, %s3074_s21   ;;  %p2600_p0 = scmp.ge.s32.totalorder %s3074_s21, 1  ;;  %s3074_s21 = sphi %s3145_s21, %s22_s21  }
   0x2   : > { %p362_p1 = scmp.lt.s32.totalorder %s3074_s21, 3 }
   0x4   : > { %p363_p2 = pnand %p2600_p0, %p362_p1 }
   0x6   : > { %366 = sbr.rel (%p363_p2) target bundleno = 633 (0x279), region = 68 }
   0xd   : > { %v1014_v0 = vld [vmem:[%s4799_s6] sm:$0xff]  ;;  %v1015_v1 = vld [vmem:[%s4799_s6 + $0x8] sm:$0xff]  ;;  %p404_p3 = scmp.lt.s32.totalorder %s2596_s22, 1  ;;  %v463_v2 = vlaneseq  ;;  %v4814_v3 = vmov 0.0|0.0   ;;  %vm3077_vm0 = vmmov 0   ;;  %v4816_v5 = vmov 0.0  }
   0xe   : > { %3038 = vmatprep.subr.bf16.mxu1 %v4814_v3  ;;  %v3160_v4 = vpack.c.bf16 %v1015_v1, %v1014_v0  ;;  %2860 = vmatprep.mubr.msk.f32.mxu1 %vm3077_vm0, %v4816_v5  ;;  %v858_v6 = vld [vmem:[%s4797_s4] sm:$0xff]  ;;  %v859_v8 = vld [vmem:[%s4797_s4 + $0x8] sm:$0xff]  ;;  %v3079_v16 = vmov 0   ;;  %vm867_vm1 = vcmask 130048   ;;  %v2672_v31 = vld [vmem:[%s4794_s1 + $0x58] sm:$0xff]  ;;  %vm529_vm2 = vcmask 1046528  }
   0xf   : > { %s4979_s22 = smov (!%p404_p3, %s2596_s22), 1  ;;  %v3169_v7 = vshrl.u32 %v463_v2, 7  ;;  %3035 = vmatprep.subr.bf16.mxu0 %v4814_v3  ;;  %2829 = vmatprep.mubr.msk.f32.mxu0 %vm3077_vm0, %v4816_v5  ;;  %v3181_v9 = vld [vmem:[%s4795_s2] sm:$0xff]  ;;  %v3036_v10 = vpack.c.bf16 %v859_v8, %v858_v6  ;;  %v1188_v20 = vld [vmem:[%s4794_s1 + $0x8] sm:$0xff]  ;;  %v1189_v49 = vld [vmem:[%s4794_s1 + $0x10] sm:$0xff]  ;;  %vm804_vm3 = vcmask 1045504  }
  0x10   : > { %3040 = vmatpush3.bf16.msra.mxu1 %v3160_v4  ;;  %v1187_v11 = vld [vmem:[%s4794_s1] sm:$0xff]  ;;  %s3053_s17 = smul.u32 352, %s4979_s22  ;;  %3066 = vset.pattern.permute.xlu0 %v3079_v16  ;;  %v3251_v37 = vld [vmem:[%s4795_s2 + $0x8] ss:$0 sm:$0xff]  ;;  %v2694_v1 = vld [vmem:[%s4794_s1 + $0xb8] sm:$0xff]  ;;  %s2750_s28 = sshll.u32 %s4979_s22, 6 }
  0x11   : > { %4838 = vst [vmem:[#allocation2_spill] sm:$0xff] %v3169_v7  ;;  %v4810_v12 = vsub.s32 0, %v3169_v7  ;;  %v4809_v13 = vsub.s32 1, %v3169_v7  ;;  %v4813_v14 = vsub.s32 2, %v3169_v7  ;;  %v4812_v15 = vsub.s32 6, %v3169_v7  ;;  %3044 = vmatprep.subr.bf16.mxu1 %v4814_v3  ;;  %3037 = vmatpush3.bf16.msra.mxu0 %v3036_v10  ;;  %v2673_v44 = vld [vmem:[%s4794_s1 + $0x60] sm:$0xff]  ;;  %s4751_s13 = scalar_lea.vmem %s4805_s12, %s2750_s28 }
  0x12   : > { %1200 = vperm.xlu0 %3066, %v1187_v11   ;;  %s3195_s20 = scalar_lea.vmem %s4793_s0, %s3053_s17  ;;  %3041 = vmatprep.subr.bf16.mxu0 %v4814_v3  ;;  %v4808_v24 = vsub.s32 3, %v3169_v7  ;;  %v4806_v29 = vsub.s32 4, %v3169_v7  ;;  %v4811_v30 = vsub.s32 5, %v3169_v7  ;;  %v4807_v48 = vsub.s32 7, %v3169_v7  ;;  %v2693_v11 = vld [vmem:[%s4794_s1 + $0xb0] sm:$0xff] }
  0x13   : > { %v3200_v17 = vrot.slane %v3181_v9, %v4810_v12  ;;  %v3205_v18 = vrot.slane %v3181_v9, %v4809_v13  ;;  %v3210_v19 = vrot.slane %v3181_v9, %v4813_v14  ;;  %v414_v21 = vld [vmem:[%s3195_s20] sm:$0xff]  ;;  %v3218_v22 = vld [vmem:[%s3195_s20 + $0x58] sm:$0xff]  ;;  %v415_v23 = vld [vmem:[%s3195_s20 + $0x8] sm:$0xff]  ;;  %3067 = vset.pattern.permute.xlu1 %v3079_v16  ;;  %v3230_v27 = vrot.slane %v3181_v9, %v4812_v15 }
  0x14   : > { %2861 = vmatmul.mubr.msk.f32.vlgmr.msra.gmra.mrb[0].mxu1 %vm867_vm1, %v414_v21  ;;  %v3225_v26 = vld [vmem:[%s3195_s20 + $0x60] sm:$0xff]  ;;  %v3233_v28 = vld [vmem:[%s3195_s20 + $0x68] sm:$0xff]  ;;  %v416_v36 = vld [vmem:[%s3195_s20 + $0x10] sm:$0xff]  ;;  %1439 = vperm.xlu1 %3067, %v2672_v31   ;;  %v3271_v46 = vrot.slane %v3181_v9, %v4808_v24  ;;  %v3276_v47 = vrot.slane %v3181_v9, %v4806_v29  ;;  %v3286_v51 = vmul.f32 %v3251_v37, %v415_v23  ;;  %vm2504_vm4 = vcmask 261120  }
  0x15   : > { %v511_v25 = vmul.f32 %v3210_v19, %v414_v21  ;;  %4839 = vst [vmem:[#allocation3_spill] sm:$0xff] %v3233_v28  ;;  %v467_v32 = vmul.f32 %v3200_v17, %v414_v21  ;;  %v489_v33 = vmul.f32 %v3218_v22, %v3205_v18  ;;  %2863 = vmatprep.mubr.msk.f32.mxu1 %vm3077_vm0, %v4816_v5  ;;  %v3259_v41 = vld [vmem:[%s3195_s20 + $0x18] sm:$0xff]  ;;  %v3291_v52 = vld [vmem:[%s3195_s20 + $0x70] sm:$0xff]  ;;  %v3296_v54 = vld [vmem:[%s3195_s20 + $0x20] sm:$0xff]  ;;  %vm2507_vm5 = vcmask 261121  }
  0x16   : > { %v468_v34 = vmul.f32 %v3200_v17, %v415_v23  ;;  %v512_v35 = vmul.f32 %v3210_v19, %v415_v23  ;;  %v490_v38 = vmul.f32 %v3225_v26, %v3205_v18  ;;  %v469_v39 = vmul.f32 %v3200_v17, %v416_v36  ;;  %3046 = vmatpush3.bf16.msra.mxu1 %v3160_v4  ;;  %v3304_v60 = vld [vmem:[%s3195_s20 + $0x78] sm:$0xff]  ;;  %v420_v24 = vld [vmem:[%s3195_s20 + $0x30] sm:$0xff] }
  0x17   : > { %v491_v40 = vmul.f32 %v3233_v28, %v3205_v18  ;;  %1205 = vperm.xlu0 %3066, %v1188_v20   ;;  %v530_v42 = vrot.slane %v511_v25, 1  ;;  %3050 = vmatprep.subr.bf16.mxu1 %v4814_v3  ;;  %v513_v45 = vmul.f32 %v3210_v19, %v416_v36  ;;  %v3283_v50 = vmul.f32 %v3230_v27, %v415_v23  ;;  %v3438_v14 = vld [vmem:[%s3195_s20 + $0x110] sm:$0xff] }
  0x18   : > { %v531_v43 = vrot.slane %v512_v35, 1  ;;  %2864 = vmatmul.mubr.msk.f32.gmra.mrb[2].mxu1 %vm867_vm1, %v415_v23  ;;  %4840 = vst [vmem:[#allocation4_spill] sm:$0xff] %v3291_v52  ;;  %v514_v53 = vmul.f32 %v3210_v19, %v3259_v41  ;;  %v3301_v55 = vrot.slane %v3181_v9, %v4811_v30  ;;  %v498_v56 = vadd.f32 %v489_v33, %v467_v32  ;;  %v419_v33 = vld [vmem:[%s3195_s20 + $0x28] sm:$0xff]  ;;  %v2675_v3 = vld [vmem:[%s4794_s1 + $0x70] sm:$0xff] }
  0x19   : > { %2866 = vmatprep.mubr.msk.f32.mxu1 %vm3077_vm0, %v4816_v5  ;;  %v499_v57 = vadd.f32 %v490_v38, %v468_v34  ;;  %v500_v58 = vadd.f32 %v491_v40, %v469_v39  ;;  %v533_v59 = vrot.slane %v513_v45, 1  ;;  %4841 = vst [vmem:[#allocation5_spill] sm:$0xff] %v3304_v60  ;;  %v3308_v62 = vmul.f32 %v3230_v27, %v416_v36  ;;  %v3356_v40 = vld [vmem:[%s3195_s20 + $0xb0] sm:$0xff] }
  0x1a   : > { %v532_v61 = vsel %vm529_vm2, %v530_v42, %v531_v43  ;;  %v3311_v63 = vmul.f32 %v3251_v37, %v416_v36  ;;  %v535_v0 = vrot.slane %v514_v53, 1  ;;  %1210 = vperm.xlu1 %3067, %v1189_v49   ;;  %v470_v2 = vmul.f32 %v3200_v17, %v3259_v41  ;;  %v3359_v42 = vld [vmem:[%s3195_s20 + $0x108] sm:$0xff]  ;;  %v3377_v53 = vld [vmem:[%s3195_s20 + $0xb8] sm:$0xff]  ;;  %4843 = vst [vmem:[#allocation7_spill] sm:$0xff] %v3438_v14 }
  0x1b   : > { %1444 = vperm.xlu0 %3066, %v2673_v44   ;;  %v492_v6 = vmul.f32 %v3291_v52, %v3205_v18  ;;  %v3323_v8 = vmul.f32 %v3230_v27, %v3259_v41  ;;  %v3327_v10 = vmul.f32 %v3210_v19, %v3296_v54  ;;  %v534_v16 = vsel %vm529_vm2, %v531_v43, %v533_v59 }
  0x1c   : > { %2867 = vmatmul.mubr.msk.f32.gmra.mrb[4].mxu1 %vm867_vm1, %v416_v36  ;;  %v3337_v20 = vmul.f32 %v3251_v37, %v3259_v41  ;;  %v471_v21 = vmul.f32 %v3200_v17, %v3296_v54  ;;  %v493_v23 = vmul.f32 %v3304_v60, %v3205_v18  ;;  %v688_v25 = vrot.slane %v3283_v50, 1  ;;  %4842 = vst [vmem:[#allocation6_spill] sm:$0xff] %v3359_v42  ;;  %v3374_v50 = vld [vmem:[%s3195_s20 + $0x80] sm:$0xff] }
  0x1d   : > { %2869 = vmatprep.mubr.msk.f32.mxu1 %vm3077_vm0, %v4816_v5  ;;  %v805_v31 = vrot.slane %v3286_v51, 2  ;;  %v536_v32 = vsel %vm529_vm2, %v533_v59, %v535_v0  ;;  %v3350_v34 = vrot.slane %v3181_v9, %v4807_v48  ;;  %v556_v35 = vadd.f32 %v532_v61, %v498_v56  ;;  %v1190_v9 = vld [vmem:[%s4794_s1 + $0x18] sm:$0xff]  ;;  %v2713_v56 = vld [vmem:[%s4794_s1 + $0x108] sm:$0xff]  ;;  %v3448_v59 = vld [vmem:[%s3195_s20 + $0xc0] sm:$0xff] }
  0x1e   : > { %v689_v36 = vrot.slane %v3308_v62, 1  ;;  %v4815_v38 = vrot.slane %v3311_v63, 2  ;;  %v537_v39 = vrot.slane %v3327_v10, 1  ;;  %1669 = vperm.xlu1 %3067, %v2693_v11   ;;  %v3364_v43 = vadd.f32 %v534_v16, %v499_v57  ;;  %v421_v62 = vld [vmem:[%s3195_s20 + $0x38] sm:$0xff] }
  0x1f   : > { %1674 = vperm.xlu0 %3066, %v2694_v1   ;;  %v501_v44 = vadd.f32 %v492_v6, %v470_v2  ;;  %v4820_v45 = vrot.slane %v3323_v8, 1  ;;  %v3371_v49 = vmul.f32 %v3230_v27, %v3296_v54  ;;  %v3382_v57 = vadd.f32 %v536_v32, %v500_v58 }
  0x20   : > { %2870 = vmatmul.mubr.msk.f32.gmra.mrb[6].mxu1 %vm867_vm1, %v3259_v41  ;;  %v3387_v41 = vadd.f32 %v493_v23, %v471_v21  ;;  %v3390_v61 = vmul.f32 %v3210_v19, %v419_v33  ;;  %v3394_v1 = vmul.f32 %v3251_v37, %v3296_v54  ;;  %v472_v2 = vmul.f32 %v3200_v17, %v419_v33  ;;  %v2695_v23 = vld [vmem:[%s4794_s1 + $0xc0] sm:$0xff] }
  0x21   : > { %2872 = vmatprep.mubr.msk.f32.mxu1 %vm3077_vm0, %v4816_v5  ;;  %v569_v58 = vmul.f32 %v3356_v40, %v3271_v46  ;;  %v591_v6 = vmul.f32 %v3359_v42, %v3276_v47  ;;  %v538_v10 = vsel %vm529_vm2, %v535_v0, %v537_v39  ;;  %v494_v11 = vmul.f32 %v3374_v50, %v3205_v18 }
  0x22   : > { %v613_v16 = vmul.f32 %v3356_v40, %v3301_v55  ;;  %v3408_v21 = vmul.f32 %v3377_v53, %v3301_v55  ;;  %1893 = vperm.xlu1 %3067, %v2713_v56   ;;  %v3420_v29 = vmul.f32 %v3233_v28, %v3350_v34  ;;  %v2674_v56 = vld [vmem:[%s4794_s1 + $0x68] sm:$0xff]  ;;  %v539_v48 = vrot.slane %v3390_v61, 1 }
  0x23   : > { %1215 = vperm.xlu0 %3066, %v1190_v9   ;;  %v578_v0 = vadd.f32 %v569_v58, %v556_v35  ;;  %v727_v9 = vmul.f32 %v3225_v26, %v3350_v34  ;;  %v3434_v13 = vmul.f32 %v3251_v37, %v419_v33  ;;  %v3440_v32 = vadd.f32 %v538_v10, %v501_v44  ;;  %v3457_v10 = vld [vmem:[%s3195_s20 + $0x88] sm:$0xff] }
  0x24   : > { %2873 = vmatmul.mubr.msk.f32.gmra.mrb[8].mxu1 %vm867_vm1, %v3296_v54  ;;  %v3429_v54 = vmul.f32 %v3230_v27, %v419_v33  ;;  %v631_v35 = vrot.slane %v613_v16, 1  ;;  %v632_v58 = vrot.slane %v3408_v21, 1  ;;  %v746_v15 = vrot.slane %v3420_v29, 1  ;;  %v1191_v29 = vld [vmem:[%s4794_s1 + $0x20] sm:$0xff] }
  0x25   : > { %2875 = vmatprep.mubr.msk.f32.mxu1 %vm3077_vm0, %v4816_v5  ;;  %v600_v12 = vadd.f32 %v591_v6, %v578_v0  ;;  %v745_v30 = vrot.slane %v727_v9, 1  ;;  %v690_v21 = vsel %vm529_vm2, %v688_v25, %v689_v36  ;;  %v3453_v6 = vadd.f32 %v494_v11, %v472_v2  ;;  %v2714_v0 = vld [vmem:[%s4794_s1 + $0x110] sm:$0xff] }
  0x26   : > { %v633_v16 = vsel %vm529_vm2, %v631_v35, %v632_v58  ;;  %1449 = vperm.xlu1 %3067, %v2674_v56   ;;  %v570_v25 = vmul.f32 %v3377_v53, %v3271_v46  ;;  %v540_v2 = vsel %vm529_vm2, %v537_v39, %v539_v48  ;;  %v473_v56 = vmul.f32 %v3200_v17, %v420_v24 }
  0x27   : > { %1679 = vperm.xlu0 %3066, %v2695_v23   ;;  %v657_v44 = vadd.f32 %v633_v16, %v600_v12  ;;  %v3460_v23 = vmul.f32 %v3210_v19, %v420_v24  ;;  %v747_v11 = vsel %vm529_vm2, %v745_v30, %v746_v15  ;;  %v807_v12 = vsel %vm804_vm3, %v805_v31, %v4815_v38 }
  0x28   : > { %2876 = vmatmul.mubr.msk.f32.gmra.mrb[10].mxu1 %vm867_vm1, %v419_v33  ;;  %v592_v33 = vmul.f32 %v3438_v14, %v3276_v47  ;;  %v579_v35 = vadd.f32 %v570_v25, %v3364_v43  ;;  %v3484_v30 = vmul.f32 %v3448_v59, %v3301_v55  ;;  %v495_v51 = vmul.f32 %v3457_v10, %v3205_v18  ;;  %v2696_v43 = vld [vmem:[%s4794_s1 + $0xc8] sm:$0xff] }
  0x29   : > { %2878 = vmatprep.mubr.msk.f32.mxu1 %vm3077_vm0, %v4816_v5  ;;  %v714_v9 = vadd.f32 %v690_v21, %v657_v44  ;;  %v3489_v31 = vmul.f32 %v3230_v27, %v420_v24  ;;  %v3492_v39 = vmul.f32 %v3251_v37, %v420_v24  ;;  %v3496_v16 = vmul.f32 %v3291_v52, %v3350_v34 }
  0x2a   : > { %1898 = vperm.xlu1 %3067, %v2714_v0   ;;  %v601_v44 = vadd.f32 %v592_v33, %v579_v35  ;;  %v634_v25 = vrot.slane %v3484_v30, 1  ;;  %v3508_v0 = vadd.f32 %v540_v2, %v3387_v41  ;;  %v692_v2 = vsel %vm529_vm2, %v689_v36, %v4820_v45  ;;  %v3527_v35 = vld [vmem:[%s3195_s20 + $0xc8] sm:$0xff]  ;;  %v3530_v30 = vld [vmem:[%s3195_s20 + $0x118] sm:$0xff] }
  0x2b   : > { %1220 = vperm.xlu0 %3066, %v1191_v29   ;;  %v771_v21 = vadd.f32 %v747_v11, %v714_v9  ;;  %v4818_v29 = vrot.slane %v3460_v23, 1  ;;  %v4819_v33 = vrot.slane %v3496_v16, 1  ;;  %4844 = vst [vmem:[#allocation8_spill] sm:$0xff] %v3530_v30  ;;  %v571_v11 = vmul.f32 %v3448_v59, %v3271_v46 }
  0x2c   : > { %2879 = vmatmul.mubr.msk.f32.gmra.mrb[12].mxu1 %vm867_vm1, %v420_v24  ;;  %v3515_v24 = vld [vmem:[%s4796_s3] ss:$0 sm:$0xff]  ;;  %v635_v41 = vsel %vm529_vm2, %v632_v58, %v634_v25  ;;  %v3534_v38 = vadd.f32 %v495_v51, %v473_v56  ;;  %v593_v61 = vmul.f32 %v3530_v30, %v3276_v47  ;;  %v4847_v58 = vmov 0.0  }
  0x2d   : > { %2881 = vmatprep.mubr.msk.f32.mxu1 %vm3077_vm0, %v4816_v5  ;;  %v833_v9 = vadd.f32 %v807_v12, %v771_v21  ;;  %v658_v21 = vadd.f32 %v635_v41, %v601_v44  ;;  %v3540_v5 = vld [vmem:[%s3195_s20 + $0x90] sm:$0xff]  ;;  %v542_v56 = vsel %vm529_vm2, %v539_v48, %v4818_v29  ;;  %v749_v51 = vsel %vm529_vm2, %v746_v15, %v4819_v33  ;;  %v3567_v15 = vld [vmem:[%s3195_s20 + $0x40] sm:$0xff]  ;;  %v1192_v29 = vld [vmem:[%s4794_s1 + $0x28] sm:$0xff] }
  0x2e   : > { %1454 = vperm.xlu1 %3067, %v2675_v3   ;;  %v4845_v41 = vrot.slane %v3337_v20, 2  ;;  %v4846_v3 = vrot.slane %v3311_v63, 2  ;;  %v3562_v48 = vmul.f32 %v3527_v35, %v3301_v55  ;;  %v474_v63 = vmul.f32 %v3200_v17, %v421_v62  ;;  %v2715_v33 = vld [vmem:[%s4794_s1 + $0x118] sm:$0xff] }
  0x2f   : > { %1684 = vperm.xlu0 %3066, %v2696_v43   ;;  %v849_v36 = vadd.f32 %v3515_v24, %v833_v9  ;;  %v580_v43 = vadd.f32 %v571_v11, %v3382_v57  ;;  %v715_v44 = vadd.f32 %v692_v2, %v658_v21  ;;  %v3570_v57 = vld [vmem:[%s3195_s20 + $0x98] sm:$0xff]  ;;  %v496_v11 = vmul.f32 %v3540_v5, %v3205_v18 }
  0x30   : > { %2882 = vmatmul.mubr.msk.f32.gmra.mrb[14].mxu1 %vm867_vm1, %v421_v62  ;;  %v809_v9 = vsel %vm804_vm3, %v4846_v3, %v4845_v41  ;;  %v3577_v2 = vmul.f32 %v3210_v19, %v421_v62  ;;  %v3581_v21 = vmul.f32 %v3304_v60, %v3350_v34  ;;  %v4849_v7 = vrot.slane %v3562_v48, 1 }
  0x31   : > { %2884 = vmatprep.mubr.msk.f32.mxu1 %vm3077_vm0, %v4847_v58  ;;  %2830 = vmatmul.mubr.msk.f32.vlgmr.msra.gmra.mrb[0].mxu0 %vm867_vm1, %v849_v36  ;;  %v772_v41 = vadd.f32 %v749_v51, %v715_v44  ;;  %v3587_v36 = vmul.f32 %v3230_v27, %v421_v62  ;;  %v602_v3 = vadd.f32 %v593_v61, %v580_v43  ;;  %v4848_v61 = vmov 0.0|0.0  }
  0x32   : > { %3043 = vmatpush3.bf16.msra.mxu0 %v3160_v4  ;;  %2832 = vmatprep.mubr.msk.f32.mxu0 %vm3077_vm0, %v4847_v58  ;;  %v475_v51 = vmul.f32 %v3200_v17, %v3567_v15  ;;  %v497_v43 = vmul.f32 %v3570_v57, %v3205_v18  ;;  %v519_v44 = vmul.f32 %v3210_v19, %v3567_v15  ;;  %v4850_v30 = vrot.slane %v3371_v49, 1  ;;  %v3615_v18 = vld [vmem:[%s3195_s20 + $0x120] sm:$0xff] }
  0x33   : > { %3047 = vmatprep.subr.bf16.mxu0 %v4848_v61  ;;  %v834_v12 = vadd.f32 %v809_v9, %v772_v41  ;;  %v637_v45 = vsel %vm529_vm2, %v634_v25, %v4849_v7  ;;  %v4851_v17 = vrot.slane %v3323_v8, 1  ;;  %v572_v19 = vmul.f32 %v3527_v35, %v3271_v46  ;;  %v3622_v61 = vld [vmem:[%s3195_s20 + $0x48] sm:$0xff]  ;;  %v3629_v8 = vld [vmem:[%s3195_s20 + $0xd0] sm:$0xff]  ;;  %1225 = vperm.xlu0 %3066, %v1192_v29  }
  0x34   : > { %2885 = vmatmul.mubr.msk.f32.gmra.mrb[16].mxu1 %vm867_vm1, %v3567_v15  ;;  %v543_v9 = vrot.slane %v3577_v2, 1  ;;  %v3626_v7 = vmul.f32 %v3251_v37, %v421_v62  ;;  %v659_v25 = vadd.f32 %v637_v45, %v602_v3  ;;  %v545_v41 = vrot.slane %v519_v44, 1  ;;  %1903 = vperm.xlu1 %3067, %v2715_v33   ;;  %v3671_v3 = vld [vmem:[%s3195_s20 + $0xe8] sm:$0xff] }
  0x35   : > { %v694_v14 = vsel %vm529_vm2, %v4851_v17, %v4850_v30  ;;  %2887 = vmatprep.mubr.msk.f32.mxu1 %vm3077_vm0, %v4847_v58  ;;  %v850_v30 = vadd.f32 %v3515_v24, %v834_v12  ;;  %v505_v17 = vadd.f32 %v496_v11, %v474_v63  ;;  %v4852_v42 = vrot.slane %v3581_v21, 1  ;;  %v3664_v63 = vld [vmem:[%s3195_s20 + $0x50] sm:$0x1] }
  0x36   : > { %v4853_v60 = vrot.slane %v3496_v16, 1  ;;  %v581_v2 = vadd.f32 %v572_v19, %v3440_v32  ;;  %v716_v62 = vadd.f32 %v694_v14, %v659_v25  ;;  %v506_v28 = vadd.f32 %v497_v43, %v475_v51  ;;  %v2697_v16 = vld [vmem:[%s4794_s1 + $0xd0] sm:$0xff]  ;;  %v3679_v25 = vld [vmem:[%s3195_s20 + $0x140] sm:$0xff] }
  0x37   : > { %v546_v45 = vsel %vm529_vm2, %v543_v9, %v545_v41  ;;  %v594_v29 = vmul.f32 %v3615_v18, %v3276_v47  ;;  %2833 = vmatmul.mubr.msk.f32.gmra.mrb[2].mxu0 %vm867_vm1, %v850_v30  ;;  %v4854_v14 = vrot.slane %v3394_v1, 2  ;;  %v3657_v33 = vmul.f32 %v3629_v8, %v3301_v55  ;;  %v3674_v51 = vld [vmem:[%s3195_s20 + $0xf0] sm:$0xff]  ;;  %1689 = vperm.xlu0 %3066, %v2697_v16  }
  0x38   : > { %v751_v52 = vsel %vm529_vm2, %v4853_v60, %v4852_v42  ;;  %2888 = vmatmul.mubr.msk.f32.gmra.mrb[18].mxu1 %vm867_vm1, %v3622_v61  ;;  %v3647_v60 = vadd.f32 %v542_v56, %v3453_v6  ;;  %v4855_v42 = vrot.slane %v3337_v20, 2  ;;  %v3661_v12 = vmul.f32 %v3374_v50, %v3350_v34  ;;  %2835 = vmatprep.mubr.msk.f32.mxu0 %vm3077_vm0, %v4847_v58  ;;  %v1193_v16 = vld [vmem:[%s4794_s1 + $0x30] sm:$0xff] }
  0x39   : > { %v773_v20 = vadd.f32 %v751_v52, %v716_v62  ;;  %v603_v11 = vadd.f32 %v594_v29, %v581_v2  ;;  %v563_v43 = vadd.f32 %v546_v45, %v505_v17  ;;  %v4829_v44 = vrot.slane %v3657_v33, 1  ;;  %2890 = vmatprep.mubr.msk.f32.mxu1 %vm3077_vm0, %v4847_v58  ;;  %v2676_v52 = vld [vmem:[%s4794_s1 + $0x78] sm:$0xff]  ;;  %v3692_v29 = vld [vmem:[%s3195_s20 + $0x148] sm:$0xff] }
  0x3a   : > { %v811_v32 = vsel %vm804_vm3, %v4855_v42, %v4854_v14  ;;  %v4830_v19 = vrot.slane %v3661_v12, 1  ;;  %v576_v30 = vmul.f32 %v3671_v3, %v3271_v46  ;;  %v4856_v17 = vrot.slane %v3460_v23, 1  ;;  %4857 = vst [vmem:[#allocation9_spill] sm:$0xff] %v3692_v29  ;;  %1459 = vperm.xlu1 %3067, %v2676_v52   ;;  %v3747_v52 = vld [vmem:[%s3195_s20 + $0xa0] sm:$0xff] }
  0x3b   : > { %v835_v62 = vadd.f32 %v811_v32, %v773_v20  ;;  %v564_v45 = vadd.f32 %v545_v41, %v506_v28  ;;  %v577_v14 = vmul.f32 %v3674_v51, %v3271_v46  ;;  %v3703_v42 = vmul.f32 %v3230_v27, %v3567_v15  ;;  %1230 = vperm.xlu0 %3066, %v1193_v16   ;;  %v2698_v16 = vld [vmem:[%s4794_s1 + $0xd8] sm:$0xff] }
  0x3c   : > { %v544_v2 = vsel %vm529_vm2, %v4856_v17, %v543_v9  ;;  %2891 = vmatmul.mubr.msk.f32.gmra.mrb[20].mxu1 %vm867_vm1, %v3664_v63  ;;  %v4858_v28 = vrot.slane %v3562_v48, 1  ;;  %v4859_v9 = vrot.slane %v3429_v54, 1  ;;  %v4860_v41 = vrot.slane %v3371_v49, 1  ;;  %v3720_v17 = vld [vmem:[%s3195_s20 + $0x128] sm:$0xff] }
  0x3d   : > { %v3717_v20 = vmul.f32 %v3674_v51, %v3301_v55  ;;  %2934 = vmatprep.mubr.msk.f32.mxu1 %vm3077_vm0, %v4847_v58  ;;  %v851_v48 = vadd.f32 %v3515_v24, %v835_v62  ;;  %v585_v6 = vadd.f32 %v576_v30, %v563_v43  ;;  %v3740_v62 = vmul.f32 %v3671_v3, %v3301_v55 }
  0x3e   : > { %v639_v23 = vsel %vm529_vm2, %v4858_v28, %v4829_v44  ;;  %v696_v32 = vsel %vm529_vm2, %v4860_v41, %v4859_v9  ;;  %v3727_v28 = vmul.f32 %v3251_v37, %v3567_v15  ;;  %v598_v9 = vmul.f32 %v3679_v25, %v3276_v47  ;;  %v2716_v15 = vld [vmem:[%s4794_s1 + $0x120] sm:$0xff] }
  0x3f   : > { %v660_v49 = vadd.f32 %v639_v23, %v603_v11  ;;  %v4861_v41 = vrot.slane %v3581_v21, 1  ;;  %v599_v44 = vmul.f32 %v3692_v29, %v3276_v47  ;;  %2836 = vmatmul.mubr.msk.f32.gmra.mrb[4].mxu0 %vm867_vm1, %v851_v48  ;;  %v586_v21 = vadd.f32 %v577_v14, %v564_v45  ;;  %v3750_v23 = vld [vmem:[%s3195_s20 + $0xd8] sm:$0xff]  ;;  %1908 = vperm.xlu1 %3067, %v2716_v15  }
  0x40   : > { %v573_v43 = vmul.f32 %v3629_v8, %v3271_v46  ;;  %v595_v30 = vmul.f32 %v3720_v17, %v3276_v47  ;;  %2838 = vmatprep.mubr.msk.f32.mxu0 %vm3077_vm0, %v4847_v58  ;;  %v4862_v45 = vrot.slane %v3434_v13, 2  ;;  %v4863_v14 = vrot.slane %v3394_v1, 2  ;;  %2935 = vmatmul.mubr.msk.f32.vlgmr.msra.gmra.mrb[22].mxu1 %vm867_vm1, %v3356_v40 }
  0x41   : > { %v753_v56 = vsel %vm529_vm2, %v4861_v41, %v4830_v19  ;;  %v717_v11 = vadd.f32 %v696_v32, %v660_v49  ;;  %v3760_v41 = vadd.f32 %v544_v2, %v3534_v38  ;;  %v4832_v48 = vrot.slane %v3717_v20, 1  ;;  %2937 = vmatprep.mubr.msk.f32.mxu1 %vm3077_vm0, %v4847_v58  ;;  %1694 = vperm.xlu0 %3066, %v2698_v16   ;;  %v3831_v38 = vld [vmem:[%s3195_s20 + $0x138] sm:$0xff] }
  0x42   : > { %v813_v32 = vsel %vm804_vm3, %v4863_v14, %v4862_v45  ;;  %v3772_v49 = vmul.f32 %v3230_v27, %v3622_v61  ;;  %v582_v29 = vadd.f32 %v573_v43, %v3508_v0  ;;  %v607_v1 = vadd.f32 %v598_v9, %v585_v6  ;;  %v3789_v14 = vld [vmem:[%s3195_s20 + $0x130] sm:$0xff]  ;;  %v2677_v0 = vld [vmem:[%s4794_s1 + $0x80] sm:$0xff] }
  0x43   : > { %v774_v19 = vadd.f32 %v753_v56, %v717_v11  ;;  %v644_v45 = vrot.slane %v3740_v62, 1  ;;  %v3784_v27 = vmul.f32 %v3747_v52, %v3350_v34  ;;  %v618_v40 = vmul.f32 %v3750_v23, %v3301_v55  ;;  %v3797_v9 = vld [vmem:[%s3195_s20 + $0xe0] sm:$0xff]  ;;  %v1194_v62 = vld [vmem:[%s4794_s1 + $0x38] sm:$0xff]  ;;  %1464 = vperm.xlu1 %3067, %v2677_v0   ;;  %v2717_v0 = vld [vmem:[%s4794_s1 + $0x128] sm:$0xff] }
  0x44   : > { %v608_v11 = vadd.f32 %v599_v44, %v586_v21  ;;  %v604_v15 = vadd.f32 %v595_v30, %v582_v29  ;;  %v732_v6 = vmul.f32 %v3457_v10, %v3350_v34  ;;  %v703_v16 = vrot.slane %v3772_v49, 1  ;;  %2938 = vmatmul.mubr.msk.f32.gmra.mrb[24].mxu1 %vm867_vm1, %v3377_v53 }
  0x45   : > { %v836_v56 = vadd.f32 %v813_v32, %v774_v19  ;;  %v647_v43 = vsel %vm529_vm2, %v644_v45, %v4832_v48  ;;  %v3808_v44 = vmul.f32 %v3251_v37, %v3622_v61  ;;  %v640_v19 = vrot.slane %v618_v40, 1  ;;  %2940 = vmatprep.mubr.msk.f32.mxu1 %vm3077_vm0, %v4847_v58  ;;  %1235 = vperm.xlu0 %3066, %v1194_v62  }
  0x46   : > { %v754_v21 = vrot.slane %v732_v6, 1  ;;  %v574_v30 = vmul.f32 %v3750_v23, %v3271_v46  ;;  %v596_v32 = vmul.f32 %v3789_v14, %v3276_v47  ;;  %v4864_v40 = vrot.slane %v3657_v33, 1 }
  0x47   : > { %v852_v29 = vadd.f32 %v3515_v24, %v836_v56  ;;  %v4865_v53 = vrot.slane %v3489_v31, 1  ;;  %v4866_v56 = vrot.slane %v3429_v54, 1  ;;  %v619_v48 = vmul.f32 %v3797_v9, %v3301_v55  ;;  %v2699_v55 = vld [vmem:[%s4794_s1 + $0xe0] sm:$0xff]  ;;  %1913 = vperm.xlu1 %3067, %v2717_v0  }
  0x48   : > { %v641_v2 = vsel %vm529_vm2, %v4864_v40, %v640_v19  ;;  %v664_v33 = vadd.f32 %v647_v43, %v607_v1  ;;  %v583_v61 = vadd.f32 %v574_v30, %v3647_v60  ;;  %v733_v54 = vmul.f32 %v3540_v5, %v3350_v34  ;;  %2941 = vmatmul.mubr.msk.f32.gmra.mrb[26].mxu1 %vm867_vm1, %v3448_v59 }
  0x49   : > { %v698_v6 = vsel %vm529_vm2, %v4866_v56, %v4865_v53  ;;  %2839 = vmatmul.mubr.msk.f32.gmra.mrb[6].mxu0 %vm867_vm1, %v852_v29  ;;  %v661_v40 = vadd.f32 %v641_v2, %v604_v15  ;;  %v4867_v62 = vrot.slane %v3703_v42, 1  ;;  %v4868_v2 = vrot.slane %v3661_v12, 1  ;;  %2943 = vmatprep.mubr.msk.f32.mxu1 %vm3077_vm0, %v4847_v58 }
  0x4a   : > { %2841 = vmatprep.mubr.msk.f32.mxu0 %vm3077_vm0, %v4847_v58  ;;  %v642_v1 = vrot.slane %v619_v48, 1  ;;  %v575_v15 = vmul.f32 %v3797_v9, %v3271_v46  ;;  %v605_v30 = vadd.f32 %v596_v32, %v583_v61  ;;  %v756_v53 = vrot.slane %v733_v54, 1  ;;  %1699 = vperm.xlu0 %3066, %v2699_v55  }
  0x4b   : > { %v704_v29 = vsel %vm529_vm2, %v4867_v62, %v703_v16  ;;  %v755_v60 = vsel %vm529_vm2, %v4868_v2, %v754_v21  ;;  %v718_v43 = vadd.f32 %v698_v6, %v661_v40  ;;  %v597_v56 = vmul.f32 %v3831_v38, %v3276_v47  ;;  %v2678_v6 = vld [vmem:[%s4794_s1 + $0x88] sm:$0xff] }
  0x4c   : > { %v4869_v12 = vrot.slane %v3492_v39, 2  ;;  %v4870_v48 = vrot.slane %v3434_v13, 2  ;;  %v643_v46 = vsel %vm529_vm2, %v640_v19, %v642_v1  ;;  %v4871_v59 = vrot.slane %v3587_v36, 1  ;;  %2944 = vmatmul.mubr.msk.f32.gmra.mrb[28].mxu1 %vm867_vm1, %v3527_v35  ;;  %1469 = vperm.xlu1 %3067, %v2678_v6  }
  0x4d   : > { %v4872_v32 = vrot.slane %v3489_v31, 1  ;;  %v584_v47 = vadd.f32 %v575_v15, %v3760_v41  ;;  %v775_v0 = vadd.f32 %v755_v60, %v718_v43  ;;  %v662_v40 = vadd.f32 %v643_v46, %v605_v30  ;;  %v1195_v31 = vld [vmem:[%s4794_s1 + $0x40] sm:$0xff]  ;;  %2946 = vmatprep.mubr.msk.f32.mxu1 %vm3077_vm0, %v4847_v58 }
  0x4e   : > { %v815_v62 = vsel %vm804_vm3, %v4870_v48, %v4869_v12  ;;  %v645_v13 = vsel %vm529_vm2, %v642_v1, %v644_v45  ;;  %v734_v19 = vmul.f32 %v3570_v57, %v3350_v34  ;;  %v4873_v54 = vrot.slane %v3717_v20, 1  ;;  %1240 = vperm.xlu0 %3066, %v1195_v31   ;;  %v2700_v48 = vld [vmem:[%s4794_s1 + $0xe8] sm:$0xff]  ;;  %v2720_v31 = vld [vmem:[%s4794_s1 + $0x140] sm:$0xff] }
  0x4f   : > { %v700_v61 = vsel %vm529_vm2, %v4872_v32, %v4871_v59  ;;  %v721_v41 = vadd.f32 %v704_v29, %v664_v33  ;;  %v757_v55 = vsel %vm529_vm2, %v754_v21, %v756_v53  ;;  %v606_v15 = vadd.f32 %v597_v56, %v584_v47 }
  0x50   : > { %v665_v2 = vadd.f32 %v4873_v54, %v608_v11  ;;  %v837_v60 = vadd.f32 %v815_v62, %v775_v0  ;;  %v719_v43 = vadd.f32 %v700_v61, %v662_v40  ;;  %v4874_v45 = vrot.slane %v3703_v42, 1  ;;  %2947 = vmatmul.mubr.msk.f32.gmra.mrb[30].mxu1 %vm867_vm1, %v3629_v8  ;;  %v2680_v0 = vld [vmem:[%s4794_s1 + $0x98] sm:$0xff] }
  0x51   : > { %v4875_v34 = vmov %v4871_v59  ;;  %v758_v30 = vrot.slane %v734_v19, 1  ;;  %v820_v20 = vrot.slane %v3808_v44, 2  ;;  %v793_v11 = vmul.f32 %v3251_v37, %v3664_v63  ;;  %v2718_v37 = vld [vmem:[%s4794_s1 + $0x130] sm:$0xff]  ;;  %2949 = vmatprep.mubr.msk.f32.mxu1 %vm3077_vm0, %v4847_v58 }
  0x52   : > { %v702_v1 = vsel %vm529_vm2, %v4875_v34, %v4874_v45  ;;  %v4876_v35 = vrot.slane %v3626_v7, 2  ;;  %v4877_v21 = vmov %v4869_v12  ;;  %v663_v33 = vadd.f32 %v645_v13, %v606_v15  ;;  %1918 = vperm.xlu1 %3067, %v2718_v37   ;;  %1704 = vperm.xlu0 %3066, %v2700_v48   ;;  %v2679_v7 = vld [vmem:[%s4794_s1 + $0x90] sm:$0xff] }
  0x53   : > { %v853_v36 = vadd.f32 %v3515_v24, %v837_v60  ;;  %v776_v29 = vadd.f32 %v757_v55, %v719_v43  ;;  %v759_v56 = vsel %vm529_vm2, %v756_v53, %v758_v30  ;;  %v4878_v12 = vrot.slane %v3784_v27, 1  ;;  %v2719_v27 = vld [vmem:[%s4794_s1 + $0x138] sm:$0xff]  ;;  %v1197_v15 = vld [vmem:[%s4794_s1 + $0x50] sm:$0x1] }
  0x54   : > { %v817_v42 = vsel %vm804_vm3, %v4877_v21, %v4876_v35  ;;  %v722_v39 = vadd.f32 %v703_v16, %v665_v2  ;;  %v720_v63 = vadd.f32 %v702_v1, %v663_v33  ;;  %v4879_v62 = vrot.slane %v3727_v28, 2  ;;  %2950 = vmatmul.mubr.msk.f32.gmra.mrb[32].mxu1 %vm867_vm1, %v3750_v23  ;;  %v4889_v43 = vld [vmem:[#allocation9_spill] sm:$0xff] }
  0x55   : > { %v761_v44 = vsel %vm529_vm2, %v758_v30, %v4878_v12  ;;  %2842 = vmatmul.mubr.msk.f32.gmra.mrb[8].mxu0 %vm867_vm1, %v853_v36  ;;  %v838_v53 = vadd.f32 %v817_v42, %v776_v29  ;;  %v4880_v46 = vmov %v4876_v35  ;;  %v822_v8 = vrot.slane %v793_v11, 2  ;;  %2952 = vmatprep.mubr.msk.f32.mxu1 %vm3077_vm0, %v4847_v58  ;;  %v2340_v36 = vld [vmem:[%s4803_s10] sm:$0xff]  ;;  %v2341_v29 = vld [vmem:[%s4803_s10 + $0x8] sm:$0xff] }
  0x56   : > { %v819_v59 = vsel %vm804_vm3, %v4880_v46, %v4879_v62  ;;  %v778_v32 = vadd.f32 %v761_v44, %v721_v41  ;;  %2844 = vmatprep.mubr.msk.f32.mxu0 %vm3077_vm0, %v4847_v58  ;;  %v777_v49 = vadd.f32 %v759_v56, %v720_v63  ;;  %v4881_v16 = vmov %v4879_v62  ;;  %v2681_v41 = vld [vmem:[%s4794_s1 + $0xa0] sm:$0xff] }
  0x57   : > { %v821_v61 = vsel %vm804_vm3, %v4881_v16, %v820_v20  ;;  %v854_v47 = vadd.f32 %v3515_v24, %v838_v53  ;;  %v4882_v28 = vmov %v4878_v12  ;;  %v823_v19 = vsel %vm804_vm3, %v820_v20, %v822_v8  ;;  %1474 = vperm.xlu1 %3067, %v2679_v7   ;;  %1479 = vperm.xlu0 %3066, %v2680_v0   ;;  %v4120_v63 = vld [vmem:[%s4800_s7] ss:$0 sm:$0xff] }
  0x58   : > { %v839_v6 = vadd.f32 %v819_v59, %v777_v49  ;;  %v779_v40 = vadd.f32 %v4882_v28, %v722_v39  ;;  %v840_v13 = vadd.f32 %v821_v61, %v778_v32  ;;  %2953 = vmatmul.mubr.msk.f32.gmra.mrb[34].mxu1 %vm867_vm1, %v3797_v9  ;;  %v2701_v9 = vld [vmem:[%s4794_s1 + $0xf0] sm:$0xff]  ;;  %v3051_v56 = vpack.c.bf16 %v2341_v29, %v2340_v36  ;;  %v4127_v62 = vld [vmem:[%s4801_s8] sm:$0xff] }
  0x59   : > { %2845 = vmatmul.mubr.msk.f32.gmra.mrb[10].mxu0 %vm867_vm1, %v854_v47  ;;  %2955 = vmatprep.mubr.msk.f32.mxu1 %vm3077_vm0, %v4847_v58  ;;  %v4893_v49 = vld [vmem:[#allocation2_spill] sm:$0xff]  ;;  %vm2509_vm6 = vcmask 253952   ;;  %vm2512_vm7 = vcmask 261122   ;;  %vm2514_vm8 = vcmask 254976   ;;  %vm2517_vm9 = vcmask 261123  }
  0x5a   : > { %2847 = vmatprep.mubr.msk.f32.mxu0 %vm3077_vm0, %v4847_v58  ;;  %v855_v23 = vadd.f32 %v3515_v24, %v839_v6  ;;  %v856_v54 = vadd.f32 %v3515_v24, %v840_v13  ;;  %v841_v2 = vadd.f32 %v823_v19, %v779_v40  ;;  %3052 = vmatpush3.bf16.msra.mxu1 %v3051_v56  ;;  %v4894_v16 = vsub.s32 2, %v4893_v49  ;;  %v2625_v29 = vld [vmem:[%s3195_s20 + $0x100] sm:$0x1] }
  0x5b   : > { %1923 = vperm.xlu1 %3067, %v2719_v27   ;;  %1928 = vperm.xlu0 %3066, %v2720_v31   ;;  %v4154_v31 = vld [vmem:[%s4801_s8 + $0x8] ss:$0 sm:$0xff]  ;;  %vm2519_vm10 = vcmask 256000   ;;  %vm2522_vm11 = vcmask 261124   ;;  %vm2524_vm12 = vcmask 257024   ;;  %vm2527_vm13 = vcmask 261125  }
  0x5c   : > { %2956 = vmatmul.mubr.msk.f32.gmra.mrb[36].mxu1 %vm867_vm1, %v3671_v3  ;;  %v857_v55 = vadd.f32 %v3515_v24, %v841_v2  ;;  %v1196_v3 = vld [vmem:[%s4794_s1 + $0x48] sm:$0xff]  ;;  %v4135_v61 = vrot.slane %v4127_v62, %v4894_v16  ;;  %vm2529_vm14 = vcmask 258048   ;;  %vm2532_vm15 = vcmask 261126  }
  0x5d   : > { %2848 = vmatmul.mubr.msk.f32.gmra.mrb[12].mxu0 %vm867_vm1, %v855_v23  ;;  %2958 = vmatprep.mubr.msk.f32.mxu1 %vm3077_vm0, %v4847_v58  ;;  %v2721_v24 = vld [vmem:[%s4794_s1 + $0x148] sm:$0xff]  ;;  %v4896_v23 = vsub.s32 6, %v4893_v49 }
  0x5e   : > { %2850 = vmatprep.mubr.msk.f32.mxu0 %vm3077_vm0, %v4847_v58 }
  0x5f   : > { %1709 = vperm.xlu1 %3067, %v2701_v9   ;;  %1484 = vperm.xlu0 %3066, %v2681_v41   ;;  %v4149_v27 = vrot.slane %v4127_v62, %v4896_v23 }
  0x60   : > { %2959 = vmatmul.mubr.msk.f32.gmra.mrb[38].mxu1 %vm867_vm1, %v3674_v51  ;;  %v4883_v51 = vld [vmem:[#allocation3_spill] sm:$0xff] }
  0x61   : > { %2851 = vmatmul.mubr.msk.f32.gmra.mrb[14].mxu0 %vm867_vm1, %v856_v54  ;;  %2961 = vmatprep.mubr.msk.f32.mxu1 %vm3077_vm0, %v4847_v58 }
  0x62   : > { %2853 = vmatprep.mubr.msk.f32.mxu0 %vm3077_vm0, %v4847_v58 }
  0x63   : > { %1245 = vperm.xlu1 %3067, %v1196_v3   ;;  %1250 = vperm.xlu0 %3066, %v1197_v15   ;;  %v2624_v3 = vld [vmem:[%s3195_s20 + $0xf8] sm:$0xff] }
  0x64   : > { %2962 = vmatmul.mubr.msk.f32.gmra.mrb[40].mxu1 %vm867_vm1, %v2624_v3 }
  0x65   : > { %2854 = vmatmul.mubr.msk.f32.gmra.mrb[16].mxu0 %vm867_vm1, %v857_v55  ;;  %2964 = vmatprep.mubr.msk.f32.mxu1 %vm3077_vm0, %v4847_v58 }
  0x66   : > { %2897 = vmatprep.mubr.msk.f32.mxu0 %vm3077_vm0, %v4847_v58 }
  0x67   : > { %1933 = vperm.xlu1 %3067, %v2721_v24  }
  0x68   : > { %2965 = vmatmul.mubr.msk.f32.gmra.mrb[42].mxu1 %vm867_vm1, %v2625_v29 }
  0x69   : > { %2898 = vmatmul.mubr.msk.f32.vlgmr.msra.gmra.mrb[18].mxu0 %vm867_vm1, %v3218_v22  ;;  %v4884_v22 = vld [vmem:[#allocation4_spill] sm:$0xff]  ;;  %3008 = vmatprep.mubr.msk.f32.mxu1 %vm3077_vm0, %v4847_v58 }
  0x6a   : > { %3049 = vmatpush3.bf16.msra.mxu0 %v3160_v4  ;;  %2900 = vmatprep.mubr.msk.f32.mxu0 %vm3077_vm0, %v4847_v58  ;;  %v4885_v4 = vld [vmem:[#allocation5_spill] sm:$0xff] }
  0x6d   : > { %2901 = vmatmul.mubr.msk.f32.gmra.mrb[20].mxu0 %vm867_vm1, %v3225_v26  ;;  %v2614_v26 = vld [vmem:[%s3195_s20 + $0xa8] sm:$0x1] }
  0x6e   : > { %2903 = vmatprep.mubr.msk.f32.mxu0 %vm3077_vm0, %v4847_v58 }
  0x71   : > { %2904 = vmatmul.mubr.msk.f32.gmra.mrb[22].mxu0 %vm867_vm1, %v4883_v51 }
  0x72   : > { %2906 = vmatprep.mubr.msk.f32.mxu0 %vm3077_vm0, %v4847_v58 }
  0x75   : > { %2907 = vmatmul.mubr.msk.f32.gmra.mrb[24].mxu0 %vm867_vm1, %v4884_v22 }
  0x76   : > { %2909 = vmatprep.mubr.msk.f32.mxu0 %vm3077_vm0, %v4847_v58 }
  0x79   : > { %2910 = vmatmul.mubr.msk.f32.gmra.mrb[26].mxu0 %vm867_vm1, %v4885_v4 }
  0x7a   : > { %2912 = vmatprep.mubr.msk.f32.mxu0 %vm3077_vm0, %v4847_v58 }
  0x7d   : > { %2913 = vmatmul.mubr.msk.f32.gmra.mrb[28].mxu0 %vm867_vm1, %v3374_v50  ;;  %v4887_v50 = vld [vmem:[#allocation7_spill] sm:$0xff] }
  0x7e   : > { %2915 = vmatprep.mubr.msk.f32.mxu0 %vm3077_vm0, %v4847_v58 }
  0x81   : > { %2916 = vmatmul.mubr.msk.f32.gmra.mrb[30].mxu0 %vm867_vm1, %v3457_v10  ;;  %v4888_v10 = vld [vmem:[#allocation8_spill] sm:$0xff] }
  0x82   : > { %2918 = vmatprep.mubr.msk.f32.mxu0 %vm3077_vm0, %v4847_v58 }
  0x85   : > { %2919 = vmatmul.mubr.msk.f32.gmra.mrb[32].mxu0 %vm867_vm1, %v3540_v5  ;;  %v4886_v5 = vld [vmem:[#allocation6_spill] sm:$0xff] }
  0x86   : > { %2921 = vmatprep.mubr.msk.f32.mxu0 %vm3077_vm0, %v4847_v58 }
  0x89   : > { %2922 = vmatmul.mubr.msk.f32.gmra.mrb[34].mxu0 %vm867_vm1, %v3570_v57 }
  0x8a   : > { %2924 = vmatprep.mubr.msk.f32.mxu0 %vm3077_vm0, %v4847_v58 }
  0x8d   : > { %2925 = vmatmul.mubr.msk.f32.gmra.mrb[36].mxu0 %vm867_vm1, %v3747_v52 }
  0x8e   : > { %2927 = vmatprep.mubr.msk.f32.mxu0 %vm3077_vm0, %v4847_v58 }
  0x91   : > { %2928 = vmatmul.mubr.msk.f32.gmra.mrb[38].mxu0 %vm867_vm1, %v2614_v26  ;;  %v1201_v57 = vpop.permute.xlu0 %1200 }
  0x92   : > { %2971 = vmatprep.mubr.msk.f32.mxu0 %vm3077_vm0, %v4847_v58 }
  0x95   : > { %2972 = vmatmul.mubr.msk.f32.vlgmr.msra.gmra.mrb[40].mxu0 %vm867_vm1, %v4886_v5 }
  0x96   : > { %2974 = vmatprep.mubr.msk.f32.mxu0 %vm3077_vm0, %v4847_v58  ;;  %v1206_v52 = vpop.permute.xlu0 %1205 }
  0x99   : > { %2975 = vmatmul.mubr.msk.f32.gmra.mrb[42].mxu0 %vm867_vm1, %v4887_v50 }
  0x9a   : > { %2977 = vmatprep.mubr.msk.f32.mxu0 %vm3077_vm0, %v4847_v58  ;;  %v4067_v60 = vpop.permute.xlu0 %1444 }
  0x9d   : > { %2978 = vmatmul.mubr.msk.f32.gmra.mrb[44].mxu0 %vm867_vm1, %v4888_v10 }
  0x9e   : > { %2980 = vmatprep.mubr.msk.f32.mxu0 %vm3077_vm0, %v4847_v58 }
  0xa1   : > { %2981 = vmatmul.mubr.msk.f32.gmra.mrb[46].mxu0 %vm867_vm1, %v3615_v18  ;;  %v4063_v18 = vpop.permute.xlu1 %1439 }
  0xa2   : > { %2983 = vmatprep.mubr.msk.f32.mxu0 %vm3077_vm0, %v4847_v58 }
  0xa5   : > { %2984 = vmatmul.mubr.msk.f32.gmra.mrb[48].mxu0 %vm867_vm1, %v3720_v17  ;;  %v1211_v17 = vpop.permute.xlu1 %1210 }
  0xa6   : > { %2986 = vmatprep.mubr.msk.f32.mxu0 %vm3077_vm0, %v4847_v58 }
  0xa9   : > { %2987 = vmatmul.mubr.msk.f32.gmra.mrb[50].mxu0 %vm867_vm1, %v3789_v14  ;;  %v4073_v14 = vpop.permute.xlu0 %1674 }
  0xaa   : > { %2989 = vmatprep.mubr.msk.f32.mxu0 %vm3077_vm0, %v4847_v58 }
  0xad   : > { %2990 = vmatmul.mubr.msk.f32.gmra.mrb[52].mxu0 %vm867_vm1, %v3831_v38  ;;  %v4079_v38 = vpop.permute.xlu1 %1669  ;;  %v4081_v45 = vpop.permute.xlu0 %1215 }
  0xae   : > { %2992 = vmatprep.mubr.msk.f32.mxu0 %vm3077_vm0, %v4847_v58 }
  0xb1   : > { %2993 = vmatmul.mubr.msk.f32.gmra.mrb[54].mxu0 %vm867_vm1, %v3679_v25  ;;  %v4083_v34 = vpop.permute.xlu1 %1893  ;;  %v4085_v1 = vpop.permute.xlu0 %1679 }
  0xb2   : > { %2995 = vmatprep.mubr.msk.f32.mxu0 %vm3077_vm0, %v4847_v58 }
  0xb5   : > { %2996 = vmatmul.mubr.msk.f32.gmra.mrb[56].mxu0 %vm867_vm1, %v4889_v43  ;;  %v4087_v25 = vpop.permute.xlu1 %1449  ;;  %v4089_v30 = vpop.permute.xlu0 %1220 }
  0xb6   : > { %2998 = vmatprep.mubr.msk.f32.mxu0 %vm3077_vm0, %v4847_v58 }
  0xb9   : > { %v4091_v20 = vpop.permute.xlu1 %1898  ;;  %v4093_v11 = vpop.permute.xlu0 %1684 }
  0xba   : > { %4890 = vst [vmem:[#allocation3_spill] sm:$0xff] %v4091_v20 }
  0xbd   : > { %v4095_v35 = vpop.permute.xlu1 %1454  ;;  %v4097_v21 = vpop.permute.xlu0 %1225 }
  0xc1   : > { %v4099_v42 = vpop.permute.xlu1 %1903  ;;  %v4101_v33 = vpop.permute.xlu0 %1689 }
  0xc2   : > { %4891 = vst [vmem:[#allocation4_spill] sm:$0xff] %v4099_v42 }
  0xc5   : > { %v4109_v12 = vpop.permute.xlu1 %1459  ;;  %v4111_v44 = vpop.permute.xlu0 %1230 }
  0xc9   : > { %v4113_v37 = vpop.permute.xlu1 %1908  ;;  %v4115_v39 = vpop.permute.xlu0 %1694 }
  0xca   : > { %4892 = vst [vmem:[#allocation5_spill] sm:$0xff] %v4113_v37 }
  0xcd   : > { %v4122_v48 = vpop.permute.xlu1 %1464  ;;  %v4129_v46 = vpop.permute.xlu0 %1235 }
  0xd1   : > { %v4140_v28 = vpop.permute.xlu1 %1913  ;;  %v4142_v40 = vpop.permute.xlu0 %1699 }
  0xd2   : > { %4895 = vst [vmem:[#allocation6_spill] sm:$0xff] %v4140_v28 }
  0xd5   : > { %v4166_v4 = vpop.permute.xlu1 %1469  ;;  %v4169_v5 = vpop.permute.xlu0 %1240 }
  0xe7   : > { %v1122_v53 = vpop.f32.mrb[0].mxu1 }
  0xe8   : > { %v1123_v59 = vadd.f32 %v4120_v63, %v1122_v53  ;;  %v2862_v32 = vpop.f32.mrb[1].mxu1 }
  0xea   : > { %v1176_v8 = vmax.f32 %v1123_v59, 0.0 }
  0xeb   : > { %v1127_v47 = vpop.f32.mrb[2].mxu1 }
  0xec   : > { %v4137_v7 = vmul.f32 %v1201_v57, %v1176_v8  ;;  %v1128_v6 = vadd.f32 %v4120_v63, %v1127_v47  ;;  %v2865_v0 = vpop.f32.mrb[3].mxu1 }
  0xee   : > { %v1995_v13 = vmul.f32 %v4135_v61, %v4137_v7  ;;  %v1177_v19 = vmax.f32 %v1128_v6, 0.0 }
  0xef   : > { %v1132_v54 = vpop.f32.mrb[4].mxu1 }
  0xf0   : > { %v4156_v2 = vmul.f32 %v1206_v52, %v1177_v19  ;;  %v1133_v9 = vadd.f32 %v4120_v63, %v1132_v54  ;;  %v2868_v41 = vpop.f32.mrb[5].mxu1  ;;  %v2013_v55 = vrot.slane %v1995_v13, 1  ;;  %v4190_v19 = vpop.permute.xlu1 %1918 }
  0xf1   : > { %4897 = vst [vmem:[#allocation7_spill] sm:$0xff] %v4190_v19  ;;  %v4195_v54 = vpop.permute.xlu0 %1704 }
  0xf2   : > { %v1996_v15 = vmul.f32 %v4135_v61, %v4156_v2  ;;  %v2153_v24 = vmul.f32 %v4149_v27, %v4156_v2  ;;  %v2267_v51 = vmul.f32 %v4154_v31, %v4156_v2  ;;  %v1178_v22 = vmax.f32 %v1133_v9, 0.0 }
  0xf3   : > { %v1137_v26 = vpop.f32.mrb[6].mxu1 }
  0xf4   : > { %v2014_v50 = vrot.slane %v1996_v15, 1  ;;  %v4173_v10 = vmul.f32 %v1211_v17, %v1178_v22  ;;  %v2871_v57 = vpop.f32.mrb[7].mxu1  ;;  %v2171_v52 = vrot.slane %v2153_v24, 1  ;;  %v2287_v43 = vrot.slane %v2267_v51, 2 }
  0xf5   : > { %v1138_v36 = vadd.f32 %v4120_v63, %v1137_v26 }
  0xf6   : > { %v1997_v56 = vmul.f32 %v4135_v61, %v4173_v10  ;;  %v2154_v53 = vmul.f32 %v4149_v27, %v4173_v10  ;;  %v2268_v59 = vmul.f32 %v4154_v31, %v4173_v10  ;;  %v4184_v32 = vsel %vm529_vm2, %v2013_v55, %v2014_v50 }
  0xf7   : > { %v1179_v17 = vmax.f32 %v1138_v36, 0.0  ;;  %v1142_v8 = vpop.f32.mrb[8].mxu1 }
  0xf8   : > { %v2016_v16 = vrot.slane %v1997_v56, 1  ;;  %v2172_v47 = vrot.slane %v2154_v53, 1  ;;  %v2288_v6 = vrot.slane %v2268_v59, 2  ;;  %v1143_v0 = vadd.f32 %v4120_v63, %v1142_v8  ;;  %v2874_v13 = vpop.f32.mrb[9].mxu1  ;;  %v4222_v59 = vpop.permute.xlu1 %1474 }
  0xf9   : > { %v4193_v23 = vmul.f32 %v4081_v45, %v1179_v17  ;;  %v4224_v17 = vpop.permute.xlu0 %1479 }
  0xfa   : > { %v1180_v9 = vmax.f32 %v1143_v0, 0.0  ;;  %v4198_v41 = vsel %vm529_vm2, %v2014_v50, %v2016_v16  ;;  %v4201_v55 = vsel %vm529_vm2, %v2171_v52, %v2172_v47  ;;  %v4204_v3 = vsel %vm804_vm3, %v2287_v43, %v2288_v6 }
  0xfb   : > { %4898 = vst [vmem:[#allocation8_spill] sm:$0xff] %v4201_v55  ;;  %4899 = vst [vmem:[#allocation9_spill] sm:$0xff] %v4204_v3  ;;  %v1998_v15 = vmul.f32 %v4135_v61, %v4193_v23  ;;  %v2155_v24 = vmul.f32 %v4149_v27, %v4193_v23  ;;  %v2269_v45 = vmul.f32 %v4154_v31, %v4193_v23  ;;  %v1147_v51 = vpop.f32.mrb[10].mxu1 }
  0xfc   : > { %v4213_v22 = vmul.f32 %v4089_v30, %v1180_v9  ;;  %v1148_v26 = vadd.f32 %v4120_v63, %v1147_v51  ;;  %v2877_v50 = vpop.f32.mrb[11].mxu1 }
  0xfd   : > { %v2018_v57 = vrot.slane %v1998_v15, 1  ;;  %v2174_v52 = vrot.slane %v2155_v24, 1  ;;  %v2290_v43 = vrot.slane %v2269_v45, 2 }
  0xfe   : > { %v1999_v36 = vmul.f32 %v4135_v61, %v4213_v22  ;;  %v2156_v29 = vmul.f32 %v4149_v27, %v4213_v22  ;;  %v2270_v56 = vmul.f32 %v4154_v31, %v4213_v22  ;;  %v1181_v53 = vmax.f32 %v1148_v26, 0.0 }
  0xff   : > { %v1152_v30 = vpop.f32.mrb[12].mxu1  ;;  %v4227_v8 = vsel %vm529_vm2, %v2016_v16, %v2018_v57  ;;  %v4230_v0 = vsel %vm529_vm2, %v2172_v47, %v2174_v52  ;;  %v4233_v13 = vsel %vm804_vm3, %v2288_v6, %v2290_v43 }
 0x100   : > { %4900 = vst [vmem:[#allocation2_spill] sm:$0xff] %v4230_v0  ;;  %4901 = vst [vmem:[#allocation10_spill] sm:$0xff] %v4233_v13  ;;  %v2020_v9 = vrot.slane %v1999_v36, 1  ;;  %v2176_v15 = vrot.slane %v2156_v29, 1  ;;  %v2292_v24 = vrot.slane %v2270_v56, 2  ;;  %v4236_v45 = vmul.f32 %v4097_v21, %v1181_v53  ;;  %v2880_v51 = vpop.f32.mrb[13].mxu1  ;;  %v4255_v13 = vpop.permute.xlu1 %1923 }
 0x101   : > { %v1153_v26 = vadd.f32 %v4120_v63, %v1152_v30  ;;  %4904 = vst [vmem:[#allocation13_spill] sm:$0xff] %v4255_v13 }
 0x102   : > { %v2000_v50 = vmul.f32 %v4135_v61, %v4236_v45  ;;  %v2157_v16 = vmul.f32 %v4149_v27, %v4236_v45  ;;  %v2271_v47 = vmul.f32 %v4154_v31, %v4236_v45  ;;  %v4246_v6 = vsel %vm529_vm2, %v2018_v57, %v2020_v9 }
 0x103   : > { %v1182_v36 = vmax.f32 %v1153_v26, 0.0  ;;  %v1157_v29 = vpop.f32.mrb[14].mxu1  ;;  %v4249_v21 = vsel %vm529_vm2, %v2174_v52, %v2176_v15  ;;  %v4252_v56 = vsel %vm804_vm3, %v2290_v43, %v2292_v24  ;;  %v4262_v26 = vpop.permute.xlu0 %1928 }
 0x104   : > { %4902 = vst [vmem:[#allocation11_spill] sm:$0xff] %v4249_v21  ;;  %4903 = vst [vmem:[#allocation12_spill] sm:$0xff] %v4252_v56  ;;  %v2022_v53 = vrot.slane %v2000_v50, 1  ;;  %v2178_v30 = vrot.slane %v2157_v16, 1  ;;  %v2294_v51 = vrot.slane %v2271_v47, 2  ;;  %v1158_v19 = vadd.f32 %v4120_v63, %v1157_v29  ;;  %v2883_v28 = vpop.f32.mrb[15].mxu1 }
 0x105   : > { %v4257_v37 = vpop.f32.mrb[0].mxu0  ;;  %v4260_v57 = vmul.f32 %v4111_v44, %v1182_v36  ;;  %4906 = vst [vmem:[#allocation15_spill] sm:$0xff] %v4262_v26 }
 0x106   : > { %4905 = vst [vmem:[#allocation14_spill] sm:$0xff] %v4257_v37  ;;  %v2831_v52 = vpop.f32.mrb[1].mxu0  ;;  %v1183_v21 = vmax.f32 %v1158_v19, 0.0  ;;  %v4265_v43 = vsel %vm529_vm2, %v2020_v9, %v2022_v53  ;;  %v4268_v50 = vsel %vm529_vm2, %v2176_v15, %v2178_v30  ;;  %v4281_v29 = vsel %vm804_vm3, %v2292_v24, %v2294_v51 }
 0x107   : > { %4907 = vst [vmem:[#allocation16_spill] sm:$0xff] %v4268_v50  ;;  %v2001_v28 = vmul.f32 %v4135_v61, %v4260_v57  ;;  %v2158_v16 = vmul.f32 %v4149_v27, %v4260_v57  ;;  %v2272_v44 = vmul.f32 %v4154_v31, %v4260_v57  ;;  %v1162_v47 = vpop.f32.mrb[16].mxu1  ;;  %4908 = vst [vmem:[#allocation17_spill] sm:$0xff] %v4281_v29 }
 0x108   : > { %v4277_v36 = vmul.f32 %v4129_v46, %v1183_v21  ;;  %v1163_v19 = vadd.f32 %v4120_v63, %v1162_v47  ;;  %v2886_v9 = vpop.f32.mrb[17].mxu1  ;;  %v4289_v21 = vpop.permute.xlu1 %1709 }
 0x109   : > { %v2024_v15 = vrot.slane %v2001_v28, 1  ;;  %v2180_v52 = vrot.slane %v2158_v16, 1  ;;  %v2296_v37 = vrot.slane %v2272_v44, 2  ;;  %v4291_v9 = vpop.permute.xlu0 %1484 }
 0x10a   : > { %v2002_v26 = vmul.f32 %v4135_v61, %v4277_v36  ;;  %v2159_v13 = vmul.f32 %v4149_v27, %v4277_v36  ;;  %v2273_v56 = vmul.f32 %v4154_v31, %v4277_v36  ;;  %v1184_v46 = vmax.f32 %v1163_v19, 0.0  ;;  %v4302_v44 = vpop.f32.mrb[2].mxu0 }
 0x10b   : > { %v1167_v47 = vpop.f32.mrb[18].mxu1  ;;  %v4294_v24 = vsel %vm529_vm2, %v2022_v53, %v2024_v15  ;;  %v4297_v28 = vsel %vm529_vm2, %v2178_v30, %v2180_v52  ;;  %v4300_v16 = vsel %vm804_vm3, %v2294_v51, %v2296_v37  ;;  %4911 = vst [vmem:[#allocation20_spill] sm:$0xff] %v4302_v44  ;;  %v2834_v3 = vpop.f32.mrb[3].mxu0 }
 0x10c   : > { %4909 = vst [vmem:[#allocation18_spill] sm:$0xff] %v4297_v28  ;;  %4910 = vst [vmem:[#allocation19_spill] sm:$0xff] %v4300_v16  ;;  %v2026_v29 = vrot.slane %v2002_v26, 1  ;;  %v2182_v50 = vrot.slane %v2159_v13, 1  ;;  %v4305_v19 = vmul.f32 %v4169_v5, %v1184_v46  ;;  %v2889_v0 = vpop.f32.mrb[19].mxu1  ;;  %v2298_v42 = vrot.slane %v2273_v56, 2  ;;  %v1246_v44 = vpop.permute.xlu1 %1245 }
 0x10d   : > { %v1168_v55 = vadd.f32 %v4120_v63, %v1167_v47  ;;  %v1251_v28 = vpop.permute.xlu0 %1250 }
 0x10e   : > { %v4310_v53 = vmul.f32 %v4135_v61, %v4305_v19  ;;  %v2160_v30 = vmul.f32 %v4149_v27, %v4305_v19  ;;  %v2274_v51 = vmul.f32 %v4154_v31, %v4305_v19  ;;  %v4317_v13 = vsel %vm529_vm2, %v2024_v15, %v2026_v29 }
 0x10f   : > { %v1185_v5 = vmax.f32 %v1168_v55, 0.0  ;;  %v1172_v26 = vpop.f32.mrb[20].mxu1  ;;  %v4320_v3 = vsel %vm529_vm2, %v2180_v52, %v2182_v50  ;;  %v4325_v20 = vsel %vm804_vm3, %v2296_v37, %v2298_v42 }
 0x110   : > { %4912 = vst [vmem:[#allocation21_spill] sm:$0xff] %v4320_v3  ;;  %v4833_v0 = vrot.slane %v4310_v53, 1  ;;  %v2184_v56 = vrot.slane %v2160_v30, 1  ;;  %v2300_v46 = vrot.slane %v2274_v51, 2  ;;  %v1173_v61 = vadd.f32 %v4120_v63, %v1172_v26  ;;  %v2892_v47 = vpop.f32.mrb[21].mxu1  ;;  %4913 = vst [vmem:[#allocation22_spill] sm:$0xff] %v4325_v20 }
 0x111   : > { %v1262_v16 = vmul.f32 %v1246_v44, %v1185_v5 }
 0x112   : > { %v1186_v15 = vmax.f32 %v1173_v61, 0.0  ;;  %v4330_v55 = vsel %vm529_vm2, %v2026_v29, %v4833_v0  ;;  %v4333_v52 = vsel %vm529_vm2, %v2182_v50, %v2184_v56  ;;  %v4336_v30 = vsel %vm804_vm3, %v2298_v42, %v2300_v46  ;;  %v4338_v51 = vpop.f32.mrb[4].mxu0 }
 0x113   : > { %4914 = vst [vmem:[#allocation23_spill] sm:$0xff] %v4333_v52  ;;  %4915 = vst [vmem:[#allocation24_spill] sm:$0xff] %v4336_v30  ;;  %v4341_v44 = vmul.f32 %v4149_v27, %v1262_v16  ;;  %v2275_v37 = vmul.f32 %v4154_v31, %v1262_v16  ;;  %v2837_v5 = vpop.f32.mrb[5].mxu0  ;;  %v1596_v26 = vpop.f32.mrb[22].mxu1 }
 0x114   : > { %4916 = vst [vmem:[#allocation25_spill] sm:$0xff] %v4338_v51  ;;  %v1263_v61 = vmul.f32 %v1251_v28, %v1186_v15  ;;  %v1597_v47 = vadd.f32 %v4120_v63, %v1596_v26  ;;  %v2936_v29 = vpop.f32.mrb[23].mxu1  ;;  %v4918_v51 = vsub.s32 5, %v4893_v49 }
 0x115   : > { %4917 = vst [vmem:[#allocation26_spill] sm:$0xff] %v4341_v44  ;;  %v4834_v0 = vrot.slane %v4341_v44, 1  ;;  %v2302_v50 = vrot.slane %v2275_v37, 2 }
 0x116   : > { %v2276_v42 = vmul.f32 %v4154_v31, %v1263_v61  ;;  %v1648_v30 = vmax.f32 %v1597_v47, 0.0  ;;  %v4350_v27 = vrot.slane %v4127_v62, %v4918_v51 }
 0x117   : > { %v4355_v16 = vsel %vm529_vm2, %v2184_v56, %v4834_v0  ;;  %v4358_v28 = vsel %vm804_vm3, %v2300_v46, %v2302_v50  ;;  %v1601_v15 = vpop.f32.mrb[24].mxu1  ;;  %v2635_v46 = vld [vmem:[%s3195_s20 + $0x150] sm:$0xff] }
 0x118   : > { %4919 = vst [vmem:[#allocation27_spill] sm:$0xff] %v4355_v16  ;;  %4920 = vst [vmem:[#allocation28_spill] sm:$0xff] %v4358_v28  ;;  %v2304_v5 = vrot.slane %v2276_v42, 2  ;;  %v4361_v37 = vmul.f32 %v4079_v38, %v1648_v30  ;;  %v1602_v31 = vadd.f32 %v4120_v63, %v1601_v15  ;;  %v2939_v26 = vpop.f32.mrb[25].mxu1  ;;  %2999 = vmatmul.mubr.msk.f32.gmra.mrb[58].mxu0 %vm867_vm1, %v2635_v46 }
 0x119   : > { %3001 = vmatprep.mubr.msk.f32.mxu0 %vm3077_vm0, %v4847_v58 }
 0x11a   : > { %v4365_v51 = vsel %vm804_vm3, %v2302_v50, %v2304_v5  ;;  %v2096_v56 = vmul.f32 %v4350_v27, %v4361_v37  ;;  %v1649_v47 = vmax.f32 %v1602_v31, 0.0  ;;  %v2636_v50 = vld [vmem:[%s3195_s20 + $0x158] sm:$0x1] }
 0x11b   : > { %4921 = vst [vmem:[#allocation29_spill] sm:$0xff] %v4365_v51  ;;  %v1606_v0 = vpop.f32.mrb[26].mxu1 }
 0x11c   : > { %v4367_v61 = vpop.f32.mrb[6].mxu0  ;;  %v4374_v38 = vmul.f32 %v4073_v14, %v1649_v47  ;;  %v1607_v30 = vadd.f32 %v4120_v63, %v1606_v0  ;;  %v2942_v42 = vpop.f32.mrb[27].mxu1  ;;  %v2114_v15 = vrot.slane %v2096_v56, 1  ;;  %3002 = vmatmul.mubr.msk.f32.gmra.mrb[60].mxu0 %vm867_vm1, %v2636_v50 }
 0x11d   : > { %4922 = vst [vmem:[#allocation30_spill] sm:$0xff] %v4367_v61  ;;  %v2840_v29 = vpop.f32.mrb[7].mxu0 }
 0x11e   : > { %v2097_v5 = vmul.f32 %v4350_v27, %v4374_v38  ;;  %v1650_v31 = vmax.f32 %v1607_v30, 0.0 }
 0x11f   : > { %v1611_v26 = vpop.f32.mrb[28].mxu1 }
 0x120   : > { %v2115_v29 = vrot.slane %v2097_v5, 1  ;;  %v4384_v46 = vmul.f32 %v4085_v1, %v1650_v31  ;;  %v1612_v14 = vadd.f32 %v4120_v63, %v1611_v26  ;;  %v2945_v0 = vpop.f32.mrb[29].mxu1 }
 0x122   : > { %v2098_v47 = vmul.f32 %v4350_v27, %v4384_v46  ;;  %v1651_v42 = vmax.f32 %v1612_v14, 0.0  ;;  %v4390_v56 = vsel %vm529_vm2, %v2114_v15, %v2115_v29 }
 0x123   : > { %v1616_v61 = vpop.f32.mrb[30].mxu1 }
 0x124   : > { %v2117_v30 = vrot.slane %v2098_v47, 1  ;;  %v4395_v50 = vmul.f32 %v4093_v11, %v1651_v42  ;;  %v1617_v1 = vadd.f32 %v4120_v63, %v1616_v61  ;;  %v2948_v5 = vpop.f32.mrb[31].mxu1 }
 0x126   : > { %v2099_v26 = vmul.f32 %v4350_v27, %v4395_v50  ;;  %v1652_v0 = vmax.f32 %v1617_v1, 0.0  ;;  %v4401_v14 = vsel %vm529_vm2, %v2115_v29, %v2117_v30 }
 0x127   : > { %v1621_v15 = vpop.f32.mrb[32].mxu1 }
 0x128   : > { %v4392_v51 = vpop.f32.mrb[8].mxu0  ;;  %v2119_v44 = vrot.slane %v2099_v26, 1  ;;  %v4406_v47 = vmul.f32 %v4101_v33, %v1652_v0  ;;  %v1622_v11 = vadd.f32 %v4120_v63, %v1621_v15  ;;  %v2951_v42 = vpop.f32.mrb[33].mxu1 }
 0x129   : > { %4923 = vst [vmem:[#allocation31_spill] sm:$0xff] %v4392_v51  ;;  %v2843_v31 = vpop.f32.mrb[9].mxu0 }
 0x12a   : > { %v2100_v5 = vmul.f32 %v4350_v27, %v4406_v47  ;;  %v1653_v31 = vmax.f32 %v1622_v11, 0.0  ;;  %v4412_v1 = vsel %vm529_vm2, %v2117_v30, %v2119_v44 }
 0x12b   : > { %v1626_v29 = vpop.f32.mrb[34].mxu1 }
 0x12c   : > { %v4403_v28 = vpop.f32.mrb[10].mxu0  ;;  %v2121_v16 = vrot.slane %v2100_v5, 1  ;;  %v4417_v26 = vmul.f32 %v4115_v39, %v1653_v31  ;;  %v1627_v33 = vadd.f32 %v4120_v63, %v1626_v29  ;;  %v2954_v0 = vpop.f32.mrb[35].mxu1 }
 0x12d   : > { %4924 = vst [vmem:[#allocation32_spill] sm:$0xff] %v4403_v28  ;;  %v2846_v61 = vpop.f32.mrb[11].mxu0 }
 0x12e   : > { %v2101_v42 = vmul.f32 %v4350_v27, %v4417_v26  ;;  %v1654_v61 = vmax.f32 %v1627_v33, 0.0  ;;  %v4423_v11 = vsel %vm529_vm2, %v2119_v44, %v2121_v16 }
 0x12f   : > { %v1631_v30 = vpop.f32.mrb[36].mxu1 }
 0x130   : > { %v4414_v51 = vpop.f32.mrb[12].mxu0  ;;  %v2123_v20 = vrot.slane %v2101_v42, 1  ;;  %v4428_v5 = vmul.f32 %v4142_v40, %v1654_v61  ;;  %v1632_v39 = vadd.f32 %v4120_v63, %v1631_v30  ;;  %v2957_v31 = vpop.f32.mrb[37].mxu1 }
 0x131   : > { %4925 = vst [vmem:[#allocation33_spill] sm:$0xff] %v4414_v51  ;;  %v2849_v15 = vpop.f32.mrb[13].mxu0 }
 0x132   : > { %v2102_v0 = vmul.f32 %v4350_v27, %v4428_v5  ;;  %v1655_v15 = vmax.f32 %v1632_v39, 0.0  ;;  %v4434_v33 = vsel %vm529_vm2, %v2121_v16, %v2123_v20 }
 0x133   : > { %v1636_v44 = vpop.f32.mrb[38].mxu1 }
 0x134   : > { %v4425_v28 = vpop.f32.mrb[14].mxu0  ;;  %v2125_v52 = vrot.slane %v2102_v0, 1  ;;  %v4439_v42 = vmul.f32 %v4195_v54, %v1655_v15  ;;  %v1637_v40 = vadd.f32 %v4120_v63, %v1636_v44  ;;  %v2960_v61 = vpop.f32.mrb[39].mxu1 }
 0x135   : > { %4926 = vst [vmem:[#allocation34_spill] sm:$0xff] %v4425_v28  ;;  %v2852_v29 = vpop.f32.mrb[15].mxu0 }
 0x136   : > { %v2103_v31 = vmul.f32 %v4350_v27, %v4439_v42  ;;  %v1656_v29 = vmax.f32 %v1637_v40, 0.0  ;;  %v4445_v39 = vsel %vm529_vm2, %v2123_v20, %v2125_v52  ;;  %v4931_v40 = vsub.s32 0, %v4893_v49 }
 0x137   : > { %4928 = vst [vmem:[#allocation36_spill] sm:$0xff] %v4445_v39 }
 0x138   : > { %v4436_v51 = vpop.f32.mrb[16].mxu0  ;;  %v2127_v28 = vrot.slane %v2103_v31, 1  ;;  %v4448_v3 = vmul.f32 %v4289_v21, %v1656_v29  ;;  %v4461_v20 = vrot.slane %v4127_v62, %v4931_v40 }
 0x139   : > { %4927 = vst [vmem:[#allocation35_spill] sm:$0xff] %v4436_v51  ;;  %v2855_v30 = vpop.f32.mrb[17].mxu0 }
 0x13a   : > { %v4453_v15 = vmul.f32 %v4350_v27, %v4448_v3  ;;  %v4456_v44 = vsel %vm529_vm2, %v2125_v52, %v2127_v28  ;;  %v4932_v30 = vsub.s32 1, %v4893_v49  ;;  %v1951_v40 = vmul.f32 %v4461_v20, %v4137_v7 }
 0x13b   : > { %4930 = vst [vmem:[#allocation38_spill] sm:$0xff] %v4456_v44 }
 0x13c   : > { %v1363_v16 = vpop.f32.mrb[18].mxu0  ;;  %4929 = vst [vmem:[#allocation37_spill] sm:$0xff] %v4453_v15  ;;  %v4466_v21 = vrot.slane %v4127_v62, %v4932_v30  ;;  %v4837_v29 = vrot.slane %v4453_v15, 1 }
 0x13d   : > { %v1364_v0 = vadd.f32 %v4120_v63, %v1363_v16  ;;  %v2899_v54 = vpop.f32.mrb[19].mxu0 }
 0x13e   : > { %v4933_v54 = vsub.s32 3, %v4893_v49 }
 0x13f   : > { %v1416_v61 = vmax.f32 %v1364_v0, 0.0  ;;  %v4479_v0 = vsel %vm529_vm2, %v2127_v28, %v4837_v29 }
 0x140   : > { %v1368_v31 = vpop.f32.mrb[20].mxu0  ;;  %v4474_v51 = vrot.slane %v4127_v62, %v4933_v54  ;;  %4934 = vst [vmem:[#allocation39_spill] sm:$0xff] %v4479_v0 }
 0x141   : > { %v1487_v27 = vmul.f32 %v4063_v18, %v1416_v61  ;;  %v1369_v16 = vadd.f32 %v4120_v63, %v1368_v31  ;;  %v2902_v52 = vpop.f32.mrb[21].mxu0  ;;  %v4935_v18 = vsub.s32 7, %v4893_v49 }
 0x142   : > { %v2052_v28 = vmul.f32 %v4474_v51, %v4361_v37  ;;  %v1953_v37 = vmul.f32 %v4461_v20, %v4173_v10 }
 0x143   : > { %v1973_v30 = vmul.f32 %v4466_v21, %v1487_v27  ;;  %v1417_v44 = vmax.f32 %v1369_v16, 0.0  ;;  %v4487_v61 = vrot.slane %v4127_v62, %v4935_v18  ;;  %v1952_v27 = vmul.f32 %v4461_v20, %v4156_v2 }
 0x144   : > { %v1373_v31 = vpop.f32.mrb[22].mxu0 }
 0x145   : > { %v1982_v52 = vadd.f32 %v1973_v30, %v1951_v40  ;;  %v1488_v54 = vmul.f32 %v4067_v60, %v1417_v44  ;;  %v1374_v15 = vadd.f32 %v4120_v63, %v1373_v31  ;;  %v2905_v39 = vpop.f32.mrb[23].mxu0 }
 0x147   : > { %v2039_v7 = vadd.f32 %v4184_v32, %v1982_v52  ;;  %v1974_v16 = vmul.f32 %v4466_v21, %v1488_v54  ;;  %v1418_v29 = vmax.f32 %v1374_v15, 0.0  ;;  %v2210_v18 = vmul.f32 %v4487_v61, %v1488_v54 }
 0x148   : > { %v1378_v0 = vpop.f32.mrb[24].mxu0  ;;  %v2053_v52 = vmul.f32 %v4474_v51, %v4374_v38 }
 0x149   : > { %v1983_v40 = vadd.f32 %v1974_v16, %v1952_v27  ;;  %v1489_v60 = vmul.f32 %v4087_v25, %v1418_v29  ;;  %v1379_v44 = vadd.f32 %v4120_v63, %v1378_v0  ;;  %v2908_v39 = vpop.f32.mrb[25].mxu0  ;;  %v4502_v30 = vadd.f32 %v2052_v28, %v2039_v7 }
 0x14a   : > { %v2228_v54 = vrot.slane %v2210_v18, 1  ;;  %v1954_v7 = vmul.f32 %v4461_v20, %v4193_v23 }
 0x14b   : > { %v2040_v32 = vadd.f32 %v4198_v41, %v1983_v40  ;;  %v1975_v2 = vmul.f32 %v4466_v21, %v1489_v60  ;;  %v2211_v15 = vmul.f32 %v4487_v61, %v1489_v60  ;;  %v1419_v31 = vmax.f32 %v1379_v44, 0.0 }
 0x14c   : > { %v1383_v25 = vpop.f32.mrb[26].mxu0  ;;  %v2054_v41 = vmul.f32 %v4474_v51, %v4384_v46 }
 0x14d   : > { %v1984_v29 = vadd.f32 %v1975_v2, %v1953_v37  ;;  %v2229_v0 = vrot.slane %v2211_v15, 1  ;;  %v1490_v27 = vmul.f32 %v4095_v35, %v1419_v31  ;;  %v1384_v10 = vadd.f32 %v4120_v63, %v1383_v25  ;;  %v2911_v28 = vpop.f32.mrb[27].mxu0 }
 0x14e   : > { %v4515_v16 = vadd.f32 %v2053_v52, %v2040_v32 }
 0x14f   : > { %v2041_v40 = vadd.f32 %v4227_v8, %v1984_v29  ;;  %v4519_v38 = vsel %vm529_vm2, %v2228_v54, %v2229_v0  ;;  %v1976_v18 = vmul.f32 %v4466_v21, %v1490_v27  ;;  %v2212_v35 = vmul.f32 %v4487_v61, %v1490_v27 }
 0x150   : > { %v1420_v60 = vmax.f32 %v1384_v10, 0.0  ;;  %v1388_v44 = vpop.f32.mrb[28].mxu0  ;;  %v2055_v8 = vmul.f32 %v4474_v51, %v4395_v50  ;;  %v1955_v54 = vmul.f32 %v4461_v20, %v4213_v22 }
 0x151   : > { %v1985_v39 = vadd.f32 %v1976_v18, %v1954_v7  ;;  %v2231_v37 = vrot.slane %v2212_v35, 1  ;;  %v1389_v46 = vadd.f32 %v4120_v63, %v1388_v44  ;;  %v2914_v2 = vpop.f32.mrb[29].mxu0  ;;  %v4524_v15 = vadd.f32 %v2054_v41, %v2041_v40 }
 0x152   : > { %v1491_v23 = vmul.f32 %v4109_v12, %v1420_v60  ;;  %v2056_v18 = vmul.f32 %v4474_v51, %v4406_v47 }
 0x153   : > { %v2042_v32 = vadd.f32 %v4246_v6, %v1985_v39  ;;  %v4531_v31 = vsel %vm529_vm2, %v2229_v0, %v2231_v37  ;;  %v1421_v52 = vmax.f32 %v1389_v46, 0.0  ;;  %v1956_v0 = vmul.f32 %v4461_v20, %v4236_v45 }
 0x154   : > { %v1977_v25 = vmul.f32 %v4466_v21, %v1491_v23  ;;  %v2213_v29 = vmul.f32 %v4487_v61, %v1491_v23  ;;  %v1393_v27 = vpop.f32.mrb[30].mxu0  ;;  %v2057_v23 = vmul.f32 %v4474_v51, %v4417_v26 }
 0x155   : > { %v1492_v10 = vmul.f32 %v4122_v48, %v1421_v52  ;;  %v1394_v12 = vadd.f32 %v4120_v63, %v1393_v27  ;;  %v2917_v28 = vpop.f32.mrb[31].mxu0  ;;  %v4539_v50 = vadd.f32 %v2055_v8, %v2042_v32  ;;  %v1957_v8 = vmul.f32 %v4461_v20, %v4260_v57 }
 0x156   : > { %v1986_v6 = vadd.f32 %v1977_v25, %v1955_v54  ;;  %v2233_v41 = vrot.slane %v2213_v29, 1 }
 0x157   : > { %v1978_v7 = vmul.f32 %v4466_v21, %v1492_v10  ;;  %v2214_v22 = vmul.f32 %v4487_v61, %v1492_v10  ;;  %v1422_v40 = vmax.f32 %v1394_v12, 0.0 }
 0x158   : > { %v2043_v48 = vadd.f32 %v4265_v43, %v1986_v6  ;;  %v4549_v35 = vsel %vm529_vm2, %v2231_v37, %v2233_v41  ;;  %v1398_v60 = vpop.f32.mrb[32].mxu0 }
 0x159   : > { %v1987_v44 = vadd.f32 %v1978_v7, %v1956_v0  ;;  %v2235_v39 = vrot.slane %v2214_v22, 1  ;;  %v1493_v46 = vmul.f32 %v4166_v4, %v1422_v40  ;;  %v1399_v45 = vadd.f32 %v4120_v63, %v1398_v60  ;;  %v2920_v2 = vpop.f32.mrb[33].mxu0 }
 0x15a   : > { %v4557_v47 = vadd.f32 %v2056_v18, %v2043_v48  ;;  %v1959_v60 = vmul.f32 %v4461_v20, %v4305_v19 }
 0x15b   : > { %v2044_v43 = vadd.f32 %v4294_v24, %v1987_v44  ;;  %v4561_v37 = vsel %vm529_vm2, %v2233_v41, %v2235_v39  ;;  %v1979_v32 = vmul.f32 %v4466_v21, %v1493_v46  ;;  %v2215_v4 = vmul.f32 %v4487_v61, %v1493_v46 }
 0x15c   : > { %v1423_v52 = vmax.f32 %v1399_v45, 0.0  ;;  %v1403_v54 = vpop.f32.mrb[34].mxu0  ;;  %v2058_v24 = vmul.f32 %v4474_v51, %v4428_v5  ;;  %v1958_v41 = vmul.f32 %v4461_v20, %v4277_v36  ;;  %v2059_v46 = vmul.f32 %v4474_v51, %v4439_v42 }
 0x15d   : > { %v1988_v25 = vadd.f32 %v1979_v32, %v1957_v8  ;;  %v2237_v29 = vrot.slane %v2215_v4, 1  ;;  %v1404_v26 = vadd.f32 %v4120_v63, %v1403_v54  ;;  %v2923_v27 = vpop.f32.mrb[35].mxu0  ;;  %v4566_v10 = vadd.f32 %v2057_v23, %v2044_v43 }
 0x15e   : > { %v1494_v57 = vmul.f32 %v4222_v59, %v1423_v52  ;;  %v2060_v20 = vmul.f32 %v4474_v51, %v4448_v3  ;;  %v4937_v51 = vsub.s32 4, %v4893_v49 }
 0x15f   : > { %v2045_v12 = vadd.f32 %v4317_v13, %v1988_v25  ;;  %v4573_v28 = vsel %vm529_vm2, %v2235_v39, %v2237_v29  ;;  %v1424_v6 = vmax.f32 %v1404_v26, 0.0 }
 0x160   : > { %v1980_v0 = vmul.f32 %v4466_v21, %v1494_v57  ;;  %v2216_v7 = vmul.f32 %v4487_v61, %v1494_v57  ;;  %v1408_v22 = vpop.f32.mrb[36].mxu0  ;;  %v4618_v26 = vrot.slane %v4127_v62, %v4937_v51 }
 0x161   : > { %v1495_v40 = vmul.f32 %v4224_v17, %v1424_v6  ;;  %v1409_v59 = vadd.f32 %v4120_v63, %v1408_v22  ;;  %v2926_v18 = vpop.f32.mrb[37].mxu0  ;;  %v4581_v5 = vadd.f32 %v2058_v24, %v2045_v12 }
 0x162   : > { %v1989_v13 = vadd.f32 %v1980_v0, %v1958_v41  ;;  %v2239_v48 = vrot.slane %v2216_v7, 1  ;;  %v4938_v7 = vld [vmem:[#allocation3_spill] sm:$0xff] }
 0x163   : > { %v1981_v44 = vmul.f32 %v4466_v21, %v1495_v40  ;;  %v2217_v36 = vmul.f32 %v4487_v61, %v1495_v40  ;;  %v1425_v39 = vmax.f32 %v1409_v59, 0.0  ;;  %v4936_v21 = vrot.slane %v4310_v53, 1 }
 0x164   : > { %v2046_v17 = vadd.f32 %v4330_v55, %v1989_v13  ;;  %v4591_v45 = vsel %vm529_vm2, %v2237_v29, %v2239_v48  ;;  %v1413_v2 = vpop.f32.mrb[38].mxu0  ;;  %v4939_v13 = vld [vmem:[#allocation8_spill] sm:$0xff] }
 0x165   : > { %v1990_v23 = vadd.f32 %v1981_v44, %v1959_v60  ;;  %v2241_v8 = vrot.slane %v2217_v36, 1  ;;  %v1496_v43 = vmul.f32 %v4291_v9, %v1425_v39  ;;  %v2929_v32 = vpop.f32.mrb[39].mxu0  ;;  %v4940_v44 = vld [vmem:[#allocation4_spill] sm:$0xff] }
 0x166   : > { %v4594_v19 = vadd.f32 %v2059_v46, %v2046_v17  ;;  %v4942_v32 = vld [vmem:[#allocation2_spill] sm:$0xff] }
 0x167   : > { %v2047_v4 = vadd.f32 %v4936_v21, %v1990_v23  ;;  %v4601_v42 = vsel %vm529_vm2, %v2239_v48, %v2241_v8  ;;  %v4604_v55 = vmul.f32 %v4487_v61, %v1496_v43  ;;  %v4638_v23 = vld [vmem:[%s4802_s9] ss:$0 sm:$0xff]  ;;  %v4941_v43 = vld [vmem:[#allocation9_spill] sm:$0xff] }
 0x168   : > { %v1820_v52 = vpop.f32.mrb[40].mxu0 }
 0x169   : > { %v2243_v54 = vrot.slane %v4604_v55, 1  ;;  %v1821_v9 = vadd.f32 %v4120_v63, %v1820_v52  ;;  %v2973_v25 = vpop.f32.mrb[41].mxu0  ;;  %v4608_v29 = vadd.f32 %v2060_v20, %v2047_v4  ;;  %v4943_v4 = vld [vmem:[#allocation5_spill] sm:$0xff] }
 0x16b   : > { %v4613_v3 = vsel %vm529_vm2, %v2241_v8, %v2243_v54  ;;  %v1872_v53 = vmax.f32 %v1821_v9, 0.0  ;;  %vm2539_vm2 = vcmask 260096  }
 0x16c   : > { %v1825_v61 = vpop.f32.mrb[42].mxu0 }
 0x16d   : > { %v1936_v27 = vmul.f32 %v4083_v34, %v1872_v53  ;;  %v1826_v57 = vadd.f32 %v4120_v63, %v1825_v61  ;;  %v2976_v24 = vpop.f32.mrb[43].mxu0 }
 0x16f   : > { %v2074_v12 = vmul.f32 %v4618_v26, %v1936_v27  ;;  %v1873_v6 = vmax.f32 %v1826_v57, 0.0  ;;  %v4944_v57 = vld [vmem:[#allocation11_spill] sm:$0xff] }
 0x170   : > { %v1830_v41 = vpop.f32.mrb[44].mxu0 }
 0x171   : > { %v2083_v0 = vadd.f32 %v2074_v12, %v4502_v30  ;;  %v1937_v22 = vmul.f32 %v4938_v7, %v1873_v6  ;;  %v1831_v40 = vadd.f32 %v4120_v63, %v1830_v41  ;;  %v2979_v49 = vpop.f32.mrb[45].mxu0  ;;  %v4945_v41 = vld [vmem:[#allocation10_spill] sm:$0xff] }
 0x172   : > { %v4946_v7 = vld [vmem:[#allocation6_spill] sm:$0xff] }
 0x173   : > { %v2140_v62 = vadd.f32 %v4390_v56, %v2083_v0  ;;  %v2075_v59 = vmul.f32 %v4618_v26, %v1937_v22  ;;  %v1874_v18 = vmax.f32 %v1831_v40, 0.0 }
 0x174   : > { %v1835_v34 = vpop.f32.mrb[46].mxu0 }
 0x175   : > { %v2197_v48 = vadd.f32 %v4939_v13, %v2140_v62  ;;  %v2084_v60 = vadd.f32 %v2075_v59, %v4515_v16  ;;  %v1938_v36 = vmul.f32 %v4940_v44, %v1874_v18  ;;  %v1836_v39 = vadd.f32 %v4120_v63, %v1835_v34  ;;  %v2982_v30 = vpop.f32.mrb[47].mxu0  ;;  %v4947_v59 = vld [vmem:[#allocation16_spill] sm:$0xff]  ;;  %v4948_v34 = vld [vmem:[#allocation7_spill] sm:$0xff] }
 0x176   : > { %v4949_v44 = vld [vmem:[#allocation12_spill] sm:$0xff] }
 0x177   : > { %v2254_v46 = vadd.f32 %v4519_v38, %v2197_v48  ;;  %v2141_v17 = vadd.f32 %v4401_v14, %v2084_v60  ;;  %v2076_v2 = vmul.f32 %v4618_v26, %v1938_v36  ;;  %v1875_v56 = vmax.f32 %v1836_v39, 0.0 }
 0x178   : > { %v1840_v8 = vpop.f32.mrb[48].mxu0 }
 0x179   : > { %v2315_v16 = vadd.f32 %v4941_v43, %v2254_v46  ;;  %v2198_v20 = vadd.f32 %v4942_v32, %v2141_v17  ;;  %v2085_v21 = vadd.f32 %v2076_v2, %v4524_v15  ;;  %v1939_v52 = vmul.f32 %v4943_v4, %v1875_v56  ;;  %v2985_v38 = vpop.f32.mrb[49].mxu0  ;;  %v4951_v32 = vld [vmem:[#allocation17_spill] sm:$0xff] }
 0x17a   : > { %v1841_v14 = vadd.f32 %v4120_v63, %v1840_v8  ;;  %v4950_v8 = vld [vmem:[#allocation13_spill] sm:$0xff] }
 0x17b   : > { %v2331_v9 = vadd.f32 %v4638_v23, %v2315_v16  ;;  %v2142_v25 = vadd.f32 %v4412_v1, %v2085_v21  ;;  %v2077_v53 = vmul.f32 %v4618_v26, %v1939_v52  ;;  %v2255_v51 = vadd.f32 %v4531_v31, %v2198_v20  ;;  %v4952_v21 = vld [vmem:[#allocation18_spill] sm:$0xff] }
 0x17c   : > { %v1876_v61 = vmax.f32 %v1841_v14, 0.0  ;;  %v1845_v27 = vpop.f32.mrb[50].mxu0 }
 0x17d   : > { %v2199_v24 = vadd.f32 %v4944_v57, %v2142_v25  ;;  %v2086_v12 = vadd.f32 %v2077_v53, %v4539_v50  ;;  %v1846_v15 = vadd.f32 %v4120_v63, %v1845_v27  ;;  %v2988_v6 = vpop.f32.mrb[51].mxu0  ;;  %3009 = vmatmul.mubr.msk.f32.vlgmr.msra.gmra.mrb[44].mxu1 %vm867_vm1, %v2331_v9  ;;  %v2316_v0 = vadd.f32 %v4945_v41, %v2255_v51  ;;  %v4954_v25 = vld [vmem:[#allocation21_spill] sm:$0xff] }
 0x17e   : > { %v1940_v22 = vmul.f32 %v4946_v7, %v1876_v61  ;;  %3011 = vmatprep.mubr.msk.f32.mxu1 %vm3077_vm0, %v4847_v58  ;;  %v4955_v61 = vld [vmem:[#allocation15_spill] sm:$0xff]  ;;  %v4957_v6 = vld [vmem:[#allocation38_spill] sm:$0xff] }
 0x17f   : > { %v2143_v1 = vadd.f32 %v4423_v11, %v2086_v12  ;;  %v1877_v31 = vmax.f32 %v1846_v15, 0.0  ;;  %v2332_v40 = vadd.f32 %v4638_v23, %v2316_v0  ;;  %v2256_v49 = vadd.f32 %v4549_v35, %v2199_v24  ;;  %v4956_v12 = vld [vmem:[#allocation19_spill] sm:$0xff] }
 0x180   : > { %v2078_v50 = vmul.f32 %v4618_v26, %v1940_v22  ;;  %v1850_v62 = vpop.f32.mrb[52].mxu0 }
 0x181   : > { %v2200_v18 = vadd.f32 %v4947_v59, %v2143_v1  ;;  %v1941_v13 = vmul.f32 %v4948_v34, %v1877_v31  ;;  %v1851_v48 = vadd.f32 %v4120_v63, %v1850_v62  ;;  %v2991_v60 = vpop.f32.mrb[53].mxu0  ;;  %3012 = vmatmul.mubr.msk.f32.gmra.mrb[46].mxu1 %vm867_vm1, %v2332_v40  ;;  %v2317_v36 = vadd.f32 %v4949_v44, %v2256_v49  ;;  %v4958_v1 = vld [vmem:[#allocation23_spill] sm:$0xff]  ;;  %v4959_v49 = vld [vmem:[#allocation22_spill] sm:$0xff] }
 0x182   : > { %v2087_v11 = vadd.f32 %v2078_v50, %v4557_v47  ;;  %3014 = vmatprep.mubr.msk.f32.mxu1 %vm3077_vm0, %v4847_v58  ;;  %v4960_v62 = vld [vmem:[#allocation39_spill] sm:$0xff]  ;;  %v4962_v60 = vld [vmem:[#allocation24_spill] sm:$0xff] }
 0x183   : > { %v2079_v35 = vmul.f32 %v4618_v26, %v1941_v13  ;;  %v1878_v39 = vmax.f32 %v1851_v48, 0.0  ;;  %v2333_v30 = vadd.f32 %v4638_v23, %v2317_v36  ;;  %v2257_v46 = vadd.f32 %v4561_v37, %v2200_v18  ;;  %v4953_v37 = vld [vmem:[#allocation36_spill] sm:$0xff]  ;;  %v4961_v13 = vld [vmem:[#allocation27_spill] sm:$0xff]  ;;  %v4963_v36 = vld [vmem:[#allocation37_spill] sm:$0xff] }
 0x184   : > { %v2144_v17 = vadd.f32 %v4434_v33, %v2087_v11  ;;  %v1855_v2 = vpop.f32.mrb[54].mxu0  ;;  %v4964_v11 = vrot.slane %v4963_v36, 1 }
 0x185   : > { %v2088_v56 = vadd.f32 %v2079_v35, %v4566_v10  ;;  %v1942_v43 = vmul.f32 %v4950_v8, %v1878_v39  ;;  %v1856_v16 = vadd.f32 %v4120_v63, %v1855_v2  ;;  %v2994_v47 = vpop.f32.mrb[55].mxu0  ;;  %3015 = vmatmul.mubr.msk.f32.gmra.mrb[48].mxu1 %vm867_vm1, %v2333_v30  ;;  %v2318_v20 = vadd.f32 %v4951_v32, %v2257_v46  ;;  %v4965_v30 = vld [vmem:[#allocation26_spill] sm:$0xff]  ;;  %v4968_v8 = vld [vmem:[#allocation29_spill] sm:$0xff] }
 0x186   : > { %v2201_v4 = vadd.f32 %v4952_v21, %v2144_v17  ;;  %3017 = vmatprep.mubr.msk.f32.mxu1 %vm3077_vm0, %v4847_v58  ;;  %v4967_v17 = vld [vmem:[#allocation28_spill] sm:$0xff] }
 0x187   : > { %v2145_v52 = vadd.f32 %v4953_v37, %v2088_v56  ;;  %v2080_v33 = vmul.f32 %v4618_v26, %v1942_v43  ;;  %v1879_v38 = vmax.f32 %v1856_v16, 0.0  ;;  %v2334_v10 = vadd.f32 %v4638_v23, %v2318_v20  ;;  %v1641_v16 = vpop.f32.mrb[40].mxu1  ;;  %v4735_v37 = vld [vmem:[%s4798_s5] ss:$0 sm:$0xff] }
 0x188   : > { %v1860_v14 = vpop.f32.mrb[56].mxu0  ;;  %v2258_v9 = vadd.f32 %v4573_v28, %v2201_v4  ;;  %v2963_v47 = vpop.f32.mrb[41].mxu1  ;;  %v4976_v16 = vld [vmem:[#allocation34_spill] sm:$0xff] }
 0x189   : > { %v2202_v53 = vadd.f32 %v4954_v25, %v2145_v52  ;;  %v2089_v51 = vadd.f32 %v2080_v33, %v4581_v5  ;;  %v1943_v27 = vmul.f32 %v4955_v61, %v1879_v38  ;;  %v1861_v57 = vadd.f32 %v4120_v63, %v1860_v14  ;;  %v2997_v24 = vpop.f32.mrb[57].mxu0  ;;  %3018 = vmatmul.mubr.msk.f32.gmra.mrb[50].mxu1 %vm867_vm1, %v2334_v10  ;;  %v1934_v5 = vpop.permute.xlu1 %1933 }
 0x18a   : > { %3020 = vmatprep.mubr.msk.f32.mxu1 %vm3077_vm0, %v4847_v58  ;;  %v2319_v15 = vadd.f32 %v4956_v12, %v2258_v9  ;;  %v1645_v32 = vpop.f32.mrb[42].mxu1  ;;  %v4970_v9 = vld [vmem:[#allocation20_spill] sm:$0xff]  ;;  %v4971_v12 = vld [vmem:[#allocation25_spill] sm:$0xff]  ;;  %v997_v47 = vadd.f32 %v4735_v37, %v4976_v16 }
 0x18b   : > { %v2146_v41 = vadd.f32 %v4957_v6, %v2089_v51  ;;  %v2081_v28 = vmul.f32 %v4618_v26, %v1943_v27  ;;  %v1880_v0 = vmax.f32 %v1861_v57, 0.0  ;;  %v2259_v7 = vadd.f32 %v4591_v45, %v2202_v53  ;;  %v2966_v20 = vpop.f32.mrb[43].mxu1 }
 0x18c   : > { %v2335_v22 = vadd.f32 %v4638_v23, %v2319_v15  ;;  %v967_v25 = vadd.f32 %v4735_v37, %v4970_v9  ;;  %v972_v15 = vadd.f32 %v4735_v37, %v4971_v12 }
 0x18d   : > { %v2203_v63 = vadd.f32 %v4958_v1, %v2146_v41  ;;  %v2090_v31 = vadd.f32 %v2081_v28, %v4594_v19  ;;  %v1944_v40 = vmul.f32 %v1934_v5, %v1880_v0  ;;  %v2320_v50 = vadd.f32 %v4959_v49, %v2259_v7 }
 0x18e   : > { %3021 = vmatmul.mubr.msk.f32.gmra.mrb[52].mxu1 %vm867_vm1, %v2335_v22  ;;  %v1006_v24 = vmax.f32 %v967_v25, 0.0  ;;  %v1007_v5 = vmax.f32 %v972_v15, 0.0  ;;  %v4972_v22 = vld [vmem:[#allocation30_spill] sm:$0xff] }
 0x18f   : > { %v2147_v59 = vadd.f32 %v4960_v62, %v2090_v31  ;;  %v2082_v18 = vmul.f32 %v4618_v26, %v1944_v40  ;;  %3023 = vmatprep.mubr.msk.f32.mxu1 %vm3077_vm0, %v4847_v58  ;;  %v2336_v45 = vadd.f32 %v4638_v23, %v2320_v50  ;;  %v2260_v34 = vadd.f32 %v4601_v42, %v2203_v63 }
 0x190   : > { %v4966_v42 = vrot.slane %v4965_v30, 1  ;;  %v977_v1 = vadd.f32 %v4735_v37, %v4972_v22 }
 0x191   : > { %v2204_v48 = vadd.f32 %v4961_v13, %v2147_v59  ;;  %v2091_v19 = vadd.f32 %v2082_v18, %v4608_v29  ;;  %v2321_v44 = vadd.f32 %v4962_v60, %v2260_v34  ;;  %v4973_v18 = vld [vmem:[#allocation31_spill] sm:$0xff] }
 0x192   : > { %3024 = vmatmul.mubr.msk.f32.gmra.mrb[54].mxu1 %vm867_vm1, %v2336_v45  ;;  %v1008_v62 = vmax.f32 %v977_v1, 0.0  ;;  %v982_v45 = vadd.f32 %v4735_v37, %v4973_v18 }
 0x193   : > { %v2148_v35 = vadd.f32 %v4964_v11, %v2091_v19  ;;  %3026 = vmatprep.mubr.msk.f32.mxu1 %vm3077_vm0, %v4847_v58  ;;  %v2337_v26 = vadd.f32 %v4638_v23, %v2321_v44  ;;  %v2261_v39 = vadd.f32 %v4613_v3, %v2204_v48  ;;  %v4974_v44 = vld [vmem:[#allocation32_spill] sm:$0xff] }
 0x194   : > { %v1009_v60 = vmax.f32 %v982_v45, 0.0  ;;  %v987_v36 = vadd.f32 %v4735_v37, %v4974_v44 }
 0x195   : > { %v2205_v46 = vadd.f32 %v4966_v42, %v2148_v35  ;;  %v2322_v2 = vadd.f32 %v4967_v17, %v2261_v39 }
 0x196   : > { %3027 = vmatmul.mubr.msk.f32.gmra.mrb[56].mxu1 %vm867_vm1, %v2337_v26  ;;  %v1010_v42 = vmax.f32 %v987_v36, 0.0 }
 0x197   : > { %3029 = vmatprep.mubr.msk.f32.mxu1 %vm3077_vm0, %v4847_v58  ;;  %v2338_v29 = vadd.f32 %v4638_v23, %v2322_v2  ;;  %v2262_v56 = vadd.f32 %v2243_v54, %v2205_v46  ;;  %v4975_v46 = vld [vmem:[#allocation33_spill] sm:$0xff] }
 0x198   : > { %v992_v17 = vadd.f32 %v4735_v37, %v4975_v46 }
 0x199   : > { %v2323_v43 = vadd.f32 %v4968_v8, %v2262_v56 }
 0x19a   : > { %3030 = vmatmul.mubr.msk.f32.gmra.mrb[58].mxu1 %vm867_vm1, %v2338_v29 }
 0x19b   : > { %3032 = vmatprep.mubr.msk.f32.mxu1 %vm3077_vm0, %v4847_v58  ;;  %v2339_v3 = vadd.f32 %v4638_v23, %v2323_v43  ;;  %v4740_v58 = vld [vmem:[%s4804_s11] ss:$0 sm:$0xff]  ;;  %vm2534_vm0 = vcmask 259072  }
 0x19c   : > { %v4969_v23 = vld [vmem:[#allocation14_spill] sm:$0xff] }
 0x19d   : > { %v962_v52 = vadd.f32 %v4735_v37, %v4969_v23  ;;  %v4977_v23 = vld [vmem:[#allocation35_spill] sm:$0xff] }
 0x19e   : > { %3033 = vmatmul.mubr.msk.f32.gmra.mrb[60].mxu1 %vm867_vm1, %v2339_v3  ;;  %v1011_v3 = vmax.f32 %v992_v17, 0.0  ;;  %vm2537_vm1 = vcmask 261127  }
 0x19f   : > { %v1005_v14 = vmax.f32 %v962_v52, 0.0  ;;  %v1002_v52 = vadd.f32 %v4735_v37, %v4977_v23 }
 0x1a1   : > { %v1013_v25 = vmax.f32 %v1002_v52, 0.0 }
 0x1eb   : > { %v1865_v21 = vpop.f32.mrb[58].mxu0 }
 0x1ec   : > { %v3000_v4 = vpop.f32.mrb[59].mxu0 }
 0x1ef   : > { %v1869_v55 = vpop.f32.mrb[60].mxu0 }
 0x1f0   : > { %v3003_v54 = vpop.f32.mrb[61].mxu0 }
 0x1f1   : > { %v1012_v54 = vmax.f32 %v997_v47, 0.0 }
 0x250   : > { %v2442_v33 = vpop.f32.mrb[44].mxu1 }
 0x251   : > { %v2443_v38 = vadd.f32 %v4740_v58, %v2442_v33  ;;  %v3010_v10 = vpop.f32.mrb[45].mxu1 }
 0x253   : > { %v2486_v53 = vmax.f32 %v2443_v38, 0.0 }
 0x254   : > { %v2447_v51 = vpop.f32.mrb[46].mxu1 }
 0x255   : > { %v2495_v61 = vadd.f32 %v2486_v53, %v1005_v14  ;;  %v2448_v27 = vadd.f32 %v4740_v58, %v2447_v51  ;;  %v3013_v57 = vpop.f32.mrb[47].mxu1 }
 0x257   : > { %2505 = vst.msk [vmem:[%s4751_s13] sm:$0xff] %vm2504_vm4, %v2495_v61  ;;  %v2487_v6 = vmax.f32 %v2448_v27, 0.0 }
 0x258   : > { %v2452_v41 = vpop.f32.mrb[48].mxu1 }
 0x259   : > { %v2496_v28 = vadd.f32 %v2487_v6, %v1006_v24  ;;  %v2453_v0 = vadd.f32 %v4740_v58, %v2452_v41  ;;  %v3016_v7 = vpop.f32.mrb[49].mxu1 }
 0x25b   : > { %2734 = vst.msk [vmem:[%s4751_s13 + $0x7] sm:$0xfe] %vm2507_vm5, %v2496_v28  ;;  %v2488_v63 = vmax.f32 %v2453_v0, 0.0 }
 0x25c   : > { %v2457_v31 = vpop.f32.mrb[50].mxu1 }
 0x25d   : > { %v2497_v40 = vadd.f32 %v2488_v63, %v1007_v5  ;;  %v2458_v49 = vadd.f32 %v4740_v58, %v2457_v31  ;;  %v3019_v50 = vpop.f32.mrb[51].mxu1 }
 0x25f   : > { %2735 = vst.msk [vmem:[%s4751_s13 + $0xf] sm:$0x1] %vm2509_vm6, %v2497_v40  ;;  %v2489_v59 = vmax.f32 %v2458_v49, 0.0 }
 0x260   : > { %2736 = vst.msk [vmem:[%s4751_s13 + $0xe] sm:$0xfc] %vm2512_vm7, %v2497_v40 }
 0x261   : > { %v2498_v34 = vadd.f32 %v2489_v59, %v1008_v62  ;;  %v2462_v13 = vpop.f32.mrb[52].mxu1 }
 0x262   : > { %v2463_v48 = vadd.f32 %v4740_v58, %v2462_v13  ;;  %v3022_v19 = vpop.f32.mrb[53].mxu1 }
 0x263   : > { %2737 = vst.msk [vmem:[%s4751_s13 + $0x16] sm:$0x3] %vm2514_vm8, %v2498_v34 }
 0x264   : > { %2738 = vst.msk [vmem:[%s4751_s13 + $0x15] sm:$0xf8] %vm2517_vm9, %v2498_v34  ;;  %v2490_v11 = vmax.f32 %v2463_v48, 0.0 }
 0x265   : > { %v2467_v35 = vpop.f32.mrb[54].mxu1 }
 0x266   : > { %v2499_v26 = vadd.f32 %v2490_v11, %v1009_v60  ;;  %v2468_v39 = vadd.f32 %v4740_v58, %v2467_v35  ;;  %v3025_v30 = vpop.f32.mrb[55].mxu1 }
 0x268   : > { %2739 = vst.msk [vmem:[%s4751_s13 + $0x1d] sm:$0x7] %vm2519_vm10, %v2499_v26  ;;  %v2491_v2 = vmax.f32 %v2468_v39, 0.0 }
 0x269   : > { %2740 = vst.msk [vmem:[%s4751_s13 + $0x1c] sm:$0xf0] %vm2522_vm11, %v2499_v26  ;;  %v2472_v29 = vpop.f32.mrb[56].mxu1 }
 0x26a   : > { %v2500_v56 = vadd.f32 %v2491_v2, %v1010_v42  ;;  %v2473_v8 = vadd.f32 %v4740_v58, %v2472_v29  ;;  %v3028_v43 = vpop.f32.mrb[57].mxu1 }
 0x26c   : > { %2741 = vst.msk [vmem:[%s4751_s13 + $0x24] sm:$0xf] %vm2524_vm12, %v2500_v56  ;;  %v2492_v32 = vmax.f32 %v2473_v8, 0.0 }
 0x26d   : > { %2742 = vst.msk [vmem:[%s4751_s13 + $0x23] sm:$0xe0] %vm2527_vm13, %v2500_v56  ;;  %v2477_v20 = vpop.f32.mrb[58].mxu1 }
 0x26e   : > { %v2501_v21 = vadd.f32 %v2492_v32, %v1011_v3  ;;  %v2478_v4 = vadd.f32 %v4740_v58, %v2477_v20  ;;  %v3031_v55 = vpop.f32.mrb[59].mxu1 }
 0x270   : > { %2743 = vst.msk [vmem:[%s4751_s13 + $0x2b] sm:$0x1f] %vm2529_vm14, %v2501_v21  ;;  %v2493_v33 = vmax.f32 %v2478_v4, 0.0 }
 0x271   : > { %2744 = vst.msk [vmem:[%s4751_s13 + $0x2a] sm:$0xc0] %vm2532_vm15, %v2501_v21  ;;  %v2482_v38 = vpop.f32.mrb[60].mxu1 }
 0x272   : > { %v2502_v10 = vadd.f32 %v2493_v33, %v1012_v54  ;;  %v2483_v14 = vadd.f32 %v4740_v58, %v2482_v38  ;;  %v3034_v9 = vpop.f32.mrb[61].mxu1 }
 0x274   : > { %2745 = vst.msk [vmem:[%s4751_s13 + $0x32] sm:$0x3f] %vm2534_vm0, %v2502_v10  ;;  %v2494_v53 = vmax.f32 %v2483_v14, 0.0 }
 0x275   : > { %2746 = vst.msk [vmem:[%s4751_s13 + $0x31] sm:$0x80] %vm2537_vm1, %v2502_v10 }
 0x276   : > { %v2503_v51 = vadd.f32 %v2494_v53, %v1013_v25 }
 0x278   : > { %2747 = vst.msk [vmem:[%s4751_s13 + $0x39] sm:$0x7f] %vm2539_vm2, %v2503_v51 }
 0x279 PF: > { %s22_s21 = sadd.s32 1, %s3074_s21  }
 0x27a   : > { %p19_p4 = scmp.ge.s32.totalorder %s22_s21, 4  }
 0x27c   :  { %21 = sbr.rel (!%p19_p4) target bundleno = 1 (0x1), region = 111 }

// kernel: forward.14
= control target key start
LH: loop header
LB: loop body
LE: loop exit
PB: predicated region body
PF: predicated region fallthrough
CT: control target
= control target key end

     0   :  { %s1218_s30 = smov 0   ;;  %s1520_s0 = inlined_call_operand.vmem [shape: f32[2,36,64], index: 0, kind: input, shape index: {}]   ;;  %s1521_s1 = inlined_call_operand.vmem [shape: f32[36,1], index: 1, kind: input, shape index: {}]   ;;  %s1522_s2 = inlined_call_operand.vmem [shape: f32[64,32], index: 2, kind: input, shape index: {}]   ;;  %s1523_s3 = inlined_call_operand.vmem [shape: f32[1,32], index: 3, kind: input, shape index: {}]   ;;  %s1524_s4 = inlined_call_operand.vmem [shape: f32[9,32], index: 4, kind: input, shape index: {}]   ;;  %s1525_s5 = inlined_call_operand.vmem [shape: f32[1,32], index: 5, kind: input, shape index: {}]   ;;  %s1526_s6 = inlined_call_operand.vmem [shape: f32[32,64], index: 6, kind: input, shape index: {}]   ;;  %s1527_s7 = inlined_call_operand.vmem [shape: f32[1,64], index: 7, kind: input, shape index: {}]   ;;  %s1528_s8 = inlined_call_operand.vmem [shape: f32[64,64], index: 8, kind: input, shape index: {}]   ;;  %s1529_s9 = inlined_call_operand.vmem [shape: f32[2,4,4,64], index: 9, kind: output, shape index: {}]  }
   0x1 LB: > { %s977_s10 = sadd.s32 4294967295, %s1162_s30   ;;  %p981_p0 = scmp.ge.s32.totalorder %s1162_s30, 1  ;;  %s1162_s30 = sphi %s1218_s30, %s19_s30  }
   0x2   : > { %p287_p1 = scmp.lt.s32.totalorder %s1162_s30, 3 }
   0x4   : > { %p288_p2 = pnand %p981_p0, %p287_p1 }
   0x5   : > { %v338_v0 = vld [vmem:[%s1522_s2] sm:$0xff] (!%p288_p2)  ;;  %v339_v1 = vld [vmem:[%s1522_s2 + $0x8] sm:$0xff] (!%p288_p2)  ;;  %v340_v2 = vld [vmem:[%s1522_s2 + $0x10] sm:$0xff] (!%p288_p2)  ;;  %v1164_v3 = vmov (!%p288_p2), 0.0|0.0   ;;  %vm1165_vm0 = vmmov (!%p288_p2), 0   ;;  %v1166_v6 = vmov (!%p288_p2), 0.0   ;;  %v501_v38 = vlaneseq (!%p288_p2) }
   0x6   : > { %291 = sbr.rel (%p288_p2) target bundleno = 510 (0x1fe), region = 56  ;;  %1111 = vmatprep.subr.bf16.mxu0 (!%p288_p2), %v1164_v3  ;;  %v1112_v4 = vpack.c.bf16 (!%p288_p2), %v339_v1, %v338_v0  ;;  %v341_v5 = vld [vmem:[%s1522_s2 + $0x18] sm:$0xff] (!%p288_p2)  ;;  %1054 = vmatprep.mubr.msk.f32.mxu0 (!%p288_p2), %vm1165_vm0, %v1166_v6  ;;  %p323_p3 = scmp.lt.s32.totalorder (!%p288_p2), %s977_s10, 1  ;;  %v1167_v7 = vmov (!%p288_p2), 0   ;;  %v464_v8 = vld [vmem:[%s1521_s1] sm:$0xff] (!%p288_p2)  ;;  %v466_v10 = vld [vmem:[%s1521_s1 + $0x10] sm:$0xff] (!%p288_p2) }
   0x7   : > { %1154 = vset.pattern.permute.xlu0 (!%p288_p2), %v1167_v7  ;;  %1155 = vset.pattern.permute.xlu1 (!%p288_p2), %v1167_v7  ;;  %v1115_v9 = vpack.c.bf16 (!%p288_p2), %v341_v5, %v340_v2  ;;  %v342_v11 = vld [vmem:[%s1522_s2 + $0x20] sm:$0xff] (!%p288_p2)  ;;  %v343_v12 = vld [vmem:[%s1522_s2 + $0x28] sm:$0xff] (!%p288_p2)  ;;  %v467_v14 = vld [vmem:[%s1521_s1 + $0x18] sm:$0xff] (!%p288_p2)  ;;  %vm353_vm1 = vcmask (!%p288_p2), 523264   ;;  %vm593_vm2 = vcmask (!%p288_p2), 1040384   ;;  %v502_v39 = vshrl.u32 (!%p288_p2), %v501_v38, 7 }
   0x8   : > { %1113 = vmatpush3.bf16.msra.mxu0 (!%p288_p2), %v1112_v4  ;;  %471 = vperm.xlu0 (!%p288_p2), %1154, %v464_v8   ;;  %v465_v13 = vld [vmem:[%s1521_s1 + $0x8] sm:$0xff] (!%p288_p2)  ;;  %v1118_v15 = vpack.c.bf16 (!%p288_p2), %v343_v12, %v342_v11  ;;  %v344_v16 = vld [vmem:[%s1522_s2 + $0x30] sm:$0xff] (!%p288_p2)  ;;  %v345_v17 = vld [vmem:[%s1522_s2 + $0x38] sm:$0xff] (!%p288_p2)  ;;  %vm521_vm3 = vcmask (!%p288_p2), 1046528   ;;  %vm629_vm4 = vcmask (!%p288_p2), 1043456   ;;  %vm543_vm5 = vcmask (!%p288_p2), 1045504  }
   0x9   : > { %1114 = vmatprep.subr.bf16.mxu0 (!%p288_p2), %v1164_v3  ;;  %481 = vperm.xlu1 (!%p288_p2), %1155, %v466_v10   ;;  %v468_v18 = vld [vmem:[%s1521_s1 + $0x20] sm:$0xf] (!%p288_p2)  ;;  %v1121_v19 = vpack.c.bf16 (!%p288_p2), %v345_v17, %v344_v16  ;;  %v713_v26 = vld [vmem:[%s1526_s6 + $0x8] sm:$0xff] (!%p288_p2)  ;;  %v714_v28 = vld [vmem:[%s1526_s6 + $0x10] sm:$0xff] (!%p288_p2)  ;;  %v513_v41 = vsub.s32 (!%p288_p2), 1, %v502_v39  ;;  %v535_v42 = vsub.s32 (!%p288_p2), 2, %v502_v39 }
   0xa   : > { %1123 = vmatprep.subr.bf16.mxu1 (!%p288_p2), %v1164_v3  ;;  %1077 = vmatprep.mubr.msk.f32.mxu1 (!%p288_p2), %vm1165_vm0, %v1166_v6  ;;  %v712_v25 = vld [vmem:[%s1526_s6] sm:$0xff] (!%p288_p2)  ;;  %v715_v29 = vld [vmem:[%s1526_s6 + $0x18] sm:$0xff] (!%p288_p2)  ;;  %v557_v43 = vsub.s32 (!%p288_p2), 3, %v502_v39  ;;  %v583_v47 = vsub.s32 (!%p288_p2), 4, %v502_v39  ;;  %v503_v54 = vsub.s32 (!%p288_p2), 0, %v502_v39  ;;  %v619_v56 = vsub.s32 (!%p288_p2), 6, %v502_v39 }
   0xb   : > { %v1124_v27 = vpack.c.bf16 (!%p288_p2), %v713_v26, %v712_v25  ;;  %v1127_v30 = vpack.c.bf16 (!%p288_p2), %v715_v29, %v714_v28  ;;  %v1319_v40 = vld [vmem:[%s1523_s3] ss:$0 sm:$0xff] (!%p288_p2)  ;;  %v645_v57 = vsub.s32 (!%p288_p2), 7, %v502_v39  ;;  %v609_v62 = vsub.s32 (!%p288_p2), 5, %v502_v39 }
   0xc   : > { %1116 = vmatpush3.bf16.msra.mxu0 (!%p288_p2), %v1115_v9  ;;  %476 = vperm.xlu0 (!%p288_p2), %1154, %v465_v13   ;;  %v499_v45 = vld [vmem:[%s1524_s4] sm:$0xff] (!%p288_p2)  ;;  %vm567_vm6 = vcmask (!%p288_p2), 1041408   ;;  %vm655_vm7 = vcmask (!%p288_p2), 1042432   ;;  %vm723_vm8 = vcmask (!%p288_p2), 261120   ;;  %vm909_vm9 = vcmask (!%p288_p2), 519168  }
   0xd   : > { %s1531_s10 = smov (!%p323_p3, %s977_s10), 1  ;;  %1117 = vmatprep.subr.bf16.mxu0 %v1164_v3  ;;  %486 = vperm.xlu1 %1155, %v467_v14   ;;  %v1325_v51 = vrot.slane %v499_v45, %v513_v41  ;;  %v1327_v52 = vrot.slane %v499_v45, %v535_v42  ;;  %v1329_v53 = vrot.slane %v499_v45, %v557_v43  ;;  %v1378_v41 = vld [vmem:[%s1524_s4 + $0x8] ss:$0 sm:$0xff]  ;;  %vm912_vm10 = vcmask 523270  }
   0xe   : > { %s1141_s16 = smul.u32 40, %s1531_s10  ;;  %1125 = vmatpush3.bf16.msra.mxu1 %v1124_v27  ;;  %v1331_v59 = vrot.slane %v499_v45, %v583_v47  ;;  %v1337_v2 = vrot.slane %v499_v45, %v503_v54  ;;  %v1339_v8 = vrot.slane %v499_v45, %v619_v56  ;;  %v1341_v9 = vrot.slane %v499_v45, %v645_v57  ;;  %s1006_s18 = sshll.u32 %s1531_s10, 4 }
   0xf   : > { %1126 = vmatprep.subr.bf16.mxu1 %v1164_v3  ;;  %v1345_v14 = vrot.slane %v499_v45, %v609_v62  ;;  %vm914_vm11 = vcmask 517120   ;;  %vm917_vm12 = vcmask 523268   ;;  %vm920_vm13 = vcmask 521218  }
  0x10   : > { %1119 = vmatpush3.bf16.msra.mxu0 %v1118_v15  ;;  %491 = vperm.xlu0 %1154, %v468_v18   ;;  %s327_s21 = scalar_lea.vmem %s1520_s0, %s1141_s16 }
  0x11   : > { %1120 = vmatprep.subr.bf16.mxu0 %v1164_v3  ;;  %v333_v20 = vld [vmem:[%s327_s21] sm:$0xff]  ;;  %v334_v21 = vld [vmem:[%s327_s21 + $0x8] sm:$0xff]  ;;  %v335_v22 = vld [vmem:[%s327_s21 + $0x10] sm:$0xff] }
  0x12   : > { %v336_v23 = vld [vmem:[%s327_s21 + $0x18] sm:$0xff]  ;;  %v337_v24 = vld [vmem:[%s327_s21 + $0x20] sm:$0xf]  ;;  %1128 = vmatpush3.bf16.msra.mxu1 %v1127_v30  ;;  %v816_v31 = vrot.slane %v333_v20, 7  ;;  %v817_v32 = vrot.slane %v334_v21, 7  ;;  %v819_v33 = vrot.slane %v335_v22, 7  ;;  %s332_s21 = scalar_lea.vmem %s1529_s9, %s1006_s18 }
  0x13   : > { %1129 = vmatprep.subr.bf16.mxu1 %v1164_v3  ;;  %v821_v35 = vrot.slane %v336_v23, 7 }
  0x14   : > { %1122 = vmatpush3.bf16.msra.mxu0 %v1121_v19  ;;  %v1308_v34 = vsel %vm593_vm2, %v816_v31, %v817_v32  ;;  %v1311_v36 = vsel %vm593_vm2, %v817_v32, %v819_v33 }
  0x15   : > { %v1314_v37 = vsel %vm593_vm2, %v819_v33, %v821_v35 }
  0x17   : > { %1055 = vmatmul.mubr.msk.f32.vlgmr.msra.gmra.mrb[0].mxu0 %vm353_vm1, %v333_v20 }
  0x18   : > { %1057 = vmatprep.mubr.msk.f32.mxu0 %vm1165_vm0, %v1166_v6 }
  0x1b   : > { %1058 = vmatmul.mubr.msk.f32.gmra.mrb[2].mxu0 %vm353_vm1, %v334_v21 }
  0x1c   : > { %1060 = vmatprep.mubr.msk.f32.mxu0 %vm1165_vm0, %v1166_v6 }
  0x1f   : > { %1061 = vmatmul.mubr.msk.f32.gmra.mrb[4].mxu0 %vm353_vm1, %v335_v22 }
  0x20   : > { %1063 = vmatprep.mubr.msk.f32.mxu0 %vm1165_vm0, %v1166_v6 }
  0x23   : > { %1064 = vmatmul.mubr.msk.f32.gmra.mrb[6].mxu0 %vm353_vm1, %v336_v23 }
  0x24   : > { %1066 = vmatprep.mubr.msk.f32.mxu0 %vm1165_vm0, %v1166_v6 }
  0x27   : > { %1067 = vmatmul.mubr.msk.f32.gmra.mrb[8].mxu0 %vm353_vm1, %v337_v24 }
  0x87   : > { %v472_v49 = vpop.permute.xlu0 %471 }
  0x88   : > { %v482_v7 = vpop.permute.xlu1 %481 }
  0x8b   : > { %v477_v10 = vpop.permute.xlu0 %476 }
  0x8c   : > { %v487_v30 = vpop.permute.xlu1 %486 }
  0xea   : > { %v435_v44 = vpop.f32.mrb[0].mxu0 }
  0xeb   : > { %v436_v46 = vadd.f32 %v1319_v40, %v435_v44  ;;  %v1056_v48 = vpop.f32.mrb[1].mxu0 }
  0xed   : > { %v459_v50 = vmax.f32 %v436_v46, 0.0 }
  0xee   : > { %v440_v55 = vpop.f32.mrb[2].mxu0 }
  0xef   : > { %v494_v58 = vmul.f32 %v472_v49, %v459_v50  ;;  %v441_v60 = vadd.f32 %v1319_v40, %v440_v55  ;;  %v1059_v61 = vpop.f32.mrb[3].mxu0 }
  0xf1   : > { %v515_v63 = vmul.f32 %v1325_v51, %v494_v58  ;;  %v537_v0 = vmul.f32 %v1327_v52, %v494_v58  ;;  %v559_v1 = vmul.f32 %v1329_v53, %v494_v58  ;;  %v460_v4 = vmax.f32 %v441_v60, 0.0 }
  0xf2   : > { %v445_v5 = vpop.f32.mrb[4].mxu0  ;;  %v585_v11 = vmul.f32 %v1331_v59, %v494_v58  ;;  %v505_v38 = vmul.f32 %v1337_v2, %v494_v58 }
  0xf3   : > { %v446_v12 = vadd.f32 %v1319_v40, %v445_v5  ;;  %v1062_v13 = vpop.f32.mrb[5].mxu0  ;;  %v1347_v15 = vmul.f32 %v477_v10, %v460_v4  ;;  %v522_v16 = vrot.slane %v515_v63, 1  ;;  %v544_v17 = vrot.slane %v537_v0, 2 }
  0xf4   : > { %v568_v18 = vrot.slane %v559_v1, 6  ;;  %v594_v25 = vrot.slane %v585_v11, 7  ;;  %v492_v1 = vpop.permute.xlu0 %491 }
  0xf5   : > { %v461_v19 = vmax.f32 %v446_v12, 0.0  ;;  %v1351_v21 = vmul.f32 %v1325_v51, %v1347_v15  ;;  %v1355_v22 = vmul.f32 %v1327_v52, %v1347_v15  ;;  %v1359_v23 = vmul.f32 %v1329_v53, %v1347_v15 }
  0xf6   : > { %v450_v20 = vpop.f32.mrb[6].mxu0  ;;  %v1363_v24 = vmul.f32 %v1331_v59, %v1347_v15  ;;  %v621_v29 = vmul.f32 %v1339_v8, %v1347_v15  ;;  %v647_v43 = vmul.f32 %v1341_v9, %v1347_v15  ;;  %v673_v60 = vmul.f32 %v1378_v41, %v1347_v15 }
  0xf7   : > { %v1365_v26 = vmul.f32 %v482_v7, %v461_v19  ;;  %v451_v27 = vadd.f32 %v1319_v40, %v450_v20  ;;  %v1065_v28 = vpop.f32.mrb[7].mxu0  ;;  %v523_v31 = vrot.slane %v1351_v21, 1  ;;  %v545_v32 = vrot.slane %v1355_v22, 2 }
  0xf8   : > { %v569_v33 = vrot.slane %v1359_v23, 6  ;;  %v595_v35 = vrot.slane %v1363_v24, 7  ;;  %v630_v57 = vrot.slane %v621_v29, 4  ;;  %v656_v7 = vrot.slane %v647_v43, 5 }
  0xf9   : > { %v462_v39 = vmax.f32 %v451_v27, 0.0  ;;  %v622_v42 = vmul.f32 %v1339_v8, %v1365_v26  ;;  %v524_v45 = vsel %vm521_vm3, %v522_v16, %v523_v31  ;;  %v546_v46 = vsel %vm543_vm5, %v544_v17, %v545_v32 }
  0xfa   : > { %v455_v44 = vpop.f32.mrb[8].mxu0  ;;  %v570_v47 = vsel %vm567_vm6, %v568_v18, %v569_v33  ;;  %v596_v48 = vsel %vm593_vm2, %v594_v25, %v595_v35  ;;  %v530_v55 = vadd.f32 %v524_v45, %v505_v38  ;;  %v1399_v58 = vmul.f32 %v1341_v9, %v1365_v26 }
  0xfb   : > { %v1394_v49 = vmul.f32 %v487_v30, %v462_v39  ;;  %v456_v50 = vadd.f32 %v1319_v40, %v455_v44  ;;  %v1068_v54 = vpop.f32.mrb[9].mxu0  ;;  %v631_v56 = vrot.slane %v622_v42, 4  ;;  %v1405_v61 = vmul.f32 %v1378_v41, %v1365_v26 }
  0xfc   : > { %v552_v4 = vadd.f32 %v546_v46, %v530_v55  ;;  %v657_v10 = vrot.slane %v1399_v58, 5  ;;  %v611_v13 = vmul.f32 %v1345_v14, %v1347_v15  ;;  %v681_v16 = vrot.slane %v673_v60, 6 }
  0xfd   : > { %v562_v62 = vmul.f32 %v1329_v53, %v1394_v49  ;;  %v588_v40 = vmul.f32 %v1331_v59, %v1394_v49  ;;  %v463_v63 = vmax.f32 %v456_v50, 0.0  ;;  %v623_v0 = vmul.f32 %v1339_v8, %v1394_v49 }
  0xfe   : > { %v632_v5 = vsel %vm629_vm4, %v630_v57, %v631_v56  ;;  %v578_v18 = vadd.f32 %v570_v47, %v552_v4  ;;  %v658_v19 = vsel %vm655_vm7, %v656_v7, %v657_v10  ;;  %v682_v20 = vrot.slane %v1405_v61, 6 }
  0xff   : > { %v573_v11 = vrot.slane %v562_v62, 6  ;;  %v498_v12 = vmul.f32 %v492_v1, %v463_v63  ;;  %v599_v17 = vrot.slane %v588_v40, 7  ;;  %v633_v25 = vrot.slane %v623_v0, 4  ;;  %v992_v62 = vld [vmem:[%s1525_s5] ss:$0 sm:$0xff] }
 0x100   : > { %v517_v28 = vmul.f32 %v1325_v51, %v1365_v26  ;;  %v604_v29 = vadd.f32 %v596_v48, %v578_v18  ;;  %v683_v30 = vsel %vm567_vm6, %v681_v16, %v682_v20  ;;  %v539_v38 = vmul.f32 %v1327_v52, %v1365_v26 }
 0x101   : > { %v624_v21 = vmul.f32 %v1339_v8, %v498_v12  ;;  %v650_v27 = vmul.f32 %v1341_v9, %v498_v12  ;;  %v561_v39 = vmul.f32 %v1329_v53, %v1365_v26  ;;  %v676_v43 = vmul.f32 %v1378_v41, %v498_v12 }
 0x102   : > { %v506_v8 = vmul.f32 %v1337_v2, %v1347_v15  ;;  %v525_v44 = vrot.slane %v517_v28, 1  ;;  %v614_v45 = vadd.f32 %v611_v13, %v604_v29  ;;  %v547_v46 = vrot.slane %v539_v38, 2  ;;  %v709_v28 = vld [vmem:[%s1528_s8 + $0x28] sm:$0xff] }
 0x103   : > { %v635_v42 = vrot.slane %v624_v21, 4  ;;  %v571_v51 = vrot.slane %v561_v39, 6  ;;  %v587_v47 = vmul.f32 %v1331_v59, %v1365_v26  ;;  %v661_v52 = vrot.slane %v650_v27, 5  ;;  %v704_v59 = vld [vmem:[%s1528_s8] sm:$0xff] }
 0x104   : > { %v526_v50 = vsel %vm521_vm3, %v523_v31, %v525_v44  ;;  %v634_v53 = vsel %vm629_vm4, %v631_v56, %v633_v25  ;;  %v640_v54 = vadd.f32 %v632_v5, %v614_v45  ;;  %v548_v15 = vsel %vm543_vm5, %v545_v32, %v547_v46  ;;  %v705_v31 = vld [vmem:[%s1528_s8 + $0x8] sm:$0xff]  ;;  %v708_v27 = vld [vmem:[%s1528_s8 + $0x20] sm:$0xff] }
 0x105   : > { %v636_v48 = vsel %vm629_vm4, %v633_v25, %v635_v42  ;;  %v531_v55 = vadd.f32 %v526_v50, %v506_v8  ;;  %v572_v57 = vsel %vm567_vm6, %v569_v33, %v571_v51  ;;  %v597_v58 = vrot.slane %v587_v47, 7  ;;  %v993_v47 = vld [vmem:[%s1527_s7] ss:$0 sm:$0xff] }
 0x106   : > { %v649_v56 = vmul.f32 %v1341_v9, %v1394_v49  ;;  %v675_v22 = vmul.f32 %v1378_v41, %v1394_v49  ;;  %v507_v23 = vmul.f32 %v1337_v2, %v1365_v26  ;;  %v686_v32 = vrot.slane %v676_v43, 6 }
 0x107   : > { %v666_v33 = vadd.f32 %v658_v19, %v640_v54  ;;  %v553_v60 = vadd.f32 %v548_v15, %v531_v55  ;;  %v574_v61 = vsel %vm567_vm6, %v571_v51, %v573_v11  ;;  %v598_v40 = vsel %vm593_vm2, %v595_v35, %v597_v58  ;;  %v706_v35 = vld [vmem:[%s1528_s8 + $0x10] sm:$0xff] }
 0x108   : > { %v659_v9 = vrot.slane %v649_v56, 5  ;;  %v684_v63 = vrot.slane %v675_v22, 6  ;;  %v532_v0 = vadd.f32 %v525_v44, %v507_v23  ;;  %v1130_v1 = vpack.c.bf16 %v705_v31, %v704_v59 }
 0x109   : > { %v691_v41 = vadd.f32 %v683_v30, %v666_v33  ;;  %v579_v4 = vadd.f32 %v572_v57, %v553_v60  ;;  %v600_v2 = vsel %vm593_vm2, %v597_v58, %v599_v17  ;;  %v612_v24 = vmul.f32 %v1345_v14, %v1365_v26  ;;  %v707_v17 = vld [vmem:[%s1528_s8 + $0x18] sm:$0xff] }
 0x10a   : > { %v660_v5 = vsel %vm655_vm7, %v657_v10, %v659_v9  ;;  %v685_v7 = vsel %vm567_vm6, %v682_v20, %v684_v63  ;;  %v554_v11 = vadd.f32 %v547_v46, %v532_v0  ;;  %v662_v12 = vsel %vm655_vm7, %v659_v9, %v661_v52 }
 0x10b   : > { %v701_v13 = vadd.f32 %v992_v62, %v691_v41  ;;  %v605_v16 = vadd.f32 %v598_v40, %v579_v4  ;;  %v687_v10 = vsel %vm567_vm6, %v684_v63, %v686_v32  ;;  %v1133_v20 = vpack.c.bf16 %v707_v17, %v706_v35 }
 0x10c   : > { %v580_v18 = vadd.f32 %v574_v61, %v554_v11  ;;  %v613_v21 = vmul.f32 %v1345_v14, %v1394_v49  ;;  %v1136_v39 = vpack.c.bf16 %v709_v28, %v708_v27  ;;  %v710_v14 = vld [vmem:[%s1528_s8 + $0x30] sm:$0xff]  ;;  %v711_v49 = vld [vmem:[%s1528_s8 + $0x38] sm:$0xff] }
 0x10d   : > { %1078 = vmatmul.mubr.msk.f32.vlgmr.msra.gmra.mrb[0].mxu1 %vm723_vm8, %v701_v13  ;;  %v615_v19 = vadd.f32 %v612_v24, %v605_v16  ;;  %v1139_v45 = vpack.c.bf16 %v711_v49, %v710_v14 }
 0x10e   : > { %1131 = vmatpush3.bf16.msra.mxu1 %v1130_v1  ;;  %1080 = vmatprep.mubr.msk.f32.mxu1 %vm1165_vm0, %v1166_v6  ;;  %v606_v26 = vadd.f32 %v600_v2, %v580_v18 }
 0x10f   : > { %1132 = vmatprep.subr.bf16.mxu1 %v1164_v3  ;;  %v641_v25 = vadd.f32 %v634_v53, %v615_v19 }
 0x110   : > { %v616_v29 = vadd.f32 %v613_v21, %v606_v26 }
 0x111   : > { %v667_v30 = vadd.f32 %v660_v5, %v641_v25 }
 0x112   : > { %1134 = vmatpush3.bf16.msra.mxu1 %v1133_v20  ;;  %v642_v38 = vadd.f32 %v636_v48, %v616_v29 }
 0x113   : > { %v692_v42 = vadd.f32 %v685_v7, %v667_v30  ;;  %1135 = vmatprep.subr.bf16.mxu1 %v1164_v3 }
 0x114   : > { %v668_v43 = vadd.f32 %v662_v12, %v642_v38 }
 0x115   : > { %v702_v8 = vadd.f32 %v992_v62, %v692_v42 }
 0x116   : > { %v693_v44 = vadd.f32 %v687_v10, %v668_v43  ;;  %1137 = vmatpush3.bf16.msra.mxu1 %v1136_v39 }
 0x117   : > { %1081 = vmatmul.mubr.msk.f32.gmra.mrb[2].mxu1 %vm723_vm8, %v702_v8  ;;  %1138 = vmatprep.subr.bf16.mxu1 %v1164_v3 }
 0x118   : > { %1083 = vmatprep.mubr.msk.f32.mxu1 %vm1165_vm0, %v1166_v6  ;;  %v703_v46 = vadd.f32 %v992_v62, %v693_v44 }
 0x11a   : > { %1140 = vmatpush3.bf16.msra.mxu1 %v1139_v45 }
 0x11b   : > { %1084 = vmatmul.mubr.msk.f32.gmra.mrb[4].mxu1 %vm723_vm8, %v703_v46 }
 0x11c   : > { %1102 = vmatprep.mubr.msk.f32.mxu1 %vm1165_vm0, %v1166_v6 }
 0x11f   : > { %1103 = vmatmul.mubr.msk.f32.vlgmr.msra.gmra.mrb[6].mxu1 %vm353_vm1, %v1308_v34 }
 0x120   : > { %1105 = vmatprep.mubr.msk.f32.mxu1 %vm1165_vm0, %v1166_v6 }
 0x123   : > { %1106 = vmatmul.mubr.msk.f32.gmra.mrb[8].mxu1 %vm353_vm1, %v1311_v36 }
 0x124   : > { %1108 = vmatprep.mubr.msk.f32.mxu1 %vm1165_vm0, %v1166_v6 }
 0x127   : > { %1109 = vmatmul.mubr.msk.f32.gmra.mrb[10].mxu1 %vm353_vm1, %v1314_v37 }
 0x1e0   : > { %v799_v3 = vpop.f32.mrb[0].mxu1 }
 0x1e1   : > { %v1079_v51 = vpop.f32.mrb[1].mxu1  ;;  %v800_v52 = vadd.f32 %v993_v47, %v799_v3 }
 0x1e3   : > { %v813_v54 = vmax.f32 %v800_v52, 0.0 }
 0x1ea   : > { %v804_v48 = vpop.f32.mrb[2].mxu1 }
 0x1eb   : > { %v1082_v34 = vpop.f32.mrb[3].mxu1  ;;  %v805_v36 = vadd.f32 %v993_v47, %v804_v48 }
 0x1ed   : > { %v814_v15 = vmax.f32 %v805_v36, 0.0 }
 0x1ee   : > { %v809_v50 = vpop.f32.mrb[4].mxu1 }
 0x1ef   : > { %v1085_v53 = vpop.f32.mrb[5].mxu1  ;;  %v810_v57 = vadd.f32 %v993_v47, %v809_v50 }
 0x1f1   : > { %v815_v56 = vmax.f32 %v810_v57, 0.0 }
 0x1f2   : > { %v895_v6 = vpop.f32.mrb[6].mxu1 }
 0x1f3   : > { %v896_v37 = vadd.f32 %v895_v6, %v813_v54  ;;  %v1104_v55 = vpop.f32.mrb[7].mxu1 }
 0x1f5   : > { %910 = vst.msk [vmem:[%s332_s21] sm:$0xf] %vm909_vm9, %v896_v37 }
 0x1f6   : > { %1000 = vst.msk [vmem:[%s332_s21 - $0x2] sm:$0xc0] %vm912_vm10, %v896_v37  ;;  %v900_v59 = vpop.f32.mrb[8].mxu1 }
 0x1f7   : > { %v901_v31 = vadd.f32 %v900_v59, %v814_v15  ;;  %v1107_v58 = vpop.f32.mrb[9].mxu1 }
 0x1f9   : > { %1001 = vst.msk [vmem:[%s332_s21 + $0x6] sm:$0x3] %vm914_vm11, %v901_v31 }
 0x1fa   : > { %1002 = vst.msk [vmem:[%s332_s21 + $0x4] sm:$0xf0] %vm917_vm12, %v901_v31  ;;  %v905_v22 = vpop.f32.mrb[10].mxu1 }
 0x1fb   : > { %v906_v23 = vadd.f32 %v905_v22, %v815_v56  ;;  %v1110_v32 = vpop.f32.mrb[11].mxu1 }
 0x1fd   : > { %1003 = vst.msk [vmem:[%s332_s21 + $0xa] sm:$0x3c] %vm920_vm13, %v906_v23 }
 0x1fe PF: > { %s19_s30 = sadd.s32 1, %s1162_s30  }
 0x1ff   : > { %p16_p4 = scmp.ge.s32.totalorder %s19_s30, 4  }
 0x201   :  { %18 = sbr.rel (!%p16_p4) target bundleno = 1 (0x1), region = 89 }

// kernel: forward.13
= control target key start
LH: loop header
LB: loop body
LE: loop exit
PB: predicated region body
PF: predicated region fallthrough
CT: control target
= control target key end

     0   :  { %s1884_s21 = smov 0   ;;  %s2294_s0 = inlined_call_operand.vmem [shape: f32[2,4,25,32], index: 0, kind: input, shape index: {}]   ;;  %s2295_s1 = inlined_call_operand.vmem [shape: f32[4,25,1], index: 1, kind: input, shape index: {}]   ;;  %s2296_s2 = inlined_call_operand.vmem [shape: f32[9,32], index: 2, kind: input, shape index: {}]   ;;  %s2297_s3 = inlined_call_operand.vmem [shape: f32[1,32], index: 3, kind: input, shape index: {}]   ;;  %s2298_s4 = inlined_call_operand.vmem [shape: f32[32,64], index: 4, kind: input, shape index: {}]   ;;  %s2299_s5 = inlined_call_operand.vmem [shape: f32[1,64], index: 5, kind: input, shape index: {}]   ;;  %s2300_s6 = inlined_call_operand.vmem [shape: f32[32,32], index: 6, kind: input, shape index: {}]   ;;  %s2301_s7 = inlined_call_operand.vmem [shape: f32[1,32], index: 7, kind: input, shape index: {}]   ;;  %s2302_s8 = inlined_call_operand.vmem [shape: f32[9,32], index: 8, kind: input, shape index: {}]   ;;  %s2303_s9 = inlined_call_operand.vmem [shape: f32[1,32], index: 9, kind: input, shape index: {}]   ;;  %s2304_s10 = inlined_call_operand.vmem [shape: f32[32,64], index: 10, kind: input, shape index: {}]   ;;  %s2305_s11 = inlined_call_operand.vmem [shape: f32[1,64], index: 11, kind: input, shape index: {}]   ;;  %s2306_s12 = inlined_call_operand.vmem [shape: f32[2,4,4,64], index: 12, kind: output, shape index: {}]  }
   0x1 LB: > { %s1541_s22 = sadd.s32 4294967295, %s1813_s21   ;;  %p1545_p0 = scmp.ge.s32.totalorder %s1813_s21, 1  ;;  %s1813_s21 = sphi %s1884_s21, %s22_s21  }
   0x2   : > { %p362_p1 = scmp.lt.s32.totalorder %s1813_s21, 3 }
   0x4   : > { %p363_p2 = pnand %p1545_p0, %p362_p1 }
   0x5   : > { %v701_v0 = vld [vmem:[%s2300_s6] sm:$0xff] (!%p363_p2)  ;;  %v702_v1 = vld [vmem:[%s2300_s6 + $0x8] sm:$0xff] (!%p363_p2)  ;;  %v703_v2 = vld [vmem:[%s2300_s6 + $0x10] sm:$0xff] (!%p363_p2)  ;;  %p404_p3 = scmp.lt.s32.totalorder (!%p363_p2), %s1541_s22, 1  ;;  %v435_v3 = vlaneseq (!%p363_p2)  ;;  %v1815_v8 = vmov (!%p363_p2), 0.0|0.0   ;;  %vm608_vm0 = vcmask (!%p363_p2), 261120  }
   0x6   : > { %366 = sbr.rel (%p363_p2) target bundleno = 515 (0x203), region = 68  ;;  %v1901_v4 = vpack.c.bf16 (!%p363_p2), %v702_v1, %v701_v0  ;;  %v704_v5 = vld [vmem:[%s2300_s6 + $0x18] sm:$0xff] (!%p363_p2)  ;;  %1745 = vmatprep.subr.bf16.mxu0 (!%p363_p2), %v1815_v8  ;;  %v597_v9 = vld [vmem:[%s2298_s4] sm:$0xff] (!%p363_p2)  ;;  %v598_v10 = vld [vmem:[%s2298_s4 + $0x8] sm:$0xff] (!%p363_p2)  ;;  %vm1816_vm1 = vmmov (!%p363_p2), 0   ;;  %v1817_v19 = vmov (!%p363_p2), 0.0  }
   0x7   : > { %v1906_v6 = vpack.c.bf16 (!%p363_p2), %v704_v5, %v703_v2  ;;  %v1910_v7 = vshrl.u32 (!%p363_p2), %v435_v3, 7  ;;  %v1923_v11 = vld [vmem:[%s2296_s2] sm:$0xff] (!%p363_p2)  ;;  %v1746_v12 = vpack.c.bf16 (!%p363_p2), %v598_v10, %v597_v9  ;;  %v599_v13 = vld [vmem:[%s2298_s4 + $0x10] sm:$0xff] (!%p363_p2)  ;;  %v600_v14 = vld [vmem:[%s2298_s4 + $0x18] sm:$0xff] (!%p363_p2)  ;;  %1663 = vmatprep.mubr.msk.f32.mxu0 (!%p363_p2), %vm1816_vm1, %v1817_v19  ;;  %vm465_vm2 = vcmask (!%p363_p2), 1046528  }
   0x8   : > { %1752 = vmatprep.subr.bf16.mxu1 (!%p363_p2), %v1901_v4  ;;  %v1749_v25 = vpack.c.bf16 (!%p363_p2), %v600_v14, %v599_v13  ;;  %v1562_v27 = vld [vmem:[%s2296_s2 + $0x8] ss:$0 sm:$0xff] (!%p363_p2)  ;;  %v1818_v41 = vmov (!%p363_p2), 0   ;;  %v813_v47 = vld [vmem:[%s2295_s1] sm:$0xff] (!%p363_p2)  ;;  %vm528_vm3 = vcmask (!%p363_p2), 1042432   ;;  %vm573_vm4 = vcmask (!%p363_p2), 1041408  }
   0x9   : > { %1754 = vmatpush3.bf16.msra.mxu1 (!%p363_p2), %v1901_v4  ;;  %v457_v15 = vsub.s32 (!%p363_p2), 2, %v1910_v7  ;;  %v520_v16 = vsub.s32 (!%p363_p2), 6, %v1910_v7  ;;  %v437_v17 = vsub.s32 (!%p363_p2), 0, %v1910_v7  ;;  %v447_v18 = vsub.s32 (!%p363_p2), 1, %v1910_v7  ;;  %1747 = vmatpush3.bf16.msra.mxu0 (!%p363_p2), %v1746_v12  ;;  %v1577_v61 = vld [vmem:[%s2295_s1 + $0x20] sm:$0xff] (!%p363_p2)  ;;  %v814_v2 = vld [vmem:[%s2295_s1 + $0x8] sm:$0xff] (!%p363_p2) }
   0xa   : > { %1756 = vmatprep.subr.bf16.mxu1 (!%p363_p2), %v1906_v6  ;;  %v542_v20 = vsub.s32 (!%p363_p2), 7, %v1910_v7  ;;  %1748 = vmatprep.subr.bf16.mxu0 (!%p363_p2), %v1815_v8  ;;  %v479_v35 = vsub.s32 (!%p363_p2), 3, %v1910_v7  ;;  %v489_v46 = vsub.s32 (!%p363_p2), 4, %v1910_v7  ;;  %v499_v12 = vsub.s32 (!%p363_p2), 5, %v1910_v7 }
   0xb   : > { %v458_v22 = vrot.slane (!%p363_p2), %v1923_v11, %v457_v15  ;;  %v521_v26 = vrot.slane (!%p363_p2), %v1923_v11, %v520_v16  ;;  %v438_v29 = vrot.slane (!%p363_p2), %v1923_v11, %v437_v17  ;;  %v448_v31 = vrot.slane (!%p363_p2), %v1923_v11, %v447_v18  ;;  %1805 = vset.pattern.permute.xlu0 (!%p363_p2), %v1818_v41 }
   0xc   : > { %v1974_v34 = vrot.slane (!%p363_p2), %v1923_v11, %v542_v20  ;;  %819 = vperm.xlu0 (!%p363_p2), %1805, %v813_v47   ;;  %1806 = vset.pattern.permute.xlu1 (!%p363_p2), %v1818_v41  ;;  %v480_v10 = vrot.slane (!%p363_p2), %v1923_v11, %v479_v35  ;;  %vm1471_vm5 = vcmask (!%p363_p2), 519168   ;;  %vm1474_vm6 = vcmask (!%p363_p2), 523269  }
   0xd   : > { %s2308_s22 = smov (!%p404_p3, %s1541_s22), 1  ;;  %1758 = vmatpush3.bf16.msra.mxu1 %v1906_v6  ;;  %1750 = vmatpush3.bf16.msra.mxu0 %v1749_v25  ;;  %vm1476_vm7 = vcmask 516096   ;;  %vm1479_vm8 = vcmask 521218   ;;  %vm1482_vm9 = vcmask 523271   ;;  %vm1484_vm10 = vcmask 518144  }
   0xe   : > { %s1607_s25 = sshll.u32 %s2308_s22, 7  ;;  %1760 = vmatprep.subr.bf16.mxu1 %v1901_v4  ;;  %1768 = vmatprep.subr.bf16.mxu0 %v1901_v4  ;;  %s1608_s15 = sshll.u32 %s2308_s22, 4 }
   0xf   : > { %s1943_s28 = scalar_lea.vmem %s2294_s0, %s1607_s25  ;;  %946 = vperm.xlu1 %1806, %v1577_v61   ;;  %s413_s17 = scalar_lea.vmem %s2306_s12, %s1608_s15 }
  0x10   : > { %v414_v21 = vld [vmem:[%s1943_s28] sm:$0xff]  ;;  %v415_v23 = vld [vmem:[%s1943_s28 + $0x8] sm:$0xff]  ;;  %v416_v24 = vld [vmem:[%s1943_s28 + $0x10] sm:$0xff]  ;;  %824 = vperm.xlu0 %1805, %v814_v2  }
  0x11   : > { %1680 = vmatprep.mubr.msk.f32.mxu1 %vm608_vm0, %v414_v21  ;;  %v459_v28 = vmul.f32 %v458_v22, %v414_v21  ;;  %v460_v30 = vmul.f32 %v458_v22, %v415_v23  ;;  %v1968_v32 = vmul.f32 %v458_v22, %v416_v24  ;;  %v1550_v33 = vld [vmem:[%s1943_s28 + $0x20] sm:$0xff]  ;;  %v1977_v38 = vmul.f32 %v1562_v27, %v414_v21  ;;  %v1551_v40 = vld [vmem:[%s1943_s28 + $0x28] sm:$0xff]  ;;  %v1552_v45 = vld [vmem:[%s1943_s28 + $0x30] sm:$0xff] }
  0x12   : > { %v1979_v39 = vmul.f32 %v1562_v27, %v415_v23  ;;  %v1982_v42 = vmul.f32 %v521_v26, %v414_v21  ;;  %v440_v43 = vmul.f32 %v438_v29, %v415_v23  ;;  %1681 = vmatmul.mubr.msk.f32.vlgmr.msra.gmra.mrb[0].mxu1 %vm608_vm0, %v415_v23  ;;  %v1985_v44 = vmul.f32 %v1562_v27, %v416_v24  ;;  %v417_v49 = vld [vmem:[%s1943_s28 + $0x18] sm:$0x1]  ;;  %v2017_v1 = vld [vmem:[%s1943_s28 + $0x40] sm:$0xff]  ;;  %v2030_v13 = vld [vmem:[%s1943_s28 + $0x68] sm:$0xff] }
  0x13   : > { %v466_v36 = vrot.slane %v459_v28, 1  ;;  %v467_v37 = vrot.slane %v460_v30, 1  ;;  %v1993_v48 = vmul.f32 %v521_v26, %v415_v23  ;;  %1762 = vmatpush3.bf16.msra.mxu1 %v1901_v4  ;;  %1683 = vmatprep.mubr.msk.f32.mxu1 %vm608_vm0, %v416_v24  ;;  %v439_v50 = vmul.f32 %v438_v29, %v414_v21  ;;  %v1558_v9 = vld [vmem:[%s1943_s28 + $0x60] sm:$0xff]  ;;  %v2036_v22 = vld [vmem:[%s1943_s28 + $0x48] sm:$0xff] }
  0x14   : > { %v449_v51 = vmul.f32 %v1550_v33, %v448_v31  ;;  %v469_v52 = vrot.slane %v1968_v32, 1  ;;  %v1999_v53 = vmul.f32 %v521_v26, %v416_v24  ;;  %1764 = vmatprep.subr.bf16.mxu1 %v1906_v6  ;;  %v2004_v55 = vmul.f32 %v1550_v33, %v1974_v34 }
  0x15   : > { %v468_v54 = vsel %vm465_vm2, %v466_v36, %v467_v37  ;;  %v450_v56 = vmul.f32 %v1551_v40, %v448_v31  ;;  %v441_v58 = vmul.f32 %v438_v29, %v416_v24  ;;  %v451_v59 = vmul.f32 %v1552_v45, %v448_v31  ;;  %v1560_v29 = vld [vmem:[%s1943_s28 + $0x70] sm:$0xff] }
  0x16   : > { %v452_v57 = vadd.f32 %v449_v51, %v439_v50  ;;  %v470_v60 = vsel %vm465_vm2, %v467_v37, %v469_v52  ;;  %v2010_v62 = vmul.f32 %v1562_v27, %v417_v49  ;;  %1684 = vmatmul.mubr.msk.f32.gmra.mrb[2].mxu1 %vm608_vm0, %v417_v49  ;;  %v2014_v0 = vmul.f32 %v1551_v40, %v1974_v34  ;;  %v2054_v36 = vld [vmem:[%s1943_s28 + $0x50] sm:$0xff] }
  0x17   : > { %v453_v63 = vadd.f32 %v450_v56, %v440_v43  ;;  %1766 = vmatpush3.bf16.msra.mxu1 %v1906_v6  ;;  %1694 = vmatprep.mubr.msk.f32.mxu1 %vm608_vm0, %v1550_v33  ;;  %v454_v5 = vadd.f32 %v451_v59, %v441_v58  ;;  %v529_v14 = vrot.slane %v1982_v42, 5  ;;  %v530_v21 = vrot.slane %v1993_v48, 5  ;;  %v815_v37 = vld [vmem:[%s2295_s1 + $0x10] sm:$0xff] }
  0x18   : > { %v474_v3 = vadd.f32 %v468_v54, %v452_v57  ;;  %1776 = vmatprep.subr.bf16.mxu1 %v1901_v4  ;;  %v490_v23 = vrot.slane %v1923_v11, %v489_v46  ;;  %v550_v25 = vrot.slane %v2004_v55, 5  ;;  %v481_v26 = vmul.f32 %v2017_v1, %v480_v10  ;;  %829 = vperm.xlu1 %1806, %v815_v37   ;;  %v1579_v59 = vld [vmem:[%s2295_s1 + $0x30] sm:$0xff] }
  0x19   : > { %v475_v24 = vadd.f32 %v470_v60, %v453_v63  ;;  %v500_v27 = vrot.slane %v1923_v11, %v499_v12  ;;  %v482_v28 = vmul.f32 %v2036_v22, %v480_v10  ;;  %v476_v30 = vadd.f32 %v469_v52, %v454_v5  ;;  %v1578_v11 = vld [vmem:[%s2295_s1 + $0x28] sm:$0xff] }
  0x1a   : > { %1695 = vmatmul.mubr.msk.f32.vlgmr.msra.gmra.mrb[4].mxu1 %vm608_vm0, %v1551_v40  ;;  %v2050_v31 = vmul.f32 %v1552_v45, %v1974_v34  ;;  %v491_v32 = vmul.f32 %v1558_v9, %v490_v23  ;;  %v492_v33 = vmul.f32 %v2030_v13, %v490_v23  ;;  %v551_v41 = vrot.slane %v2014_v0, 5  ;;  %v1553_v34 = vld [vmem:[%s1943_s28 + $0x38] sm:$0x1]  ;;  %951 = vperm.xlu0 %1805, %v1578_v11   ;;  %v1592_v11 = vld [vmem:[%s2295_s1 + $0x68] sm:$0xff] }
  0x1b   : > { %1778 = vmatpush3.bf16.msra.mxu1 %v1901_v4  ;;  %1697 = vmatprep.mubr.msk.f32.mxu1 %vm608_vm0, %v1552_v45  ;;  %v484_v40 = vadd.f32 %v481_v26, %v474_v3  ;;  %v501_v42 = vmul.f32 %v2017_v1, %v500_v27  ;;  %v502_v43 = vmul.f32 %v2036_v22, %v500_v27  ;;  %v532_v50 = vrot.slane %v1999_v53, 5  ;;  %v1584_v53 = vld [vmem:[%s2295_s1 + $0x40] sm:$0xff] }
  0x1c   : > { %1780 = vmatprep.subr.bf16.mxu1 %v1906_v6  ;;  %v485_v47 = vadd.f32 %v482_v28, %v475_v24  ;;  %v483_v48 = vmul.f32 %v2054_v36, %v480_v10  ;;  %v493_v49 = vmul.f32 %v1560_v29, %v490_v23  ;;  %v503_v55 = vmul.f32 %v2054_v36, %v500_v27  ;;  %v1585_v24 = vld [vmem:[%s2295_s1 + $0x48] sm:$0xff]  ;;  %v1561_v27 = vld [vmem:[%s1943_s28 + $0x78] sm:$0x1] }
  0x1d   : > { %v494_v51 = vadd.f32 %v491_v32, %v484_v40  ;;  %v507_v52 = vrot.slane %v501_v42, 1  ;;  %v508_v54 = vrot.slane %v502_v43, 1  ;;  %v574_v45 = vrot.slane %v1977_v38, 6  ;;  %956 = vperm.xlu1 %1806, %v1579_v59  }
  0x1e   : > { %v575_v56 = vrot.slane %v1979_v39, 6  ;;  %1698 = vmatmul.mubr.msk.f32.gmra.mrb[6].mxu1 %vm608_vm0, %v1553_v34  ;;  %v495_v57 = vadd.f32 %v492_v33, %v485_v47  ;;  %v486_v58 = vadd.f32 %v483_v48, %v476_v30  ;;  %v553_v60 = vrot.slane %v2050_v31, 5  ;;  %1067 = vperm.xlu0 %1805, %v1584_v53   ;;  %v1563_v31 = vld [vmem:[%s2297_s3] ss:$0 sm:$0xff]  ;;  %v1593_v47 = vld [vmem:[%s2295_s1 + $0x70] sm:$0xff] }
  0x1f   : > { %1782 = vmatpush3.bf16.msra.mxu1 %v1906_v6  ;;  %v509_v38 = vsel %vm465_vm2, %v507_v52, %v508_v54  ;;  %v531_v39 = vsel %vm528_vm3, %v529_v14, %v530_v21  ;;  %1722 = vmatprep.mubr.msk.f32.mxu1 %vm608_vm0, %v1558_v9  ;;  %v510_v61 = vrot.slane %v503_v55, 1  ;;  %v577_v2 = vrot.slane %v1985_v44, 6  ;;  %v1591_v44 = vld [vmem:[%s2295_s1 + $0x60] sm:$0xff]  ;;  %v816_v48 = vld [vmem:[%s2295_s1 + $0x18] sm:$0x1] }
  0x20   : > { %v515_v63 = vadd.f32 %v509_v38, %v494_v51  ;;  %v496_v0 = vadd.f32 %v493_v49, %v486_v58  ;;  %1789 = vmatprep.subr.bf16.mxu1 %v1815_v8  ;;  %v552_v3 = vsel %vm528_vm3, %v550_v25, %v551_v41  ;;  %v533_v10 = vsel %vm528_vm3, %v530_v21, %v532_v50 }
  0x21   : > { %v511_v5 = vsel %vm465_vm2, %v508_v54, %v510_v61  ;;  %v579_v25 = vrot.slane %v2010_v62, 6  ;;  %v554_v21 = vsel %vm528_vm3, %v551_v41, %v553_v60  ;;  %v576_v26 = vsel %vm573_vm4, %v574_v45, %v575_v56  ;;  %1072 = vperm.xlu1 %1806, %v1585_v24  }
  0x22   : > { %v537_v14 = vadd.f32 %v531_v39, %v515_v63  ;;  %1723 = vmatmul.mubr.msk.f32.vlgmr.msra.gmra.mrb[8].mxu1 %vm608_vm0, %v2030_v13  ;;  %v517_v9 = vadd.f32 %v510_v61, %v496_v0  ;;  %v516_v23 = vadd.f32 %v511_v5, %v495_v57  ;;  %v578_v32 = vsel %vm573_vm4, %v575_v56, %v577_v2  ;;  %v2166_v57 = vld [vmem:[%s2301_s7] ss:$0 sm:$0xff] }
  0x23   : > { %1725 = vmatprep.mubr.msk.f32.mxu1 %vm608_vm0, %v1560_v29  ;;  %1188 = vperm.xlu0 %1805, %v1591_v44   ;;  %v1586_v29 = vld [vmem:[%s2295_s1 + $0x50] sm:$0xff]  ;;  %v580_v41 = vsel %vm573_vm4, %v577_v2, %v579_v25 }
  0x24   : > { %v558_v13 = vadd.f32 %v552_v3, %v537_v14  ;;  %v539_v28 = vadd.f32 %v532_v50, %v517_v9  ;;  %v538_v30 = vadd.f32 %v533_v10, %v516_v23 }
  0x25   : > { %1077 = vperm.xlu1 %1806, %v1586_v29  }
  0x26   : > { %v584_v33 = vadd.f32 %v576_v26, %v558_v13  ;;  %1726 = vmatmul.mubr.msk.f32.gmra.mrb[10].mxu1 %vm608_vm0, %v1561_v27  ;;  %v559_v62 = vadd.f32 %v554_v21, %v538_v30  ;;  %v560_v37 = vadd.f32 %v553_v60, %v539_v28  ;;  %v1594_v30 = vld [vmem:[%s2302_s8 + $0x8] ss:$0 sm:$0xff] }
  0x27   : > { %1742 = vmatprep.mubr.msk.f32.mxu1 %vm1816_vm1, %v1817_v19  ;;  %1193 = vperm.xlu0 %1805, %v1592_v11  }
  0x28   : > { %v594_v34 = vadd.f32 %v1563_v31, %v584_v33  ;;  %v585_v40 = vadd.f32 %v578_v32, %v559_v62  ;;  %v586_v43 = vadd.f32 %v580_v41, %v560_v37 }
  0x29   : > { %1198 = vperm.xlu1 %1806, %v1593_v47  }
  0x2a   : > { %1664 = vmatmul.mubr.msk.f32.vlgmr.msra.gmra.mrb[0].mxu0 %vm608_vm0, %v594_v34  ;;  %v595_v42 = vadd.f32 %v1563_v31, %v585_v40  ;;  %v596_v49 = vadd.f32 %v1563_v31, %v586_v43 }
  0x2b   : > { %1770 = vmatpush3.bf16.msra.mxu0 %v1901_v4  ;;  %1666 = vmatprep.mubr.msk.f32.mxu0 %vm1816_vm1, %v1817_v19  ;;  %v1557_v4 = vld [vmem:[%s1943_s28 + $0x58] sm:$0x1] }
  0x2c   : > { %1772 = vmatprep.subr.bf16.mxu0 %v1906_v6  ;;  %834 = vperm.xlu0 %1805, %v816_v48  }
  0x2e   : > { %1667 = vmatmul.mubr.msk.f32.gmra.mrb[2].mxu0 %vm608_vm0, %v595_v42 }
  0x2f   : > { %1774 = vmatpush3.bf16.msra.mxu0 %v1906_v6  ;;  %1669 = vmatprep.mubr.msk.f32.mxu0 %vm1816_vm1, %v1817_v19  ;;  %v1365_v6 = vld [vmem:[%s2304_s10] sm:$0xff] }
  0x30   : > { %1783 = vmatprep.subr.bf16.mxu0 %v1815_v8 }
  0x32   : > { %1670 = vmatmul.mubr.msk.f32.gmra.mrb[4].mxu0 %vm608_vm0, %v596_v49 }
  0x33   : > { %1708 = vmatprep.mubr.msk.f32.mxu0 %vm608_vm0, %v2017_v1  ;;  %v1366_v1 = vld [vmem:[%s2304_s10 + $0x8] sm:$0xff] }
  0x34   : > { %v1784_v50 = vpack.c.bf16 %v1366_v1, %v1365_v6 }
  0x36   : > { %1709 = vmatmul.mubr.msk.f32.vlgmr.msra.gmra.mrb[6].mxu0 %vm608_vm0, %v2036_v22  ;;  %1791 = vmatpush3.bf16.msra.mxu1 %v1784_v50  ;;  %v1367_v22 = vld [vmem:[%s2304_s10 + $0x10] sm:$0xff] }
  0x37   : > { %1711 = vmatprep.mubr.msk.f32.mxu0 %vm608_vm0, %v2054_v36  ;;  %1785 = vmatpush3.bf16.msra.mxu0 %v1784_v50  ;;  %v1368_v36 = vld [vmem:[%s2304_s10 + $0x18] sm:$0xff] }
  0x38   : > { %1786 = vmatprep.subr.bf16.mxu0 %v1815_v8  ;;  %1790 = vmatprep.subr.bf16.mxu1 %v1815_v8  ;;  %v1787_v51 = vpack.c.bf16 %v1368_v36, %v1367_v22  ;;  %v2171_v8 = vld [vmem:[%s2302_s8] sm:$0xff] }
  0x39   : > { %v1229_v63 = vrot.slane %v2171_v8, %v457_v15  ;;  %v1291_v0 = vrot.slane %v2171_v8, %v520_v16  ;;  %v1209_v9 = vrot.slane %v2171_v8, %v437_v17  ;;  %v1219_v16 = vrot.slane %v2171_v8, %v447_v18 }
  0x3a   : > { %1712 = vmatmul.mubr.msk.f32.gmra.mrb[8].mxu0 %vm608_vm0, %v1557_v4  ;;  %1792 = vmatpush3.bf16.msra.mxu1 %v1787_v51  ;;  %v1312_v17 = vrot.slane %v2171_v8, %v542_v20 }
  0x3b   : > { %1736 = vmatprep.mubr.msk.f32.mxu0 %vm1816_vm1, %v1817_v19  ;;  %1788 = vmatpush3.bf16.msra.mxu0 %v1787_v51 }
  0x8b   : > { %v820_v52 = vpop.permute.xlu0 %819 }
  0x8e   : > { %v947_v39 = vpop.permute.xlu1 %946 }
  0x8f   : > { %v825_v54 = vpop.permute.xlu0 %824 }
  0x97   : > { %v830_v31 = vpop.permute.xlu1 %829 }
  0x99   : > { %v952_v55 = vpop.permute.xlu0 %951 }
  0x9d   : > { %v2159_v45 = vpop.permute.xlu0 %1067 }
  0xa2   : > { %v2161_v56 = vpop.permute.xlu0 %1188 }
  0xa6   : > { %v2173_v59 = vpop.permute.xlu0 %1193 }
  0xab   : > { %v835_v44 = vpop.permute.xlu0 %834 }
  0xe5   : > { %v1682_v58 = vpop.f32.mrb[0].mxu1 }
  0xe6   : > { %v796_v53 = vadd.f32 %v1682_v58, %v2166_v57  ;;  %v790_v60 = vpop.f32.mrb[1].mxu1 }
  0xe7   : > { %v791_v38 = vadd.f32 %v2166_v57, %v790_v60 }
  0xe8   : > { %v810_v61 = vmax.f32 %v796_v53, 0.0 }
  0xe9   : > { %v809_v2 = vmax.f32 %v791_v38, 0.0  ;;  %v1685_v3 = vpop.f32.mrb[2].mxu1 }
  0xea   : > { %v838_v5 = vmul.f32 %v825_v54, %v810_v61  ;;  %v806_v10 = vadd.f32 %v1685_v3, %v2166_v57  ;;  %v800_v14 = vpop.f32.mrb[3].mxu1 }
  0xeb   : > { %v837_v23 = vmul.f32 %v820_v52, %v809_v2  ;;  %v801_v24 = vadd.f32 %v2166_v57, %v800_v14  ;;  %v957_v14 = vpop.permute.xlu1 %956 }
  0xec   : > { %v1231_v25 = vmul.f32 %v1229_v63, %v838_v5  ;;  %v2188_v15 = vmul.f32 %v1291_v0, %v838_v5  ;;  %v812_v21 = vmax.f32 %v806_v10, 0.0  ;;  %v1211_v33 = vmul.f32 %v1209_v9, %v838_v5 }
  0xed   : > { %v1230_v26 = vmul.f32 %v1229_v63, %v837_v23  ;;  %v1292_v27 = vmul.f32 %v1291_v0, %v837_v23  ;;  %v811_v13 = vmax.f32 %v801_v24, 0.0  ;;  %v1696_v28 = vpop.f32.mrb[4].mxu1  ;;  %v1210_v37 = vmul.f32 %v1209_v9, %v837_v23 }
  0xee   : > { %v925_v32 = vadd.f32 %v1696_v28, %v2166_v57  ;;  %v919_v62 = vpop.f32.mrb[5].mxu1  ;;  %v840_v29 = vmul.f32 %v835_v44, %v812_v21  ;;  %v1237_v18 = vrot.slane %v1231_v25, 1  ;;  %v1299_v11 = vrot.slane %v2188_v15, 5 }
  0xef   : > { %v839_v41 = vmul.f32 %v830_v31, %v811_v13  ;;  %v920_v34 = vadd.f32 %v2166_v57, %v919_v62  ;;  %v1334_v42 = vmul.f32 %v1594_v30, %v837_v23  ;;  %v1335_v20 = vmul.f32 %v1594_v30, %v838_v5 }
  0xf0   : > { %v938_v40 = vmax.f32 %v925_v32, 0.0  ;;  %v1337_v43 = vmul.f32 %v1594_v30, %v840_v29  ;;  %v1236_v47 = vrot.slane %v1230_v26, 1  ;;  %v1298_v48 = vrot.slane %v1292_v27, 5 }
  0xf1   : > { %v1232_v49 = vmul.f32 %v1229_v63, %v839_v41  ;;  %v937_v4 = vmax.f32 %v920_v34, 0.0  ;;  %v1699_v6 = vpop.f32.mrb[6].mxu1  ;;  %v1336_v22 = vmul.f32 %v1594_v30, %v839_v41  ;;  %v1342_v36 = vrot.slane %v1334_v42, 6 }
  0xf2   : > { %v960_v1 = vmul.f32 %v952_v55, %v938_v40  ;;  %v929_v50 = vpop.f32.mrb[7].mxu1  ;;  %v1343_v51 = vrot.slane %v1335_v20, 6  ;;  %v1347_v53 = vrot.slane %v1337_v43, 6  ;;  %v2207_v23 = vmul.f32 %v1291_v0, %v839_v41 }
  0xf3   : > { %v1239_v52 = vrot.slane %v1232_v49, 1  ;;  %v959_v54 = vmul.f32 %v947_v39, %v937_v4  ;;  %v930_v58 = vadd.f32 %v2166_v57, %v929_v50  ;;  %v1345_v2 = vrot.slane %v1336_v22, 6 }
  0xf4   : > { %v1221_v60 = vmul.f32 %v1219_v16, %v960_v1  ;;  %v1314_v38 = vmul.f32 %v1312_v17, %v960_v1  ;;  %v2204_v61 = vsel %vm573_vm4, %v1342_v36, %v1343_v51  ;;  %v1212_v27 = vmul.f32 %v1209_v9, %v839_v41 }
  0xf5   : > { %v1220_v3 = vmul.f32 %v1219_v16, %v959_v54  ;;  %v1313_v63 = vmul.f32 %v1312_v17, %v959_v54  ;;  %v939_v5 = vmax.f32 %v930_v58, 0.0  ;;  %v1724_v10 = vpop.f32.mrb[8].mxu1  ;;  %v1240_v55 = vsel %vm465_vm2, %v1237_v18, %v1239_v52 }
  0xf6   : > { %v1224_v24 = vadd.f32 %v1221_v60, %v1211_v33  ;;  %v1320_v39 = vrot.slane %v1314_v38, 5  ;;  %v1161_v44 = vpop.f32.mrb[9].mxu1  ;;  %v2210_v25 = vsel %vm573_vm4, %v1345_v2, %v1347_v53  ;;  %v1238_v28 = vsel %vm465_vm2, %v1236_v47, %v1237_v18 }
  0xf7   : > { %v1223_v15 = vadd.f32 %v1220_v3, %v1210_v37  ;;  %v1319_v21 = vrot.slane %v1313_v63, 5  ;;  %v961_v26 = vmul.f32 %v957_v14, %v939_v5  ;;  %v2214_v30 = vsel %vm528_vm3, %v1298_v48, %v1299_v11  ;;  %v1073_v48 = vpop.permute.xlu1 %1072 }
  0xf8   : > { %v1245_v13 = vadd.f32 %v1240_v55, %v1224_v24  ;;  %v1301_v37 = vrot.slane %v2207_v23, 5  ;;  %v2223_v34 = vsel %vm573_vm4, %v1343_v51, %v1345_v2  ;;  %v1167_v49 = vadd.f32 %v1724_v10, %v2166_v57  ;;  %v1564_v23 = vld [vmem:[%s2299_s5] ss:$0 sm:$0xff] }
  0xf9   : > { %v2217_v31 = vsel %vm528_vm3, %v1319_v21, %v1320_v39  ;;  %v1222_v0 = vmul.f32 %v1219_v16, %v961_v26  ;;  %v2219_v32 = vmul.f32 %v1312_v17, %v961_v26  ;;  %v1727_v33 = vpop.f32.mrb[10].mxu1  ;;  %v1244_v29 = vadd.f32 %v1238_v28, %v1223_v15 }
  0xfa   : > { %v1171_v62 = vpop.f32.mrb[11].mxu1  ;;  %v1302_v41 = vsel %vm528_vm3, %v1299_v11, %v1301_v37  ;;  %v1162_v4 = vadd.f32 %v2166_v57, %v1161_v44  ;;  %v1180_v1 = vmax.f32 %v1167_v49, 0.0  ;;  %v1250_v53 = vrot.slane %v2171_v8, %v479_v35 }
  0xfb   : > { %v1225_v9 = vadd.f32 %v1222_v0, %v1212_v27  ;;  %v1322_v18 = vrot.slane %v2219_v32, 5  ;;  %v1172_v51 = vadd.f32 %v2166_v57, %v1171_v62  ;;  %v1078_v54 = vpop.permute.xlu1 %1077  ;;  %v1270_v60 = vrot.slane %v2171_v8, %v499_v12  ;;  %v1596_v32 = vld [vmem:[%s2305_s11] ss:$0 sm:$0xff] }
  0xfc   : > { %v1179_v50 = vmax.f32 %v1162_v4, 0.0  ;;  %v1202_v3 = vmul.f32 %v2173_v59, %v1180_v1  ;;  %v1260_v63 = vrot.slane %v2171_v8, %v489_v46 }
  0xfd   : > { %v2232_v16 = vsel %vm528_vm3, %v1320_v39, %v1322_v18  ;;  %v2234_v17 = vpop.f32.mrb[0].mxu0  ;;  %v1246_v40 = vadd.f32 %v1239_v52, %v1225_v9  ;;  %v1181_v14 = vmax.f32 %v1172_v51, 0.0 }
  0xfe   : > { %v1665_v42 = vpop.f32.mrb[1].mxu0  ;;  %v1201_v5 = vmul.f32 %v2161_v56, %v1179_v50  ;;  %v1262_v26 = vmul.f32 %v1260_v63, %v1202_v3 }
  0xff   : > { %v1199_v27 = vpop.permute.xlu1 %1198 }
 0x100   : > { %v1261_v59 = vmul.f32 %v1260_v63, %v1201_v5  ;;  %v1203_v46 = vmul.f32 %v1199_v27, %v1181_v14 }
 0x101   : > { %v2236_v20 = vpop.f32.mrb[2].mxu0 }
 0x102   : > { %v1668_v43 = vpop.f32.mrb[3].mxu0  ;;  %v1263_v42 = vmul.f32 %v1260_v63, %v1203_v46 }
 0x105   : > { %v2238_v47 = vpop.f32.mrb[4].mxu0 }
 0x106   : > { %v1671_v11 = vpop.f32.mrb[5].mxu0 }
 0x109   : > { %v1710_v6 = vpop.f32.mrb[6].mxu0 }
 0x10a   : > { %v1046_v22 = vadd.f32 %v1710_v6, %v2166_v57  ;;  %v1040_v36 = vpop.f32.mrb[7].mxu0 }
 0x10b   : > { %v1041_v52 = vadd.f32 %v2166_v57, %v1040_v36 }
 0x10c   : > { %v1059_v58 = vmax.f32 %v1046_v22, 0.0  ;;  %v1595_v22 = vld [vmem:[%s2303_s9] ss:$0 sm:$0xff] }
 0x10d   : > { %v1058_v38 = vmax.f32 %v1041_v52, 0.0  ;;  %v1713_v2 = vpop.f32.mrb[8].mxu0 }
 0x10e   : > { %v1081_v10 = vmul.f32 %v1073_v48, %v1059_v58  ;;  %v1050_v55 = vpop.f32.mrb[9].mxu0  ;;  %v695_v58 = vadd.f32 %v1564_v23, %v2238_v47 }
 0x10f   : > { %v1080_v24 = vmul.f32 %v2159_v45, %v1058_v38  ;;  %v1051_v35 = vadd.f32 %v2166_v57, %v1050_v55 }
 0x110   : > { %v1252_v39 = vmul.f32 %v1250_v53, %v1081_v10  ;;  %v1272_v44 = vmul.f32 %v1270_v60, %v1081_v10  ;;  %v700_v55 = vmax.f32 %v695_v58, 0.0 }
 0x111   : > { %v1251_v12 = vmul.f32 %v1250_v53, %v1080_v24  ;;  %v1271_v15 = vmul.f32 %v1270_v60, %v1080_v24  ;;  %v1060_v21 = vmax.f32 %v1051_v35, 0.0 }
 0x112   : > { %v1255_v7 = vadd.f32 %v1252_v39, %v1245_v13  ;;  %v1278_v28 = vrot.slane %v1272_v44, 1 }
 0x113   : > { %v1254_v8 = vadd.f32 %v1251_v12, %v1244_v29  ;;  %v1277_v56 = vrot.slane %v1271_v15, 1  ;;  %v1082_v0 = vmul.f32 %v1078_v54, %v1060_v21 }
 0x114   : > { %v1265_v33 = vadd.f32 %v1262_v26, %v1255_v7 }
 0x115   : > { %v1264_v62 = vadd.f32 %v1261_v59, %v1254_v8  ;;  %v1279_v45 = vsel %vm465_vm2, %v1277_v56, %v1278_v28  ;;  %v1253_v9 = vmul.f32 %v1250_v53, %v1082_v0  ;;  %v1273_v57 = vmul.f32 %v1270_v60, %v1082_v0 }
 0x117   : > { %v1285_v43 = vadd.f32 %v1279_v45, %v1264_v62  ;;  %v1256_v48 = vadd.f32 %v1253_v9, %v1246_v40  ;;  %v1280_v49 = vrot.slane %v1273_v57, 1 }
 0x119   : > { %v1306_v4 = vadd.f32 %v2214_v30, %v1285_v43  ;;  %v1266_v11 = vadd.f32 %v1263_v42, %v1256_v48  ;;  %v1281_v13 = vsel %vm465_vm2, %v1278_v28, %v1280_v49 }
 0x11a   : > { %v1286_v6 = vadd.f32 %v1281_v13, %v1265_v33 }
 0x11b   : > { %v1327_v29 = vadd.f32 %v2217_v31, %v1306_v4  ;;  %v1287_v1 = vadd.f32 %v1280_v49, %v1266_v11 }
 0x11c   : > { %v1307_v50 = vadd.f32 %v1302_v41, %v1286_v6 }
 0x11d   : > { %v1352_v36 = vadd.f32 %v2204_v61, %v1327_v29  ;;  %v1308_v40 = vadd.f32 %v1301_v37, %v1287_v1 }
 0x11e   : > { %v1328_v30 = vadd.f32 %v2232_v16, %v1307_v50  ;;  %v690_v16 = vadd.f32 %v1564_v23, %v2236_v20 }
 0x11f   : > { %v1329_v51 = vadd.f32 %v1322_v18, %v1308_v40  ;;  %v1362_v52 = vadd.f32 %v1595_v22, %v1352_v36 }
 0x120   : > { %v1353_v31 = vadd.f32 %v2223_v34, %v1328_v30  ;;  %v699_v10 = vmax.f32 %v690_v16, 0.0 }
 0x121   : > { %v1354_v41 = vadd.f32 %v2210_v25, %v1329_v51  ;;  %1737 = vmatmul.mubr.msk.f32.vlgmr.msra.gmra.mrb[10].mxu0 %vm608_vm0, %v1362_v52  ;;  %v685_v25 = vadd.f32 %v1564_v23, %v2234_v17 }
 0x122   : > { %1739 = vmatprep.mubr.msk.f32.mxu0 %vm1816_vm1, %v1817_v19  ;;  %v1363_v61 = vadd.f32 %v1595_v22, %v1353_v31 }
 0x123   : > { %v1364_v54 = vadd.f32 %v1595_v22, %v1354_v41  ;;  %v698_v18 = vmax.f32 %v685_v25, 0.0 }
 0x125   : > { %1740 = vmatmul.mubr.msk.f32.gmra.mrb[12].mxu0 %vm608_vm0, %v1363_v61  ;;  %1743 = vmatmul.mubr.msk.f32.vlgmr.msra.gmra.mrb[12].mxu1 %vm608_vm0, %v1364_v54 }
 0x1f4   : > { %v1451_v37 = vpop.f32.mrb[10].mxu0 }
 0x1f5   : > { %v1452_v34 = vadd.f32 %v1596_v32, %v1451_v37  ;;  %v1738_v19 = vpop.f32.mrb[11].mxu0 }
 0x1f7   : > { %v1465_v53 = vmax.f32 %v1452_v34, 0.0 }
 0x1f8   : > { %v1456_v60 = vpop.f32.mrb[12].mxu0  ;;  %v1461_v38 = vpop.f32.mrb[12].mxu1 }
 0x1f9   : > { %v1468_v2 = vadd.f32 %v1465_v53, %v698_v18  ;;  %v1457_v17 = vadd.f32 %v1596_v32, %v1456_v60  ;;  %v1462_v3 = vadd.f32 %v1596_v32, %v1461_v38  ;;  %v1741_v63 = vpop.f32.mrb[13].mxu0  ;;  %v1744_v5 = vpop.f32.mrb[13].mxu1 }
 0x1fb   : > { %1472 = vst.msk [vmem:[%s413_s17] sm:$0xf] %vm1471_vm5, %v1468_v2  ;;  %v1466_v20 = vmax.f32 %v1457_v17, 0.0  ;;  %v1467_v47 = vmax.f32 %v1462_v3, 0.0 }
 0x1fc   : > { %1600 = vst.msk [vmem:[%s413_s17 - $0x1] sm:$0xe0] %vm1474_vm6, %v1468_v2 }
 0x1fd   : > { %v1469_v14 = vadd.f32 %v1466_v20, %v699_v10  ;;  %v1470_v24 = vadd.f32 %v1467_v47, %v700_v55 }
 0x1ff   : > { %1601 = vst.msk [vmem:[%s413_s17 + $0x7] sm:$0x1] %vm1476_vm7, %v1469_v14 }
 0x200   : > { %1602 = vst.msk [vmem:[%s413_s17 + $0x6] sm:$0x3c] %vm1479_vm8, %v1469_v14 }
 0x201   : > { %1603 = vst.msk [vmem:[%s413_s17 + $0x5] sm:$0x80] %vm1482_vm9, %v1469_v14 }
 0x202   : > { %1604 = vst.msk [vmem:[%s413_s17 + $0xd] sm:$0x7] %vm1484_vm10, %v1470_v24 }
 0x203 PF: > { %s22_s21 = sadd.s32 1, %s1813_s21  }
 0x204   : > { %p19_p4 = scmp.ge.s32.totalorder %s22_s21, 4  }
 0x206   :  { %21 = sbr.rel (!%p19_p4) target bundleno = 1 (0x1), region = 107 }

// kernel: forward.17
= control target key start
LH: loop header
LB: loop body
LE: loop exit
PB: predicated region body
PF: predicated region fallthrough
CT: control target
= control target key end

     0   :  { %s459_s12 = smov 0   ;;  %s583_s0 = inlined_call_operand.vmem [shape: f32[2,4,128], index: 0, kind: input, shape index: {}]   ;;  %s584_s1 = inlined_call_operand.vmem [shape: f32[128,256], index: 1, kind: input, shape index: {}]   ;;  %s585_s2 = inlined_call_operand.vmem [shape: f32[1,256], index: 2, kind: input, shape index: {}]   ;;  %s586_s3 = inlined_call_operand.vmem [shape: f32[2,1,256], index: 3, kind: output, shape index: {}]  }
   0x1 LB: > { %s378_s13 = sadd.s32 4294967295, %s435_s12   ;;  %p382_p0 = scmp.ge.s32.totalorder %s435_s12, 1  ;;  %s435_s12 = sphi %s459_s12, %s13_s12  }
   0x2   : > { %p136_p1 = scmp.lt.s32.totalorder %s435_s12, 3 }
   0x4   : > { %p137_p2 = pnand %p382_p0, %p136_p1 }
   0x5   : > { %v168_v0 = vld [vmem:[%s584_s1 + $0x8] sm:$0xff] (!%p137_p2)  ;;  %v170_v1 = vld [vmem:[%s584_s1 + $0x18] sm:$0xff] (!%p137_p2)  ;;  %v167_v2 = vld [vmem:[%s584_s1] sm:$0xff] (!%p137_p2)  ;;  %v437_v7 = vmov (!%p137_p2), 0.0   ;;  %p158_p3 = scmp.lt.s32.totalorder (!%p137_p2), %s378_s13, 1  ;;  %v201_v50 = vlaneseq (!%p137_p2)  ;;  %vm284_vm0 = vcmask (!%p137_p2), 1043456  }
   0x6   : > { %140 = sbr.rel (%p137_p2) target bundleno = 279 (0x117), region = 32  ;;  %v387_v3 = vpack.c.bf16 (!%p137_p2), %v170_v1, %v168_v0  ;;  %v169_v4 = vld [vmem:[%s584_s1 + $0x10] sm:$0xff] (!%p137_p2)  ;;  %v172_v5 = vld [vmem:[%s584_s1 + $0x28] sm:$0xff] (!%p137_p2)  ;;  %v174_v6 = vld [vmem:[%s584_s1 + $0x38] sm:$0xff] (!%p137_p2)  ;;  %275 = vmatprep.mubr.f32.mxu0 (!%p137_p2), %v437_v7 }
   0x7   : > { %v389_v8 = vpack.c.bf16 (!%p137_p2), %v169_v4, %v167_v2  ;;  %v391_v9 = vpack.c.bf16 (!%p137_p2), %v174_v6, %v172_v5  ;;  %v171_v10 = vld [vmem:[%s584_s1 + $0x20] sm:$0xff] (!%p137_p2)  ;;  %v173_v11 = vld [vmem:[%s584_s1 + $0x30] sm:$0xff] (!%p137_p2)  ;;  %v176_v12 = vld [vmem:[%s584_s1 + $0x48] sm:$0xff] (!%p137_p2)  ;;  %v202_v51 = vshrl.u32 (!%p137_p2), %v201_v50, 7  ;;  %v438_v6 = vmov (!%p137_p2), 1966171168  }
   0x8   : > { %388 = vmatprep.subr.bf16.mxu0 (!%p137_p2), %v387_v3  ;;  %v178_v13 = vld [vmem:[%s584_s1 + $0x58] sm:$0xff] (!%p137_p2)  ;;  %v393_v14 = vpack.c.bf16 (!%p137_p2), %v173_v11, %v171_v10  ;;  %v175_v16 = vld [vmem:[%s584_s1 + $0x40] sm:$0xff] (!%p137_p2)  ;;  %v177_v17 = vld [vmem:[%s584_s1 + $0x50] sm:$0xff] (!%p137_p2)  ;;  %v306_v7 = vunpack.c.l.s4 (!%p137_p2), %v438_v6  ;;  %vm322_vm1 = vcmp.lt.s32.totalorder (!%p137_p2), %v201_v50, 256 }
   0x9   : > { %390 = vmatpush1.bf16.msra.mxu0 (!%p137_p2), %v389_v8  ;;  %v395_v15 = vpack.c.bf16 (!%p137_p2), %v178_v13, %v176_v12  ;;  %v180_v18 = vld [vmem:[%s584_s1 + $0x68] sm:$0xff] (!%p137_p2)  ;;  %v182_v19 = vld [vmem:[%s584_s1 + $0x78] sm:$0xff] (!%p137_p2)  ;;  %v397_v20 = vpack.c.bf16 (!%p137_p2), %v177_v17, %v175_v16  ;;  %v179_v22 = vld [vmem:[%s584_s1 + $0x60] sm:$0xff] (!%p137_p2)  ;;  %v203_v52 = vsub.s32 (!%p137_p2), 0, %v202_v51  ;;  %v207_v54 = vsub.s32 (!%p137_p2), 1, %v202_v51 }
   0xa   : > { %392 = vmatprep.subr.bf16.mxu0 (!%p137_p2), %v391_v9  ;;  %v399_v21 = vpack.c.bf16 (!%p137_p2), %v182_v19, %v180_v18  ;;  %v181_v23 = vld [vmem:[%s584_s1 + $0x70] sm:$0xff] (!%p137_p2)  ;;  %v184_v24 = vld [vmem:[%s584_s1 + $0x88] sm:$0xff] (!%p137_p2)  ;;  %v186_v25 = vld [vmem:[%s584_s1 + $0x98] sm:$0xff] (!%p137_p2)  ;;  %v307_v12 = vunpack.c.0.s8 (!%p137_p2), %v306_v7 }
   0xb   : > { %v401_v26 = vpack.c.bf16 (!%p137_p2), %v181_v23, %v179_v22  ;;  %v403_v27 = vpack.c.bf16 (!%p137_p2), %v186_v25, %v184_v24  ;;  %v183_v28 = vld [vmem:[%s584_s1 + $0x80] sm:$0xff] (!%p137_p2)  ;;  %v185_v29 = vld [vmem:[%s584_s1 + $0x90] sm:$0xff] (!%p137_p2)  ;;  %v188_v30 = vld [vmem:[%s584_s1 + $0xa8] sm:$0xff] (!%p137_p2) }
   0xc   : > { %v190_v31 = vld [vmem:[%s584_s1 + $0xb8] sm:$0xff] (!%p137_p2)  ;;  %v405_v32 = vpack.c.bf16 (!%p137_p2), %v185_v29, %v183_v28  ;;  %v187_v34 = vld [vmem:[%s584_s1 + $0xa0] sm:$0xff] (!%p137_p2)  ;;  %v189_v35 = vld [vmem:[%s584_s1 + $0xb0] sm:$0xff] (!%p137_p2)  ;;  %v310_v17 = vsub.s32 (!%p137_p2), %v307_v12, %v202_v51 }
   0xd   : > { %394 = vmatpush1.bf16.msra.mxu0 %v393_v14  ;;  %v407_v33 = vpack.c.bf16 %v190_v31, %v188_v30  ;;  %v192_v36 = vld [vmem:[%s584_s1 + $0xc8] sm:$0xff]  ;;  %v194_v37 = vld [vmem:[%s584_s1 + $0xd8] sm:$0xff]  ;;  %v409_v38 = vpack.c.bf16 %v189_v35, %v187_v34  ;;  %v191_v40 = vld [vmem:[%s584_s1 + $0xc0] sm:$0xff]  ;;  %s588_s13 = smov (!%p158_p3, %s378_s13), 1 }
   0xe   : > { %396 = vmatprep.subr.bf16.mxu0 %v395_v15  ;;  %v411_v39 = vpack.c.bf16 %v194_v37, %v192_v36  ;;  %v193_v41 = vld [vmem:[%s584_s1 + $0xd0] sm:$0xff]  ;;  %v196_v42 = vld [vmem:[%s584_s1 + $0xe8] sm:$0xff]  ;;  %v198_v43 = vld [vmem:[%s584_s1 + $0xf8] sm:$0xff]  ;;  %s383_s28 = sshll.u32 %s588_s13, 2  ;;  %s384_s7 = sshll.u32 %s588_s13, 1 }
   0xf   : > { %v413_v44 = vpack.c.bf16 %v193_v41, %v191_v40  ;;  %v415_v45 = vpack.c.bf16 %v198_v43, %v196_v42  ;;  %v195_v46 = vld [vmem:[%s584_s1 + $0xe0] sm:$0xff]  ;;  %v197_v47 = vld [vmem:[%s584_s1 + $0xf0] sm:$0xff]  ;;  %s161_s4 = scalar_lea.vmem %s583_s0, %s383_s28  ;;  %s165_s10 = scalar_lea.vmem %s586_s3, %s384_s7 }
  0x10   : > { %v417_v48 = vpack.c.bf16 %v197_v47, %v195_v46  ;;  %v166_v49 = vld [vmem:[%s161_s4] sm:$0xf] }
  0x11   : > { %398 = vmatpush1.bf16.msra.mxu0 %v397_v20  ;;  %v199_v53 = vld [vmem:[%s585_s2] sm:$0x3] }
  0x12   : > { %400 = vmatprep.subr.bf16.mxu0 %v399_v21  ;;  %v204_v55 = vrot.slane %v199_v53, %v203_v52  ;;  %v208_v56 = vrot.slane %v199_v53, %v207_v54 }
  0x15   : > { %402 = vmatpush1.bf16.msra.mxu0 %v401_v26 }
  0x16   : > { %404 = vmatprep.subr.bf16.mxu0 %v403_v27 }
  0x19   : > { %406 = vmatpush1.bf16.msra.mxu0 %v405_v32 }
  0x1a   : > { %408 = vmatprep.subr.bf16.mxu0 %v407_v33 }
  0x1d   : > { %410 = vmatpush1.bf16.msra.mxu0 %v409_v38 }
  0x1e   : > { %412 = vmatprep.subr.bf16.mxu0 %v411_v39 }
  0x21   : > { %414 = vmatpush1.bf16.msra.mxu0 %v413_v44 }
  0x22   : > { %416 = vmatprep.subr.bf16.mxu0 %v415_v45 }
  0x25   : > { %418 = vmatpush1.bf16.msra.mxu0 %v417_v48 }
  0x28   : > { %276 = vmatmul.mubr.f32.vlgmr.msra.gmra.mrb[0].mxu0 %v166_v49 }
  0xfb   : > { %v277_v57 = vpop.f32.mrb[0].mxu0 }
  0xfc   : > { %v278_v58 = vadd.f32 %v277_v57, %v204_v55  ;;  %v279_v59 = vpop.f32.mrb[1].mxu0 }
  0xfd   : > { %v280_v60 = vadd.f32 %v279_v59, %v208_v56 }
  0xfe   : > { %v282_v61 = vmax.f32 %v278_v58, 0.0 }
  0xff   : > { %v283_v62 = vmax.f32 %v280_v60, 0.0 }
 0x100   : > { %v285_v63 = vsel %vm284_vm0, %v282_v61, 0.0 }
 0x101   : > { %v286_v0 = vrot.slane %v285_v63, 4  ;;  %v292_v1 = vsel %vm284_vm0, %v283_v62, 0.0 }
 0x102   : > { %v293_v2 = vrot.slane %v292_v1, 4 }
 0x103   : > { %v287_v3 = vadd.f32 %v286_v0, %v285_v63 }
 0x104   : > { %v294_v4 = vadd.f32 %v293_v2, %v292_v1 }
 0x105   : > { %v288_v5 = vrot.slane %v287_v3, 2 }
 0x106   : > { %v295_v8 = vrot.slane %v294_v4, 2 }
 0x107   : > { %v289_v9 = vadd.f32 %v288_v5, %v287_v3 }
 0x108   : > { %v296_v10 = vadd.f32 %v295_v8, %v294_v4 }
 0x109   : > { %v290_v11 = vrot.slane %v289_v9, 1 }
 0x10a   : > { %v297_v13 = vrot.slane %v296_v10, 1 }
 0x10b   : > { %v291_v14 = vadd.f32 %v290_v11, %v289_v9 }
 0x10c   : > { %v298_v15 = vadd.f32 %v297_v13, %v296_v10 }
 0x10d   : > { %v300_v16 = vmul.f32 0.25, %v291_v14 }
 0x10e   : > { %v301_v18 = vmul.f32 0.25, %v298_v15 }
 0x110   : > { %v304_v19 = vcombine.low %v300_v16, %v301_v18 }
 0x112   : > { %v311_v20 = vrot.slane %v304_v19, %v310_v17 }
 0x114   : > { %v318_v21 = vrot.slane %v311_v20, %v310_v17 }
 0x116   : > { %324 = vst.msk [vmem:[%s165_s10] sm:$0x3] %vm322_vm1, %v318_v21 }
 0x117 PF: > { %s13_s12 = sadd.s32 1, %s435_s12  }
 0x118   : > { %p10_p4 = scmp.ge.s32.totalorder %s13_s12, 4  }
 0x11a   :  { %12 = sbr.rel (!%p10_p4) target bundleno = 1 (0x1), region = 62 }

// kernel: forward.16
= control target key start
LH: loop header
LB: loop body
LE: loop exit
PB: predicated region body
PF: predicated region fallthrough
CT: control target
= control target key end

     0   :  { %14 = vsyncpa [#allocation3], 0  ;;  %s1155_s30 = smov 0   ;;  %s1382_s0 = inlined_call_operand.vmem [shape: f32[2,16,128], index: 0, kind: input, shape index: {}]   ;;  %s1383_s1 = inlined_call_operand.vmem [shape: f32[16,1], index: 1, kind: input, shape index: {}]   ;;  %s1384_s2 = inlined_call_operand.vmem [shape: f32[128,64], index: 2, kind: input, shape index: {}]   ;;  %s1385_s3 = inlined_call_operand.vmem [shape: f32[1,64], index: 3, kind: input, shape index: {}]   ;;  %s1386_s4 = inlined_call_operand.vmem [shape: f32[9,64], index: 4, kind: input, shape index: {}]   ;;  %s1387_s5 = inlined_call_operand.vmem [shape: f32[1,64], index: 5, kind: input, shape index: {}]   ;;  %s1388_s6 = inlined_call_operand.vmem [shape: f32[64,128], index: 6, kind: input, shape index: {}]   ;;  %s1389_s7 = inlined_call_operand.hbm [shape: f32[1,128], index: 7, kind: input, shape index: {}]   ;;  %s1390_s8 = inlined_call_operand.vmem [shape: f32[128,128], index: 8, kind: input, shape index: {}]   ;;  %s1391_s9 = inlined_call_operand.vmem [shape: f32[2,2,2,128], index: 9, kind: output, shape index: {}]  }
   0x1 LB: > { %s1161_s10 = sadd.s32 4294967295, %s1098_s30   ;;  %p816_p0 = scmp.ge.s32.totalorder %s1098_s30, 1  ;;  %s1098_s30 = sphi %s1155_s30, %s20_s30  }
   0x2   : > { %p245_p1 = scmp.lt.s32.totalorder %s1098_s30, 3  ;;  %p1392_p3 = scmp.eq.s32.totalorder %s1161_s10, 0 }
   0x3   : > { %s1100_s12 = smov [#allocation2]   ;;  %s1060_s17 = scalar_lea.hbm %s1389_s7, 16 }
   0x4   : > { %p1165_p2 = pnand %p816_p0, %p245_p1  ;;  %s276_s13 = sshll.u32 %s1100_s12, 4  ;;  %s277_s13 = int_to_ptr.vmem [resolvable:$true] %s276_s13 }
   0x5   : > { %p1061_p6 = scmp.ne.s32.totalorder %s1389_s7, %s1060_s17  ;;  %p1067_p10 = scmp.lt.u32.totalorder %s1060_s17, %s1389_s7 }
   0x6   : > { %s1394_s11 = scalar_select %p1165_p2, 1, 0 }
   0x7   : > { %p1040_p4 = pneg %p1165_p2 }
   0x9   : > { %p1174_p5 = pnand %p1392_p3, %p1040_p4 }
   0xb   : > { %p1062_p7 = pneg %p1174_p5 }
   0xd   : > { %p1063_p8 = pnand %p1062_p7, %p1061_p6 }
   0xf   : > { %p1064_p9 = pneg %p1063_p8 }
  0x11   : > { %p1069_p11 = pnand %p1067_p10, %p1064_p9 }
  0x13   : > { %1072 = shalt.err (!%p1069_p11)
}
  0x14   : > { %s1073_s22 = scalar_lea.vmem %s277_s13, 16  ;;  %s1080_s23 = scalar_lea.vmem %s277_s13, 32 }
  0x15   : > { %p1074_p12 = scmp.ne.s32.totalorder %s277_s13, %s1073_s22  ;;  %p1081_p1 = scmp.lt.s32.totalorder %s277_s13, %s277_s13 }
  0x16   : > { %p1082_p4 = scmp.lt.s32.totalorder %s1080_s23, %s1073_s22 }
  0x17   : > { %p1076_p13 = pnand %p1074_p12, %p1062_p7 }
  0x18   : > { %p1083_p3 = por %p1082_p4, %p1081_p1 }
  0x19   : > { %p1077_p0 = pneg %p1076_p13 }
  0x1b   : > { %p1084_p2 = pnand %p1083_p3, %p1077_p0 }
  0x1d   : > { %1087 = shalt.err (!%p1084_p2)
}
  0x1e   : > { %1043 = dma.hbm_to_vmem [thread:$0]  (!%p1174_p5), %s1389_s7, 16, %s277_s13, [#allocation3]  }
  0x1f   : > { %p1396_p6 = scmp.ne.s32.totalorder %s1394_s11, 0 }
  0x20   : > { %p1397_p8 = scmp.eq.s32.totalorder (!%p1396_p6), %s1161_s10, 0 }
  0x21   : > { %300 = sbr.rel (%p1396_p6) target bundleno = 564 (0x234), region = 56 }
  0x28   : > { %1093 = dma.done.wait (%p1397_p8), [#allocation3], 16   ;;  %p1398_p7 = pmov %p1397_p8 }
  0x29   : > { %p336_p9 = scmp.lt.s32.totalorder %s1161_s10, 1  ;;  %v1101_v0 = vmov 0   ;;  %v348_v1 = vld [vmem:[%s1384_s2] sm:$0xff]  ;;  %v349_v2 = vld [vmem:[%s1384_s2 + $0x8] sm:$0xff]  ;;  %v350_v3 = vld [vmem:[%s1384_s2 + $0x10] sm:$0xff]  ;;  %v1102_v32 = vmov 0.0|0.0   ;;  %v464_v46 = vlaneseq }
  0x2a   : > { %1095 = vsyncadd (%p1398_p7), [#allocation3], 4294967280  ;;  %1059 = vset.pattern.permute.xlu0 %v1101_v0  ;;  %v968_v4 = vpack.c.bf16 %v349_v2, %v348_v1  ;;  %v351_v5 = vld [vmem:[%s1384_s2 + $0x18] sm:$0xff]  ;;  %v352_v7 = vld [vmem:[%s1384_s2 + $0x20] sm:$0xff]  ;;  %1000 = vmatprep.subr.bf16.mxu1 %v1102_v32  ;;  %vm1103_vm0 = vmmov 0   ;;  %v1104_v35 = vmov 0.0  }
  0x2b   : > { %s1400_s10 = smov (!%p336_p9, %s1161_s10), 1  ;;  %v972_v6 = vpack.c.bf16 %v351_v5, %v350_v3  ;;  %v353_v8 = vld [vmem:[%s1384_s2 + $0x28] sm:$0xff]  ;;  %v354_v11 = vld [vmem:[%s1384_s2 + $0x30] sm:$0xff]  ;;  %v355_v12 = vld [vmem:[%s1384_s2 + $0x38] sm:$0xff]  ;;  %930 = vmatprep.mubr.msk.f32.mxu1 %vm1103_vm0, %v1104_v35  ;;  %vm510_vm1 = vcmask 1042432   ;;  %v465_v47 = vshrl.u32 %v464_v46, 7 }
  0x2c   : > { %s833_s26 = sshll.u32 %s1400_s10, 4  ;;  %969 = vmatprep.subr.bf16.mxu0 %v968_v4  ;;  %v976_v9 = vpack.c.bf16 %v353_v8, %v352_v7  ;;  %v448_v13 = vld [vmem:[%s1383_s1] sm:$0xff]  ;;  %v449_v14 = vld [vmem:[%s1383_s1 + $0x8] sm:$0xff]  ;;  %v980_v15 = vpack.c.bf16 %v355_v12, %v354_v11  ;;  %v358_v19 = vld [vmem:[%s1384_s2 + $0x50] sm:$0xff]  ;;  %vm496_vm2 = vcmask 1043456   ;;  %vm524_vm3 = vcmask 1041408  }
  0x2d   : > { %s1226_s22 = scalar_lea.vmem %s1382_s0, %s833_s26  ;;  %971 = vmatpush3.bf16.msra.mxu0 %v968_v4  ;;  %452 = vperm.xlu0 %1059, %v448_v13   ;;  %v356_v16 = vld [vmem:[%s1384_s2 + $0x40] sm:$0xff]  ;;  %v357_v17 = vld [vmem:[%s1384_s2 + $0x48] sm:$0xff]  ;;  %v359_v20 = vld [vmem:[%s1384_s2 + $0x58] sm:$0xff]  ;;  %v490_v50 = vsub.s32 3, %v465_v47  ;;  %v504_v51 = vsub.s32 4, %v465_v47  ;;  %v518_v52 = vsub.s32 5, %v465_v47 }
  0x2e   : > { %973 = vmatprep.subr.bf16.mxu0 %v972_v6  ;;  %v1229_v10 = vld [vmem:[%s1226_s22] sm:$0xff]  ;;  %v984_v18 = vpack.c.bf16 %v357_v17, %v356_v16  ;;  %v988_v21 = vpack.c.bf16 %v359_v20, %v358_v19  ;;  %v361_v23 = vld [vmem:[%s1384_s2 + $0x68] sm:$0xff]  ;;  %v362_v25 = vld [vmem:[%s1384_s2 + $0x70] sm:$0xff]  ;;  %v472_v55 = vsub.s32 1, %v465_v47  ;;  %v481_v56 = vsub.s32 2, %v465_v47  ;;  %s834_s26 = sshll.u32 %s1400_s10, 2 }
  0x2f   : > { %911 = vmatprep.mubr.f32.mxu0 %v1229_v10  ;;  %v360_v22 = vld [vmem:[%s1384_s2 + $0x60] sm:$0xff]  ;;  %v363_v26 = vld [vmem:[%s1384_s2 + $0x78] sm:$0xff]  ;;  %v347_v28 = vld [vmem:[%s1226_s22 + $0x8] sm:$0xff]  ;;  %v670_v43 = vrot.slane %v1229_v10, 5  ;;  %v466_v59 = vsub.s32 0, %v465_v47  ;;  %v538_v11 = vsub.s32 7, %v465_v47  ;;  %s345_s12 = scalar_lea.vmem %s1391_s9, %s834_s26 }
  0x30   : > { %v992_v24 = vpack.c.bf16 %v361_v23, %v360_v22  ;;  %v996_v27 = vpack.c.bf16 %v363_v26, %v362_v25  ;;  %v578_v29 = vld [vmem:[%s1388_s6] sm:$0xff]  ;;  %v579_v30 = vld [vmem:[%s1388_s6 + $0x8] sm:$0xff]  ;;  %v580_v31 = vld [vmem:[%s1388_s6 + $0x10] sm:$0xff]  ;;  %v671_v44 = vrot.slane %v347_v28, 5  ;;  %vm593_vm4 = vcmask 523264  }
  0x31   : > { %975 = vmatpush3.bf16.msra.mxu0 %v972_v6  ;;  %457 = vperm.xlu0 %1059, %v449_v14   ;;  %v1001_v33 = vpack.c.bf16 %v579_v30, %v578_v29  ;;  %v581_v34 = vld [vmem:[%s1388_s6 + $0x18] sm:$0xff]  ;;  %v582_v37 = vld [vmem:[%s1388_s6 + $0x20] sm:$0xff]  ;;  %v583_v38 = vld [vmem:[%s1388_s6 + $0x28] sm:$0xff] }
  0x32   : > { %977 = vmatprep.subr.bf16.mxu0 %v976_v9  ;;  %v1004_v36 = vpack.c.bf16 %v581_v34, %v580_v31  ;;  %v1007_v39 = vpack.c.bf16 %v583_v38, %v582_v37  ;;  %v584_v40 = vld [vmem:[%s1388_s6 + $0x30] sm:$0xff]  ;;  %v585_v41 = vld [vmem:[%s1388_s6 + $0x38] sm:$0xff]  ;;  %v1302_v45 = vsel %vm510_vm1, %v670_v43, %v671_v44  ;;  %v825_v49 = vld [vmem:[%s1385_s3] ss:$0 sm:$0xff] }
  0x33   : > { %1002 = vmatpush3.bf16.msra.mxu1 %v1001_v33  ;;  %v1010_v42 = vpack.c.bf16 %v585_v41, %v584_v40  ;;  %v462_v54 = vld [vmem:[%s1386_s4] sm:$0xff]  ;;  %v826_v37 = vld [vmem:[%s1386_s4 + $0x8] ss:$0 sm:$0xff] }
  0x34   : > { %1003 = vmatprep.subr.bf16.mxu1 %v1102_v32  ;;  %v491_v63 = vrot.slane %v462_v54, %v490_v50  ;;  %v505_v0 = vrot.slane %v462_v54, %v504_v51  ;;  %v519_v1 = vrot.slane %v462_v54, %v518_v52  ;;  %v473_v3 = vrot.slane %v462_v54, %v472_v55  ;;  %v827_v50 = vld [vmem:[%s1387_s5] ss:$0 sm:$0xff]  ;;  %v565_v55 = vld [vmem:[%s1390_s8 + $0x18] sm:$0xff] }
  0x35   : > { %979 = vmatpush3.bf16.msra.mxu0 %v976_v9  ;;  %v482_v4 = vrot.slane %v462_v54, %v481_v56  ;;  %v467_v5 = vrot.slane %v462_v54, %v466_v59  ;;  %v539_v33 = vrot.slane %v462_v54, %v538_v11 }
  0x36   : > { %981 = vmatprep.subr.bf16.mxu0 %v980_v15 }
  0x37   : > { %1005 = vmatpush3.bf16.msra.mxu1 %v1004_v36 }
  0x38   : > { %1006 = vmatprep.subr.bf16.mxu1 %v1102_v32 }
  0x39   : > { %983 = vmatpush3.bf16.msra.mxu0 %v980_v15 }
  0x3a   : > { %985 = vmatprep.subr.bf16.mxu0 %v984_v18 }
  0x3b   : > { %1008 = vmatpush3.bf16.msra.mxu1 %v1007_v39 }
  0x3c   : > { %1009 = vmatprep.subr.bf16.mxu1 %v1102_v32 }
  0x3d   : > { %987 = vmatpush3.bf16.msra.mxu0 %v984_v18 }
  0x3e   : > { %989 = vmatprep.subr.bf16.mxu0 %v988_v21 }
  0x3f   : > { %1011 = vmatpush3.bf16.msra.mxu1 %v1010_v42 }
  0x40   : > { %1012 = vmatprep.subr.bf16.mxu1 %v1102_v32 }
  0x41   : > { %991 = vmatpush3.bf16.msra.mxu0 %v988_v21 }
  0x42   : > { %993 = vmatprep.subr.bf16.mxu0 %v992_v24 }
  0x45   : > { %995 = vmatpush3.bf16.msra.mxu0 %v992_v24  ;;  %v532_v24 = vsub.s32 6, %v465_v47 }
  0x46   : > { %997 = vmatprep.subr.bf16.mxu0 %v996_v27 }
  0x47   : > { %v533_v36 = vrot.slane %v462_v54, %v532_v24  ;;  %v564_v54 = vld [vmem:[%s1390_s8 + $0x10] sm:$0xff] }
  0x48   : > { %v1016_v56 = vpack.c.bf16 %v565_v55, %v564_v54 }
  0x49   : > { %999 = vmatpush3.bf16.msra.mxu0 %v996_v27 }
  0x4c   : > { %912 = vmatmul.mubr.f32.vlgmr.msra.gmra.mrb[0].mxu0 %v347_v28 }
  0xac   : > { %v453_v48 = vpop.permute.xlu0 %452 }
  0xb0   : > { %v458_v61 = vpop.permute.xlu0 %457 }
 0x11f   : > { %v913_v53 = vpop.f32.mrb[0].mxu0 }
 0x120   : > { %v443_v57 = vadd.f32 %v913_v53, %v825_v49  ;;  %v437_v58 = vpop.f32.mrb[1].mxu0 }
 0x121   : > { %v438_v60 = vadd.f32 %v825_v49, %v437_v58  ;;  %v563_v49 = vld [vmem:[%s1390_s8 + $0x8] sm:$0xff] }
 0x122   : > { %v447_v62 = vmax.f32 %v443_v57, 0.0  ;;  %v566_v57 = vld [vmem:[%s1390_s8 + $0x20] sm:$0xff]  ;;  %v567_v58 = vld [vmem:[%s1390_s8 + $0x28] sm:$0xff] }
 0x123   : > { %v446_v2 = vmax.f32 %v438_v60, 0.0  ;;  %v1019_v59 = vpack.c.bf16 %v567_v58, %v566_v57  ;;  %v568_v60 = vld [vmem:[%s1390_s8 + $0x30] sm:$0xff] }
 0x124   : > { %v461_v6 = vmul.f32 %v458_v61, %v447_v62  ;;  %v570_v62 = vld [vmem:[%s1390_s8 + $0x40] sm:$0xff] }
 0x125   : > { %v460_v7 = vmul.f32 %v453_v48, %v446_v2  ;;  %v562_v48 = vld [vmem:[%s1390_s8] sm:$0xff]  ;;  %v573_v2 = vld [vmem:[%s1390_s8 + $0x58] sm:$0xff] }
 0x126   : > { %v493_v8 = vmul.f32 %v491_v63, %v461_v6  ;;  %v507_v9 = vmul.f32 %v505_v0, %v461_v6  ;;  %v521_v10 = vmul.f32 %v519_v1, %v461_v6  ;;  %v540_v39 = vmul.f32 %v539_v33, %v461_v6 }
 0x127   : > { %v474_v12 = vmul.f32 %v473_v3, %v460_v7  ;;  %v483_v13 = vmul.f32 %v482_v4, %v460_v7  ;;  %v492_v14 = vmul.f32 %v491_v63, %v460_v7  ;;  %v468_v15 = vmul.f32 %v467_v5, %v460_v7  ;;  %v571_v63 = vld [vmem:[%s1390_s8 + $0x48] sm:$0xff]  ;;  %v574_v4 = vld [vmem:[%s1390_s8 + $0x60] sm:$0xff] }
 0x128   : > { %v498_v16 = vrot.slane %v493_v8, 4  ;;  %v506_v17 = vmul.f32 %v505_v0, %v460_v7  ;;  %v512_v18 = vrot.slane %v507_v9, 5  ;;  %v526_v21 = vrot.slane %v521_v10, 6  ;;  %v575_v5 = vld [vmem:[%s1390_s8 + $0x68] sm:$0xff]  ;;  %v577_v8 = vld [vmem:[%s1390_s8 + $0x78] sm:$0xff] }
 0x129   : > { %v476_v19 = vrot.slane %v474_v12, 1  ;;  %v497_v20 = vrot.slane %v492_v14, 4  ;;  %v520_v22 = vmul.f32 %v519_v1, %v460_v7  ;;  %v485_v26 = vrot.slane %v483_v13, 2  ;;  %v572_v1 = vld [vmem:[%s1390_s8 + $0x50] sm:$0xff]  ;;  %v828_v12 = vld [vmem:[#allocation2] ss:$0 sm:$0xff] }
 0x12a   : > { %v511_v23 = vrot.slane %v506_v17, 5  ;;  %v534_v41 = vmul.f32 %v533_v36, %v461_v6  ;;  %v549_v42 = vmul.f32 %v826_v37, %v461_v6  ;;  %v542_v44 = vrot.slane %v540_v39, 1  ;;  %v576_v7 = vld [vmem:[%s1390_s8 + $0x70] sm:$0xff] }
 0x12b   : > { %v478_v25 = vadd.f32 %v476_v19, %v468_v15  ;;  %v499_v27 = vsel %vm496_vm2, %v497_v20, %v498_v16  ;;  %v525_v28 = vrot.slane %v520_v22, 6  ;;  %v1013_v52 = vpack.c.bf16 %v563_v49, %v562_v48 }
 0x12c   : > { %v513_v29 = vsel %vm510_vm1, %v511_v23, %v512_v18  ;;  %v551_v47 = vrot.slane %v549_v42, 2  ;;  %v1025_v0 = vpack.c.bf16 %v571_v63, %v570_v62  ;;  %v1028_v3 = vpack.c.bf16 %v573_v2, %v572_v1 }
 0x12d   : > { %v487_v30 = vadd.f32 %v485_v26, %v478_v25  ;;  %v527_v31 = vsel %vm524_vm3, %v525_v28, %v526_v21  ;;  %v1031_v6 = vpack.c.bf16 %v575_v5, %v574_v4  ;;  %v1034_v9 = vpack.c.bf16 %v577_v8, %v576_v7 }
 0x12f   : > { %v501_v34 = vadd.f32 %v499_v27, %v487_v30 }
 0x131   : > { %v515_v38 = vadd.f32 %v513_v29, %v501_v34 }
 0x133   : > { %v529_v40 = vadd.f32 %v527_v31, %v515_v38 }
 0x135   : > { %v535_v43 = vadd.f32 %v534_v41, %v529_v40 }
 0x137   : > { %v544_v46 = vadd.f32 %v542_v44, %v535_v43 }
 0x139   : > { %v553_v51 = vadd.f32 %v551_v47, %v544_v46 }
 0x13b   : > { %v561_v53 = vadd.f32 %v827_v50, %v553_v51 }
 0x13d   : > { %931 = vmatmul.mubr.msk.f32.vlgmr.msra.gmra.mrb[0].mxu1 %vm593_vm4, %v561_v53 }
 0x13e   : > { %1014 = vmatpush3.bf16.msra.mxu1 %v1013_v52  ;;  %965 = vmatprep.mubr.msk.f32.mxu1 %vm1103_vm0, %v1104_v35  ;;  %v569_v35 = vld [vmem:[%s1390_s8 + $0x38] sm:$0xff] }
 0x13f   : > { %1015 = vmatprep.subr.bf16.mxu1 %v1102_v32  ;;  %v1022_v61 = vpack.c.bf16 %v569_v35, %v568_v60 }
 0x142   : > { %1017 = vmatpush3.bf16.msra.mxu1 %v1016_v56 }
 0x143   : > { %1018 = vmatprep.subr.bf16.mxu1 %v1102_v32 }
 0x146   : > { %1020 = vmatpush3.bf16.msra.mxu1 %v1019_v59 }
 0x147   : > { %1021 = vmatprep.subr.bf16.mxu1 %v1102_v32 }
 0x14a   : > { %1023 = vmatpush3.bf16.msra.mxu1 %v1022_v61 }
 0x14b   : > { %1024 = vmatprep.subr.bf16.mxu1 %v1102_v32 }
 0x14e   : > { %1026 = vmatpush3.bf16.msra.mxu1 %v1025_v0 }
 0x14f   : > { %1027 = vmatprep.subr.bf16.mxu1 %v1102_v32 }
 0x152   : > { %1029 = vmatpush3.bf16.msra.mxu1 %v1028_v3 }
 0x153   : > { %1030 = vmatprep.subr.bf16.mxu1 %v1102_v32 }
 0x156   : > { %1032 = vmatpush3.bf16.msra.mxu1 %v1031_v6 }
 0x157   : > { %1033 = vmatprep.subr.bf16.mxu1 %v1102_v32 }
 0x15a   : > { %1035 = vmatpush3.bf16.msra.mxu1 %v1034_v9 }
 0x15d   : > { %966 = vmatmul.mubr.f32.vlgmr.msra.gmra.mrb[2].mxu1 %v1302_v45 }
 0x210   : > { %v663_v10 = vpop.f32.mrb[0].mxu1 }
 0x211   : > { %v932_v11 = vpop.f32.mrb[1].mxu1  ;;  %v664_v13 = vadd.f32 %v828_v12, %v663_v10 }
 0x213   : > { %v667_v14 = vmax.f32 %v664_v13, 0.0 }
 0x230   : > { %v740_v15 = vpop.f32.mrb[2].mxu1 }
 0x231   : > { %v741_v16 = vadd.f32 %v740_v15, %v667_v14  ;;  %v967_v17 = vpop.f32.mrb[3].mxu1 }
 0x233   : > { %744 = vst [vmem:[%s345_s12] sm:$0x3] %v741_v16  ;;  %830 = vst [vmem:[%s345_s12 - $0x2] sm:$0x30] %v741_v16 }
 0x234 PF: > { %s20_s30 = sadd.s32 1, %s1098_s30  }
 0x235   : > { %p17_p2 = scmp.ge.s32.totalorder %s20_s30, 4  }
 0x237   :  { %19 = sbr.rel (!%p17_p2) target bundleno = 1 (0x1), region = 92 }
 0x23e   :  { %768 = vsyncpa [#allocation3], 1 }
 0x23f   :  { %770 = vsyncpa [#allocation3 + $0x1], 1 }

// kernel: forward.15
= control target key start
LH: loop header
LB: loop body
LE: loop exit
PB: predicated region body
PF: predicated region fallthrough
CT: control target
= control target key end

     0   :  { %s1600_s21 = smov 0   ;;  %s1863_s0 = inlined_call_operand.vmem [shape: f32[2,4,9,64], index: 0, kind: input, shape index: {}]   ;;  %s1864_s1 = inlined_call_operand.vmem [shape: f32[4,9,1], index: 1, kind: input, shape index: {}]   ;;  %s1865_s2 = inlined_call_operand.vmem [shape: f32[9,64], index: 2, kind: input, shape index: {}]   ;;  %s1866_s3 = inlined_call_operand.vmem [shape: f32[1,64], index: 3, kind: input, shape index: {}]   ;;  %s1867_s4 = inlined_call_operand.vmem [shape: f32[64,128], index: 4, kind: input, shape index: {}]   ;;  %s1868_s5 = inlined_call_operand.vmem [shape: f32[1,128], index: 5, kind: input, shape index: {}]   ;;  %s1869_s6 = inlined_call_operand.vmem [shape: f32[64,64], index: 6, kind: input, shape index: {}]   ;;  %s1870_s7 = inlined_call_operand.vmem [shape: f32[1,64], index: 7, kind: input, shape index: {}]   ;;  %s1871_s8 = inlined_call_operand.vmem [shape: f32[9,64], index: 8, kind: input, shape index: {}]   ;;  %s1872_s9 = inlined_call_operand.vmem [shape: f32[1,64], index: 9, kind: input, shape index: {}]   ;;  %s1873_s10 = inlined_call_operand.vmem [shape: f32[64,128], index: 10, kind: input, shape index: {}]   ;;  %s1874_s11 = inlined_call_operand.vmem [shape: f32[1,128], index: 11, kind: input, shape index: {}]   ;;  %s1875_s12 = inlined_call_operand.vmem [shape: f32[2,2,2,128], index: 12, kind: output, shape index: {}]  }
   0x1 LB: > { %s1209_s22 = sadd.s32 4294967295, %s1529_s21   ;;  %p1213_p0 = scmp.ge.s32.totalorder %s1529_s21, 1  ;;  %s1529_s21 = sphi %s1600_s21, %s22_s21  }
   0x2   : > { %p362_p1 = scmp.lt.s32.totalorder %s1529_s21, 3 }
   0x4   : > { %p363_p2 = pnand %p1213_p0, %p362_p1 }
   0x5   : > { %v509_v0 = vld [vmem:[%s1867_s4] sm:$0xff] (!%p363_p2)  ;;  %v510_v1 = vld [vmem:[%s1867_s4 + $0x8] sm:$0xff] (!%p363_p2)  ;;  %v427_v3 = vlaneseq (!%p363_p2)  ;;  %v1531_v4 = vmov (!%p363_p2), 0.0|0.0   ;;  %v511_v7 = vld [vmem:[%s1867_s4 + $0x10] sm:$0xff] (!%p363_p2)  ;;  %vm1532_vm0 = vmmov (!%p363_p2), 0   ;;  %v1533_v9 = vmov (!%p363_p2), 0.0  }
   0x6   : > { %366 = sbr.rel (%p363_p2) target bundleno = 521 (0x209), region = 68  ;;  %v599_v2 = vld [vmem:[%s1869_s6] sm:$0xff] (!%p363_p2)  ;;  %1421 = vmatprep.subr.bf16.mxu0 (!%p363_p2), %v1531_v4  ;;  %v1422_v5 = vpack.c.bf16 (!%p363_p2), %v510_v1, %v509_v0  ;;  %v600_v6 = vld [vmem:[%s1869_s6 + $0x8] sm:$0xff] (!%p363_p2)  ;;  %v512_v8 = vld [vmem:[%s1867_s4 + $0x18] sm:$0xff] (!%p363_p2)  ;;  %1323 = vmatprep.mubr.msk.f32.mxu0 (!%p363_p2), %vm1532_vm0, %v1533_v9  ;;  %p404_p3 = scmp.lt.s32.totalorder (!%p363_p2), %s1209_s22, 1  ;;  %v1534_v18 = vmov (!%p363_p2), 0  }
   0x7   : > { %v1629_v10 = vpack.c.bf16 (!%p363_p2), %v600_v6, %v599_v2  ;;  %v601_v11 = vld [vmem:[%s1869_s6 + $0x10] sm:$0xff] (!%p363_p2)  ;;  %v602_v12 = vld [vmem:[%s1869_s6 + $0x18] sm:$0xff] (!%p363_p2)  ;;  %v1637_v13 = vshrl.u32 (!%p363_p2), %v427_v3, 7  ;;  %v1425_v14 = vpack.c.bf16 (!%p363_p2), %v512_v8, %v511_v7  ;;  %v603_v16 = vld [vmem:[%s1869_s6 + $0x20] sm:$0xff] (!%p363_p2)  ;;  %1521 = vset.pattern.permute.xlu0 (!%p363_p2), %v1534_v18  ;;  %vm524_vm1 = vcmask (!%p363_p2), 523264   ;;  %1522 = vset.pattern.permute.xlu1 (!%p363_p2), %v1534_v18 }
   0x8   : > { %1423 = vmatpush3.bf16.msra.mxu0 (!%p363_p2), %v1422_v5  ;;  %v1639_v15 = vpack.c.bf16 (!%p363_p2), %v602_v12, %v601_v11  ;;  %v604_v17 = vld [vmem:[%s1869_s6 + $0x28] sm:$0xff] (!%p363_p2)  ;;  %v513_v19 = vld [vmem:[%s1867_s4 + $0x20] sm:$0xff] (!%p363_p2)  ;;  %v1663_v23 = vld [vmem:[%s1867_s4 + $0x30] sm:$0xff] (!%p363_p2)  ;;  %vm495_vm2 = vcmask (!%p363_p2), 1043456  }
   0x9   : > { %1424 = vmatprep.subr.bf16.mxu0 (!%p363_p2), %v1531_v4  ;;  %1434 = vmatprep.subr.bf16.mxu1 (!%p363_p2), %v1629_v10  ;;  %v514_v20 = vld [vmem:[%s1867_s4 + $0x28] sm:$0xff] (!%p363_p2)  ;;  %v429_v21 = vsub.s32 (!%p363_p2), 0, %v1637_v13  ;;  %v435_v22 = vsub.s32 (!%p363_p2), 1, %v1637_v13  ;;  %v425_v24 = vld [vmem:[%s1865_s2] sm:$0xff] (!%p363_p2)  ;;  %v441_v25 = vsub.s32 (!%p363_p2), 2, %v1637_v13  ;;  %v1671_v26 = vpack.c.bf16 (!%p363_p2), %v604_v17, %v603_v16  ;;  %v516_v27 = vld [vmem:[%s1867_s4 + $0x38] sm:$0xff] (!%p363_p2) }
   0xa   : > { %1436 = vmatpush3.bf16.msra.mxu1 (!%p363_p2), %v1629_v10  ;;  %v605_v28 = vld [vmem:[%s1869_s6 + $0x30] sm:$0xff] (!%p363_p2)  ;;  %v450_v31 = vsub.s32 (!%p363_p2), 3, %v1637_v13  ;;  %v697_v32 = vld [vmem:[%s1864_s1] sm:$0xff] (!%p363_p2)  ;;  %v1428_v33 = vpack.c.bf16 (!%p363_p2), %v514_v20, %v513_v19  ;;  %v606_v34 = vld [vmem:[%s1869_s6 + $0x38] sm:$0xff] (!%p363_p2)  ;;  %v456_v38 = vsub.s32 (!%p363_p2), 4, %v1637_v13  ;;  %v462_v39 = vsub.s32 (!%p363_p2), 5, %v1637_v13 }
   0xb   : > { %1438 = vmatprep.subr.bf16.mxu1 (!%p363_p2), %v1639_v15  ;;  %v430_v29 = vrot.slane (!%p363_p2), %v425_v24, %v429_v21  ;;  %v436_v30 = vrot.slane (!%p363_p2), %v425_v24, %v435_v22  ;;  %v442_v37 = vrot.slane (!%p363_p2), %v425_v24, %v441_v25  ;;  %701 = vperm.xlu0 (!%p363_p2), %1521, %v697_v32   ;;  %v471_v44 = vsub.s32 (!%p363_p2), 6, %v1637_v13  ;;  %v1233_v45 = vld [vmem:[%s1864_s1 + $0x10] sm:$0xff] (!%p363_p2)  ;;  %v1236_v50 = vld [vmem:[%s1864_s1 + $0x20] sm:$0xff] (!%p363_p2)  ;;  %v1224_v57 = vld [vmem:[%s1865_s2 + $0x8] ss:$0 sm:$0xff] (!%p363_p2) }
   0xc   : > { %1426 = vmatpush3.bf16.msra.mxu0 (!%p363_p2), %v1425_v14  ;;  %v451_v43 = vrot.slane (!%p363_p2), %v425_v24, %v450_v31  ;;  %v457_v47 = vrot.slane (!%p363_p2), %v425_v24, %v456_v38  ;;  %v463_v48 = vrot.slane (!%p363_p2), %v425_v24, %v462_v39  ;;  %v480_v49 = vsub.s32 (!%p363_p2), 7, %v1637_v13  ;;  %v698_v62 = vld [vmem:[%s1864_s1 + $0x8] sm:$0x1] (!%p363_p2)  ;;  %885 = vperm.xlu1 (!%p363_p2), %1522, %v1236_v50   ;;  %v1239_v2 = vld [vmem:[%s1864_s1 + $0x30] sm:$0xff] (!%p363_p2) }
   0xd   : > { %s1877_s22 = smov (!%p404_p3, %s1209_s22), 1  ;;  %1427 = vmatprep.subr.bf16.mxu0 %v1531_v4  ;;  %v1431_v51 = vpack.c.bf16 %v516_v27, %v1663_v23  ;;  %v1724_v52 = vpack.c.bf16 %v606_v34, %v605_v28  ;;  %v472_v55 = vrot.slane %v425_v24, %v471_v44  ;;  %v1062_v32 = vld [vmem:[%s1873_s10 + $0x8] sm:$0xff] }
   0xe   : > { %s1247_s15 = sshll.u32 %s1877_s22, 6  ;;  %1440 = vmatpush3.bf16.msra.mxu1 %v1639_v15  ;;  %v481_v61 = vrot.slane %v425_v24, %v480_v49  ;;  %v1225_v24 = vld [vmem:[%s1866_s3] ss:$0 sm:$0xff]  ;;  %s1248_s23 = sshll.u32 %s1877_s22, 2 }
   0xf   : > { %s1682_s26 = scalar_lea.vmem %s1863_s0, %s1247_s15  ;;  %1442 = vmatprep.subr.bf16.mxu1 %v1671_v26  ;;  %796 = vperm.xlu0 %1521, %v1233_v45   ;;  %s413_s27 = scalar_lea.vmem %s1875_s12, %s1248_s23 }
  0x10   : > { %v414_v35 = vld [vmem:[%s1682_s26] sm:$0xff]  ;;  %v1697_v36 = vld [vmem:[%s1682_s26 + $0x10] sm:$0xff]  ;;  %1429 = vmatpush3.bf16.msra.mxu0 %v1428_v33  ;;  %v415_v56 = vld [vmem:[%s1682_s26 + $0x8] sm:$0x1]  ;;  %974 = vperm.xlu1 %1522, %v1239_v2  }
  0x11   : > { %v1220_v40 = vld [vmem:[%s1682_s26 + $0x20] sm:$0xff]  ;;  %v431_v41 = vmul.f32 %v430_v29, %v414_v35  ;;  %v437_v42 = vmul.f32 %v1697_v36, %v436_v30  ;;  %1342 = vmatprep.mubr.msk.f32.mxu1 %vm524_vm1, %v414_v35  ;;  %v443_v46 = vmul.f32 %v442_v37, %v414_v35  ;;  %v1727_v53 = vld [vmem:[%s1682_s26 + $0x30] sm:$0xff]  ;;  %1430 = vmatprep.subr.bf16.mxu0 %v1531_v4  ;;  %v1221_v29 = vld [vmem:[%s1682_s26 + $0x28] sm:$0x1] }
  0x12   : > { %v452_v59 = vmul.f32 %v1220_v40, %v451_v43  ;;  %v464_v60 = vmul.f32 %v1220_v40, %v463_v48  ;;  %1444 = vmatpush3.bf16.msra.mxu1 %v1671_v26  ;;  %v458_v0 = vmul.f32 %v1727_v53, %v457_v47  ;;  %v473_v1 = vmul.f32 %v472_v55, %v414_v35  ;;  %v1219_v30 = vld [vmem:[%s1682_s26 + $0x18] sm:$0x1] }
  0x13   : > { %v438_v54 = vadd.f32 %v437_v42, %v431_v41  ;;  %v445_v58 = vrot.slane %v443_v46, 1  ;;  %1446 = vmatprep.subr.bf16.mxu1 %v1724_v52  ;;  %v491_v3 = vmul.f32 %v1224_v57, %v414_v35  ;;  %v492_v5 = vmul.f32 %v1224_v57, %v415_v56  ;;  %706 = vperm.xlu0 %1521, %v698_v62   ;;  %v1064_v33 = vld [vmem:[%s1873_s10 + $0x18] sm:$0xff]  ;;  %v1065_v35 = vld [vmem:[%s1873_s10 + $0x20] sm:$0xff] }
  0x14   : > { %1432 = vmatpush3.bf16.msra.mxu0 %v1431_v51  ;;  %v466_v7 = vrot.slane %v464_v60, 1  ;;  %v482_v8 = vmul.f32 %v1697_v36, %v481_v61  ;;  %v475_v12 = vrot.slane %v473_v1, 3  ;;  %v1068_v41 = vld [vmem:[%s1873_s10 + $0x38] sm:$0xff]  ;;  %v1228_v46 = vld [vmem:[%s1870_s7] ss:$0 sm:$0xff] }
  0x15   : > { %v447_v63 = vadd.f32 %v445_v58, %v438_v54  ;;  %1450 = vmatprep.subr.bf16.mxu0 %v1629_v10  ;;  %v496_v14 = vrot.slane %v491_v3, 4  ;;  %v497_v16 = vrot.slane %v492_v5, 4  ;;  %v1240_v54 = vld [vmem:[%s1871_s8 + $0x8] ss:$0 sm:$0xff]  ;;  %v978_v3 = vld [vmem:[%s1871_s8] sm:$0xff] }
  0x16   : > { %1448 = vmatpush3.bf16.msra.mxu1 %v1724_v52  ;;  %v484_v18 = vrot.slane %v482_v8, 3 }
  0x17   : > { %v453_v6 = vadd.f32 %v452_v59, %v447_v63  ;;  %1466 = vmatprep.subr.bf16.mxu1 %v1629_v10  ;;  %v498_v20 = vsel %vm495_vm2, %v496_v14, %v497_v16  ;;  %v983_v16 = vrot.slane %v978_v3, %v429_v21  ;;  %v1016_v21 = vrot.slane %v978_v3, %v462_v39 }
  0x19   : > { %v459_v11 = vadd.f32 %v458_v0, %v453_v6  ;;  %1343 = vmatmul.mubr.msk.f32.vlgmr.msra.gmra.mrb[0].mxu1 %vm524_vm1, %v415_v56 }
  0x1a   : > { %1468 = vmatpush3.bf16.msra.mxu1 %v1629_v10  ;;  %1380 = vmatprep.mubr.msk.f32.mxu1 %vm524_vm1, %v1220_v40  ;;  %v1067_v40 = vld [vmem:[%s1873_s10 + $0x30] sm:$0xff] }
  0x1b   : > { %v468_v17 = vadd.f32 %v466_v7, %v459_v11  ;;  %1470 = vmatprep.subr.bf16.mxu1 %v1639_v15  ;;  %v1507_v42 = vpack.c.bf16 %v1068_v41, %v1067_v40  ;;  %v995_v11 = vrot.slane %v978_v3, %v441_v25 }
  0x1d   : > { %v477_v19 = vadd.f32 %v475_v12, %v468_v17  ;;  %v989_v17 = vrot.slane %v978_v3, %v435_v22  ;;  %v1025_v22 = vrot.slane %v978_v3, %v471_v44 }
  0x1e   : > { %1472 = vmatpush3.bf16.msra.mxu1 %v1639_v15 }
  0x1f   : > { %v486_v23 = vadd.f32 %v484_v18, %v477_v19  ;;  %1474 = vmatprep.subr.bf16.mxu1 %v1671_v26 }
  0x21   : > { %v500_v27 = vadd.f32 %v498_v20, %v486_v23  ;;  %v1004_v23 = vrot.slane %v978_v3, %v450_v31  ;;  %v1010_v31 = vrot.slane %v978_v3, %v456_v38  ;;  %v1241_v38 = vld [vmem:[%s1872_s9] ss:$0 sm:$0xff] }
  0x22   : > { %1476 = vmatpush3.bf16.msra.mxu1 %v1671_v26 }
  0x23   : > { %v508_v28 = vadd.f32 %v1225_v24, %v500_v27  ;;  %1478 = vmatprep.subr.bf16.mxu1 %v1724_v52 }
  0x25   : > { %1324 = vmatmul.mubr.msk.f32.vlgmr.msra.gmra.mrb[0].mxu0 %vm524_vm1, %v508_v28 }
  0x26   : > { %1452 = vmatpush3.bf16.msra.mxu0 %v1629_v10  ;;  %1361 = vmatprep.mubr.msk.f32.mxu0 %vm524_vm1, %v1697_v36  ;;  %v1066_v36 = vld [vmem:[%s1873_s10 + $0x28] sm:$0xff] }
  0x27   : > { %1454 = vmatprep.subr.bf16.mxu0 %v1639_v15  ;;  %1480 = vmatpush3.bf16.msra.mxu1 %v1724_v52  ;;  %v1504_v37 = vpack.c.bf16 %v1066_v36, %v1065_v35 }
  0x28   : > { %1497 = vmatprep.subr.bf16.mxu1 %v1531_v4 }
  0x2a   : > { %1456 = vmatpush3.bf16.msra.mxu0 %v1639_v15  ;;  %1381 = vmatmul.mubr.msk.f32.vlgmr.msra.gmra.mrb[2].mxu1 %vm524_vm1, %v1221_v29 }
  0x2b   : > { %1458 = vmatprep.subr.bf16.mxu0 %v1671_v26  ;;  %1418 = vmatprep.mubr.msk.f32.mxu1 %vm1532_vm0, %v1533_v9  ;;  %v1223_v9 = vld [vmem:[%s1682_s26 + $0x38] sm:$0x1] }
  0x2e   : > { %1460 = vmatpush3.bf16.msra.mxu0 %v1671_v26 }
  0x2f   : > { %1462 = vmatprep.subr.bf16.mxu0 %v1724_v52 }
  0x32   : > { %1464 = vmatpush3.bf16.msra.mxu0 %v1724_v52 }
  0x33   : > { %1482 = vmatprep.subr.bf16.mxu0 %v1629_v10 }
  0x35   : > { %1362 = vmatmul.mubr.msk.f32.vlgmr.msra.gmra.mrb[2].mxu0 %vm524_vm1, %v1219_v30 }
  0x36   : > { %1484 = vmatpush3.bf16.msra.mxu0 %v1629_v10  ;;  %1399 = vmatprep.mubr.msk.f32.mxu0 %vm524_vm1, %v1727_v53  ;;  %v1061_v10 = vld [vmem:[%s1873_s10] sm:$0xff] }
  0x37   : > { %1486 = vmatprep.subr.bf16.mxu0 %v1639_v15 }
  0x3a   : > { %1488 = vmatpush3.bf16.msra.mxu0 %v1639_v15  ;;  %v1498_v15 = vpack.c.bf16 %v1062_v32, %v1061_v10 }
  0x3b   : > { %1490 = vmatprep.subr.bf16.mxu0 %v1671_v26 }
  0x3c   : > { %1499 = vmatpush3.bf16.msra.mxu1 %v1498_v15 }
  0x3d   : > { %1500 = vmatprep.subr.bf16.mxu1 %v1531_v4 }
  0x3e   : > { %1492 = vmatpush3.bf16.msra.mxu0 %v1671_v26  ;;  %v1063_v26 = vld [vmem:[%s1873_s10 + $0x10] sm:$0xff] }
  0x3f   : > { %1494 = vmatprep.subr.bf16.mxu0 %v1724_v52  ;;  %v1501_v34 = vpack.c.bf16 %v1064_v33, %v1063_v26 }
  0x41   : > { %1502 = vmatpush3.bf16.msra.mxu1 %v1501_v34  ;;  %v1034_v34 = vrot.slane %v978_v3, %v480_v49  ;;  %v1226_v49 = vld [vmem:[%s1868_s5] ss:$0 sm:$0xff] }
  0x42   : > { %1496 = vmatpush3.bf16.msra.mxu0 %v1724_v52  ;;  %1503 = vmatprep.subr.bf16.mxu1 %v1531_v4 }
  0x45   : > { %1400 = vmatmul.mubr.msk.f32.vlgmr.msra.gmra.mrb[4].mxu0 %vm524_vm1, %v1223_v9  ;;  %1505 = vmatpush3.bf16.msra.mxu1 %v1504_v37 }
  0x46   : > { %1506 = vmatprep.subr.bf16.mxu1 %v1531_v4 }
  0x49   : > { %1508 = vmatpush3.bf16.msra.mxu1 %v1507_v42 }
  0x8a   : > { %v702_v43 = vpop.permute.xlu0 %701 }
  0x8b   : > { %v886_v12 = vpop.permute.xlu1 %885 }
  0x8e   : > { %v797_v45 = vpop.permute.xlu0 %796 }
  0x8f   : > { %v975_v33 = vpop.permute.xlu1 %974 }
  0x92   : > { %v707_v51 = vpop.permute.xlu0 %706 }
  0xec   : > { %v1344_v47 = vpop.f32.mrb[0].mxu1 }
  0xed   : > { %v692_v48 = vadd.f32 %v1344_v47, %v1228_v46  ;;  %v686_v50 = vpop.f32.mrb[1].mxu1 }
  0xee   : > { %v687_v4 = vadd.f32 %v1228_v46, %v686_v50  ;;  %v1242_v50 = vld [vmem:[%s1874_s11] ss:$0 sm:$0xff] }
  0xef   : > { %v696_v52 = vmax.f32 %v692_v48, 0.0 }
  0xf0   : > { %v695_v53 = vmax.f32 %v687_v4, 0.0 }
  0xf1   : > { %v710_v55 = vmul.f32 %v707_v51, %v696_v52 }
  0xf2   : > { %v709_v56 = vmul.f32 %v702_v43, %v695_v53 }
  0xf3   : > { %v1045_v57 = vmul.f32 %v1240_v54, %v710_v55 }
  0xf4   : > { %v1044_v58 = vmul.f32 %v1240_v54, %v709_v56  ;;  %v996_v20 = vmul.f32 %v995_v11, %v709_v56  ;;  %v984_v24 = vmul.f32 %v983_v16, %v709_v56  ;;  %v1026_v37 = vmul.f32 %v1025_v22, %v709_v56 }
  0xf5   : > { %v1049_v60 = vrot.slane %v1045_v57, 4 }
  0xf6   : > { %v1048_v62 = vrot.slane %v1044_v58, 4  ;;  %v998_v29 = vrot.slane %v996_v20, 1  ;;  %v1028_v43 = vrot.slane %v1026_v37, 3 }
  0xf8   : > { %v594_v59 = vpop.f32.mrb[0].mxu0  ;;  %v1050_v63 = vsel %vm495_vm2, %v1048_v62, %v1049_v60 }
  0xf9   : > { %v1325_v61 = vpop.f32.mrb[1].mxu0  ;;  %v595_v4 = vadd.f32 %v1226_v49, %v594_v59 }
  0xfb   : > { %v598_v54 = vmax.f32 %v595_v4, 0.0 }
  0xfd   : > { %v1382_v0 = vpop.f32.mrb[2].mxu1 }
  0xfe   : > { %v872_v1 = vpop.f32.mrb[3].mxu1 }
  0xff   : > { %v873_v2 = vadd.f32 %v1228_v46, %v872_v1 }
 0x101   : > { %v880_v8 = vmax.f32 %v873_v2, 0.0 }
 0x103   : > { %v888_v19 = vmul.f32 %v886_v12, %v880_v8 }
 0x105   : > { %v1005_v30 = vmul.f32 %v1004_v23, %v888_v19  ;;  %v1017_v35 = vmul.f32 %v1016_v21, %v888_v19 }
 0x107   : > { %v1019_v42 = vrot.slane %v1017_v35, 1 }
 0x108   : > { %v1363_v5 = vpop.f32.mrb[2].mxu0 }
 0x109   : > { %v783_v6 = vpop.f32.mrb[3].mxu0 }
 0x10a   : > { %v784_v7 = vadd.f32 %v1228_v46, %v783_v6 }
 0x10c   : > { %v791_v14 = vmax.f32 %v784_v7, 0.0 }
 0x10e   : > { %v799_v18 = vmul.f32 %v797_v45, %v791_v14 }
 0x110   : > { %v990_v27 = vmul.f32 %v989_v17, %v799_v18  ;;  %v1035_v41 = vmul.f32 %v1034_v34, %v799_v18 }
 0x112   : > { %v991_v28 = vadd.f32 %v990_v27, %v984_v24 }
 0x114   : > { %v1000_v25 = vadd.f32 %v998_v29, %v991_v28 }
 0x116   : > { %v1006_v9 = vadd.f32 %v1005_v30, %v1000_v25 }
 0x118   : > { %v1401_v10 = vpop.f32.mrb[4].mxu0 }
 0x119   : > { %v961_v32 = vpop.f32.mrb[5].mxu0 }
 0x11a   : > { %v962_v15 = vadd.f32 %v1228_v46, %v961_v32  ;;  %v1037_v46 = vrot.slane %v1035_v41, 3 }
 0x11c   : > { %v969_v26 = vmax.f32 %v962_v15, 0.0 }
 0x11e   : > { %v977_v36 = vmul.f32 %v975_v33, %v969_v26 }
 0x120   : > { %v1011_v40 = vmul.f32 %v1010_v31, %v977_v36 }
 0x122   : > { %v1012_v39 = vadd.f32 %v1011_v40, %v1006_v9 }
 0x124   : > { %v1021_v45 = vadd.f32 %v1019_v42, %v1012_v39 }
 0x126   : > { %v1030_v44 = vadd.f32 %v1028_v43, %v1021_v45 }
 0x128   : > { %v1039_v47 = vadd.f32 %v1037_v46, %v1030_v44 }
 0x12a   : > { %v1052_v48 = vadd.f32 %v1050_v63, %v1039_v47 }
 0x12c   : > { %v1060_v13 = vadd.f32 %v1241_v38, %v1052_v48 }
 0x12e   : > { %1419 = vmatmul.mubr.msk.f32.vlgmr.msra.gmra.mrb[4].mxu1 %vm524_vm1, %v1060_v13 }
 0x201   : > { %v1145_v51 = vpop.f32.mrb[4].mxu1 }
 0x202   : > { %v1146_v52 = vadd.f32 %v1242_v50, %v1145_v51  ;;  %v1420_v53 = vpop.f32.mrb[5].mxu1 }
 0x204   : > { %v1149_v55 = vmax.f32 %v1146_v52, 0.0 }
 0x206   : > { %v1150_v56 = vadd.f32 %v1149_v55, %v598_v54 }
 0x208   : > { %1151 = vst [vmem:[%s413_s27] sm:$0x3] %v1150_v56  ;;  %1244 = vst [vmem:[%s413_s27 - $0x1] sm:$0x18] %v1150_v56 }
 0x209 PF: > { %s22_s21 = sadd.s32 1, %s1529_s21  }
 0x20a   : > { %p19_p4 = scmp.ge.s32.totalorder %s22_s21, 4  }
 0x20c   :  { %21 = sbr.rel (!%p19_p4) target bundleno = 1 (0x1), region = 105 }

</bundles_post_ra>
